<compile_context>
chip_gen: v7x
topology: tpu7x:2x2x1
jax: 0.10.0
libtpu: 0.0.40
codegen_flags: <defaults>
</compile_context>

<pallas_src>
import functools

import jax
import jax.numpy as jnp
from jax.experimental import pallas as pl
from jax.experimental.pallas import tpu as pltpu

SOS_token = 0
EOS_token = 1
MAX_LENGTH = 8

LANE = 128
NEG_INF = -1e30


def _round_up(x, m):
    return (x + m - 1) // m * m


# ----------------------------------------------------------------------------
# In-kernel helpers
# ----------------------------------------------------------------------------
def _gru_cell(x, h, wih, whh, bih, bhh):
    """PyTorch nn.GRU single step. wih/whh are bf16 (Hp, 3*Hp), gate order
    [r, z, n]; biases and h are f32.

    Hp is a multiple of 128, so every gate slice is 128-lane aligned. Padded
    lanes stay exactly zero (zero weights/biases -> h'_pad = 0.5*h_pad, and
    h_pad starts at 0)."""
    Hp = h.shape[1]
    x_bf = x.astype(jnp.bfloat16)
    h_bf = h.astype(jnp.bfloat16)
    gi = jnp.dot(x_bf, wih, preferred_element_type=jnp.float32) + bih   # (1, 3Hp)
    gh = jnp.dot(h_bf, whh, preferred_element_type=jnp.float32) + bhh   # (1, 3Hp)
    r = jax.nn.sigmoid(gi[:, :Hp] + gh[:, :Hp])
    z = jax.nn.sigmoid(gi[:, Hp:2 * Hp] + gh[:, Hp:2 * Hp])
    n = jnp.tanh(gi[:, 2 * Hp:] + r * gh[:, 2 * Hp:])
    return (1.0 - z) * n + z * h


# ----------------------------------------------------------------------------
# Fused encoder + decoder kernel (runs once, grid=(1,))
# ----------------------------------------------------------------------------
def seq2seq_kernel(encx_ref,                                   # (MAX_LENGTH, Hp) bf16
                   ewih_ref, ewhh_ref, ebih_ref, ebhh_ref,
                   emb_sos_ref, wax_ref, wah_ref, ba_ref,
                   wcx_ref, wca_ref, bc_ref,
                   dwih_ref, dwhh_ref, dbih_ref, dbhh_ref,
                   wout_ref, bout_ref,
                   out_ref,                                    # (T, Vp) log-prob slab
                   enc_outs,                                   # VMEM scratch (Lp, Hp) f32
                   *, input_length, target_length, max_length):
    Hp = emb_sos_ref.shape[1]

    # encoder_outputs = zeros(MAX_LENGTH, H); rows >= input_length stay zero,
    # rows >= MAX_LENGTH (lane padding of the attention axis) must also be
    # finite because the attn matmul multiplies them by exactly-zero weights.
    enc_outs[...] = jnp.zeros_like(enc_outs)

    # ---------------- encoder ----------------
    h = jnp.zeros((1, Hp), jnp.float32)
    enc_rows = []
    for ei in range(input_length):                    # static, fully unrolled
        x = encx_ref[pl.ds(ei, 1), :]                 # (1, Hp) pre-gathered embedding
        h = _gru_cell(x, h, ewih_ref[...], ewhh_ref[...],
                      ebih_ref[...], ebhh_ref[...])
        enc_rows.append(h)                            # step output == hidden
    enc_rows += [jnp.zeros((1, Hp), jnp.float32)] * (max_length - input_length)
    # single aligned (MAX_LENGTH, Hp) store instead of per-step masked stores
    enc_outs[pl.ds(0, max_length), :] = jnp.concatenate(enc_rows, axis=0)

    # ---------------- decoder ----------------
    # decoder_input is always SOS in the reference -> its embedding contribution
    # to attn / attn_combine is loop-invariant: compute it once.
    emb_sos = emb_sos_ref[...]                                           # (1, Hp) bf16
    ax = jnp.dot(emb_sos, wax_ref[...],
                 preferred_element_type=jnp.float32) + ba_ref[...]       # (1, Lp)
    cx = jnp.dot(emb_sos, wcx_ref[...],
                 preferred_element_type=jnp.float32) + bc_ref[...]       # (1, Hp)

    out_rows = []
    for t in range(target_length):                    # static, fully unrolled
        h_bf = h.astype(jnp.bfloat16)
        # attn_weights = softmax(Linear(cat(embedded, hidden)))  (concat split)
        attn_logits = ax + jnp.dot(h_bf, wah_ref[...],
                                   preferred_element_type=jnp.float32)   # (1, Lp)
        m = jnp.max(attn_logits, axis=1, keepdims=True)
        e = jnp.exp(attn_logits - m)                  # padded lanes -> exactly 0
        attn_w = e * pl.reciprocal(jnp.sum(e, axis=1, keepdims=True), approx=True)
        # bmm(attn_weights, encoder_outputs): re-read scratch each step (cheap
        # vld) instead of pinning 16 vregs across the unrolled loop.
        attn_applied = jnp.dot(attn_w, enc_outs[...],
                               preferred_element_type=jnp.float32)       # (1, Hp)
        # attn_combine + relu  (concat split)
        x = jnp.maximum(
            cx + jnp.dot(attn_applied.astype(jnp.bfloat16), wca_ref[...],
                         preferred_element_type=jnp.float32), 0.0)       # (1, Hp)
        # GRU step
        h = _gru_cell(x, h, dwih_ref[...], dwhh_ref[...],
                      dbih_ref[...], dbhh_ref[...])
        # output projection + log_softmax (padded vocab lanes biased to -1e30)
        logits = jnp.dot(h.astype(jnp.bfloat16), wout_ref[...],
                         preferred_element_type=jnp.float32) + bout_ref[...]
        mm = jnp.max(logits, axis=1, keepdims=True)
        sh = logits - mm
        lse = jnp.log(jnp.sum(jnp.exp(sh), axis=1, keepdims=True))
        out_rows.append(sh - lse)                                        # (1, Vp)

    # single dense (T, Vp) store instead of T masked single-sublane stores
    out_ref[...] = jnp.concatenate(out_rows, axis=0)


# ----------------------------------------------------------------------------
# Wrapper: pad / split parameters to lane-aligned layouts, call the kernel.
# ----------------------------------------------------------------------------
def _pad_to(a, shape, fill=0.0):
    out = jnp.full(shape, fill, a.dtype)
    return out.at[tuple(slice(0, s) for s in a.shape)].set(a)


def _pad_gru(w, b, H, Hp):
    """(H,3H)->(Hp,3Hp) bf16, (1,3H)->(1,3Hp) f32; pad each gate block
    separately so the [r|z|n] blocks stay 128-lane aligned."""
    w_blocks = [_pad_to(w[:, g * H:(g + 1) * H], (Hp, Hp)) for g in range(3)]
    b_blocks = [_pad_to(b[:, g * H:(g + 1) * H], (1, Hp)) for g in range(3)]
    return (jnp.concatenate(w_blocks, axis=1).astype(jnp.bfloat16),
            jnp.concatenate(b_blocks, axis=1))


_VMEM_ORDER = ("enc_wih", "enc_whh", "enc_bih", "enc_bhh",
               "emb_sos", "wattn_x", "wattn_h", "battn",
               "wcomb_x", "wcomb_a", "bcomb",
               "dec_wih", "dec_whh", "dec_bih", "dec_bhh",
               "dec_wout", "dec_bout")


def _prepare_padded(params):
    H = params["hidden"]
    Hp = _round_up(H, LANE)
    Lp = _round_up(MAX_LENGTH, LANE)
    V_out = params["emb_dec"].shape[0]
    Vp = _round_up(V_out, LANE)

    ewih, ebih = _pad_gru(params["enc_wih"], params["enc_bih"], H, Hp)
    ewhh, ebhh = _pad_gru(params["enc_whh"], params["enc_bhh"], H, Hp)
    dwih, dbih = _pad_gru(params["dec_wih"], params["dec_bih"], H, Hp)
    dwhh, dbhh = _pad_gru(params["dec_whh"], params["dec_bhh"], H, Hp)

    wattn = params["dec_wattn"]          # (2H, MAX_LENGTH)  rows: [embedded | hidden]
    wcomb = params["dec_wcomb"]          # (2H, H)           rows: [embedded | attn_applied]

    return dict(
        Hp=Hp, Lp=Lp, Vp=Vp,
        # encoder embedding table stays out of the kernel; columns padded + bf16
        emb_enc=_pad_to(params["emb_enc"], (params["emb_enc"].shape[0], Hp)
                        ).astype(jnp.bfloat16),
        enc_wih=ewih, enc_whh=ewhh, enc_bih=ebih, enc_bhh=ebhh,
        # dropout == identity (eval); SOS embedding hoisted out of the kernel loop
        emb_sos=_pad_to(params["emb_dec"][SOS_token:SOS_token + 1, :],
                        (1, Hp)).astype(jnp.bfloat16),
        wattn_x=_pad_to(wattn[:H], (Hp, Lp)).astype(jnp.bfloat16),
        wattn_h=_pad_to(wattn[H:], (Hp, Lp)).astype(jnp.bfloat16),
        battn=_pad_to(params["dec_battn"], (1, Lp), fill=NEG_INF),   # f32
        wcomb_x=_pad_to(wcomb[:H], (Hp, Hp)).astype(jnp.bfloat16),
        wcomb_a=_pad_to(wcomb[H:], (Hp, Hp)).astype(jnp.bfloat16),
        bcomb=_pad_to(params["dec_bcomb"], (1, Hp)),                 # f32
        dec_wih=dwih, dec_whh=dwhh, dec_bih=dbih, dec_bhh=dbhh,
        dec_wout=_pad_to(params["dec_wout"], (Hp, Vp)).astype(jnp.bfloat16),
        dec_bout=_pad_to(params["dec_bout"], (1, Vp), fill=NEG_INF),  # f32
    )


def seq2seq_forward(params, input_tensor, target_tensor, teacher_forcing=True):
    """Mirrors Seq2Seq.forward(input_tensor, output_lang=target_tensor, ...)."""
    target_length, batch_size = target_tensor.shape
    V = params["emb_dec"].shape[0]
    L = int(input_tensor.shape[0])
    T = int(target_length)

    kp = _prepare_padded(params)
    Hp, Lp, Vp = kp["Hp"], kp["Lp"], kp["Vp"]

    # Gather only the input_length embedding rows in the wrapper (the full
    # table never enters VMEM); pad sublanes to MAX_LENGTH.
    enc_x = kp["emb_enc"][input_tensor.astype(jnp.int32)]          # (L, Hp) bf16
    enc_x = jnp.zeros((MAX_LENGTH, Hp), jnp.bfloat16).at[:L].set(enc_x)

    vmem_inputs = [enc_x] + [kp[name] for name in _VMEM_ORDER]

    def full(a):
        nd = a.ndim
        return pl.BlockSpec(a.shape, lambda i, _nd=nd: (0,) * _nd)

    out = pl.pallas_call(
        functools.partial(seq2seq_kernel, input_length=L, target_length=T,
                          max_length=MAX_LENGTH),
        out_shape=jax.ShapeDtypeStruct((T, Vp), jnp.float32),
        grid=(1,),
        in_specs=[full(a) for a in vmem_inputs],
        out_specs=pl.BlockSpec((T, Vp), lambda i: (0, 0)),
        scratch_shapes=[pltpu.VMEM((Lp, Hp), jnp.float32)],
        compiler_params=pltpu.CompilerParams(dimension_semantics=("arbitrary",)),
    )(*vmem_inputs)

    dec_out = out[:, :V]                                           # (T, V)
    # reference broadcasts the single decoded sequence over the batch dim
    outputs = jnp.broadcast_to(dec_out[:, None, :], (T, batch_size, V))
    return outputs


# ----------------------------------------------------------------------------
# Deterministic parameter init (shapes from Encoder/Decoder __init__)
# ----------------------------------------------------------------------------
def init_params(key, in_vocab, out_vocab, hidden, max_length):
    ks = jax.random.split(key, 16)
    s = 1.0 / float(hidden) ** 0.5
    u = lambda k, shape: jax.random.uniform(k, shape, jnp.float32, -s, s)
    n = lambda k, shape: jax.random.normal(k, shape, jnp.float32)
    H, L = hidden, max_length
    return dict(
        hidden=H,
        # encoder: Embedding(in_vocab, H) + GRU(H, H)
        emb_enc=n(ks[0], (in_vocab, H)),
        enc_wih=u(ks[1], (H, 3 * H)), enc_whh=u(ks[2], (H, 3 * H)),
        enc_bih=u(ks[3], (1, 3 * H)), enc_bhh=u(ks[4], (1, 3 * H)),
        # decoder
        emb_dec=n(ks[5], (out_vocab, H)),
        dec_wattn=u(ks[6], (2 * H, L)), dec_battn=u(ks[7], (1, L)),
        dec_wcomb=u(ks[8], (2 * H, H)), dec_bcomb=u(ks[9], (1, H)),
        dec_wih=u(ks[10], (H, 3 * H)), dec_whh=u(ks[11], (H, 3 * H)),
        dec_bih=u(ks[12], (1, 3 * H)), dec_bhh=u(ks[13], (1, 3 * H)),
        dec_wout=u(ks[14], (H, out_vocab)), dec_bout=u(ks[15], (1, out_vocab)),
    )


if __name__ == "__main__":
    key = jax.random.PRNGKey(0)
    H = 32                 # hidden_dim (512 in the original; small here)
    IN_VOCAB = 20          # input_lang.n_words
    OUT_VOCAB = 16         # output_lang.n_words
    input_length = 6       # <= MAX_LENGTH
    target_length = MAX_LENGTH
    batch_size = 1

    k_p, k_in, k_tg = jax.random.split(key, 3)
    params = init_params(k_p, IN_VOCAB, OUT_VOCAB, H, MAX_LENGTH)
    input_tensor = jax.random.randint(k_in, (input_length,), 0, IN_VOCAB, dtype=jnp.int32)
    target_tensor = jax.random.randint(k_tg, (target_length, batch_size), 0, OUT_VOCAB,
                                       dtype=jnp.int32)

    outputs = seq2seq_forward(params, input_tensor, target_tensor, teacher_forcing=True)
    outputs = jax.block_until_ready(outputs)

    assert outputs.shape == (target_length, batch_size, OUT_VOCAB)
    assert bool(jnp.all(jnp.isfinite(outputs)))
    # log-softmax rows must (approximately) sum to 1 in prob space
    assert bool(jnp.allclose(jnp.exp(outputs).sum(-1), 1.0, atol=1e-4))
    print("KERNEL_OK")
</pallas_src>

<mosaic_0001>
module attributes {stable_mosaic.version = 11 : i64} {
  func.func @seq2seq_kernel(%arg0: i32, %arg1: memref<8x128xbf16, #tpu.memory_space<vmem>>, %arg2: memref<128x384xbf16, #tpu.memory_space<vmem>>, %arg3: memref<128x384xbf16, #tpu.memory_space<vmem>>, %arg4: memref<1x384xf32, #tpu.memory_space<vmem>>, %arg5: memref<1x384xf32, #tpu.memory_space<vmem>>, %arg6: memref<1x128xbf16, #tpu.memory_space<vmem>>, %arg7: memref<128x128xbf16, #tpu.memory_space<vmem>>, %arg8: memref<128x128xbf16, #tpu.memory_space<vmem>>, %arg9: memref<1x128xf32, #tpu.memory_space<vmem>>, %arg10: memref<128x128xbf16, #tpu.memory_space<vmem>>, %arg11: memref<128x128xbf16, #tpu.memory_space<vmem>>, %arg12: memref<1x128xf32, #tpu.memory_space<vmem>>, %arg13: memref<128x384xbf16, #tpu.memory_space<vmem>>, %arg14: memref<128x384xbf16, #tpu.memory_space<vmem>>, %arg15: memref<1x384xf32, #tpu.memory_space<vmem>>, %arg16: memref<1x384xf32, #tpu.memory_space<vmem>>, %arg17: memref<128x128xbf16, #tpu.memory_space<vmem>>, %arg18: memref<1x128xf32, #tpu.memory_space<vmem>>, %arg19: memref<8x128xf32, #tpu.memory_space<vmem>>, %arg20: memref<128x128xf32, #tpu.memory_space<vmem>>) attributes {dimension_semantics = [#tpu.dimension_semantics<arbitrary>], iteration_bounds = array<i64: 1>, scalar_prefetch = 0 : i64, scratch_operands = 1 : i64, tpu.core_type = #tpu.core_type<tc>, window_params = [{pipeline_mode = #tpu.pipeline_mode<synchronous>, transform_indices = @transform_0, window_bounds = array<i64: 8, 128>}, {pipeline_mode = #tpu.pipeline_mode<synchronous>, transform_indices = @transform_1, window_bounds = array<i64: 128, 384>}, {pipeline_mode = #tpu.pipeline_mode<synchronous>, transform_indices = @transform_2, window_bounds = array<i64: 128, 384>}, {pipeline_mode = #tpu.pipeline_mode<synchronous>, transform_indices = @transform_3, window_bounds = array<i64: 1, 384>}, {pipeline_mode = #tpu.pipeline_mode<synchronous>, transform_indices = @transform_4, window_bounds = array<i64: 1, 384>}, {pipeline_mode = #tpu.pipeline_mode<synchronous>, transform_indices = @transform_5, window_bounds = array<i64: 1, 128>}, {pipeline_mode = #tpu.pipeline_mode<synchronous>, transform_indices = @transform_6, window_bounds = array<i64: 128, 128>}, {pipeline_mode = #tpu.pipeline_mode<synchronous>, transform_indices = @transform_7, window_bounds = array<i64: 128, 128>}, {pipeline_mode = #tpu.pipeline_mode<synchronous>, transform_indices = @transform_8, window_bounds = array<i64: 1, 128>}, {pipeline_mode = #tpu.pipeline_mode<synchronous>, transform_indices = @transform_9, window_bounds = array<i64: 128, 128>}, {pipeline_mode = #tpu.pipeline_mode<synchronous>, transform_indices = @transform_10, window_bounds = array<i64: 128, 128>}, {pipeline_mode = #tpu.pipeline_mode<synchronous>, transform_indices = @transform_11, window_bounds = array<i64: 1, 128>}, {pipeline_mode = #tpu.pipeline_mode<synchronous>, transform_indices = @transform_12, window_bounds = array<i64: 128, 384>}, {pipeline_mode = #tpu.pipeline_mode<synchronous>, transform_indices = @transform_13, window_bounds = array<i64: 128, 384>}, {pipeline_mode = #tpu.pipeline_mode<synchronous>, transform_indices = @transform_14, window_bounds = array<i64: 1, 384>}, {pipeline_mode = #tpu.pipeline_mode<synchronous>, transform_indices = @transform_15, window_bounds = array<i64: 1, 384>}, {pipeline_mode = #tpu.pipeline_mode<synchronous>, transform_indices = @transform_16, window_bounds = array<i64: 128, 128>}, {pipeline_mode = #tpu.pipeline_mode<synchronous>, transform_indices = @transform_17, window_bounds = array<i64: 1, 128>}, {pipeline_mode = #tpu.pipeline_mode<synchronous>, transform_indices = @transform_18, window_bounds = array<i64: 8, 128>}]} {
    %cst = arith.constant 0.000000e+00 : f32
    %0 = vector.broadcast %cst : f32 to vector<128x128xf32>
    %c0 = arith.constant 0 : index
    %c0_0 = arith.constant 0 : index
    %1 = vector.load %arg20[%c0, %c0_0] : memref<128x128xf32, #tpu.memory_space<vmem>>, vector<128x128xf32>
    tpu.vector_store %arg20[%c0, %c0_0], %0 {strides = array<i32>} : memref<128x128xf32, #tpu.memory_space<vmem>>, vector<128x128xf32>,
    %cst_1 = arith.constant 0.000000e+00 : f32
    %2 = vector.broadcast %cst_1 : f32 to vector<1x128xf32>
    %c0_2 = arith.constant 0 : index
    %c0_3 = arith.constant 0 : index
    %3 = vector.load %arg1[%c0_2, %c0_3] : memref<8x128xbf16, #tpu.memory_space<vmem>>, vector<1x128xbf16>
    %c0_4 = arith.constant 0 : index
    %c0_5 = arith.constant 0 : index
    %4 = vector.load %arg2[%c0_4, %c0_5] : memref<128x384xbf16, #tpu.memory_space<vmem>>, vector<128x384xbf16>
    %c0_6 = arith.constant 0 : index
    %c0_7 = arith.constant 0 : index
    %5 = vector.load %arg3[%c0_6, %c0_7] : memref<128x384xbf16, #tpu.memory_space<vmem>>, vector<128x384xbf16>
    %c0_8 = arith.constant 0 : index
    %c0_9 = arith.constant 0 : index
    %6 = vector.load %arg4[%c0_8, %c0_9] : memref<1x384xf32, #tpu.memory_space<vmem>>, vector<1x384xf32>
    %c0_10 = arith.constant 0 : index
    %c0_11 = arith.constant 0 : index
    %7 = vector.load %arg5[%c0_10, %c0_11] : memref<1x384xf32, #tpu.memory_space<vmem>>, vector<1x384xf32>
    %8 = arith.truncf %2 : vector<1x128xf32> to vector<1x128xbf16>
    %cst_12 = arith.constant dense<0.000000e+00> : vector<1x384xf32>
    %9 = tpu.matmul %3, %4, %cst_12 {dimension_numbers = #tpu.dot_dimension_numbers<[1], [0], [0], [1], [0, 0, 1, 1], [], []>} : vector<1x128xbf16>, vector<128x384xbf16>, vector<1x384xf32> -> vector<1x384xf32>
    %10 = arith.addf %9, %6 : vector<1x384xf32>
    %cst_13 = arith.constant dense<0.000000e+00> : vector<1x384xf32>
    %11 = tpu.matmul %8, %5, %cst_13 {dimension_numbers = #tpu.dot_dimension_numbers<[1], [0], [0], [1], [0, 0, 1, 1], [], []>} : vector<1x128xbf16>, vector<128x384xbf16>, vector<1x384xf32> -> vector<1x384xf32>
    %12 = arith.addf %11, %7 : vector<1x384xf32>
    %13 = vector.extract_strided_slice %10 {offsets = [0, 0], sizes = [1, 128], strides = [1, 1]} : vector<1x384xf32> to vector<1x128xf32>
    %14 = vector.extract_strided_slice %12 {offsets = [0, 0], sizes = [1, 128], strides = [1, 1]} : vector<1x384xf32> to vector<1x128xf32>
    %15 = arith.addf %13, %14 : vector<1x128xf32>
    %16 = arith.negf %15 : vector<1x128xf32>
    %17 = math.exp %16 : vector<1x128xf32>
    %cst_14 = arith.constant 1.000000e+00 : f32
    %18 = vector.broadcast %cst_14 : f32 to vector<1x128xf32>
    %19 = arith.addf %18, %17 : vector<1x128xf32>
    %20 = arith.divf %18, %19 : vector<1x128xf32>
    %21 = vector.extract_strided_slice %10 {offsets = [0, 128], sizes = [1, 128], strides = [1, 1]} : vector<1x384xf32> to vector<1x128xf32>
    %22 = vector.extract_strided_slice %12 {offsets = [0, 128], sizes = [1, 128], strides = [1, 1]} : vector<1x384xf32> to vector<1x128xf32>
    %23 = arith.addf %21, %22 : vector<1x128xf32>
    %24 = arith.negf %23 : vector<1x128xf32>
    %25 = math.exp %24 : vector<1x128xf32>
    %cst_15 = arith.constant 1.000000e+00 : f32
    %26 = vector.broadcast %cst_15 : f32 to vector<1x128xf32>
    %27 = arith.addf %26, %25 : vector<1x128xf32>
    %28 = arith.divf %26, %27 : vector<1x128xf32>
    %29 = vector.extract_strided_slice %10 {offsets = [0, 256], sizes = [1, 128], strides = [1, 1]} : vector<1x384xf32> to vector<1x128xf32>
    %30 = vector.extract_strided_slice %12 {offsets = [0, 256], sizes = [1, 128], strides = [1, 1]} : vector<1x384xf32> to vector<1x128xf32>
    %31 = arith.mulf %20, %30 : vector<1x128xf32>
    %32 = arith.addf %29, %31 : vector<1x128xf32>
    %33 = math.tanh %32 : vector<1x128xf32>
    %cst_16 = arith.constant 1.000000e+00 : f32
    %34 = vector.broadcast %cst_16 : f32 to vector<1x128xf32>
    %35 = arith.subf %34, %28 : vector<1x128xf32>
    %36 = arith.mulf %35, %33 : vector<1x128xf32>
    %37 = arith.mulf %28, %2 : vector<1x128xf32>
    %38 = arith.addf %36, %37 : vector<1x128xf32>
    %c1 = arith.constant 1 : index
    %c0_17 = arith.constant 0 : index
    %39 = vector.load %arg1[%c1, %c0_17] : memref<8x128xbf16, #tpu.memory_space<vmem>>, vector<1x128xbf16>
    %c0_18 = arith.constant 0 : index
    %c0_19 = arith.constant 0 : index
    %40 = vector.load %arg2[%c0_18, %c0_19] : memref<128x384xbf16, #tpu.memory_space<vmem>>, vector<128x384xbf16>
    %c0_20 = arith.constant 0 : index
    %c0_21 = arith.constant 0 : index
    %41 = vector.load %arg3[%c0_20, %c0_21] : memref<128x384xbf16, #tpu.memory_space<vmem>>, vector<128x384xbf16>
    %c0_22 = arith.constant 0 : index
    %c0_23 = arith.constant 0 : index
    %42 = vector.load %arg4[%c0_22, %c0_23] : memref<1x384xf32, #tpu.memory_space<vmem>>, vector<1x384xf32>
    %c0_24 = arith.constant 0 : index
    %c0_25 = arith.constant 0 : index
    %43 = vector.load %arg5[%c0_24, %c0_25] : memref<1x384xf32, #tpu.memory_space<vmem>>, vector<1x384xf32>
    %44 = arith.truncf %38 : vector<1x128xf32> to vector<1x128xbf16>
    %cst_26 = arith.constant dense<0.000000e+00> : vector<1x384xf32>
    %45 = tpu.matmul %39, %40, %cst_26 {dimension_numbers = #tpu.dot_dimension_numbers<[1], [0], [0], [1], [0, 0, 1, 1], [], []>} : vector<1x128xbf16>, vector<128x384xbf16>, vector<1x384xf32> -> vector<1x384xf32>
    %46 = arith.addf %45, %42 : vector<1x384xf32>
    %cst_27 = arith.constant dense<0.000000e+00> : vector<1x384xf32>
    %47 = tpu.matmul %44, %41, %cst_27 {dimension_numbers = #tpu.dot_dimension_numbers<[1], [0], [0], [1], [0, 0, 1, 1], [], []>} : vector<1x128xbf16>, vector<128x384xbf16>, vector<1x384xf32> -> vector<1x384xf32>
    %48 = arith.addf %47, %43 : vector<1x384xf32>
    %49 = vector.extract_strided_slice %46 {offsets = [0, 0], sizes = [1, 128], strides = [1, 1]} : vector<1x384xf32> to vector<1x128xf32>
    %50 = vector.extract_strided_slice %48 {offsets = [0, 0], sizes = [1, 128], strides = [1, 1]} : vector<1x384xf32> to vector<1x128xf32>
    %51 = arith.addf %49, %50 : vector<1x128xf32>
    %52 = arith.negf %51 : vector<1x128xf32>
    %53 = math.exp %52 : vector<1x128xf32>
    %cst_28 = arith.constant 1.000000e+00 : f32
    %54 = vector.broadcast %cst_28 : f32 to vector<1x128xf32>
    %55 = arith.addf %54, %53 : vector<1x128xf32>
    %56 = arith.divf %54, %55 : vector<1x128xf32>
    %57 = vector.extract_strided_slice %46 {offsets = [0, 128], sizes = [1, 128], strides = [1, 1]} : vector<1x384xf32> to vector<1x128xf32>
    %58 = vector.extract_strided_slice %48 {offsets = [0, 128], sizes = [1, 128], strides = [1, 1]} : vector<1x384xf32> to vector<1x128xf32>
    %59 = arith.addf %57, %58 : vector<1x128xf32>
    %60 = arith.negf %59 : vector<1x128xf32>
    %61 = math.exp %60 : vector<1x128xf32>
    %cst_29 = arith.constant 1.000000e+00 : f32
    %62 = vector.broadcast %cst_29 : f32 to vector<1x128xf32>
    %63 = arith.addf %62, %61 : vector<1x128xf32>
    %64 = arith.divf %62, %63 : vector<1x128xf32>
    %65 = vector.extract_strided_slice %46 {offsets = [0, 256], sizes = [1, 128], strides = [1, 1]} : vector<1x384xf32> to vector<1x128xf32>
    %66 = vector.extract_strided_slice %48 {offsets = [0, 256], sizes = [1, 128], strides = [1, 1]} : vector<1x384xf32> to vector<1x128xf32>
    %67 = arith.mulf %56, %66 : vector<1x128xf32>
    %68 = arith.addf %65, %67 : vector<1x128xf32>
    %69 = math.tanh %68 : vector<1x128xf32>
    %cst_30 = arith.constant 1.000000e+00 : f32
    %70 = vector.broadcast %cst_30 : f32 to vector<1x128xf32>
    %71 = arith.subf %70, %64 : vector<1x128xf32>
    %72 = arith.mulf %71, %69 : vector<1x128xf32>
    %73 = arith.mulf %64, %38 : vector<1x128xf32>
    %74 = arith.addf %72, %73 : vector<1x128xf32>
    %c2 = arith.constant 2 : index
    %c0_31 = arith.constant 0 : index
    %75 = vector.load %arg1[%c2, %c0_31] : memref<8x128xbf16, #tpu.memory_space<vmem>>, vector<1x128xbf16>
    %c0_32 = arith.constant 0 : index
    %c0_33 = arith.constant 0 : index
    %76 = vector.load %arg2[%c0_32, %c0_33] : memref<128x384xbf16, #tpu.memory_space<vmem>>, vector<128x384xbf16>
    %c0_34 = arith.constant 0 : index
    %c0_35 = arith.constant 0 : index
    %77 = vector.load %arg3[%c0_34, %c0_35] : memref<128x384xbf16, #tpu.memory_space<vmem>>, vector<128x384xbf16>
    %c0_36 = arith.constant 0 : index
    %c0_37 = arith.constant 0 : index
    %78 = vector.load %arg4[%c0_36, %c0_37] : memref<1x384xf32, #tpu.memory_space<vmem>>, vector<1x384xf32>
    %c0_38 = arith.constant 0 : index
    %c0_39 = arith.constant 0 : index
    %79 = vector.load %arg5[%c0_38, %c0_39] : memref<1x384xf32, #tpu.memory_space<vmem>>, vector<1x384xf32>
    %80 = arith.truncf %74 : vector<1x128xf32> to vector<1x128xbf16>
    %cst_40 = arith.constant dense<0.000000e+00> : vector<1x384xf32>
    %81 = tpu.matmul %75, %76, %cst_40 {dimension_numbers = #tpu.dot_dimension_numbers<[1], [0], [0], [1], [0, 0, 1, 1], [], []>} : vector<1x128xbf16>, vector<128x384xbf16>, vector<1x384xf32> -> vector<1x384xf32>
    %82 = arith.addf %81, %78 : vector<1x384xf32>
    %cst_41 = arith.constant dense<0.000000e+00> : vector<1x384xf32>
    %83 = tpu.matmul %80, %77, %cst_41 {dimension_numbers = #tpu.dot_dimension_numbers<[1], [0], [0], [1], [0, 0, 1, 1], [], []>} : vector<1x128xbf16>, vector<128x384xbf16>, vector<1x384xf32> -> vector<1x384xf32>
    %84 = arith.addf %83, %79 : vector<1x384xf32>
    %85 = vector.extract_strided_slice %82 {offsets = [0, 0], sizes = [1, 128], strides = [1, 1]} : vector<1x384xf32> to vector<1x128xf32>
    %86 = vector.extract_strided_slice %84 {offsets = [0, 0], sizes = [1, 128], strides = [1, 1]} : vector<1x384xf32> to vector<1x128xf32>
    %87 = arith.addf %85, %86 : vector<1x128xf32>
    %88 = arith.negf %87 : vector<1x128xf32>
    %89 = math.exp %88 : vector<1x128xf32>
    %cst_42 = arith.constant 1.000000e+00 : f32
    %90 = vector.broadcast %cst_42 : f32 to vector<1x128xf32>
    %91 = arith.addf %90, %89 : vector<1x128xf32>
    %92 = arith.divf %90, %91 : vector<1x128xf32>
    %93 = vector.extract_strided_slice %82 {offsets = [0, 128], sizes = [1, 128], strides = [1, 1]} : vector<1x384xf32> to vector<1x128xf32>
    %94 = vector.extract_strided_slice %84 {offsets = [0, 128], sizes = [1, 128], strides = [1, 1]} : vector<1x384xf32> to vector<1x128xf32>
    %95 = arith.addf %93, %94 : vector<1x128xf32>
    %96 = arith.negf %95 : vector<1x128xf32>
    %97 = math.exp %96 : vector<1x128xf32>
    %cst_43 = arith.constant 1.000000e+00 : f32
    %98 = vector.broadcast %cst_43 : f32 to vector<1x128xf32>
    %99 = arith.addf %98, %97 : vector<1x128xf32>
    %100 = arith.divf %98, %99 : vector<1x128xf32>
    %101 = vector.extract_strided_slice %82 {offsets = [0, 256], sizes = [1, 128], strides = [1, 1]} : vector<1x384xf32> to vector<1x128xf32>
    %102 = vector.extract_strided_slice %84 {offsets = [0, 256], sizes = [1, 128], strides = [1, 1]} : vector<1x384xf32> to vector<1x128xf32>
    %103 = arith.mulf %92, %102 : vector<1x128xf32>
    %104 = arith.addf %101, %103 : vector<1x128xf32>
    %105 = math.tanh %104 : vector<1x128xf32>
    %cst_44 = arith.constant 1.000000e+00 : f32
    %106 = vector.broadcast %cst_44 : f32 to vector<1x128xf32>
    %107 = arith.subf %106, %100 : vector<1x128xf32>
    %108 = arith.mulf %107, %105 : vector<1x128xf32>
    %109 = arith.mulf %100, %74 : vector<1x128xf32>
    %110 = arith.addf %108, %109 : vector<1x128xf32>
    %c3 = arith.constant 3 : index
    %c0_45 = arith.constant 0 : index
    %111 = vector.load %arg1[%c3, %c0_45] : memref<8x128xbf16, #tpu.memory_space<vmem>>, vector<1x128xbf16>
    %c0_46 = arith.constant 0 : index
    %c0_47 = arith.constant 0 : index
    %112 = vector.load %arg2[%c0_46, %c0_47] : memref<128x384xbf16, #tpu.memory_space<vmem>>, vector<128x384xbf16>
    %c0_48 = arith.constant 0 : index
    %c0_49 = arith.constant 0 : index
    %113 = vector.load %arg3[%c0_48, %c0_49] : memref<128x384xbf16, #tpu.memory_space<vmem>>, vector<128x384xbf16>
    %c0_50 = arith.constant 0 : index
    %c0_51 = arith.constant 0 : index
    %114 = vector.load %arg4[%c0_50, %c0_51] : memref<1x384xf32, #tpu.memory_space<vmem>>, vector<1x384xf32>
    %c0_52 = arith.constant 0 : index
    %c0_53 = arith.constant 0 : index
    %115 = vector.load %arg5[%c0_52, %c0_53] : memref<1x384xf32, #tpu.memory_space<vmem>>, vector<1x384xf32>
    %116 = arith.truncf %110 : vector<1x128xf32> to vector<1x128xbf16>
    %cst_54 = arith.constant dense<0.000000e+00> : vector<1x384xf32>
    %117 = tpu.matmul %111, %112, %cst_54 {dimension_numbers = #tpu.dot_dimension_numbers<[1], [0], [0], [1], [0, 0, 1, 1], [], []>} : vector<1x128xbf16>, vector<128x384xbf16>, vector<1x384xf32> -> vector<1x384xf32>
    %118 = arith.addf %117, %114 : vector<1x384xf32>
    %cst_55 = arith.constant dense<0.000000e+00> : vector<1x384xf32>
    %119 = tpu.matmul %116, %113, %cst_55 {dimension_numbers = #tpu.dot_dimension_numbers<[1], [0], [0], [1], [0, 0, 1, 1], [], []>} : vector<1x128xbf16>, vector<128x384xbf16>, vector<1x384xf32> -> vector<1x384xf32>
    %120 = arith.addf %119, %115 : vector<1x384xf32>
    %121 = vector.extract_strided_slice %118 {offsets = [0, 0], sizes = [1, 128], strides = [1, 1]} : vector<1x384xf32> to vector<1x128xf32>
    %122 = vector.extract_strided_slice %120 {offsets = [0, 0], sizes = [1, 128], strides = [1, 1]} : vector<1x384xf32> to vector<1x128xf32>
    %123 = arith.addf %121, %122 : vector<1x128xf32>
    %124 = arith.negf %123 : vector<1x128xf32>
    %125 = math.exp %124 : vector<1x128xf32>
    %cst_56 = arith.constant 1.000000e+00 : f32
    %126 = vector.broadcast %cst_56 : f32 to vector<1x128xf32>
    %127 = arith.addf %126, %125 : vector<1x128xf32>
    %128 = arith.divf %126, %127 : vector<1x128xf32>
    %129 = vector.extract_strided_slice %118 {offsets = [0, 128], sizes = [1, 128], strides = [1, 1]} : vector<1x384xf32> to vector<1x128xf32>
    %130 = vector.extract_strided_slice %120 {offsets = [0, 128], sizes = [1, 128], strides = [1, 1]} : vector<1x384xf32> to vector<1x128xf32>
    %131 = arith.addf %129, %130 : vector<1x128xf32>
    %132 = arith.negf %131 : vector<1x128xf32>
    %133 = math.exp %132 : vector<1x128xf32>
    %cst_57 = arith.constant 1.000000e+00 : f32
    %134 = vector.broadcast %cst_57 : f32 to vector<1x128xf32>
    %135 = arith.addf %134, %133 : vector<1x128xf32>
    %136 = arith.divf %134, %135 : vector<1x128xf32>
    %137 = vector.extract_strided_slice %118 {offsets = [0, 256], sizes = [1, 128], strides = [1, 1]} : vector<1x384xf32> to vector<1x128xf32>
    %138 = vector.extract_strided_slice %120 {offsets = [0, 256], sizes = [1, 128], strides = [1, 1]} : vector<1x384xf32> to vector<1x128xf32>
    %139 = arith.mulf %128, %138 : vector<1x128xf32>
    %140 = arith.addf %137, %139 : vector<1x128xf32>
    %141 = math.tanh %140 : vector<1x128xf32>
    %cst_58 = arith.constant 1.000000e+00 : f32
    %142 = vector.broadcast %cst_58 : f32 to vector<1x128xf32>
    %143 = arith.subf %142, %136 : vector<1x128xf32>
    %144 = arith.mulf %143, %141 : vector<1x128xf32>
    %145 = arith.mulf %136, %110 : vector<1x128xf32>
    %146 = arith.addf %144, %145 : vector<1x128xf32>
    %c4 = arith.constant 4 : index
    %c0_59 = arith.constant 0 : index
    %147 = vector.load %arg1[%c4, %c0_59] : memref<8x128xbf16, #tpu.memory_space<vmem>>, vector<1x128xbf16>
    %c0_60 = arith.constant 0 : index
    %c0_61 = arith.constant 0 : index
    %148 = vector.load %arg2[%c0_60, %c0_61] : memref<128x384xbf16, #tpu.memory_space<vmem>>, vector<128x384xbf16>
    %c0_62 = arith.constant 0 : index
    %c0_63 = arith.constant 0 : index
    %149 = vector.load %arg3[%c0_62, %c0_63] : memref<128x384xbf16, #tpu.memory_space<vmem>>, vector<128x384xbf16>
    %c0_64 = arith.constant 0 : index
    %c0_65 = arith.constant 0 : index
    %150 = vector.load %arg4[%c0_64, %c0_65] : memref<1x384xf32, #tpu.memory_space<vmem>>, vector<1x384xf32>
    %c0_66 = arith.constant 0 : index
    %c0_67 = arith.constant 0 : index
    %151 = vector.load %arg5[%c0_66, %c0_67] : memref<1x384xf32, #tpu.memory_space<vmem>>, vector<1x384xf32>
    %152 = arith.truncf %146 : vector<1x128xf32> to vector<1x128xbf16>
    %cst_68 = arith.constant dense<0.000000e+00> : vector<1x384xf32>
    %153 = tpu.matmul %147, %148, %cst_68 {dimension_numbers = #tpu.dot_dimension_numbers<[1], [0], [0], [1], [0, 0, 1, 1], [], []>} : vector<1x128xbf16>, vector<128x384xbf16>, vector<1x384xf32> -> vector<1x384xf32>
    %154 = arith.addf %153, %150 : vector<1x384xf32>
    %cst_69 = arith.constant dense<0.000000e+00> : vector<1x384xf32>
    %155 = tpu.matmul %152, %149, %cst_69 {dimension_numbers = #tpu.dot_dimension_numbers<[1], [0], [0], [1], [0, 0, 1, 1], [], []>} : vector<1x128xbf16>, vector<128x384xbf16>, vector<1x384xf32> -> vector<1x384xf32>
    %156 = arith.addf %155, %151 : vector<1x384xf32>
    %157 = vector.extract_strided_slice %154 {offsets = [0, 0], sizes = [1, 128], strides = [1, 1]} : vector<1x384xf32> to vector<1x128xf32>
    %158 = vector.extract_strided_slice %156 {offsets = [0, 0], sizes = [1, 128], strides = [1, 1]} : vector<1x384xf32> to vector<1x128xf32>
    %159 = arith.addf %157, %158 : vector<1x128xf32>
    %160 = arith.negf %159 : vector<1x128xf32>
    %161 = math.exp %160 : vector<1x128xf32>
    %cst_70 = arith.constant 1.000000e+00 : f32
    %162 = vector.broadcast %cst_70 : f32 to vector<1x128xf32>
    %163 = arith.addf %162, %161 : vector<1x128xf32>
    %164 = arith.divf %162, %163 : vector<1x128xf32>
    %165 = vector.extract_strided_slice %154 {offsets = [0, 128], sizes = [1, 128], strides = [1, 1]} : vector<1x384xf32> to vector<1x128xf32>
    %166 = vector.extract_strided_slice %156 {offsets = [0, 128], sizes = [1, 128], strides = [1, 1]} : vector<1x384xf32> to vector<1x128xf32>
    %167 = arith.addf %165, %166 : vector<1x128xf32>
    %168 = arith.negf %167 : vector<1x128xf32>
    %169 = math.exp %168 : vector<1x128xf32>
    %cst_71 = arith.constant 1.000000e+00 : f32
    %170 = vector.broadcast %cst_71 : f32 to vector<1x128xf32>
    %171 = arith.addf %170, %169 : vector<1x128xf32>
    %172 = arith.divf %170, %171 : vector<1x128xf32>
    %173 = vector.extract_strided_slice %154 {offsets = [0, 256], sizes = [1, 128], strides = [1, 1]} : vector<1x384xf32> to vector<1x128xf32>
    %174 = vector.extract_strided_slice %156 {offsets = [0, 256], sizes = [1, 128], strides = [1, 1]} : vector<1x384xf32> to vector<1x128xf32>
    %175 = arith.mulf %164, %174 : vector<1x128xf32>
    %176 = arith.addf %173, %175 : vector<1x128xf32>
    %177 = math.tanh %176 : vector<1x128xf32>
    %cst_72 = arith.constant 1.000000e+00 : f32
    %178 = vector.broadcast %cst_72 : f32 to vector<1x128xf32>
    %179 = arith.subf %178, %172 : vector<1x128xf32>
    %180 = arith.mulf %179, %177 : vector<1x128xf32>
    %181 = arith.mulf %172, %146 : vector<1x128xf32>
    %182 = arith.addf %180, %181 : vector<1x128xf32>
    %c5 = arith.constant 5 : index
    %c0_73 = arith.constant 0 : index
    %183 = vector.load %arg1[%c5, %c0_73] : memref<8x128xbf16, #tpu.memory_space<vmem>>, vector<1x128xbf16>
    %c0_74 = arith.constant 0 : index
    %c0_75 = arith.constant 0 : index
    %184 = vector.load %arg2[%c0_74, %c0_75] : memref<128x384xbf16, #tpu.memory_space<vmem>>, vector<128x384xbf16>
    %c0_76 = arith.constant 0 : index
    %c0_77 = arith.constant 0 : index
    %185 = vector.load %arg3[%c0_76, %c0_77] : memref<128x384xbf16, #tpu.memory_space<vmem>>, vector<128x384xbf16>
    %c0_78 = arith.constant 0 : index
    %c0_79 = arith.constant 0 : index
    %186 = vector.load %arg4[%c0_78, %c0_79] : memref<1x384xf32, #tpu.memory_space<vmem>>, vector<1x384xf32>
    %c0_80 = arith.constant 0 : index
    %c0_81 = arith.constant 0 : index
    %187 = vector.load %arg5[%c0_80, %c0_81] : memref<1x384xf32, #tpu.memory_space<vmem>>, vector<1x384xf32>
    %188 = arith.truncf %182 : vector<1x128xf32> to vector<1x128xbf16>
    %cst_82 = arith.constant dense<0.000000e+00> : vector<1x384xf32>
    %189 = tpu.matmul %183, %184, %cst_82 {dimension_numbers = #tpu.dot_dimension_numbers<[1], [0], [0], [1], [0, 0, 1, 1], [], []>} : vector<1x128xbf16>, vector<128x384xbf16>, vector<1x384xf32> -> vector<1x384xf32>
    %190 = arith.addf %189, %186 : vector<1x384xf32>
    %cst_83 = arith.constant dense<0.000000e+00> : vector<1x384xf32>
    %191 = tpu.matmul %188, %185, %cst_83 {dimension_numbers = #tpu.dot_dimension_numbers<[1], [0], [0], [1], [0, 0, 1, 1], [], []>} : vector<1x128xbf16>, vector<128x384xbf16>, vector<1x384xf32> -> vector<1x384xf32>
    %192 = arith.addf %191, %187 : vector<1x384xf32>
    %193 = vector.extract_strided_slice %190 {offsets = [0, 0], sizes = [1, 128], strides = [1, 1]} : vector<1x384xf32> to vector<1x128xf32>
    %194 = vector.extract_strided_slice %192 {offsets = [0, 0], sizes = [1, 128], strides = [1, 1]} : vector<1x384xf32> to vector<1x128xf32>
    %195 = arith.addf %193, %194 : vector<1x128xf32>
    %196 = arith.negf %195 : vector<1x128xf32>
    %197 = math.exp %196 : vector<1x128xf32>
    %cst_84 = arith.constant 1.000000e+00 : f32
    %198 = vector.broadcast %cst_84 : f32 to vector<1x128xf32>
    %199 = arith.addf %198, %197 : vector<1x128xf32>
    %200 = arith.divf %198, %199 : vector<1x128xf32>
    %201 = vector.extract_strided_slice %190 {offsets = [0, 128], sizes = [1, 128], strides = [1, 1]} : vector<1x384xf32> to vector<1x128xf32>
    %202 = vector.extract_strided_slice %192 {offsets = [0, 128], sizes = [1, 128], strides = [1, 1]} : vector<1x384xf32> to vector<1x128xf32>
    %203 = arith.addf %201, %202 : vector<1x128xf32>
    %204 = arith.negf %203 : vector<1x128xf32>
    %205 = math.exp %204 : vector<1x128xf32>
    %cst_85 = arith.constant 1.000000e+00 : f32
    %206 = vector.broadcast %cst_85 : f32 to vector<1x128xf32>
    %207 = arith.addf %206, %205 : vector<1x128xf32>
    %208 = arith.divf %206, %207 : vector<1x128xf32>
    %209 = vector.extract_strided_slice %190 {offsets = [0, 256], sizes = [1, 128], strides = [1, 1]} : vector<1x384xf32> to vector<1x128xf32>
    %210 = vector.extract_strided_slice %192 {offsets = [0, 256], sizes = [1, 128], strides = [1, 1]} : vector<1x384xf32> to vector<1x128xf32>
    %211 = arith.mulf %200, %210 : vector<1x128xf32>
    %212 = arith.addf %209, %211 : vector<1x128xf32>
    %213 = math.tanh %212 : vector<1x128xf32>
    %cst_86 = arith.constant 1.000000e+00 : f32
    %214 = vector.broadcast %cst_86 : f32 to vector<1x128xf32>
    %215 = arith.subf %214, %208 : vector<1x128xf32>
    %216 = arith.mulf %215, %213 : vector<1x128xf32>
    %217 = arith.mulf %208, %182 : vector<1x128xf32>
    %218 = arith.addf %216, %217 : vector<1x128xf32>
    %cst_87 = arith.constant 0.000000e+00 : f32
    %219 = vector.broadcast %cst_87 : f32 to vector<1x128xf32>
    %220 = tpu.concatenate %38, %74, %110, %146, %182, %218, %219, %219 in 0 : vector<1x128xf32>, vector<1x128xf32>, vector<1x128xf32>, vector<1x128xf32>, vector<1x128xf32>, vector<1x128xf32>, vector<1x128xf32>, vector<1x128xf32> -> vector<8x128xf32>
    %c0_88 = arith.constant 0 : index
    %c0_89 = arith.constant 0 : index
    %221 = vector.load %arg20[%c0_88, %c0_89] : memref<128x128xf32, #tpu.memory_space<vmem>>, vector<8x128xf32>
    tpu.vector_store %arg20[%c0_88, %c0_89], %220 {strides = array<i32>} : memref<128x128xf32, #tpu.memory_space<vmem>>, vector<8x128xf32>,
    %c0_90 = arith.constant 0 : index
    %c0_91 = arith.constant 0 : index
    %222 = vector.load %arg6[%c0_90, %c0_91] : memref<1x128xbf16, #tpu.memory_space<vmem>>, vector<1x128xbf16>
    %c0_92 = arith.constant 0 : index
    %c0_93 = arith.constant 0 : index
    %223 = vector.load %arg7[%c0_92, %c0_93] : memref<128x128xbf16, #tpu.memory_space<vmem>>, vector<128x128xbf16>
    %cst_94 = arith.constant dense<0.000000e+00> : vector<1x128xf32>
    %224 = tpu.matmul %222, %223, %cst_94 {dimension_numbers = #tpu.dot_dimension_numbers<[1], [0], [0], [1], [0, 0, 1, 1], [], []>} : vector<1x128xbf16>, vector<128x128xbf16>, vector<1x128xf32> -> vector<1x128xf32>
    %c0_95 = arith.constant 0 : index
    %c0_96 = arith.constant 0 : index
    %225 = vector.load %arg9[%c0_95, %c0_96] : memref<1x128xf32, #tpu.memory_space<vmem>>, vector<1x128xf32>
    %226 = arith.addf %224, %225 : vector<1x128xf32>
    %c0_97 = arith.constant 0 : index
    %c0_98 = arith.constant 0 : index
    %227 = vector.load %arg10[%c0_97, %c0_98] : memref<128x128xbf16, #tpu.memory_space<vmem>>, vector<128x128xbf16>
    %cst_99 = arith.constant dense<0.000000e+00> : vector<1x128xf32>
    %228 = tpu.matmul %222, %227, %cst_99 {dimension_numbers = #tpu.dot_dimension_numbers<[1], [0], [0], [1], [0, 0, 1, 1], [], []>} : vector<1x128xbf16>, vector<128x128xbf16>, vector<1x128xf32> -> vector<1x128xf32>
    %c0_100 = arith.constant 0 : index
    %c0_101 = arith.constant 0 : index
    %229 = vector.load %arg12[%c0_100, %c0_101] : memref<1x128xf32, #tpu.memory_space<vmem>>, vector<1x128xf32>
    %230 = arith.addf %228, %229 : vector<1x128xf32>
    %231 = arith.truncf %218 : vector<1x128xf32> to vector<1x128xbf16>
    %c0_102 = arith.constant 0 : index
    %c0_103 = arith.constant 0 : index
    %232 = vector.load %arg8[%c0_102, %c0_103] : memref<128x128xbf16, #tpu.memory_space<vmem>>, vector<128x128xbf16>
    %cst_104 = arith.constant dense<0.000000e+00> : vector<1x128xf32>
    %233 = tpu.matmul %231, %232, %cst_104 {dimension_numbers = #tpu.dot_dimension_numbers<[1], [0], [0], [1], [0, 0, 1, 1], [], []>} : vector<1x128xbf16>, vector<128x128xbf16>, vector<1x128xf32> -> vector<1x128xf32>
    %234 = arith.addf %226, %233 : vector<1x128xf32>
    %cst_105 = arith.constant dense<0xFF800000> : vector<1xf32>
    %235 = vector.multi_reduction <maximumf>, %234, %cst_105 [1] : vector<1x128xf32> to vector<1xf32>
    %236 = vector.shape_cast %235 : vector<1xf32> to vector<1x1xf32>
    %237 = vector.broadcast %236 : vector<1x1xf32> to vector<1x128xf32>
    %238 = arith.subf %234, %237 : vector<1x128xf32>
    %239 = math.exp %238 : vector<1x128xf32>
    %cst_106 = arith.constant dense<0.000000e+00> : vector<1xf32>
    %240 = vector.multi_reduction <add>, %239, %cst_106 [1] : vector<1x128xf32> to vector<1xf32>
    %241 = vector.shape_cast %240 : vector<1xf32> to vector<1x1xf32>
    %242 = tpu.reciprocal %241 {approx = true} : vector<1x1xf32> -> vector<1x1xf32>
    %243 = vector.broadcast %242 : vector<1x1xf32> to vector<1x128xf32>
    %244 = arith.mulf %239, %243 : vector<1x128xf32>
    %c0_107 = arith.constant 0 : index
    %c0_108 = arith.constant 0 : index
    %245 = vector.load %arg20[%c0_107, %c0_108] : memref<128x128xf32, #tpu.memory_space<vmem>>, vector<128x128xf32>
    %cst_109 = arith.constant dense<0.000000e+00> : vector<1x128xf32>
    %246 = tpu.matmul %244, %245, %cst_109 {dimension_numbers = #tpu.dot_dimension_numbers<[1], [0], [0], [1], [0, 0, 1, 1], [], []>} : vector<1x128xf32>, vector<128x128xf32>, vector<1x128xf32> -> vector<1x128xf32>
    %247 = arith.truncf %246 : vector<1x128xf32> to vector<1x128xbf16>
    %c0_110 = arith.constant 0 : index
    %c0_111 = arith.constant 0 : index
    %248 = vector.load %arg11[%c0_110, %c0_111] : memref<128x128xbf16, #tpu.memory_space<vmem>>, vector<128x128xbf16>
    %cst_112 = arith.constant dense<0.000000e+00> : vector<1x128xf32>
    %249 = tpu.matmul %247, %248, %cst_112 {dimension_numbers = #tpu.dot_dimension_numbers<[1], [0], [0], [1], [0, 0, 1, 1], [], []>} : vector<1x128xbf16>, vector<128x128xbf16>, vector<1x128xf32> -> vector<1x128xf32>
    %250 = arith.addf %230, %249 : vector<1x128xf32>
    %cst_113 = arith.constant 0.000000e+00 : f32
    %251 = vector.broadcast %cst_113 : f32 to vector<1x128xf32>
    %252 = arith.maximumf %250, %251 : vector<1x128xf32>
    %c0_114 = arith.constant 0 : index
    %c0_115 = arith.constant 0 : index
    %253 = vector.load %arg13[%c0_114, %c0_115] : memref<128x384xbf16, #tpu.memory_space<vmem>>, vector<128x384xbf16>
    %c0_116 = arith.constant 0 : index
    %c0_117 = arith.constant 0 : index
    %254 = vector.load %arg14[%c0_116, %c0_117] : memref<128x384xbf16, #tpu.memory_space<vmem>>, vector<128x384xbf16>
    %c0_118 = arith.constant 0 : index
    %c0_119 = arith.constant 0 : index
    %255 = vector.load %arg15[%c0_118, %c0_119] : memref<1x384xf32, #tpu.memory_space<vmem>>, vector<1x384xf32>
    %c0_120 = arith.constant 0 : index
    %c0_121 = arith.constant 0 : index
    %256 = vector.load %arg16[%c0_120, %c0_121] : memref<1x384xf32, #tpu.memory_space<vmem>>, vector<1x384xf32>
    %257 = arith.truncf %252 : vector<1x128xf32> to vector<1x128xbf16>
    %258 = arith.truncf %218 : vector<1x128xf32> to vector<1x128xbf16>
    %cst_122 = arith.constant dense<0.000000e+00> : vector<1x384xf32>
    %259 = tpu.matmul %257, %253, %cst_122 {dimension_numbers = #tpu.dot_dimension_numbers<[1], [0], [0], [1], [0, 0, 1, 1], [], []>} : vector<1x128xbf16>, vector<128x384xbf16>, vector<1x384xf32> -> vector<1x384xf32>
    %260 = arith.addf %259, %255 : vector<1x384xf32>
    %cst_123 = arith.constant dense<0.000000e+00> : vector<1x384xf32>
    %261 = tpu.matmul %258, %254, %cst_123 {dimension_numbers = #tpu.dot_dimension_numbers<[1], [0], [0], [1], [0, 0, 1, 1], [], []>} : vector<1x128xbf16>, vector<128x384xbf16>, vector<1x384xf32> -> vector<1x384xf32>
    %262 = arith.addf %261, %256 : vector<1x384xf32>
    %263 = vector.extract_strided_slice %260 {offsets = [0, 0], sizes = [1, 128], strides = [1, 1]} : vector<1x384xf32> to vector<1x128xf32>
    %264 = vector.extract_strided_slice %262 {offsets = [0, 0], sizes = [1, 128], strides = [1, 1]} : vector<1x384xf32> to vector<1x128xf32>
    %265 = arith.addf %263, %264 : vector<1x128xf32>
    %266 = arith.negf %265 : vector<1x128xf32>
    %267 = math.exp %266 : vector<1x128xf32>
    %cst_124 = arith.constant 1.000000e+00 : f32
    %268 = vector.broadcast %cst_124 : f32 to vector<1x128xf32>
    %269 = arith.addf %268, %267 : vector<1x128xf32>
    %270 = arith.divf %268, %269 : vector<1x128xf32>
    %271 = vector.extract_strided_slice %260 {offsets = [0, 128], sizes = [1, 128], strides = [1, 1]} : vector<1x384xf32> to vector<1x128xf32>
    %272 = vector.extract_strided_slice %262 {offsets = [0, 128], sizes = [1, 128], strides = [1, 1]} : vector<1x384xf32> to vector<1x128xf32>
    %273 = arith.addf %271, %272 : vector<1x128xf32>
    %274 = arith.negf %273 : vector<1x128xf32>
    %275 = math.exp %274 : vector<1x128xf32>
    %cst_125 = arith.constant 1.000000e+00 : f32
    %276 = vector.broadcast %cst_125 : f32 to vector<1x128xf32>
    %277 = arith.addf %276, %275 : vector<1x128xf32>
    %278 = arith.divf %276, %277 : vector<1x128xf32>
    %279 = vector.extract_strided_slice %260 {offsets = [0, 256], sizes = [1, 128], strides = [1, 1]} : vector<1x384xf32> to vector<1x128xf32>
    %280 = vector.extract_strided_slice %262 {offsets = [0, 256], sizes = [1, 128], strides = [1, 1]} : vector<1x384xf32> to vector<1x128xf32>
    %281 = arith.mulf %270, %280 : vector<1x128xf32>
    %282 = arith.addf %279, %281 : vector<1x128xf32>
    %283 = math.tanh %282 : vector<1x128xf32>
    %cst_126 = arith.constant 1.000000e+00 : f32
    %284 = vector.broadcast %cst_126 : f32 to vector<1x128xf32>
    %285 = arith.subf %284, %278 : vector<1x128xf32>
    %286 = arith.mulf %285, %283 : vector<1x128xf32>
    %287 = arith.mulf %278, %218 : vector<1x128xf32>
    %288 = arith.addf %286, %287 : vector<1x128xf32>
    %289 = arith.truncf %288 : vector<1x128xf32> to vector<1x128xbf16>
    %c0_127 = arith.constant 0 : index
    %c0_128 = arith.constant 0 : index
    %290 = vector.load %arg17[%c0_127, %c0_128] : memref<128x128xbf16, #tpu.memory_space<vmem>>, vector<128x128xbf16>
    %cst_129 = arith.constant dense<0.000000e+00> : vector<1x128xf32>
    %291 = tpu.matmul %289, %290, %cst_129 {dimension_numbers = #tpu.dot_dimension_numbers<[1], [0], [0], [1], [0, 0, 1, 1], [], []>} : vector<1x128xbf16>, vector<128x128xbf16>, vector<1x128xf32> -> vector<1x128xf32>
    %c0_130 = arith.constant 0 : index
    %c0_131 = arith.constant 0 : index
    %292 = vector.load %arg18[%c0_130, %c0_131] : memref<1x128xf32, #tpu.memory_space<vmem>>, vector<1x128xf32>
    %293 = arith.addf %291, %292 : vector<1x128xf32>
    %cst_132 = arith.constant dense<0xFF800000> : vector<1xf32>
    %294 = vector.multi_reduction <maximumf>, %293, %cst_132 [1] : vector<1x128xf32> to vector<1xf32>
    %295 = vector.shape_cast %294 : vector<1xf32> to vector<1x1xf32>
    %296 = vector.broadcast %295 : vector<1x1xf32> to vector<1x128xf32>
    %297 = arith.subf %293, %296 : vector<1x128xf32>
    %298 = math.exp %297 : vector<1x128xf32>
    %cst_133 = arith.constant dense<0.000000e+00> : vector<1xf32>
    %299 = vector.multi_reduction <add>, %298, %cst_133 [1] : vector<1x128xf32> to vector<1xf32>
    %300 = vector.shape_cast %299 : vector<1xf32> to vector<1x1xf32>
    %301 = math.log %300 : vector<1x1xf32>
    %302 = vector.broadcast %301 : vector<1x1xf32> to vector<1x128xf32>
    %303 = arith.subf %297, %302 : vector<1x128xf32>
    %304 = arith.truncf %288 : vector<1x128xf32> to vector<1x128xbf16>
    %c0_134 = arith.constant 0 : index
    %c0_135 = arith.constant 0 : index
    %305 = vector.load %arg8[%c0_134, %c0_135] : memref<128x128xbf16, #tpu.memory_space<vmem>>, vector<128x128xbf16>
    %cst_136 = arith.constant dense<0.000000e+00> : vector<1x128xf32>
    %306 = tpu.matmul %304, %305, %cst_136 {dimension_numbers = #tpu.dot_dimension_numbers<[1], [0], [0], [1], [0, 0, 1, 1], [], []>} : vector<1x128xbf16>, vector<128x128xbf16>, vector<1x128xf32> -> vector<1x128xf32>
    %307 = arith.addf %226, %306 : vector<1x128xf32>
    %cst_137 = arith.constant dense<0xFF800000> : vector<1xf32>
    %308 = vector.multi_reduction <maximumf>, %307, %cst_137 [1] : vector<1x128xf32> to vector<1xf32>
    %309 = vector.shape_cast %308 : vector<1xf32> to vector<1x1xf32>
    %310 = vector.broadcast %309 : vector<1x1xf32> to vector<1x128xf32>
    %311 = arith.subf %307, %310 : vector<1x128xf32>
    %312 = math.exp %311 : vector<1x128xf32>
    %cst_138 = arith.constant dense<0.000000e+00> : vector<1xf32>
    %313 = vector.multi_reduction <add>, %312, %cst_138 [1] : vector<1x128xf32> to vector<1xf32>
    %314 = vector.shape_cast %313 : vector<1xf32> to vector<1x1xf32>
    %315 = tpu.reciprocal %314 {approx = true} : vector<1x1xf32> -> vector<1x1xf32>
    %316 = vector.broadcast %315 : vector<1x1xf32> to vector<1x128xf32>
    %317 = arith.mulf %312, %316 : vector<1x128xf32>
    %c0_139 = arith.constant 0 : index
    %c0_140 = arith.constant 0 : index
    %318 = vector.load %arg20[%c0_139, %c0_140] : memref<128x128xf32, #tpu.memory_space<vmem>>, vector<128x128xf32>
    %cst_141 = arith.constant dense<0.000000e+00> : vector<1x128xf32>
    %319 = tpu.matmul %317, %318, %cst_141 {dimension_numbers = #tpu.dot_dimension_numbers<[1], [0], [0], [1], [0, 0, 1, 1], [], []>} : vector<1x128xf32>, vector<128x128xf32>, vector<1x128xf32> -> vector<1x128xf32>
    %320 = arith.truncf %319 : vector<1x128xf32> to vector<1x128xbf16>
    %c0_142 = arith.constant 0 : index
    %c0_143 = arith.constant 0 : index
    %321 = vector.load %arg11[%c0_142, %c0_143] : memref<128x128xbf16, #tpu.memory_space<vmem>>, vector<128x128xbf16>
    %cst_144 = arith.constant dense<0.000000e+00> : vector<1x128xf32>
    %322 = tpu.matmul %320, %321, %cst_144 {dimension_numbers = #tpu.dot_dimension_numbers<[1], [0], [0], [1], [0, 0, 1, 1], [], []>} : vector<1x128xbf16>, vector<128x128xbf16>, vector<1x128xf32> -> vector<1x128xf32>
    %323 = arith.addf %230, %322 : vector<1x128xf32>
    %cst_145 = arith.constant 0.000000e+00 : f32
    %324 = vector.broadcast %cst_145 : f32 to vector<1x128xf32>
    %325 = arith.maximumf %323, %324 : vector<1x128xf32>
    %c0_146 = arith.constant 0 : index
    %c0_147 = arith.constant 0 : index
    %326 = vector.load %arg13[%c0_146, %c0_147] : memref<128x384xbf16, #tpu.memory_space<vmem>>, vector<128x384xbf16>
    %c0_148 = arith.constant 0 : index
    %c0_149 = arith.constant 0 : index
    %327 = vector.load %arg14[%c0_148, %c0_149] : memref<128x384xbf16, #tpu.memory_space<vmem>>, vector<128x384xbf16>
    %c0_150 = arith.constant 0 : index
    %c0_151 = arith.constant 0 : index
    %328 = vector.load %arg15[%c0_150, %c0_151] : memref<1x384xf32, #tpu.memory_space<vmem>>, vector<1x384xf32>
    %c0_152 = arith.constant 0 : index
    %c0_153 = arith.constant 0 : index
    %329 = vector.load %arg16[%c0_152, %c0_153] : memref<1x384xf32, #tpu.memory_space<vmem>>, vector<1x384xf32>
    %330 = arith.truncf %325 : vector<1x128xf32> to vector<1x128xbf16>
    %331 = arith.truncf %288 : vector<1x128xf32> to vector<1x128xbf16>
    %cst_154 = arith.constant dense<0.000000e+00> : vector<1x384xf32>
    %332 = tpu.matmul %330, %326, %cst_154 {dimension_numbers = #tpu.dot_dimension_numbers<[1], [0], [0], [1], [0, 0, 1, 1], [], []>} : vector<1x128xbf16>, vector<128x384xbf16>, vector<1x384xf32> -> vector<1x384xf32>
    %333 = arith.addf %332, %328 : vector<1x384xf32>
    %cst_155 = arith.constant dense<0.000000e+00> : vector<1x384xf32>
    %334 = tpu.matmul %331, %327, %cst_155 {dimension_numbers = #tpu.dot_dimension_numbers<[1], [0], [0], [1], [0, 0, 1, 1], [], []>} : vector<1x128xbf16>, vector<128x384xbf16>, vector<1x384xf32> -> vector<1x384xf32>
    %335 = arith.addf %334, %329 : vector<1x384xf32>
    %336 = vector.extract_strided_slice %333 {offsets = [0, 0], sizes = [1, 128], strides = [1, 1]} : vector<1x384xf32> to vector<1x128xf32>
    %337 = vector.extract_strided_slice %335 {offsets = [0, 0], sizes = [1, 128], strides = [1, 1]} : vector<1x384xf32> to vector<1x128xf32>
    %338 = arith.addf %336, %337 : vector<1x128xf32>
    %339 = arith.negf %338 : vector<1x128xf32>
    %340 = math.exp %339 : vector<1x128xf32>
    %cst_156 = arith.constant 1.000000e+00 : f32
    %341 = vector.broadcast %cst_156 : f32 to vector<1x128xf32>
    %342 = arith.addf %341, %340 : vector<1x128xf32>
    %343 = arith.divf %341, %342 : vector<1x128xf32>
    %344 = vector.extract_strided_slice %333 {offsets = [0, 128], sizes = [1, 128], strides = [1, 1]} : vector<1x384xf32> to vector<1x128xf32>
    %345 = vector.extract_strided_slice %335 {offsets = [0, 128], sizes = [1, 128], strides = [1, 1]} : vector<1x384xf32> to vector<1x128xf32>
    %346 = arith.addf %344, %345 : vector<1x128xf32>
    %347 = arith.negf %346 : vector<1x128xf32>
    %348 = math.exp %347 : vector<1x128xf32>
    %cst_157 = arith.constant 1.000000e+00 : f32
    %349 = vector.broadcast %cst_157 : f32 to vector<1x128xf32>
    %350 = arith.addf %349, %348 : vector<1x128xf32>
    %351 = arith.divf %349, %350 : vector<1x128xf32>
    %352 = vector.extract_strided_slice %333 {offsets = [0, 256], sizes = [1, 128], strides = [1, 1]} : vector<1x384xf32> to vector<1x128xf32>
    %353 = vector.extract_strided_slice %335 {offsets = [0, 256], sizes = [1, 128], strides = [1, 1]} : vector<1x384xf32> to vector<1x128xf32>
    %354 = arith.mulf %343, %353 : vector<1x128xf32>
    %355 = arith.addf %352, %354 : vector<1x128xf32>
    %356 = math.tanh %355 : vector<1x128xf32>
    %cst_158 = arith.constant 1.000000e+00 : f32
    %357 = vector.broadcast %cst_158 : f32 to vector<1x128xf32>
    %358 = arith.subf %357, %351 : vector<1x128xf32>
    %359 = arith.mulf %358, %356 : vector<1x128xf32>
    %360 = arith.mulf %351, %288 : vector<1x128xf32>
    %361 = arith.addf %359, %360 : vector<1x128xf32>
    %362 = arith.truncf %361 : vector<1x128xf32> to vector<1x128xbf16>
    %c0_159 = arith.constant 0 : index
    %c0_160 = arith.constant 0 : index
    %363 = vector.load %arg17[%c0_159, %c0_160] : memref<128x128xbf16, #tpu.memory_space<vmem>>, vector<128x128xbf16>
    %cst_161 = arith.constant dense<0.000000e+00> : vector<1x128xf32>
    %364 = tpu.matmul %362, %363, %cst_161 {dimension_numbers = #tpu.dot_dimension_numbers<[1], [0], [0], [1], [0, 0, 1, 1], [], []>} : vector<1x128xbf16>, vector<128x128xbf16>, vector<1x128xf32> -> vector<1x128xf32>
    %c0_162 = arith.constant 0 : index
    %c0_163 = arith.constant 0 : index
    %365 = vector.load %arg18[%c0_162, %c0_163] : memref<1x128xf32, #tpu.memory_space<vmem>>, vector<1x128xf32>
    %366 = arith.addf %364, %365 : vector<1x128xf32>
    %cst_164 = arith.constant dense<0xFF800000> : vector<1xf32>
    %367 = vector.multi_reduction <maximumf>, %366, %cst_164 [1] : vector<1x128xf32> to vector<1xf32>
    %368 = vector.shape_cast %367 : vector<1xf32> to vector<1x1xf32>
    %369 = vector.broadcast %368 : vector<1x1xf32> to vector<1x128xf32>
    %370 = arith.subf %366, %369 : vector<1x128xf32>
    %371 = math.exp %370 : vector<1x128xf32>
    %cst_165 = arith.constant dense<0.000000e+00> : vector<1xf32>
    %372 = vector.multi_reduction <add>, %371, %cst_165 [1] : vector<1x128xf32> to vector<1xf32>
    %373 = vector.shape_cast %372 : vector<1xf32> to vector<1x1xf32>
    %374 = math.log %373 : vector<1x1xf32>
    %375 = vector.broadcast %374 : vector<1x1xf32> to vector<1x128xf32>
    %376 = arith.subf %370, %375 : vector<1x128xf32>
    %377 = arith.truncf %361 : vector<1x128xf32> to vector<1x128xbf16>
    %c0_166 = arith.constant 0 : index
    %c0_167 = arith.constant 0 : index
    %378 = vector.load %arg8[%c0_166, %c0_167] : memref<128x128xbf16, #tpu.memory_space<vmem>>, vector<128x128xbf16>
    %cst_168 = arith.constant dense<0.000000e+00> : vector<1x128xf32>
    %379 = tpu.matmul %377, %378, %cst_168 {dimension_numbers = #tpu.dot_dimension_numbers<[1], [0], [0], [1], [0, 0, 1, 1], [], []>} : vector<1x128xbf16>, vector<128x128xbf16>, vector<1x128xf32> -> vector<1x128xf32>
    %380 = arith.addf %226, %379 : vector<1x128xf32>
    %cst_169 = arith.constant dense<0xFF800000> : vector<1xf32>
    %381 = vector.multi_reduction <maximumf>, %380, %cst_169 [1] : vector<1x128xf32> to vector<1xf32>
    %382 = vector.shape_cast %381 : vector<1xf32> to vector<1x1xf32>
    %383 = vector.broadcast %382 : vector<1x1xf32> to vector<1x128xf32>
    %384 = arith.subf %380, %383 : vector<1x128xf32>
    %385 = math.exp %384 : vector<1x128xf32>
    %cst_170 = arith.constant dense<0.000000e+00> : vector<1xf32>
    %386 = vector.multi_reduction <add>, %385, %cst_170 [1] : vector<1x128xf32> to vector<1xf32>
    %387 = vector.shape_cast %386 : vector<1xf32> to vector<1x1xf32>
    %388 = tpu.reciprocal %387 {approx = true} : vector<1x1xf32> -> vector<1x1xf32>
    %389 = vector.broadcast %388 : vector<1x1xf32> to vector<1x128xf32>
    %390 = arith.mulf %385, %389 : vector<1x128xf32>
    %c0_171 = arith.constant 0 : index
    %c0_172 = arith.constant 0 : index
    %391 = vector.load %arg20[%c0_171, %c0_172] : memref<128x128xf32, #tpu.memory_space<vmem>>, vector<128x128xf32>
    %cst_173 = arith.constant dense<0.000000e+00> : vector<1x128xf32>
    %392 = tpu.matmul %390, %391, %cst_173 {dimension_numbers = #tpu.dot_dimension_numbers<[1], [0], [0], [1], [0, 0, 1, 1], [], []>} : vector<1x128xf32>, vector<128x128xf32>, vector<1x128xf32> -> vector<1x128xf32>
    %393 = arith.truncf %392 : vector<1x128xf32> to vector<1x128xbf16>
    %c0_174 = arith.constant 0 : index
    %c0_175 = arith.constant 0 : index
    %394 = vector.load %arg11[%c0_174, %c0_175] : memref<128x128xbf16, #tpu.memory_space<vmem>>, vector<128x128xbf16>
    %cst_176 = arith.constant dense<0.000000e+00> : vector<1x128xf32>
    %395 = tpu.matmul %393, %394, %cst_176 {dimension_numbers = #tpu.dot_dimension_numbers<[1], [0], [0], [1], [0, 0, 1, 1], [], []>} : vector<1x128xbf16>, vector<128x128xbf16>, vector<1x128xf32> -> vector<1x128xf32>
    %396 = arith.addf %230, %395 : vector<1x128xf32>
    %cst_177 = arith.constant 0.000000e+00 : f32
    %397 = vector.broadcast %cst_177 : f32 to vector<1x128xf32>
    %398 = arith.maximumf %396, %397 : vector<1x128xf32>
    %c0_178 = arith.constant 0 : index
    %c0_179 = arith.constant 0 : index
    %399 = vector.load %arg13[%c0_178, %c0_179] : memref<128x384xbf16, #tpu.memory_space<vmem>>, vector<128x384xbf16>
    %c0_180 = arith.constant 0 : index
    %c0_181 = arith.constant 0 : index
    %400 = vector.load %arg14[%c0_180, %c0_181] : memref<128x384xbf16, #tpu.memory_space<vmem>>, vector<128x384xbf16>
    %c0_182 = arith.constant 0 : index
    %c0_183 = arith.constant 0 : index
    %401 = vector.load %arg15[%c0_182, %c0_183] : memref<1x384xf32, #tpu.memory_space<vmem>>, vector<1x384xf32>
    %c0_184 = arith.constant 0 : index
    %c0_185 = arith.constant 0 : index
    %402 = vector.load %arg16[%c0_184, %c0_185] : memref<1x384xf32, #tpu.memory_space<vmem>>, vector<1x384xf32>
    %403 = arith.truncf %398 : vector<1x128xf32> to vector<1x128xbf16>
    %404 = arith.truncf %361 : vector<1x128xf32> to vector<1x128xbf16>
    %cst_186 = arith.constant dense<0.000000e+00> : vector<1x384xf32>
    %405 = tpu.matmul %403, %399, %cst_186 {dimension_numbers = #tpu.dot_dimension_numbers<[1], [0], [0], [1], [0, 0, 1, 1], [], []>} : vector<1x128xbf16>, vector<128x384xbf16>, vector<1x384xf32> -> vector<1x384xf32>
    %406 = arith.addf %405, %401 : vector<1x384xf32>
    %cst_187 = arith.constant dense<0.000000e+00> : vector<1x384xf32>
    %407 = tpu.matmul %404, %400, %cst_187 {dimension_numbers = #tpu.dot_dimension_numbers<[1], [0], [0], [1], [0, 0, 1, 1], [], []>} : vector<1x128xbf16>, vector<128x384xbf16>, vector<1x384xf32> -> vector<1x384xf32>
    %408 = arith.addf %407, %402 : vector<1x384xf32>
    %409 = vector.extract_strided_slice %406 {offsets = [0, 0], sizes = [1, 128], strides = [1, 1]} : vector<1x384xf32> to vector<1x128xf32>
    %410 = vector.extract_strided_slice %408 {offsets = [0, 0], sizes = [1, 128], strides = [1, 1]} : vector<1x384xf32> to vector<1x128xf32>
    %411 = arith.addf %409, %410 : vector<1x128xf32>
    %412 = arith.negf %411 : vector<1x128xf32>
    %413 = math.exp %412 : vector<1x128xf32>
    %cst_188 = arith.constant 1.000000e+00 : f32
    %414 = vector.broadcast %cst_188 : f32 to vector<1x128xf32>
    %415 = arith.addf %414, %413 : vector<1x128xf32>
    %416 = arith.divf %414, %415 : vector<1x128xf32>
    %417 = vector.extract_strided_slice %406 {offsets = [0, 128], sizes = [1, 128], strides = [1, 1]} : vector<1x384xf32> to vector<1x128xf32>
    %418 = vector.extract_strided_slice %408 {offsets = [0, 128], sizes = [1, 128], strides = [1, 1]} : vector<1x384xf32> to vector<1x128xf32>
    %419 = arith.addf %417, %418 : vector<1x128xf32>
    %420 = arith.negf %419 : vector<1x128xf32>
    %421 = math.exp %420 : vector<1x128xf32>
    %cst_189 = arith.constant 1.000000e+00 : f32
    %422 = vector.broadcast %cst_189 : f32 to vector<1x128xf32>
    %423 = arith.addf %422, %421 : vector<1x128xf32>
    %424 = arith.divf %422, %423 : vector<1x128xf32>
    %425 = vector.extract_strided_slice %406 {offsets = [0, 256], sizes = [1, 128], strides = [1, 1]} : vector<1x384xf32> to vector<1x128xf32>
    %426 = vector.extract_strided_slice %408 {offsets = [0, 256], sizes = [1, 128], strides = [1, 1]} : vector<1x384xf32> to vector<1x128xf32>
    %427 = arith.mulf %416, %426 : vector<1x128xf32>
    %428 = arith.addf %425, %427 : vector<1x128xf32>
    %429 = math.tanh %428 : vector<1x128xf32>
    %cst_190 = arith.constant 1.000000e+00 : f32
    %430 = vector.broadcast %cst_190 : f32 to vector<1x128xf32>
    %431 = arith.subf %430, %424 : vector<1x128xf32>
    %432 = arith.mulf %431, %429 : vector<1x128xf32>
    %433 = arith.mulf %424, %361 : vector<1x128xf32>
    %434 = arith.addf %432, %433 : vector<1x128xf32>
    %435 = arith.truncf %434 : vector<1x128xf32> to vector<1x128xbf16>
    %c0_191 = arith.constant 0 : index
    %c0_192 = arith.constant 0 : index
    %436 = vector.load %arg17[%c0_191, %c0_192] : memref<128x128xbf16, #tpu.memory_space<vmem>>, vector<128x128xbf16>
    %cst_193 = arith.constant dense<0.000000e+00> : vector<1x128xf32>
    %437 = tpu.matmul %435, %436, %cst_193 {dimension_numbers = #tpu.dot_dimension_numbers<[1], [0], [0], [1], [0, 0, 1, 1], [], []>} : vector<1x128xbf16>, vector<128x128xbf16>, vector<1x128xf32> -> vector<1x128xf32>
    %c0_194 = arith.constant 0 : index
    %c0_195 = arith.constant 0 : index
    %438 = vector.load %arg18[%c0_194, %c0_195] : memref<1x128xf32, #tpu.memory_space<vmem>>, vector<1x128xf32>
    %439 = arith.addf %437, %438 : vector<1x128xf32>
    %cst_196 = arith.constant dense<0xFF800000> : vector<1xf32>
    %440 = vector.multi_reduction <maximumf>, %439, %cst_196 [1] : vector<1x128xf32> to vector<1xf32>
    %441 = vector.shape_cast %440 : vector<1xf32> to vector<1x1xf32>
    %442 = vector.broadcast %441 : vector<1x1xf32> to vector<1x128xf32>
    %443 = arith.subf %439, %442 : vector<1x128xf32>
    %444 = math.exp %443 : vector<1x128xf32>
    %cst_197 = arith.constant dense<0.000000e+00> : vector<1xf32>
    %445 = vector.multi_reduction <add>, %444, %cst_197 [1] : vector<1x128xf32> to vector<1xf32>
    %446 = vector.shape_cast %445 : vector<1xf32> to vector<1x1xf32>
    %447 = math.log %446 : vector<1x1xf32>
    %448 = vector.broadcast %447 : vector<1x1xf32> to vector<1x128xf32>
    %449 = arith.subf %443, %448 : vector<1x128xf32>
    %450 = arith.truncf %434 : vector<1x128xf32> to vector<1x128xbf16>
    %c0_198 = arith.constant 0 : index
    %c0_199 = arith.constant 0 : index
    %451 = vector.load %arg8[%c0_198, %c0_199] : memref<128x128xbf16, #tpu.memory_space<vmem>>, vector<128x128xbf16>
    %cst_200 = arith.constant dense<0.000000e+00> : vector<1x128xf32>
    %452 = tpu.matmul %450, %451, %cst_200 {dimension_numbers = #tpu.dot_dimension_numbers<[1], [0], [0], [1], [0, 0, 1, 1], [], []>} : vector<1x128xbf16>, vector<128x128xbf16>, vector<1x128xf32> -> vector<1x128xf32>
    %453 = arith.addf %226, %452 : vector<1x128xf32>
    %cst_201 = arith.constant dense<0xFF800000> : vector<1xf32>
    %454 = vector.multi_reduction <maximumf>, %453, %cst_201 [1] : vector<1x128xf32> to vector<1xf32>
    %455 = vector.shape_cast %454 : vector<1xf32> to vector<1x1xf32>
    %456 = vector.broadcast %455 : vector<1x1xf32> to vector<1x128xf32>
    %457 = arith.subf %453, %456 : vector<1x128xf32>
    %458 = math.exp %457 : vector<1x128xf32>
    %cst_202 = arith.constant dense<0.000000e+00> : vector<1xf32>
    %459 = vector.multi_reduction <add>, %458, %cst_202 [1] : vector<1x128xf32> to vector<1xf32>
    %460 = vector.shape_cast %459 : vector<1xf32> to vector<1x1xf32>
    %461 = tpu.reciprocal %460 {approx = true} : vector<1x1xf32> -> vector<1x1xf32>
    %462 = vector.broadcast %461 : vector<1x1xf32> to vector<1x128xf32>
    %463 = arith.mulf %458, %462 : vector<1x128xf32>
    %c0_203 = arith.constant 0 : index
    %c0_204 = arith.constant 0 : index
    %464 = vector.load %arg20[%c0_203, %c0_204] : memref<128x128xf32, #tpu.memory_space<vmem>>, vector<128x128xf32>
    %cst_205 = arith.constant dense<0.000000e+00> : vector<1x128xf32>
    %465 = tpu.matmul %463, %464, %cst_205 {dimension_numbers = #tpu.dot_dimension_numbers<[1], [0], [0], [1], [0, 0, 1, 1], [], []>} : vector<1x128xf32>, vector<128x128xf32>, vector<1x128xf32> -> vector<1x128xf32>
    %466 = arith.truncf %465 : vector<1x128xf32> to vector<1x128xbf16>
    %c0_206 = arith.constant 0 : index
    %c0_207 = arith.constant 0 : index
    %467 = vector.load %arg11[%c0_206, %c0_207] : memref<128x128xbf16, #tpu.memory_space<vmem>>, vector<128x128xbf16>
    %cst_208 = arith.constant dense<0.000000e+00> : vector<1x128xf32>
    %468 = tpu.matmul %466, %467, %cst_208 {dimension_numbers = #tpu.dot_dimension_numbers<[1], [0], [0], [1], [0, 0, 1, 1], [], []>} : vector<1x128xbf16>, vector<128x128xbf16>, vector<1x128xf32> -> vector<1x128xf32>
    %469 = arith.addf %230, %468 : vector<1x128xf32>
    %cst_209 = arith.constant 0.000000e+00 : f32
    %470 = vector.broadcast %cst_209 : f32 to vector<1x128xf32>
    %471 = arith.maximumf %469, %470 : vector<1x128xf32>
    %c0_210 = arith.constant 0 : index
    %c0_211 = arith.constant 0 : index
    %472 = vector.load %arg13[%c0_210, %c0_211] : memref<128x384xbf16, #tpu.memory_space<vmem>>, vector<128x384xbf16>
    %c0_212 = arith.constant 0 : index
    %c0_213 = arith.constant 0 : index
    %473 = vector.load %arg14[%c0_212, %c0_213] : memref<128x384xbf16, #tpu.memory_space<vmem>>, vector<128x384xbf16>
    %c0_214 = arith.constant 0 : index
    %c0_215 = arith.constant 0 : index
    %474 = vector.load %arg15[%c0_214, %c0_215] : memref<1x384xf32, #tpu.memory_space<vmem>>, vector<1x384xf32>
    %c0_216 = arith.constant 0 : index
    %c0_217 = arith.constant 0 : index
    %475 = vector.load %arg16[%c0_216, %c0_217] : memref<1x384xf32, #tpu.memory_space<vmem>>, vector<1x384xf32>
    %476 = arith.truncf %471 : vector<1x128xf32> to vector<1x128xbf16>
    %477 = arith.truncf %434 : vector<1x128xf32> to vector<1x128xbf16>
    %cst_218 = arith.constant dense<0.000000e+00> : vector<1x384xf32>
    %478 = tpu.matmul %476, %472, %cst_218 {dimension_numbers = #tpu.dot_dimension_numbers<[1], [0], [0], [1], [0, 0, 1, 1], [], []>} : vector<1x128xbf16>, vector<128x384xbf16>, vector<1x384xf32> -> vector<1x384xf32>
    %479 = arith.addf %478, %474 : vector<1x384xf32>
    %cst_219 = arith.constant dense<0.000000e+00> : vector<1x384xf32>
    %480 = tpu.matmul %477, %473, %cst_219 {dimension_numbers = #tpu.dot_dimension_numbers<[1], [0], [0], [1], [0, 0, 1, 1], [], []>} : vector<1x128xbf16>, vector<128x384xbf16>, vector<1x384xf32> -> vector<1x384xf32>
    %481 = arith.addf %480, %475 : vector<1x384xf32>
    %482 = vector.extract_strided_slice %479 {offsets = [0, 0], sizes = [1, 128], strides = [1, 1]} : vector<1x384xf32> to vector<1x128xf32>
    %483 = vector.extract_strided_slice %481 {offsets = [0, 0], sizes = [1, 128], strides = [1, 1]} : vector<1x384xf32> to vector<1x128xf32>
    %484 = arith.addf %482, %483 : vector<1x128xf32>
    %485 = arith.negf %484 : vector<1x128xf32>
    %486 = math.exp %485 : vector<1x128xf32>
    %cst_220 = arith.constant 1.000000e+00 : f32
    %487 = vector.broadcast %cst_220 : f32 to vector<1x128xf32>
    %488 = arith.addf %487, %486 : vector<1x128xf32>
    %489 = arith.divf %487, %488 : vector<1x128xf32>
    %490 = vector.extract_strided_slice %479 {offsets = [0, 128], sizes = [1, 128], strides = [1, 1]} : vector<1x384xf32> to vector<1x128xf32>
    %491 = vector.extract_strided_slice %481 {offsets = [0, 128], sizes = [1, 128], strides = [1, 1]} : vector<1x384xf32> to vector<1x128xf32>
    %492 = arith.addf %490, %491 : vector<1x128xf32>
    %493 = arith.negf %492 : vector<1x128xf32>
    %494 = math.exp %493 : vector<1x128xf32>
    %cst_221 = arith.constant 1.000000e+00 : f32
    %495 = vector.broadcast %cst_221 : f32 to vector<1x128xf32>
    %496 = arith.addf %495, %494 : vector<1x128xf32>
    %497 = arith.divf %495, %496 : vector<1x128xf32>
    %498 = vector.extract_strided_slice %479 {offsets = [0, 256], sizes = [1, 128], strides = [1, 1]} : vector<1x384xf32> to vector<1x128xf32>
    %499 = vector.extract_strided_slice %481 {offsets = [0, 256], sizes = [1, 128], strides = [1, 1]} : vector<1x384xf32> to vector<1x128xf32>
    %500 = arith.mulf %489, %499 : vector<1x128xf32>
    %501 = arith.addf %498, %500 : vector<1x128xf32>
    %502 = math.tanh %501 : vector<1x128xf32>
    %cst_222 = arith.constant 1.000000e+00 : f32
    %503 = vector.broadcast %cst_222 : f32 to vector<1x128xf32>
    %504 = arith.subf %503, %497 : vector<1x128xf32>
    %505 = arith.mulf %504, %502 : vector<1x128xf32>
    %506 = arith.mulf %497, %434 : vector<1x128xf32>
    %507 = arith.addf %505, %506 : vector<1x128xf32>
    %508 = arith.truncf %507 : vector<1x128xf32> to vector<1x128xbf16>
    %c0_223 = arith.constant 0 : index
    %c0_224 = arith.constant 0 : index
    %509 = vector.load %arg17[%c0_223, %c0_224] : memref<128x128xbf16, #tpu.memory_space<vmem>>, vector<128x128xbf16>
    %cst_225 = arith.constant dense<0.000000e+00> : vector<1x128xf32>
    %510 = tpu.matmul %508, %509, %cst_225 {dimension_numbers = #tpu.dot_dimension_numbers<[1], [0], [0], [1], [0, 0, 1, 1], [], []>} : vector<1x128xbf16>, vector<128x128xbf16>, vector<1x128xf32> -> vector<1x128xf32>
    %c0_226 = arith.constant 0 : index
    %c0_227 = arith.constant 0 : index
    %511 = vector.load %arg18[%c0_226, %c0_227] : memref<1x128xf32, #tpu.memory_space<vmem>>, vector<1x128xf32>
    %512 = arith.addf %510, %511 : vector<1x128xf32>
    %cst_228 = arith.constant dense<0xFF800000> : vector<1xf32>
    %513 = vector.multi_reduction <maximumf>, %512, %cst_228 [1] : vector<1x128xf32> to vector<1xf32>
    %514 = vector.shape_cast %513 : vector<1xf32> to vector<1x1xf32>
    %515 = vector.broadcast %514 : vector<1x1xf32> to vector<1x128xf32>
    %516 = arith.subf %512, %515 : vector<1x128xf32>
    %517 = math.exp %516 : vector<1x128xf32>
    %cst_229 = arith.constant dense<0.000000e+00> : vector<1xf32>
    %518 = vector.multi_reduction <add>, %517, %cst_229 [1] : vector<1x128xf32> to vector<1xf32>
    %519 = vector.shape_cast %518 : vector<1xf32> to vector<1x1xf32>
    %520 = math.log %519 : vector<1x1xf32>
    %521 = vector.broadcast %520 : vector<1x1xf32> to vector<1x128xf32>
    %522 = arith.subf %516, %521 : vector<1x128xf32>
    %523 = arith.truncf %507 : vector<1x128xf32> to vector<1x128xbf16>
    %c0_230 = arith.constant 0 : index
    %c0_231 = arith.constant 0 : index
    %524 = vector.load %arg8[%c0_230, %c0_231] : memref<128x128xbf16, #tpu.memory_space<vmem>>, vector<128x128xbf16>
    %cst_232 = arith.constant dense<0.000000e+00> : vector<1x128xf32>
    %525 = tpu.matmul %523, %524, %cst_232 {dimension_numbers = #tpu.dot_dimension_numbers<[1], [0], [0], [1], [0, 0, 1, 1], [], []>} : vector<1x128xbf16>, vector<128x128xbf16>, vector<1x128xf32> -> vector<1x128xf32>
    %526 = arith.addf %226, %525 : vector<1x128xf32>
    %cst_233 = arith.constant dense<0xFF800000> : vector<1xf32>
    %527 = vector.multi_reduction <maximumf>, %526, %cst_233 [1] : vector<1x128xf32> to vector<1xf32>
    %528 = vector.shape_cast %527 : vector<1xf32> to vector<1x1xf32>
    %529 = vector.broadcast %528 : vector<1x1xf32> to vector<1x128xf32>
    %530 = arith.subf %526, %529 : vector<1x128xf32>
    %531 = math.exp %530 : vector<1x128xf32>
    %cst_234 = arith.constant dense<0.000000e+00> : vector<1xf32>
    %532 = vector.multi_reduction <add>, %531, %cst_234 [1] : vector<1x128xf32> to vector<1xf32>
    %533 = vector.shape_cast %532 : vector<1xf32> to vector<1x1xf32>
    %534 = tpu.reciprocal %533 {approx = true} : vector<1x1xf32> -> vector<1x1xf32>
    %535 = vector.broadcast %534 : vector<1x1xf32> to vector<1x128xf32>
    %536 = arith.mulf %531, %535 : vector<1x128xf32>
    %c0_235 = arith.constant 0 : index
    %c0_236 = arith.constant 0 : index
    %537 = vector.load %arg20[%c0_235, %c0_236] : memref<128x128xf32, #tpu.memory_space<vmem>>, vector<128x128xf32>
    %cst_237 = arith.constant dense<0.000000e+00> : vector<1x128xf32>
    %538 = tpu.matmul %536, %537, %cst_237 {dimension_numbers = #tpu.dot_dimension_numbers<[1], [0], [0], [1], [0, 0, 1, 1], [], []>} : vector<1x128xf32>, vector<128x128xf32>, vector<1x128xf32> -> vector<1x128xf32>
    %539 = arith.truncf %538 : vector<1x128xf32> to vector<1x128xbf16>
    %c0_238 = arith.constant 0 : index
    %c0_239 = arith.constant 0 : index
    %540 = vector.load %arg11[%c0_238, %c0_239] : memref<128x128xbf16, #tpu.memory_space<vmem>>, vector<128x128xbf16>
    %cst_240 = arith.constant dense<0.000000e+00> : vector<1x128xf32>
    %541 = tpu.matmul %539, %540, %cst_240 {dimension_numbers = #tpu.dot_dimension_numbers<[1], [0], [0], [1], [0, 0, 1, 1], [], []>} : vector<1x128xbf16>, vector<128x128xbf16>, vector<1x128xf32> -> vector<1x128xf32>
    %542 = arith.addf %230, %541 : vector<1x128xf32>
    %cst_241 = arith.constant 0.000000e+00 : f32
    %543 = vector.broadcast %cst_241 : f32 to vector<1x128xf32>
    %544 = arith.maximumf %542, %543 : vector<1x128xf32>
    %c0_242 = arith.constant 0 : index
    %c0_243 = arith.constant 0 : index
    %545 = vector.load %arg13[%c0_242, %c0_243] : memref<128x384xbf16, #tpu.memory_space<vmem>>, vector<128x384xbf16>
    %c0_244 = arith.constant 0 : index
    %c0_245 = arith.constant 0 : index
    %546 = vector.load %arg14[%c0_244, %c0_245] : memref<128x384xbf16, #tpu.memory_space<vmem>>, vector<128x384xbf16>
    %c0_246 = arith.constant 0 : index
    %c0_247 = arith.constant 0 : index
    %547 = vector.load %arg15[%c0_246, %c0_247] : memref<1x384xf32, #tpu.memory_space<vmem>>, vector<1x384xf32>
    %c0_248 = arith.constant 0 : index
    %c0_249 = arith.constant 0 : index
    %548 = vector.load %arg16[%c0_248, %c0_249] : memref<1x384xf32, #tpu.memory_space<vmem>>, vector<1x384xf32>
    %549 = arith.truncf %544 : vector<1x128xf32> to vector<1x128xbf16>
    %550 = arith.truncf %507 : vector<1x128xf32> to vector<1x128xbf16>
    %cst_250 = arith.constant dense<0.000000e+00> : vector<1x384xf32>
    %551 = tpu.matmul %549, %545, %cst_250 {dimension_numbers = #tpu.dot_dimension_numbers<[1], [0], [0], [1], [0, 0, 1, 1], [], []>} : vector<1x128xbf16>, vector<128x384xbf16>, vector<1x384xf32> -> vector<1x384xf32>
    %552 = arith.addf %551, %547 : vector<1x384xf32>
    %cst_251 = arith.constant dense<0.000000e+00> : vector<1x384xf32>
    %553 = tpu.matmul %550, %546, %cst_251 {dimension_numbers = #tpu.dot_dimension_numbers<[1], [0], [0], [1], [0, 0, 1, 1], [], []>} : vector<1x128xbf16>, vector<128x384xbf16>, vector<1x384xf32> -> vector<1x384xf32>
    %554 = arith.addf %553, %548 : vector<1x384xf32>
    %555 = vector.extract_strided_slice %552 {offsets = [0, 0], sizes = [1, 128], strides = [1, 1]} : vector<1x384xf32> to vector<1x128xf32>
    %556 = vector.extract_strided_slice %554 {offsets = [0, 0], sizes = [1, 128], strides = [1, 1]} : vector<1x384xf32> to vector<1x128xf32>
    %557 = arith.addf %555, %556 : vector<1x128xf32>
    %558 = arith.negf %557 : vector<1x128xf32>
    %559 = math.exp %558 : vector<1x128xf32>
    %cst_252 = arith.constant 1.000000e+00 : f32
    %560 = vector.broadcast %cst_252 : f32 to vector<1x128xf32>
    %561 = arith.addf %560, %559 : vector<1x128xf32>
    %562 = arith.divf %560, %561 : vector<1x128xf32>
    %563 = vector.extract_strided_slice %552 {offsets = [0, 128], sizes = [1, 128], strides = [1, 1]} : vector<1x384xf32> to vector<1x128xf32>
    %564 = vector.extract_strided_slice %554 {offsets = [0, 128], sizes = [1, 128], strides = [1, 1]} : vector<1x384xf32> to vector<1x128xf32>
    %565 = arith.addf %563, %564 : vector<1x128xf32>
    %566 = arith.negf %565 : vector<1x128xf32>
    %567 = math.exp %566 : vector<1x128xf32>
    %cst_253 = arith.constant 1.000000e+00 : f32
    %568 = vector.broadcast %cst_253 : f32 to vector<1x128xf32>
    %569 = arith.addf %568, %567 : vector<1x128xf32>
    %570 = arith.divf %568, %569 : vector<1x128xf32>
    %571 = vector.extract_strided_slice %552 {offsets = [0, 256], sizes = [1, 128], strides = [1, 1]} : vector<1x384xf32> to vector<1x128xf32>
    %572 = vector.extract_strided_slice %554 {offsets = [0, 256], sizes = [1, 128], strides = [1, 1]} : vector<1x384xf32> to vector<1x128xf32>
    %573 = arith.mulf %562, %572 : vector<1x128xf32>
    %574 = arith.addf %571, %573 : vector<1x128xf32>
    %575 = math.tanh %574 : vector<1x128xf32>
    %cst_254 = arith.constant 1.000000e+00 : f32
    %576 = vector.broadcast %cst_254 : f32 to vector<1x128xf32>
    %577 = arith.subf %576, %570 : vector<1x128xf32>
    %578 = arith.mulf %577, %575 : vector<1x128xf32>
    %579 = arith.mulf %570, %507 : vector<1x128xf32>
    %580 = arith.addf %578, %579 : vector<1x128xf32>
    %581 = arith.truncf %580 : vector<1x128xf32> to vector<1x128xbf16>
    %c0_255 = arith.constant 0 : index
    %c0_256 = arith.constant 0 : index
    %582 = vector.load %arg17[%c0_255, %c0_256] : memref<128x128xbf16, #tpu.memory_space<vmem>>, vector<128x128xbf16>
    %cst_257 = arith.constant dense<0.000000e+00> : vector<1x128xf32>
    %583 = tpu.matmul %581, %582, %cst_257 {dimension_numbers = #tpu.dot_dimension_numbers<[1], [0], [0], [1], [0, 0, 1, 1], [], []>} : vector<1x128xbf16>, vector<128x128xbf16>, vector<1x128xf32> -> vector<1x128xf32>
    %c0_258 = arith.constant 0 : index
    %c0_259 = arith.constant 0 : index
    %584 = vector.load %arg18[%c0_258, %c0_259] : memref<1x128xf32, #tpu.memory_space<vmem>>, vector<1x128xf32>
    %585 = arith.addf %583, %584 : vector<1x128xf32>
    %cst_260 = arith.constant dense<0xFF800000> : vector<1xf32>
    %586 = vector.multi_reduction <maximumf>, %585, %cst_260 [1] : vector<1x128xf32> to vector<1xf32>
    %587 = vector.shape_cast %586 : vector<1xf32> to vector<1x1xf32>
    %588 = vector.broadcast %587 : vector<1x1xf32> to vector<1x128xf32>
    %589 = arith.subf %585, %588 : vector<1x128xf32>
    %590 = math.exp %589 : vector<1x128xf32>
    %cst_261 = arith.constant dense<0.000000e+00> : vector<1xf32>
    %591 = vector.multi_reduction <add>, %590, %cst_261 [1] : vector<1x128xf32> to vector<1xf32>
    %592 = vector.shape_cast %591 : vector<1xf32> to vector<1x1xf32>
    %593 = math.log %592 : vector<1x1xf32>
    %594 = vector.broadcast %593 : vector<1x1xf32> to vector<1x128xf32>
    %595 = arith.subf %589, %594 : vector<1x128xf32>
    %596 = arith.truncf %580 : vector<1x128xf32> to vector<1x128xbf16>
    %c0_262 = arith.constant 0 : index
    %c0_263 = arith.constant 0 : index
    %597 = vector.load %arg8[%c0_262, %c0_263] : memref<128x128xbf16, #tpu.memory_space<vmem>>, vector<128x128xbf16>
    %cst_264 = arith.constant dense<0.000000e+00> : vector<1x128xf32>
    %598 = tpu.matmul %596, %597, %cst_264 {dimension_numbers = #tpu.dot_dimension_numbers<[1], [0], [0], [1], [0, 0, 1, 1], [], []>} : vector<1x128xbf16>, vector<128x128xbf16>, vector<1x128xf32> -> vector<1x128xf32>
    %599 = arith.addf %226, %598 : vector<1x128xf32>
    %cst_265 = arith.constant dense<0xFF800000> : vector<1xf32>
    %600 = vector.multi_reduction <maximumf>, %599, %cst_265 [1] : vector<1x128xf32> to vector<1xf32>
    %601 = vector.shape_cast %600 : vector<1xf32> to vector<1x1xf32>
    %602 = vector.broadcast %601 : vector<1x1xf32> to vector<1x128xf32>
    %603 = arith.subf %599, %602 : vector<1x128xf32>
    %604 = math.exp %603 : vector<1x128xf32>
    %cst_266 = arith.constant dense<0.000000e+00> : vector<1xf32>
    %605 = vector.multi_reduction <add>, %604, %cst_266 [1] : vector<1x128xf32> to vector<1xf32>
    %606 = vector.shape_cast %605 : vector<1xf32> to vector<1x1xf32>
    %607 = tpu.reciprocal %606 {approx = true} : vector<1x1xf32> -> vector<1x1xf32>
    %608 = vector.broadcast %607 : vector<1x1xf32> to vector<1x128xf32>
    %609 = arith.mulf %604, %608 : vector<1x128xf32>
    %c0_267 = arith.constant 0 : index
    %c0_268 = arith.constant 0 : index
    %610 = vector.load %arg20[%c0_267, %c0_268] : memref<128x128xf32, #tpu.memory_space<vmem>>, vector<128x128xf32>
    %cst_269 = arith.constant dense<0.000000e+00> : vector<1x128xf32>
    %611 = tpu.matmul %609, %610, %cst_269 {dimension_numbers = #tpu.dot_dimension_numbers<[1], [0], [0], [1], [0, 0, 1, 1], [], []>} : vector<1x128xf32>, vector<128x128xf32>, vector<1x128xf32> -> vector<1x128xf32>
    %612 = arith.truncf %611 : vector<1x128xf32> to vector<1x128xbf16>
    %c0_270 = arith.constant 0 : index
    %c0_271 = arith.constant 0 : index
    %613 = vector.load %arg11[%c0_270, %c0_271] : memref<128x128xbf16, #tpu.memory_space<vmem>>, vector<128x128xbf16>
    %cst_272 = arith.constant dense<0.000000e+00> : vector<1x128xf32>
    %614 = tpu.matmul %612, %613, %cst_272 {dimension_numbers = #tpu.dot_dimension_numbers<[1], [0], [0], [1], [0, 0, 1, 1], [], []>} : vector<1x128xbf16>, vector<128x128xbf16>, vector<1x128xf32> -> vector<1x128xf32>
    %615 = arith.addf %230, %614 : vector<1x128xf32>
    %cst_273 = arith.constant 0.000000e+00 : f32
    %616 = vector.broadcast %cst_273 : f32 to vector<1x128xf32>
    %617 = arith.maximumf %615, %616 : vector<1x128xf32>
    %c0_274 = arith.constant 0 : index
    %c0_275 = arith.constant 0 : index
    %618 = vector.load %arg13[%c0_274, %c0_275] : memref<128x384xbf16, #tpu.memory_space<vmem>>, vector<128x384xbf16>
    %c0_276 = arith.constant 0 : index
    %c0_277 = arith.constant 0 : index
    %619 = vector.load %arg14[%c0_276, %c0_277] : memref<128x384xbf16, #tpu.memory_space<vmem>>, vector<128x384xbf16>
    %c0_278 = arith.constant 0 : index
    %c0_279 = arith.constant 0 : index
    %620 = vector.load %arg15[%c0_278, %c0_279] : memref<1x384xf32, #tpu.memory_space<vmem>>, vector<1x384xf32>
    %c0_280 = arith.constant 0 : index
    %c0_281 = arith.constant 0 : index
    %621 = vector.load %arg16[%c0_280, %c0_281] : memref<1x384xf32, #tpu.memory_space<vmem>>, vector<1x384xf32>
    %622 = arith.truncf %617 : vector<1x128xf32> to vector<1x128xbf16>
    %623 = arith.truncf %580 : vector<1x128xf32> to vector<1x128xbf16>
    %cst_282 = arith.constant dense<0.000000e+00> : vector<1x384xf32>
    %624 = tpu.matmul %622, %618, %cst_282 {dimension_numbers = #tpu.dot_dimension_numbers<[1], [0], [0], [1], [0, 0, 1, 1], [], []>} : vector<1x128xbf16>, vector<128x384xbf16>, vector<1x384xf32> -> vector<1x384xf32>
    %625 = arith.addf %624, %620 : vector<1x384xf32>
    %cst_283 = arith.constant dense<0.000000e+00> : vector<1x384xf32>
    %626 = tpu.matmul %623, %619, %cst_283 {dimension_numbers = #tpu.dot_dimension_numbers<[1], [0], [0], [1], [0, 0, 1, 1], [], []>} : vector<1x128xbf16>, vector<128x384xbf16>, vector<1x384xf32> -> vector<1x384xf32>
    %627 = arith.addf %626, %621 : vector<1x384xf32>
    %628 = vector.extract_strided_slice %625 {offsets = [0, 0], sizes = [1, 128], strides = [1, 1]} : vector<1x384xf32> to vector<1x128xf32>
    %629 = vector.extract_strided_slice %627 {offsets = [0, 0], sizes = [1, 128], strides = [1, 1]} : vector<1x384xf32> to vector<1x128xf32>
    %630 = arith.addf %628, %629 : vector<1x128xf32>
    %631 = arith.negf %630 : vector<1x128xf32>
    %632 = math.exp %631 : vector<1x128xf32>
    %cst_284 = arith.constant 1.000000e+00 : f32
    %633 = vector.broadcast %cst_284 : f32 to vector<1x128xf32>
    %634 = arith.addf %633, %632 : vector<1x128xf32>
    %635 = arith.divf %633, %634 : vector<1x128xf32>
    %636 = vector.extract_strided_slice %625 {offsets = [0, 128], sizes = [1, 128], strides = [1, 1]} : vector<1x384xf32> to vector<1x128xf32>
    %637 = vector.extract_strided_slice %627 {offsets = [0, 128], sizes = [1, 128], strides = [1, 1]} : vector<1x384xf32> to vector<1x128xf32>
    %638 = arith.addf %636, %637 : vector<1x128xf32>
    %639 = arith.negf %638 : vector<1x128xf32>
    %640 = math.exp %639 : vector<1x128xf32>
    %cst_285 = arith.constant 1.000000e+00 : f32
    %641 = vector.broadcast %cst_285 : f32 to vector<1x128xf32>
    %642 = arith.addf %641, %640 : vector<1x128xf32>
    %643 = arith.divf %641, %642 : vector<1x128xf32>
    %644 = vector.extract_strided_slice %625 {offsets = [0, 256], sizes = [1, 128], strides = [1, 1]} : vector<1x384xf32> to vector<1x128xf32>
    %645 = vector.extract_strided_slice %627 {offsets = [0, 256], sizes = [1, 128], strides = [1, 1]} : vector<1x384xf32> to vector<1x128xf32>
    %646 = arith.mulf %635, %645 : vector<1x128xf32>
    %647 = arith.addf %644, %646 : vector<1x128xf32>
    %648 = math.tanh %647 : vector<1x128xf32>
    %cst_286 = arith.constant 1.000000e+00 : f32
    %649 = vector.broadcast %cst_286 : f32 to vector<1x128xf32>
    %650 = arith.subf %649, %643 : vector<1x128xf32>
    %651 = arith.mulf %650, %648 : vector<1x128xf32>
    %652 = arith.mulf %643, %580 : vector<1x128xf32>
    %653 = arith.addf %651, %652 : vector<1x128xf32>
    %654 = arith.truncf %653 : vector<1x128xf32> to vector<1x128xbf16>
    %c0_287 = arith.constant 0 : index
    %c0_288 = arith.constant 0 : index
    %655 = vector.load %arg17[%c0_287, %c0_288] : memref<128x128xbf16, #tpu.memory_space<vmem>>, vector<128x128xbf16>
    %cst_289 = arith.constant dense<0.000000e+00> : vector<1x128xf32>
    %656 = tpu.matmul %654, %655, %cst_289 {dimension_numbers = #tpu.dot_dimension_numbers<[1], [0], [0], [1], [0, 0, 1, 1], [], []>} : vector<1x128xbf16>, vector<128x128xbf16>, vector<1x128xf32> -> vector<1x128xf32>
    %c0_290 = arith.constant 0 : index
    %c0_291 = arith.constant 0 : index
    %657 = vector.load %arg18[%c0_290, %c0_291] : memref<1x128xf32, #tpu.memory_space<vmem>>, vector<1x128xf32>
    %658 = arith.addf %656, %657 : vector<1x128xf32>
    %cst_292 = arith.constant dense<0xFF800000> : vector<1xf32>
    %659 = vector.multi_reduction <maximumf>, %658, %cst_292 [1] : vector<1x128xf32> to vector<1xf32>
    %660 = vector.shape_cast %659 : vector<1xf32> to vector<1x1xf32>
    %661 = vector.broadcast %660 : vector<1x1xf32> to vector<1x128xf32>
    %662 = arith.subf %658, %661 : vector<1x128xf32>
    %663 = math.exp %662 : vector<1x128xf32>
    %cst_293 = arith.constant dense<0.000000e+00> : vector<1xf32>
    %664 = vector.multi_reduction <add>, %663, %cst_293 [1] : vector<1x128xf32> to vector<1xf32>
    %665 = vector.shape_cast %664 : vector<1xf32> to vector<1x1xf32>
    %666 = math.log %665 : vector<1x1xf32>
    %667 = vector.broadcast %666 : vector<1x1xf32> to vector<1x128xf32>
    %668 = arith.subf %662, %667 : vector<1x128xf32>
    %669 = arith.truncf %653 : vector<1x128xf32> to vector<1x128xbf16>
    %c0_294 = arith.constant 0 : index
    %c0_295 = arith.constant 0 : index
    %670 = vector.load %arg8[%c0_294, %c0_295] : memref<128x128xbf16, #tpu.memory_space<vmem>>, vector<128x128xbf16>
    %cst_296 = arith.constant dense<0.000000e+00> : vector<1x128xf32>
    %671 = tpu.matmul %669, %670, %cst_296 {dimension_numbers = #tpu.dot_dimension_numbers<[1], [0], [0], [1], [0, 0, 1, 1], [], []>} : vector<1x128xbf16>, vector<128x128xbf16>, vector<1x128xf32> -> vector<1x128xf32>
    %672 = arith.addf %226, %671 : vector<1x128xf32>
    %cst_297 = arith.constant dense<0xFF800000> : vector<1xf32>
    %673 = vector.multi_reduction <maximumf>, %672, %cst_297 [1] : vector<1x128xf32> to vector<1xf32>
    %674 = vector.shape_cast %673 : vector<1xf32> to vector<1x1xf32>
    %675 = vector.broadcast %674 : vector<1x1xf32> to vector<1x128xf32>
    %676 = arith.subf %672, %675 : vector<1x128xf32>
    %677 = math.exp %676 : vector<1x128xf32>
    %cst_298 = arith.constant dense<0.000000e+00> : vector<1xf32>
    %678 = vector.multi_reduction <add>, %677, %cst_298 [1] : vector<1x128xf32> to vector<1xf32>
    %679 = vector.shape_cast %678 : vector<1xf32> to vector<1x1xf32>
    %680 = tpu.reciprocal %679 {approx = true} : vector<1x1xf32> -> vector<1x1xf32>
    %681 = vector.broadcast %680 : vector<1x1xf32> to vector<1x128xf32>
    %682 = arith.mulf %677, %681 : vector<1x128xf32>
    %c0_299 = arith.constant 0 : index
    %c0_300 = arith.constant 0 : index
    %683 = vector.load %arg20[%c0_299, %c0_300] : memref<128x128xf32, #tpu.memory_space<vmem>>, vector<128x128xf32>
    %cst_301 = arith.constant dense<0.000000e+00> : vector<1x128xf32>
    %684 = tpu.matmul %682, %683, %cst_301 {dimension_numbers = #tpu.dot_dimension_numbers<[1], [0], [0], [1], [0, 0, 1, 1], [], []>} : vector<1x128xf32>, vector<128x128xf32>, vector<1x128xf32> -> vector<1x128xf32>
    %685 = arith.truncf %684 : vector<1x128xf32> to vector<1x128xbf16>
    %c0_302 = arith.constant 0 : index
    %c0_303 = arith.constant 0 : index
    %686 = vector.load %arg11[%c0_302, %c0_303] : memref<128x128xbf16, #tpu.memory_space<vmem>>, vector<128x128xbf16>
    %cst_304 = arith.constant dense<0.000000e+00> : vector<1x128xf32>
    %687 = tpu.matmul %685, %686, %cst_304 {dimension_numbers = #tpu.dot_dimension_numbers<[1], [0], [0], [1], [0, 0, 1, 1], [], []>} : vector<1x128xbf16>, vector<128x128xbf16>, vector<1x128xf32> -> vector<1x128xf32>
    %688 = arith.addf %230, %687 : vector<1x128xf32>
    %cst_305 = arith.constant 0.000000e+00 : f32
    %689 = vector.broadcast %cst_305 : f32 to vector<1x128xf32>
    %690 = arith.maximumf %688, %689 : vector<1x128xf32>
    %c0_306 = arith.constant 0 : index
    %c0_307 = arith.constant 0 : index
    %691 = vector.load %arg13[%c0_306, %c0_307] : memref<128x384xbf16, #tpu.memory_space<vmem>>, vector<128x384xbf16>
    %c0_308 = arith.constant 0 : index
    %c0_309 = arith.constant 0 : index
    %692 = vector.load %arg14[%c0_308, %c0_309] : memref<128x384xbf16, #tpu.memory_space<vmem>>, vector<128x384xbf16>
    %c0_310 = arith.constant 0 : index
    %c0_311 = arith.constant 0 : index
    %693 = vector.load %arg15[%c0_310, %c0_311] : memref<1x384xf32, #tpu.memory_space<vmem>>, vector<1x384xf32>
    %c0_312 = arith.constant 0 : index
    %c0_313 = arith.constant 0 : index
    %694 = vector.load %arg16[%c0_312, %c0_313] : memref<1x384xf32, #tpu.memory_space<vmem>>, vector<1x384xf32>
    %695 = arith.truncf %690 : vector<1x128xf32> to vector<1x128xbf16>
    %696 = arith.truncf %653 : vector<1x128xf32> to vector<1x128xbf16>
    %cst_314 = arith.constant dense<0.000000e+00> : vector<1x384xf32>
    %697 = tpu.matmul %695, %691, %cst_314 {dimension_numbers = #tpu.dot_dimension_numbers<[1], [0], [0], [1], [0, 0, 1, 1], [], []>} : vector<1x128xbf16>, vector<128x384xbf16>, vector<1x384xf32> -> vector<1x384xf32>
    %698 = arith.addf %697, %693 : vector<1x384xf32>
    %cst_315 = arith.constant dense<0.000000e+00> : vector<1x384xf32>
    %699 = tpu.matmul %696, %692, %cst_315 {dimension_numbers = #tpu.dot_dimension_numbers<[1], [0], [0], [1], [0, 0, 1, 1], [], []>} : vector<1x128xbf16>, vector<128x384xbf16>, vector<1x384xf32> -> vector<1x384xf32>
    %700 = arith.addf %699, %694 : vector<1x384xf32>
    %701 = vector.extract_strided_slice %698 {offsets = [0, 0], sizes = [1, 128], strides = [1, 1]} : vector<1x384xf32> to vector<1x128xf32>
    %702 = vector.extract_strided_slice %700 {offsets = [0, 0], sizes = [1, 128], strides = [1, 1]} : vector<1x384xf32> to vector<1x128xf32>
    %703 = arith.addf %701, %702 : vector<1x128xf32>
    %704 = arith.negf %703 : vector<1x128xf32>
    %705 = math.exp %704 : vector<1x128xf32>
    %cst_316 = arith.constant 1.000000e+00 : f32
    %706 = vector.broadcast %cst_316 : f32 to vector<1x128xf32>
    %707 = arith.addf %706, %705 : vector<1x128xf32>
    %708 = arith.divf %706, %707 : vector<1x128xf32>
    %709 = vector.extract_strided_slice %698 {offsets = [0, 128], sizes = [1, 128], strides = [1, 1]} : vector<1x384xf32> to vector<1x128xf32>
    %710 = vector.extract_strided_slice %700 {offsets = [0, 128], sizes = [1, 128], strides = [1, 1]} : vector<1x384xf32> to vector<1x128xf32>
    %711 = arith.addf %709, %710 : vector<1x128xf32>
    %712 = arith.negf %711 : vector<1x128xf32>
    %713 = math.exp %712 : vector<1x128xf32>
    %cst_317 = arith.constant 1.000000e+00 : f32
    %714 = vector.broadcast %cst_317 : f32 to vector<1x128xf32>
    %715 = arith.addf %714, %713 : vector<1x128xf32>
    %716 = arith.divf %714, %715 : vector<1x128xf32>
    %717 = vector.extract_strided_slice %698 {offsets = [0, 256], sizes = [1, 128], strides = [1, 1]} : vector<1x384xf32> to vector<1x128xf32>
    %718 = vector.extract_strided_slice %700 {offsets = [0, 256], sizes = [1, 128], strides = [1, 1]} : vector<1x384xf32> to vector<1x128xf32>
    %719 = arith.mulf %708, %718 : vector<1x128xf32>
    %720 = arith.addf %717, %719 : vector<1x128xf32>
    %721 = math.tanh %720 : vector<1x128xf32>
    %cst_318 = arith.constant 1.000000e+00 : f32
    %722 = vector.broadcast %cst_318 : f32 to vector<1x128xf32>
    %723 = arith.subf %722, %716 : vector<1x128xf32>
    %724 = arith.mulf %723, %721 : vector<1x128xf32>
    %725 = arith.mulf %716, %653 : vector<1x128xf32>
    %726 = arith.addf %724, %725 : vector<1x128xf32>
    %727 = arith.truncf %726 : vector<1x128xf32> to vector<1x128xbf16>
    %c0_319 = arith.constant 0 : index
    %c0_320 = arith.constant 0 : index
    %728 = vector.load %arg17[%c0_319, %c0_320] : memref<128x128xbf16, #tpu.memory_space<vmem>>, vector<128x128xbf16>
    %cst_321 = arith.constant dense<0.000000e+00> : vector<1x128xf32>
    %729 = tpu.matmul %727, %728, %cst_321 {dimension_numbers = #tpu.dot_dimension_numbers<[1], [0], [0], [1], [0, 0, 1, 1], [], []>} : vector<1x128xbf16>, vector<128x128xbf16>, vector<1x128xf32> -> vector<1x128xf32>
    %c0_322 = arith.constant 0 : index
    %c0_323 = arith.constant 0 : index
    %730 = vector.load %arg18[%c0_322, %c0_323] : memref<1x128xf32, #tpu.memory_space<vmem>>, vector<1x128xf32>
    %731 = arith.addf %729, %730 : vector<1x128xf32>
    %cst_324 = arith.constant dense<0xFF800000> : vector<1xf32>
    %732 = vector.multi_reduction <maximumf>, %731, %cst_324 [1] : vector<1x128xf32> to vector<1xf32>
    %733 = vector.shape_cast %732 : vector<1xf32> to vector<1x1xf32>
    %734 = vector.broadcast %733 : vector<1x1xf32> to vector<1x128xf32>
    %735 = arith.subf %731, %734 : vector<1x128xf32>
    %736 = math.exp %735 : vector<1x128xf32>
    %cst_325 = arith.constant dense<0.000000e+00> : vector<1xf32>
    %737 = vector.multi_reduction <add>, %736, %cst_325 [1] : vector<1x128xf32> to vector<1xf32>
    %738 = vector.shape_cast %737 : vector<1xf32> to vector<1x1xf32>
    %739 = math.log %738 : vector<1x1xf32>
    %740 = vector.broadcast %739 : vector<1x1xf32> to vector<1x128xf32>
    %741 = arith.subf %735, %740 : vector<1x128xf32>
    %742 = arith.truncf %726 : vector<1x128xf32> to vector<1x128xbf16>
    %c0_326 = arith.constant 0 : index
    %c0_327 = arith.constant 0 : index
    %743 = vector.load %arg8[%c0_326, %c0_327] : memref<128x128xbf16, #tpu.memory_space<vmem>>, vector<128x128xbf16>
    %cst_328 = arith.constant dense<0.000000e+00> : vector<1x128xf32>
    %744 = tpu.matmul %742, %743, %cst_328 {dimension_numbers = #tpu.dot_dimension_numbers<[1], [0], [0], [1], [0, 0, 1, 1], [], []>} : vector<1x128xbf16>, vector<128x128xbf16>, vector<1x128xf32> -> vector<1x128xf32>
    %745 = arith.addf %226, %744 : vector<1x128xf32>
    %cst_329 = arith.constant dense<0xFF800000> : vector<1xf32>
    %746 = vector.multi_reduction <maximumf>, %745, %cst_329 [1] : vector<1x128xf32> to vector<1xf32>
    %747 = vector.shape_cast %746 : vector<1xf32> to vector<1x1xf32>
    %748 = vector.broadcast %747 : vector<1x1xf32> to vector<1x128xf32>
    %749 = arith.subf %745, %748 : vector<1x128xf32>
    %750 = math.exp %749 : vector<1x128xf32>
    %cst_330 = arith.constant dense<0.000000e+00> : vector<1xf32>
    %751 = vector.multi_reduction <add>, %750, %cst_330 [1] : vector<1x128xf32> to vector<1xf32>
    %752 = vector.shape_cast %751 : vector<1xf32> to vector<1x1xf32>
    %753 = tpu.reciprocal %752 {approx = true} : vector<1x1xf32> -> vector<1x1xf32>
    %754 = vector.broadcast %753 : vector<1x1xf32> to vector<1x128xf32>
    %755 = arith.mulf %750, %754 : vector<1x128xf32>
    %c0_331 = arith.constant 0 : index
    %c0_332 = arith.constant 0 : index
    %756 = vector.load %arg20[%c0_331, %c0_332] : memref<128x128xf32, #tpu.memory_space<vmem>>, vector<128x128xf32>
    %cst_333 = arith.constant dense<0.000000e+00> : vector<1x128xf32>
    %757 = tpu.matmul %755, %756, %cst_333 {dimension_numbers = #tpu.dot_dimension_numbers<[1], [0], [0], [1], [0, 0, 1, 1], [], []>} : vector<1x128xf32>, vector<128x128xf32>, vector<1x128xf32> -> vector<1x128xf32>
    %758 = arith.truncf %757 : vector<1x128xf32> to vector<1x128xbf16>
    %c0_334 = arith.constant 0 : index
    %c0_335 = arith.constant 0 : index
    %759 = vector.load %arg11[%c0_334, %c0_335] : memref<128x128xbf16, #tpu.memory_space<vmem>>, vector<128x128xbf16>
    %cst_336 = arith.constant dense<0.000000e+00> : vector<1x128xf32>
    %760 = tpu.matmul %758, %759, %cst_336 {dimension_numbers = #tpu.dot_dimension_numbers<[1], [0], [0], [1], [0, 0, 1, 1], [], []>} : vector<1x128xbf16>, vector<128x128xbf16>, vector<1x128xf32> -> vector<1x128xf32>
    %761 = arith.addf %230, %760 : vector<1x128xf32>
    %cst_337 = arith.constant 0.000000e+00 : f32
    %762 = vector.broadcast %cst_337 : f32 to vector<1x128xf32>
    %763 = arith.maximumf %761, %762 : vector<1x128xf32>
    %c0_338 = arith.constant 0 : index
    %c0_339 = arith.constant 0 : index
    %764 = vector.load %arg13[%c0_338, %c0_339] : memref<128x384xbf16, #tpu.memory_space<vmem>>, vector<128x384xbf16>
    %c0_340 = arith.constant 0 : index
    %c0_341 = arith.constant 0 : index
    %765 = vector.load %arg14[%c0_340, %c0_341] : memref<128x384xbf16, #tpu.memory_space<vmem>>, vector<128x384xbf16>
    %c0_342 = arith.constant 0 : index
    %c0_343 = arith.constant 0 : index
    %766 = vector.load %arg15[%c0_342, %c0_343] : memref<1x384xf32, #tpu.memory_space<vmem>>, vector<1x384xf32>
    %c0_344 = arith.constant 0 : index
    %c0_345 = arith.constant 0 : index
    %767 = vector.load %arg16[%c0_344, %c0_345] : memref<1x384xf32, #tpu.memory_space<vmem>>, vector<1x384xf32>
    %768 = arith.truncf %763 : vector<1x128xf32> to vector<1x128xbf16>
    %769 = arith.truncf %726 : vector<1x128xf32> to vector<1x128xbf16>
    %cst_346 = arith.constant dense<0.000000e+00> : vector<1x384xf32>
    %770 = tpu.matmul %768, %764, %cst_346 {dimension_numbers = #tpu.dot_dimension_numbers<[1], [0], [0], [1], [0, 0, 1, 1], [], []>} : vector<1x128xbf16>, vector<128x384xbf16>, vector<1x384xf32> -> vector<1x384xf32>
    %771 = arith.addf %770, %766 : vector<1x384xf32>
    %cst_347 = arith.constant dense<0.000000e+00> : vector<1x384xf32>
    %772 = tpu.matmul %769, %765, %cst_347 {dimension_numbers = #tpu.dot_dimension_numbers<[1], [0], [0], [1], [0, 0, 1, 1], [], []>} : vector<1x128xbf16>, vector<128x384xbf16>, vector<1x384xf32> -> vector<1x384xf32>
    %773 = arith.addf %772, %767 : vector<1x384xf32>
    %774 = vector.extract_strided_slice %771 {offsets = [0, 0], sizes = [1, 128], strides = [1, 1]} : vector<1x384xf32> to vector<1x128xf32>
    %775 = vector.extract_strided_slice %773 {offsets = [0, 0], sizes = [1, 128], strides = [1, 1]} : vector<1x384xf32> to vector<1x128xf32>
    %776 = arith.addf %774, %775 : vector<1x128xf32>
    %777 = arith.negf %776 : vector<1x128xf32>
    %778 = math.exp %777 : vector<1x128xf32>
    %cst_348 = arith.constant 1.000000e+00 : f32
    %779 = vector.broadcast %cst_348 : f32 to vector<1x128xf32>
    %780 = arith.addf %779, %778 : vector<1x128xf32>
    %781 = arith.divf %779, %780 : vector<1x128xf32>
    %782 = vector.extract_strided_slice %771 {offsets = [0, 128], sizes = [1, 128], strides = [1, 1]} : vector<1x384xf32> to vector<1x128xf32>
    %783 = vector.extract_strided_slice %773 {offsets = [0, 128], sizes = [1, 128], strides = [1, 1]} : vector<1x384xf32> to vector<1x128xf32>
    %784 = arith.addf %782, %783 : vector<1x128xf32>
    %785 = arith.negf %784 : vector<1x128xf32>
    %786 = math.exp %785 : vector<1x128xf32>
    %cst_349 = arith.constant 1.000000e+00 : f32
    %787 = vector.broadcast %cst_349 : f32 to vector<1x128xf32>
    %788 = arith.addf %787, %786 : vector<1x128xf32>
    %789 = arith.divf %787, %788 : vector<1x128xf32>
    %790 = vector.extract_strided_slice %771 {offsets = [0, 256], sizes = [1, 128], strides = [1, 1]} : vector<1x384xf32> to vector<1x128xf32>
    %791 = vector.extract_strided_slice %773 {offsets = [0, 256], sizes = [1, 128], strides = [1, 1]} : vector<1x384xf32> to vector<1x128xf32>
    %792 = arith.mulf %781, %791 : vector<1x128xf32>
    %793 = arith.addf %790, %792 : vector<1x128xf32>
    %794 = math.tanh %793 : vector<1x128xf32>
    %cst_350 = arith.constant 1.000000e+00 : f32
    %795 = vector.broadcast %cst_350 : f32 to vector<1x128xf32>
    %796 = arith.subf %795, %789 : vector<1x128xf32>
    %797 = arith.mulf %796, %794 : vector<1x128xf32>
    %798 = arith.mulf %789, %726 : vector<1x128xf32>
    %799 = arith.addf %797, %798 : vector<1x128xf32>
    %800 = arith.truncf %799 : vector<1x128xf32> to vector<1x128xbf16>
    %c0_351 = arith.constant 0 : index
    %c0_352 = arith.constant 0 : index
    %801 = vector.load %arg17[%c0_351, %c0_352] : memref<128x128xbf16, #tpu.memory_space<vmem>>, vector<128x128xbf16>
    %cst_353 = arith.constant dense<0.000000e+00> : vector<1x128xf32>
    %802 = tpu.matmul %800, %801, %cst_353 {dimension_numbers = #tpu.dot_dimension_numbers<[1], [0], [0], [1], [0, 0, 1, 1], [], []>} : vector<1x128xbf16>, vector<128x128xbf16>, vector<1x128xf32> -> vector<1x128xf32>
    %c0_354 = arith.constant 0 : index
    %c0_355 = arith.constant 0 : index
    %803 = vector.load %arg18[%c0_354, %c0_355] : memref<1x128xf32, #tpu.memory_space<vmem>>, vector<1x128xf32>
    %804 = arith.addf %802, %803 : vector<1x128xf32>
    %cst_356 = arith.constant dense<0xFF800000> : vector<1xf32>
    %805 = vector.multi_reduction <maximumf>, %804, %cst_356 [1] : vector<1x128xf32> to vector<1xf32>
    %806 = vector.shape_cast %805 : vector<1xf32> to vector<1x1xf32>
    %807 = vector.broadcast %806 : vector<1x1xf32> to vector<1x128xf32>
    %808 = arith.subf %804, %807 : vector<1x128xf32>
    %809 = math.exp %808 : vector<1x128xf32>
    %cst_357 = arith.constant dense<0.000000e+00> : vector<1xf32>
    %810 = vector.multi_reduction <add>, %809, %cst_357 [1] : vector<1x128xf32> to vector<1xf32>
    %811 = vector.shape_cast %810 : vector<1xf32> to vector<1x1xf32>
    %812 = math.log %811 : vector<1x1xf32>
    %813 = vector.broadcast %812 : vector<1x1xf32> to vector<1x128xf32>
    %814 = arith.subf %808, %813 : vector<1x128xf32>
    %815 = tpu.concatenate %303, %376, %449, %522, %595, %668, %741, %814 in 0 : vector<1x128xf32>, vector<1x128xf32>, vector<1x128xf32>, vector<1x128xf32>, vector<1x128xf32>, vector<1x128xf32>, vector<1x128xf32>, vector<1x128xf32> -> vector<8x128xf32>
    %c0_358 = arith.constant 0 : index
    %c0_359 = arith.constant 0 : index
    %816 = vector.load %arg19[%c0_358, %c0_359] : memref<8x128xf32, #tpu.memory_space<vmem>>, vector<8x128xf32>
    tpu.vector_store %arg19[%c0_358, %c0_359], %815 {strides = array<i32>} : memref<8x128xf32, #tpu.memory_space<vmem>>, vector<8x128xf32>,
    return
  }
  func.func @transform_0(%arg0: i32) -> (i32, i32) {
    %c0_i32 = arith.constant 0 : i32
    %c0_i32_0 = arith.constant 0 : i32
    %c0_i32_1 = arith.constant 0 : i32
    return %c0_i32, %c0_i32_0 : i32, i32
  }
  func.func @transform_1(%arg0: i32) -> (i32, i32) {
    %c0_i32 = arith.constant 0 : i32
    %c0_i32_0 = arith.constant 0 : i32
    %c0_i32_1 = arith.constant 0 : i32
    return %c0_i32, %c0_i32_0 : i32, i32
  }
  func.func @transform_2(%arg0: i32) -> (i32, i32) {
    %c0_i32 = arith.constant 0 : i32
    %c0_i32_0 = arith.constant 0 : i32
    %c0_i32_1 = arith.constant 0 : i32
    return %c0_i32, %c0_i32_0 : i32, i32
  }
  func.func @transform_3(%arg0: i32) -> (i32, i32) {
    %c0_i32 = arith.constant 0 : i32
    %c0_i32_0 = arith.constant 0 : i32
    %c0_i32_1 = arith.constant 0 : i32
    return %c0_i32, %c0_i32_0 : i32, i32
  }
  func.func @transform_4(%arg0: i32) -> (i32, i32) {
    %c0_i32 = arith.constant 0 : i32
    %c0_i32_0 = arith.constant 0 : i32
    %c0_i32_1 = arith.constant 0 : i32
    return %c0_i32, %c0_i32_0 : i32, i32
  }
  func.func @transform_5(%arg0: i32) -> (i32, i32) {
    %c0_i32 = arith.constant 0 : i32
    %c0_i32_0 = arith.constant 0 : i32
    %c0_i32_1 = arith.constant 0 : i32
    return %c0_i32, %c0_i32_0 : i32, i32
  }
  func.func @transform_6(%arg0: i32) -> (i32, i32) {
    %c0_i32 = arith.constant 0 : i32
    %c0_i32_0 = arith.constant 0 : i32
    %c0_i32_1 = arith.constant 0 : i32
    return %c0_i32, %c0_i32_0 : i32, i32
  }
  func.func @transform_7(%arg0: i32) -> (i32, i32) {
    %c0_i32 = arith.constant 0 : i32
    %c0_i32_0 = arith.constant 0 : i32
    %c0_i32_1 = arith.constant 0 : i32
    return %c0_i32, %c0_i32_0 : i32, i32
  }
  func.func @transform_8(%arg0: i32) -> (i32, i32) {
    %c0_i32 = arith.constant 0 : i32
    %c0_i32_0 = arith.constant 0 : i32
    %c0_i32_1 = arith.constant 0 : i32
    return %c0_i32, %c0_i32_0 : i32, i32
  }
  func.func @transform_9(%arg0: i32) -> (i32, i32) {
    %c0_i32 = arith.constant 0 : i32
    %c0_i32_0 = arith.constant 0 : i32
    %c0_i32_1 = arith.constant 0 : i32
    return %c0_i32, %c0_i32_0 : i32, i32
  }
  func.func @transform_10(%arg0: i32) -> (i32, i32) {
    %c0_i32 = arith.constant 0 : i32
    %c0_i32_0 = arith.constant 0 : i32
    %c0_i32_1 = arith.constant 0 : i32
    return %c0_i32, %c0_i32_0 : i32, i32
  }
  func.func @transform_11(%arg0: i32) -> (i32, i32) {
    %c0_i32 = arith.constant 0 : i32
    %c0_i32_0 = arith.constant 0 : i32
    %c0_i32_1 = arith.constant 0 : i32
    return %c0_i32, %c0_i32_0 : i32, i32
  }
  func.func @transform_12(%arg0: i32) -> (i32, i32) {
    %c0_i32 = arith.constant 0 : i32
    %c0_i32_0 = arith.constant 0 : i32
    %c0_i32_1 = arith.constant 0 : i32
    return %c0_i32, %c0_i32_0 : i32, i32
  }
  func.func @transform_13(%arg0: i32) -> (i32, i32) {
    %c0_i32 = arith.constant 0 : i32
    %c0_i32_0 = arith.constant 0 : i32
    %c0_i32_1 = arith.constant 0 : i32
    return %c0_i32, %c0_i32_0 : i32, i32
  }
  func.func @transform_14(%arg0: i32) -> (i32, i32) {
    %c0_i32 = arith.constant 0 : i32
    %c0_i32_0 = arith.constant 0 : i32
    %c0_i32_1 = arith.constant 0 : i32
    return %c0_i32, %c0_i32_0 : i32, i32
  }
  func.func @transform_15(%arg0: i32) -> (i32, i32) {
    %c0_i32 = arith.constant 0 : i32
    %c0_i32_0 = arith.constant 0 : i32
    %c0_i32_1 = arith.constant 0 : i32
    return %c0_i32, %c0_i32_0 : i32, i32
  }
  func.func @transform_16(%arg0: i32) -> (i32, i32) {
    %c0_i32 = arith.constant 0 : i32
    %c0_i32_0 = arith.constant 0 : i32
    %c0_i32_1 = arith.constant 0 : i32
    return %c0_i32, %c0_i32_0 : i32, i32
  }
  func.func @transform_17(%arg0: i32) -> (i32, i32) {
    %c0_i32 = arith.constant 0 : i32
    %c0_i32_0 = arith.constant 0 : i32
    %c0_i32_1 = arith.constant 0 : i32
    return %c0_i32, %c0_i32_0 : i32, i32
  }
  func.func @transform_18(%arg0: i32) -> (i32, i32) {
    %c0_i32 = arith.constant 0 : i32
    %c0_i32_0 = arith.constant 0 : i32
    %c0_i32_1 = arith.constant 0 : i32
    return %c0_i32, %c0_i32_0 : i32, i32
  }
}

</mosaic_0001>

<bundles_post_ra>
// kernel: tpu_custom_call.1
= control target key start
LH: loop header
LB: loop body
LE: loop exit
PB: predicated region body
PF: predicated region fallthrough
CT: control target
= control target key end

     0   :  { %s11309_s0 = inlined_call_operand.hbm [shape: bf16[8,128], index: 0, kind: input, shape index: {}]   ;;  %s11310_s1 = inlined_call_operand.hbm [shape: bf16[128,384], index: 1, kind: input, shape index: {}]   ;;  %s11311_s2 = inlined_call_operand.hbm [shape: bf16[128,384], index: 2, kind: input, shape index: {}]   ;;  %s11312_s3 = inlined_call_operand.vmem [shape: f32[1,384], index: 3, kind: input, shape index: {}]   ;;  %s11313_s4 = inlined_call_operand.vmem [shape: f32[1,384], index: 4, kind: input, shape index: {}]   ;;  %s11314_s5 = inlined_call_operand.vmem [shape: bf16[1,128], index: 5, kind: input, shape index: {}]   ;;  %s11315_s6 = inlined_call_operand.hbm [shape: bf16[128,128], index: 6, kind: input, shape index: {}]   ;;  %s11316_s7 = inlined_call_operand.hbm [shape: bf16[128,128], index: 7, kind: input, shape index: {}]   ;;  %s11317_s8 = inlined_call_operand.vmem [shape: f32[1,128], index: 8, kind: input, shape index: {}]   ;;  %s11318_s9 = inlined_call_operand.hbm [shape: bf16[128,128], index: 9, kind: input, shape index: {}]   ;;  %s11319_s10 = inlined_call_operand.hbm [shape: bf16[128,128], index: 10, kind: input, shape index: {}]   ;;  %s11320_s11 = inlined_call_operand.vmem [shape: f32[1,128], index: 11, kind: input, shape index: {}]   ;;  %s11321_s12 = inlined_call_operand.hbm [shape: bf16[128,384], index: 12, kind: input, shape index: {}]   ;;  %s11322_s13 = inlined_call_operand.hbm [shape: bf16[128,384], index: 13, kind: input, shape index: {}]   ;;  %s11323_s14 = inlined_call_operand.vmem [shape: f32[1,384], index: 14, kind: input, shape index: {}]   ;;  %s11324_s15 = inlined_call_operand.vmem [shape: f32[1,384], index: 15, kind: input, shape index: {}]   ;;  %s11325_s16 = inlined_call_operand.hbm [shape: bf16[128,128], index: 16, kind: input, shape index: {}]   ;;  %s11326_s17 = inlined_call_operand.vmem [shape: f32[1,128], index: 17, kind: input, shape index: {}]   ;;  %s11327_s18 = inlined_call_operand.hbm [shape: f32[8,128], index: 18, kind: output, shape index: {}]  }
   0x1   :  { %11524 = sst [smem:[#allocation68_spill]] %s11309_s0 }
   0x2   :  { %11525 = sst [smem:[#allocation69_spill]] %s11310_s1 }
   0x3   :  { %11526 = sst [smem:[#allocation70_spill]] %s11311_s2 }
   0x4   :  { %11527 = sst [smem:[#allocation71_spill]] %s11327_s18 }
   0x5   :  { %23 = vsyncpa [#allocation4], 0 }
   0x6   :  { %24 = vsyncpa [#allocation7], 0 }
   0x7   :  { %25 = vsyncpa [#allocation10], 0 }
   0x8   :  { %26 = vsyncpa [#allocation13], 0 }
   0x9   :  { %27 = vsyncpa [#allocation16], 0 }
   0xa   :  { %28 = vsyncpa [#allocation19], 0 }
   0xb   :  { %29 = vsyncpa [#allocation5], 0  ;;  %s8518_s27 = smov [#allocation6]   ;;  %s11528_s0 = sld [smem:[#allocation69_spill]] }
   0xc   :  { %s45_s28 = sshll.u32 %s8518_s27, 4  ;;  %s46_s28 = int_to_ptr.vmem [resolvable:$true] %s45_s28 }
  0x11   :  { %s8262_s19 = scalar_lea.hbm %s11528_s0, 3072 }
  0x12   :  { %p8263_p0 = scmp.ne.s32.totalorder %s11528_s0, %s8262_s19  ;;  %p8266_p1 = scmp.lt.u32.totalorder %s8262_s19, %s11528_s0 }
  0x14   :  { %p8268_p2 = pnand %p8266_p1, %p8263_p0 }
  0x16   :  { %8271 = shalt.err (!%p8268_p2)
}
  0x17   :  { %s8272_s2 = scalar_lea.vmem %s46_s28, 3072  ;;  %p8277_p4 = scmp.lt.s32.totalorder %s46_s28, %s46_s28 }
  0x18   :  { %p8273_p3 = scmp.ne.s32.totalorder %s46_s28, %s8272_s2  ;;  %p8278_p5 = scmp.lt.s32.totalorder %s8272_s2, %s8272_s2 }
  0x1a   :  { %p8279_p6 = por %p8278_p5, %p8277_p4 }
  0x1c   :  { %p8280_p7 = pnand %p8279_p6, %p8273_p3 }
  0x1e   :  { %8283 = shalt.err (!%p8280_p7)
}
  0x1f   :  { %s11332_s23 = smov 192   ;;  %s11334_s24 = smov 12  }
  0x20   :  { %51 = dma.hbm_to_vmem [thread:$0]  %s11528_s0, 3072, %s46_s28, [#allocation7], %s11332_s23, %s11332_s23, %s11334_s24  }
  0x21   :  { %s8521_s27 = smov [#allocation9]   ;;  %s8284_s1 = scalar_lea.hbm %s11315_s6, 1024 }
  0x22   :  { %s75_s29 = sshll.u32 %s8521_s27, 4  ;;  %p8285_p8 = scmp.ne.s32.totalorder %s11315_s6, %s8284_s1  ;;  %s76_s29 = int_to_ptr.vmem [resolvable:$true] %s75_s29 }
  0x23   :  { %p8288_p9 = scmp.lt.u32.totalorder %s8284_s1, %s11315_s6 }
  0x25   :  { %p8290_p10 = pnand %p8288_p9, %p8285_p8 }
  0x27   :  { %8293 = shalt.err (!%p8290_p10)
}
  0x28   :  { %s8294_s18 = scalar_lea.vmem %s76_s29, 1024  ;;  %p8299_p12 = scmp.lt.s32.totalorder %s76_s29, %s76_s29 }
  0x29   :  { %p8295_p11 = scmp.ne.s32.totalorder %s76_s29, %s8294_s18  ;;  %p8300_p13 = scmp.lt.s32.totalorder %s8294_s18, %s8294_s18 }
  0x2b   :  { %p8301_p0 = por %p8300_p13, %p8299_p12 }
  0x2d   :  { %p8302_p1 = pnand %p8301_p0, %p8295_p11 }
  0x2f   :  { %8305 = shalt.err (!%p8302_p1)
}
  0x30   :  { %s11336_s28 = smov 64   ;;  %s8523_s0 = smov 4  }
  0x31   :  { %81 = dma.hbm_to_vmem [thread:$0]  %s11315_s6, 1024, %s76_s29, [#allocation10], %s11336_s28, %s11336_s28, %s8523_s0  }
  0x32   :  { %s8524_s27 = smov [#allocation12]   ;;  %s8525_s19 = smov [#allocation15]  }
  0x33   :  { %s101_s30 = sshll.u32 %s8524_s27, 4  ;;  %s127_s1 = sshll.u32 %s8525_s19, 4  ;;  %s102_s30 = int_to_ptr.vmem [resolvable:$true] %s101_s30  ;;  %s8661_s1 = int_to_ptr.vmem [resolvable:$true] %s127_s1 }
  0x34   :  { %s8306_s21 = scalar_lea.hbm %s11318_s9, 1024 }
  0x35   :  { %p8307_p2 = scmp.ne.s32.totalorder %s11318_s9, %s8306_s21  ;;  %p8310_p3 = scmp.lt.u32.totalorder %s8306_s21, %s11318_s9 }
  0x37   :  { %p8312_p4 = pnand %p8310_p3, %p8307_p2 }
  0x39   :  { %8315 = shalt.err (!%p8312_p4)
}
  0x3a   :  { %s8316_s6 = scalar_lea.vmem %s102_s30, 1024  ;;  %p8321_p6 = scmp.lt.s32.totalorder %s102_s30, %s102_s30 }
  0x3b   :  { %p8317_p5 = scmp.ne.s32.totalorder %s102_s30, %s8316_s6  ;;  %p8322_p7 = scmp.lt.s32.totalorder %s8316_s6, %s8316_s6 }
  0x3d   :  { %p8323_p8 = por %p8322_p7, %p8321_p6 }
  0x3f   :  { %p8324_p9 = pnand %p8323_p8, %p8317_p5 }
  0x41   :  { %8327 = shalt.err (!%p8324_p9)
}
  0x42   :  { %107 = dma.hbm_to_vmem [thread:$0]  %s11318_s9, 1024, %s102_s30, [#allocation13], %s11336_s28, %s11336_s28, %s8523_s0  }
  0x43   :  { %s8328_s23 = scalar_lea.hbm %s11321_s12, 3072 }
  0x44   :  { %p8329_p10 = scmp.ne.s32.totalorder %s11321_s12, %s8328_s23  ;;  %p8332_p11 = scmp.lt.u32.totalorder %s8328_s23, %s11321_s12 }
  0x46   :  { %p8334_p12 = pnand %p8332_p11, %p8329_p10 }
  0x48   :  { %8337 = shalt.err (!%p8334_p12)
}
  0x49   :  { %s8338_s21 = scalar_lea.vmem %s8661_s1, 3072  ;;  %p8343_p0 = scmp.lt.s32.totalorder %s8661_s1, %s8661_s1 }
  0x4a   :  { %p8339_p13 = scmp.ne.s32.totalorder %s8661_s1, %s8338_s21  ;;  %p8344_p1 = scmp.lt.s32.totalorder %s8338_s21, %s8338_s21 }
  0x4c   :  { %p8345_p2 = por %p8344_p1, %p8343_p0 }
  0x4e   :  { %p8346_p3 = pnand %p8345_p2, %p8339_p13 }
  0x50   :  { %8349 = shalt.err (!%p8346_p3)
}
  0x51   :  { %s11529_s9 = smov 12   ;;  %s11530_s30 = smov 192  }
  0x52   :  { %133 = dma.hbm_to_vmem [thread:$0]  %s11321_s12, 3072, %s8661_s1, [#allocation16], %s11530_s30, %s11530_s30, %s11529_s9  }
  0x53   :  { %s8526_s6 = smov [#allocation3]   ;;  %s8527_s25 = smov [#allocation8]  }
  0x54   :  { %s36_s29 = sshll.u32 %s8526_s6, 4  ;;  %s57_s26 = sshll.u32 %s8527_s25, 4  ;;  %s37_s29 = int_to_ptr.vmem [resolvable:$true] %s36_s29  ;;  %s8698_s26 = int_to_ptr.vmem [resolvable:$true] %s57_s26 }
  0x55   :  { %s11531_s24 = sld [smem:[#allocation68_spill]] }
  0x5b   :  { %s8350_s19 = scalar_lea.hbm %s11531_s24, 64 }
  0x5c   :  { %p8351_p4 = scmp.ne.s32.totalorder %s11531_s24, %s8350_s19  ;;  %p8354_p5 = scmp.lt.u32.totalorder %s8350_s19, %s11531_s24 }
  0x5e   :  { %p8356_p6 = pnand %p8354_p5, %p8351_p4 }
  0x60   :  { %8359 = shalt.err (!%p8356_p6)
}
  0x61   :  { %s8360_s12 = scalar_lea.vmem %s37_s29, 64  ;;  %p8365_p8 = scmp.lt.s32.totalorder %s37_s29, %s37_s29 }
  0x62   :  { %p8361_p7 = scmp.ne.s32.totalorder %s37_s29, %s8360_s12  ;;  %p8366_p9 = scmp.lt.s32.totalorder %s8360_s12, %s8360_s12 }
  0x64   :  { %p8367_p10 = por %p8366_p9, %p8365_p8 }
  0x66   :  { %p8368_p11 = pnand %p8367_p10, %p8361_p7 }
  0x68   :  { %8371 = shalt.err (!%p8368_p11)
}
  0x69   :  { %39 = dma.hbm_to_vmem [thread:$0]  %s11531_s24, 64, %s37_s29, [#allocation4]  }
  0x6a   :  { %s11532_s25 = sld [smem:[#allocation70_spill]] }
  0x70   :  { %s8372_s27 = scalar_lea.hbm %s11532_s25, 3072 }
  0x71   :  { %p8373_p12 = scmp.ne.s32.totalorder %s11532_s25, %s8372_s27  ;;  %p8376_p13 = scmp.lt.u32.totalorder %s8372_s27, %s11532_s25 }
  0x73   :  { %p8378_p0 = pnand %p8376_p13, %p8373_p12 }
  0x75   :  { %8381 = shalt.err (!%p8378_p0)
}
  0x76   :  { %s8382_s20 = scalar_lea.vmem %s8698_s26, 3072  ;;  %p8387_p2 = scmp.lt.s32.totalorder %s8698_s26, %s8698_s26 }
  0x77   :  { %p8383_p1 = scmp.ne.s32.totalorder %s8698_s26, %s8382_s20  ;;  %p8388_p3 = scmp.lt.s32.totalorder %s8382_s20, %s8382_s20 }
  0x79   :  { %p8389_p4 = por %p8388_p3, %p8387_p2 }
  0x7b   :  { %p8390_p5 = pnand %p8389_p4, %p8383_p1 }
  0x7d   :  { %8393 = shalt.err (!%p8390_p5)
}
  0x7e   :  { %63 = dma.hbm_to_vmem [thread:$0]  %s11532_s25, 3072, %s8698_s26, [#allocation7], %s11530_s30, %s11530_s30, %s11529_s9  }
  0x7f   :  { %s8528_s21 = smov [#allocation11]   ;;  %s8529_s1 = smov [#allocation14]  }
  0x80   :  { %s87_s12 = sshll.u32 %s8528_s21, 4  ;;  %s113_s22 = sshll.u32 %s8529_s1, 4  ;;  %s88_s12 = int_to_ptr.vmem [resolvable:$true] %s87_s12  ;;  %s8732_s22 = int_to_ptr.vmem [resolvable:$true] %s113_s22 }
  0x81   :  { %s8394_s27 = scalar_lea.hbm %s11316_s7, 1024 }
  0x82   :  { %p8395_p6 = scmp.ne.s32.totalorder %s11316_s7, %s8394_s27  ;;  %p8398_p7 = scmp.lt.u32.totalorder %s8394_s27, %s11316_s7 }
  0x84   :  { %p8400_p8 = pnand %p8398_p7, %p8395_p6 }
  0x86   :  { %8403 = shalt.err (!%p8400_p8)
}
  0x87   :  { %s8404_s26 = scalar_lea.vmem %s88_s12, 1024  ;;  %p8409_p10 = scmp.lt.s32.totalorder %s88_s12, %s88_s12 }
  0x88   :  { %p8405_p9 = scmp.ne.s32.totalorder %s88_s12, %s8404_s26  ;;  %p8410_p11 = scmp.lt.s32.totalorder %s8404_s26, %s8404_s26 }
  0x8a   :  { %p8411_p12 = por %p8410_p11, %p8409_p10 }
  0x8c   :  { %p8412_p13 = pnand %p8411_p12, %p8405_p9 }
  0x8e   :  { %8415 = shalt.err (!%p8412_p13)
}
  0x8f   :  { %s11533_s25 = smov 64   ;;  %s8416_s1 = scalar_lea.hbm %s11319_s10, 1024 }
  0x90   :  { %93 = dma.hbm_to_vmem [thread:$0]  %s11316_s7, 1024, %s88_s12, [#allocation10], %s11533_s25, %s11533_s25, %s8523_s0  }
  0x91   :  { %p8417_p0 = scmp.ne.s32.totalorder %s11319_s10, %s8416_s1  ;;  %p8420_p1 = scmp.lt.u32.totalorder %s8416_s1, %s11319_s10 }
  0x93   :  { %p8422_p2 = pnand %p8420_p1, %p8417_p0 }
  0x95   :  { %8425 = shalt.err (!%p8422_p2)
}
  0x96   :  { %s8426_s28 = scalar_lea.vmem %s8732_s22, 1024  ;;  %p8431_p4 = scmp.lt.s32.totalorder %s8732_s22, %s8732_s22 }
  0x97   :  { %p8427_p3 = scmp.ne.s32.totalorder %s8732_s22, %s8426_s28  ;;  %p8432_p5 = scmp.lt.s32.totalorder %s8426_s28, %s8426_s28 }
  0x99   :  { %p8433_p6 = por %p8432_p5, %p8431_p4 }
  0x9b   :  { %p8434_p7 = pnand %p8433_p6, %p8427_p3 }
  0x9d   :  { %8437 = shalt.err (!%p8434_p7)
}
  0x9e   :  { %119 = dma.hbm_to_vmem [thread:$0]  %s11319_s10, 1024, %s8732_s22, [#allocation13], %s11533_s25, %s11533_s25, %s8523_s0  }
  0x9f   :  { %s8530_s19 = smov [#allocation17]   ;;  %s8531_s26 = smov [#allocation18]  }
  0xa0   :  { %s139_s18 = sshll.u32 %s8530_s19, 4  ;;  %s155_s20 = sshll.u32 %s8531_s26, 4  ;;  %s140_s18 = int_to_ptr.vmem [resolvable:$true] %s139_s18  ;;  %s8769_s20 = int_to_ptr.vmem [resolvable:$true] %s155_s20 }
  0xa1   :  { %s8438_s21 = scalar_lea.hbm %s11322_s13, 3072 }
  0xa2   :  { %p8439_p8 = scmp.ne.s32.totalorder %s11322_s13, %s8438_s21  ;;  %p8442_p9 = scmp.lt.u32.totalorder %s8438_s21, %s11322_s13 }
  0xa4   :  { %p8444_p10 = pnand %p8442_p9, %p8439_p8 }
  0xa6   :  { %8447 = shalt.err (!%p8444_p10)
}
  0xa7   :  { %s8448_s10 = scalar_lea.vmem %s140_s18, 3072  ;;  %p8453_p12 = scmp.lt.s32.totalorder %s140_s18, %s140_s18 }
  0xa8   :  { %p8449_p11 = scmp.ne.s32.totalorder %s140_s18, %s8448_s10  ;;  %p8454_p13 = scmp.lt.s32.totalorder %s8448_s10, %s8448_s10 }
  0xaa   :  { %p8455_p0 = por %p8454_p13, %p8453_p12 }
  0xac   :  { %p8456_p1 = pnand %p8455_p0, %p8449_p11 }
  0xae   :  { %8459 = shalt.err (!%p8456_p1)
}
  0xaf   :  { %145 = dma.hbm_to_vmem [thread:$0]  %s11322_s13, 3072, %s140_s18, [#allocation16], %s11530_s30, %s11530_s30, %s11529_s9  }
  0xb0   :  { %s8460_s12 = scalar_lea.hbm %s11325_s16, 1024 }
  0xb1   :  { %p8461_p2 = scmp.ne.s32.totalorder %s11325_s16, %s8460_s12  ;;  %p8464_p3 = scmp.lt.u32.totalorder %s8460_s12, %s11325_s16 }
  0xb3   :  { %p8466_p4 = pnand %p8464_p3, %p8461_p2 }
  0xb5   :  { %8469 = shalt.err (!%p8466_p4)
}
  0xb6   :  { %s8470_s21 = scalar_lea.vmem %s8769_s20, 1024  ;;  %p8475_p6 = scmp.lt.s32.totalorder %s8769_s20, %s8769_s20 }
  0xb7   :  { %p8471_p5 = scmp.ne.s32.totalorder %s8769_s20, %s8470_s21  ;;  %p8476_p7 = scmp.lt.s32.totalorder %s8470_s21, %s8470_s21 }
  0xb9   :  { %p8477_p8 = por %p8476_p7, %p8475_p6 }
  0xbb   :  { %p8478_p9 = pnand %p8477_p8, %p8471_p5 }
  0xbd   :  { %8481 = shalt.err (!%p8478_p9)
}
  0xbe   :  { %161 = dma.hbm_to_vmem [thread:$0]  %s11325_s16, 1024, %s8769_s20, [#allocation19], %s11533_s25, %s11533_s25, %s8523_s0  }
  0xbf   :  { %8504 = dma.done.wait [#allocation4], 64  }
  0xc0   :  { %8505 = vsyncadd [#allocation4], 4294967232 }
  0xc1   :  { %8506 = dma.done.wait [#allocation7], 6144  }
  0xc2   :  { %8507 = vsyncadd [#allocation7], 4294961152 }
  0xc3   :  { %8508 = dma.done.wait [#allocation10], 2048  }
  0xc4   :  { %8509 = vsyncadd [#allocation10], 4294965248 }
  0xc5   :  { %8510 = dma.done.wait [#allocation13], 2048  }
  0xc6   :  { %8511 = vsyncadd [#allocation13], 4294965248 }
  0xc7   :  { %8512 = dma.done.wait [#allocation16], 6144  }
  0xc8   :  { %8513 = vsyncadd [#allocation16], 4294961152 }
  0xc9   :  { %8514 = dma.done.wait [#allocation19], 1024  }
  0xca   :  { %8515 = vsyncadd [#allocation19], 4294966272  ;;  %v11340_v0 = vmov 0.0   ;;  %v11338_v1 = vmov 0   ;;  %vm8534_vm0 = vmmov 0   ;;  %v407_v57 = vlaneseq }
  0xcb   :  { %6445 = vmatprep.subr.bf16.mxu1 %v11340_v0  ;;  %454 = vmatprep.mubr.bf16.mxu0 %v11338_v1  ;;  %v8810_v2 = vld [vmem:[#allocation6 + $0x4] ss:$12 sps:$4 sm:$0xff]   ;;  %v8812_v3 = vld [vmem:[#allocation6] ss:$12 sps:$4 sm:$0xff]   ;;  %v8815_v4 = vld [vmem:[#allocation6 + $0x1c] ss:$12 sps:$4 sm:$0xff]  }
  0xcc   :  { %6461 = vmatprep.mubr.msk.bf16.mxu1 %vm8534_vm0, %v11340_v0  ;;  %422 = vmatprep.subr.bf16.mxu0 %v8810_v2  ;;  %v8818_v5 = vld [vmem:[#allocation6 + $0x18] ss:$12 sps:$4 sm:$0xff]   ;;  %v8821_v6 = vld [vmem:[#allocation6 + $0x34] ss:$12 sps:$4 sm:$0xff]   ;;  %v8824_v7 = vld [vmem:[#allocation6 + $0x30] ss:$12 sps:$4 sm:$0xff]  }
  0xcd   :  { %423 = vmatpush1.bf16.msra.mxu0 %v8812_v3  ;;  %v8827_v8 = vld [vmem:[#allocation6 + $0x4c] ss:$12 sps:$4 sm:$0xff]   ;;  %v8829_v9 = vld [vmem:[#allocation6 + $0x8] ss:$12 sps:$4 sm:$0xff]   ;;  %v8836_v11 = vld [vmem:[#allocation6 + $0x64] ss:$12 sps:$4 sm:$0xff]  }
  0xce   :  { %424 = vmatprep.subr.bf16.mxu0 %v8815_v4  ;;  %v8832_v10 = vld [vmem:[#allocation6 + $0x48] ss:$12 sps:$4 sm:$0xff]   ;;  %6446 = vmatpush3.bf16.msra.mxu1 %v8829_v9  ;;  %v8839_v12 = vld [vmem:[#allocation6 + $0x20] ss:$12 sps:$4 sm:$0xff]   ;;  %v8845_v14 = vld [vmem:[#allocation6 + $0x38] ss:$12 sps:$4 sm:$0xff]  }
  0xcf   :  { %6447 = vmatprep.subr.bf16.mxu1 %v11340_v0  ;;  %v8841_v13 = vld [vmem:[#allocation6 + $0x60] ss:$12 sps:$4 sm:$0xff]   ;;  %v8848_v15 = vld [vmem:[#allocation6 + $0x7c] ss:$12 sps:$4 sm:$0xff]   ;;  %v8852_v16 = vld [vmem:[#allocation6 + $0x78] ss:$12 sps:$4 sm:$0xff]  }
  0xd0   :  { %v8855_v17 = vld [vmem:[#allocation6 + $0x50] ss:$12 sps:$4 sm:$0xff]   ;;  %v8858_v18 = vld [vmem:[#allocation6 + $0x94] ss:$12 sps:$4 sm:$0xff]   ;;  %v8868_v21 = vld [vmem:[#allocation6 + $0xac] ss:$12 sps:$4 sm:$0xff]  }
  0xd1   :  { %425 = vmatpush1.bf16.msra.mxu0 %v8818_v5  ;;  %v8861_v19 = vld [vmem:[#allocation6 + $0x90] ss:$12 sps:$4 sm:$0xff]   ;;  %v8865_v20 = vld [vmem:[#allocation6 + $0x68] ss:$12 sps:$4 sm:$0xff]   ;;  %v8875_v23 = vld [vmem:[#allocation6 + $0x80] ss:$12 sps:$4 sm:$0xff]  }
  0xd2   :  { %426 = vmatprep.subr.bf16.mxu0 %v8821_v6  ;;  %6448 = vmatpush3.bf16.msra.mxu1 %v8839_v12  ;;  %v8871_v22 = vld [vmem:[#allocation6 + $0xa8] ss:$12 sps:$4 sm:$0xff]   ;;  %v8878_v24 = vld [vmem:[#allocation8 + $0x4] ss:$12 sps:$4 sm:$0xff]   ;;  %v8881_v25 = vld [vmem:[#allocation3] sm:$0x1] }
  0xd3   :  { %6449 = vmatprep.subr.bf16.mxu1 %v11340_v0  ;;  %v8884_v26 = vld [vmem:[#allocation8] ss:$12 sps:$4 sm:$0xff]   ;;  %v8887_v27 = vld [vmem:[#allocation6 + $0x98] ss:$12 sps:$4 sm:$0xff]   ;;  %v8890_v28 = vld [vmem:[#allocation8 + $0x1c] ss:$12 sps:$4 sm:$0xff]   ;;  %v5818_v51 = vcombine.low %v8881_v25, %v8881_v25 }
  0xd4   :  { %v8894_v29 = vld [vmem:[#allocation8 + $0x18] ss:$12 sps:$4 sm:$0xff]   ;;  %v8898_v30 = vld [vmem:[#allocation6 + $0xb0] ss:$12 sps:$4 sm:$0xff]   ;;  %v8901_v31 = vld [vmem:[#allocation8 + $0x34] ss:$12 sps:$4 sm:$0xff]  }
  0xd5   :  { %427 = vmatpush1.bf16.msra.mxu0 %v8824_v7  ;;  %v8904_v32 = vld [vmem:[#allocation8 + $0x30] ss:$12 sps:$4 sm:$0xff]   ;;  %v8906_v33 = vld [vmem:[#allocation8 + $0x8] ss:$12 sps:$4 sm:$0xff]   ;;  %v8909_v34 = vld [vmem:[#allocation8 + $0x4c] ss:$12 sps:$4 sm:$0xff]  }
  0xd6   :  { %428 = vmatprep.subr.bf16.mxu0 %v8827_v8  ;;  %6450 = vmatpush3.bf16.msra.mxu1 %v8845_v14  ;;  %v8915_v35 = vld [vmem:[#allocation8 + $0x48] ss:$12 sps:$4 sm:$0xff]   ;;  %v8917_v36 = vld [vmem:[#allocation8 + $0x20] ss:$12 sps:$4 sm:$0xff]   ;;  %v8919_v37 = vld [vmem:[#allocation8 + $0x64] ss:$12 sps:$4 sm:$0xff]  }
  0xd7   :  { %6451 = vmatprep.subr.bf16.mxu1 %v11340_v0  ;;  %v8926_v38 = vld [vmem:[#allocation8 + $0x60] ss:$12 sps:$4 sm:$0xff]   ;;  %v8928_v39 = vld [vmem:[#allocation8 + $0x38] ss:$12 sps:$4 sm:$0xff]   ;;  %v8932_v40 = vld [vmem:[#allocation8 + $0x7c] ss:$12 sps:$4 sm:$0xff]  }
  0xd8   :  { %v8938_v41 = vld [vmem:[#allocation8 + $0x78] ss:$12 sps:$4 sm:$0xff]   ;;  %v8940_v42 = vld [vmem:[#allocation8 + $0x50] ss:$12 sps:$4 sm:$0xff]   ;;  %v8942_v43 = vld [vmem:[#allocation8 + $0x94] ss:$12 sps:$4 sm:$0xff]  }
  0xd9   :  { %429 = vmatpush1.bf16.msra.mxu0 %v8832_v10  ;;  %11534 = vst [vmem:[#allocation28_spill] sm:$0xff] %v8942_v43  ;;  %v8948_v44 = vld [vmem:[#allocation8 + $0x90] ss:$12 sps:$4 sm:$0xff]   ;;  %v8950_v45 = vld [vmem:[#allocation8 + $0x68] ss:$12 sps:$4 sm:$0xff]   ;;  %v754_v52 = vshrl.u32 %v5818_v51, 16 }
  0xda   :  { %430 = vmatprep.subr.bf16.mxu0 %v8836_v11  ;;  %6452 = vmatpush3.bf16.msra.mxu1 %v8855_v17  ;;  %11535 = vst [vmem:[#allocation29_spill] sm:$0xff] %v8948_v44  ;;  %v8952_v46 = vld [vmem:[#allocation8 + $0xac] ss:$12 sps:$4 sm:$0xff]   ;;  %v8958_v47 = vld [vmem:[#allocation8 + $0xa8] ss:$12 sps:$4 sm:$0xff]   ;;  %v408_v58 = vshrl.u32 %v407_v57, 7 }
  0xdb   :  { %6453 = vmatprep.subr.bf16.mxu1 %v11340_v0  ;;  %11536 = vst [vmem:[#allocation30_spill] sm:$0xff] %v8952_v46  ;;  %11537 = vst [vmem:[#allocation31_spill] sm:$0xff] %v8958_v47  ;;  %v8960_v48 = vld [vmem:[#allocation8 + $0x80] ss:$12 sps:$4 sm:$0xff]   ;;  %v8966_v49 = vld [vmem:[#allocation8 + $0x98] ss:$12 sps:$4 sm:$0xff]  }
  0xdc   :  { %11538 = vst [vmem:[#allocation32_spill] sm:$0xff] %v8966_v49  ;;  %v8972_v50 = vld [vmem:[#allocation8 + $0xb0] ss:$12 sps:$4 sm:$0xff]   ;;  %v9052_v59 = vsub.s32 0, %v408_v58  ;;  %v9060_v62 = vsub.s32 1, %v408_v58  ;;  %vm1713_vm1 = vcmask 1040384  }
  0xdd   :  { %431 = vmatpush1.bf16.msra.mxu0 %v8841_v13  ;;  %11539 = vst [vmem:[#allocation33_spill] sm:$0xff] %v8972_v50  ;;  %v277_v60 = vld [vmem:[%s11313_s4] sm:$0x7]  ;;  %vm1715_vm2 = vcmask 1041408   ;;  %vm1717_vm3 = vcmask 1042432   ;;  %vm1719_vm4 = vcmask 1043456  }
  0xde   :  { %432 = vmatprep.subr.bf16.mxu0 %v8848_v15  ;;  %6454 = vmatpush3.bf16.msra.mxu1 %v8865_v20  ;;  %11540 = vst [vmem:[#allocation34_spill] sm:$0xff] %v9052_v59  ;;  %v276_v61 = vld [vmem:[%s11312_s3] sm:$0x7]  ;;  %11541 = vst [vmem:[#allocation35_spill] sm:$0xff] %v9060_v62  ;;  %v639_v51 = vrot.slane %v277_v60, %v9060_v62  ;;  %vm1721_vm5 = vcmask 1044480   ;;  %vm1723_vm6 = vcmask 1045504  }
  0xdf   :  { %6455 = vmatprep.subr.bf16.mxu1 %v11340_v0  ;;  %v410_v63 = vrot.slane %v276_v61, %v9052_v59  ;;  %vm1725_vm7 = vcmask 1046528  }
  0xe1   :  { %433 = vmatpush1.bf16.msra.mxu0 %v8852_v16 }
  0xe2   :  { %434 = vmatprep.subr.bf16.mxu0 %v8858_v18  ;;  %6456 = vmatpush3.bf16.msra.mxu1 %v8875_v23 }
  0xe3   :  { %6457 = vmatprep.subr.bf16.mxu1 %v11340_v0 }
  0xe5   :  { %435 = vmatpush1.bf16.msra.mxu0 %v8861_v19 }
  0xe6   :  { %436 = vmatprep.subr.bf16.mxu0 %v8868_v21  ;;  %6458 = vmatpush3.bf16.msra.mxu1 %v8887_v27 }
  0xe7   :  { %6459 = vmatprep.subr.bf16.mxu1 %v11340_v0 }
  0xe9   :  { %437 = vmatpush1.bf16.msra.mxu0 %v8871_v22 }
  0xea   :  { %647 = vmatprep.subr.bf16.mxu0 %v8878_v24  ;;  %6460 = vmatpush3.bf16.msra.mxu1 %v8898_v30 }
  0xeb   :  { %6465 = vmatprep.subr.bf16.mxu1 %v11340_v0 }
  0xec   :  { %455 = vmatmul.mubr.bf16.vlgmr.msra.gmra.mrb[0].mxu0 %v8881_v25 }
  0xed   :  { %648 = vmatpush1.bf16.msra.mxu0 %v8884_v26  ;;  %679 = vmatprep.mubr.bf16.mxu0 %v11338_v1 }
  0xee   :  { %649 = vmatprep.subr.bf16.mxu0 %v8890_v28  ;;  %6462 = vmatmul.mubr.bf16.vlgmr.msra.gmra.mrb[0].mxu1 %v8881_v25  ;;  %v414_v25 = vrot.slane %v276_v61, %v9060_v62 }
  0xef   :  { %6466 = vmatpush3.bf16.msra.mxu1 %v8906_v33  ;;  %6481 = vmatprep.mubr.msk.bf16.mxu1 %vm8534_vm0, %v11340_v0 }
  0xf0   :  { %6467 = vmatprep.subr.bf16.mxu1 %v11340_v0 }
  0xf1   :  { %650 = vmatpush1.bf16.msra.mxu0 %v8894_v29 }
  0xf2   :  { %651 = vmatprep.subr.bf16.mxu0 %v8901_v31 }
  0xf3   :  { %6468 = vmatpush3.bf16.msra.mxu1 %v8917_v36 }
  0xf4   :  { %6469 = vmatprep.subr.bf16.mxu1 %v11340_v0 }
  0xf5   :  { %652 = vmatpush1.bf16.msra.mxu0 %v8904_v32 }
  0xf6   :  { %653 = vmatprep.subr.bf16.mxu0 %v8909_v34 }
  0xf7   :  { %6470 = vmatpush3.bf16.msra.mxu1 %v8928_v39 }
  0xf8   :  { %6471 = vmatprep.subr.bf16.mxu1 %v11340_v0 }
  0xf9   :  { %654 = vmatpush1.bf16.msra.mxu0 %v8915_v35 }
  0xfa   :  { %655 = vmatprep.subr.bf16.mxu0 %v8919_v37 }
  0xfb   :  { %6472 = vmatpush3.bf16.msra.mxu1 %v8940_v42 }
  0xfc   :  { %6473 = vmatprep.subr.bf16.mxu1 %v11340_v0 }
  0xfd   :  { %656 = vmatpush1.bf16.msra.mxu0 %v8926_v38 }
  0xfe   :  { %657 = vmatprep.subr.bf16.mxu0 %v8932_v40 }
  0xff   :  { %6474 = vmatpush3.bf16.msra.mxu1 %v8950_v45 }
 0x100   :  { %6475 = vmatprep.subr.bf16.mxu1 %v11340_v0 }
 0x101   :  { %658 = vmatpush1.bf16.msra.mxu0 %v8938_v41 }
 0x102   :  { %659 = vmatprep.subr.bf16.mxu0 %v8942_v43 }
 0x103   :  { %6476 = vmatpush3.bf16.msra.mxu1 %v8960_v48 }
 0x104   :  { %6477 = vmatprep.subr.bf16.mxu1 %v11340_v0 }
 0x105   :  { %660 = vmatpush1.bf16.msra.mxu0 %v8948_v44 }
 0x106   :  { %661 = vmatprep.subr.bf16.mxu0 %v8952_v46 }
 0x107   :  { %6478 = vmatpush3.bf16.msra.mxu1 %v8966_v49 }
 0x108   :  { %6479 = vmatprep.subr.bf16.mxu1 %v11340_v0 }
 0x109   :  { %662 = vmatpush1.bf16.msra.mxu0 %v8958_v47 }
 0x10a   :  { %757 = vmatprep.subr.bf16.mxu0 %v8810_v2 }
 0x10b   :  { %6480 = vmatpush3.bf16.msra.mxu1 %v8972_v50 }
 0x10c   :  { %680 = vmatmul.mubr.bf16.vlgmr.msra.gmra.mrb[0].mxu0 %v11338_v1  ;;  %6485 = vmatprep.subr.bf16.mxu1 %v11340_v0 }
 0x10d   :  { %758 = vmatpush1.bf16.msra.mxu0 %v8812_v3  ;;  %789 = vmatprep.mubr.bf16.mxu0 %v11338_v1 }
 0x10e   :  { %759 = vmatprep.subr.bf16.mxu0 %v8815_v4  ;;  %6482 = vmatmul.mubr.bf16.vlgmr.msra.gmra.mrb[4].mxu1 %v11338_v1 }
 0x10f   :  { %6486 = vmatpush3.bf16.msra.mxu1 %v8829_v9  ;;  %6501 = vmatprep.mubr.msk.bf16.mxu1 %vm8534_vm0, %v11340_v0 }
 0x110   :  { %6487 = vmatprep.subr.bf16.mxu1 %v11340_v0 }
 0x111   :  { %760 = vmatpush1.bf16.msra.mxu0 %v8818_v5 }
 0x112   :  { %761 = vmatprep.subr.bf16.mxu0 %v8821_v6 }
 0x113   :  { %6488 = vmatpush3.bf16.msra.mxu1 %v8839_v12 }
 0x114   :  { %6489 = vmatprep.subr.bf16.mxu1 %v11340_v0 }
 0x115   :  { %762 = vmatpush1.bf16.msra.mxu0 %v8824_v7 }
 0x116   :  { %763 = vmatprep.subr.bf16.mxu0 %v8827_v8 }
 0x117   :  { %6490 = vmatpush3.bf16.msra.mxu1 %v8845_v14 }
 0x118   :  { %6491 = vmatprep.subr.bf16.mxu1 %v11340_v0 }
 0x119   :  { %764 = vmatpush1.bf16.msra.mxu0 %v8832_v10 }
 0x11a   :  { %765 = vmatprep.subr.bf16.mxu0 %v8836_v11 }
 0x11b   :  { %6492 = vmatpush3.bf16.msra.mxu1 %v8855_v17 }
 0x11c   :  { %6493 = vmatprep.subr.bf16.mxu1 %v11340_v0 }
 0x11d   :  { %766 = vmatpush1.bf16.msra.mxu0 %v8841_v13 }
 0x11e   :  { %767 = vmatprep.subr.bf16.mxu0 %v8848_v15 }
 0x11f   :  { %6494 = vmatpush3.bf16.msra.mxu1 %v8865_v20 }
 0x120   :  { %6495 = vmatprep.subr.bf16.mxu1 %v11340_v0 }
 0x121   :  { %768 = vmatpush1.bf16.msra.mxu0 %v8852_v16 }
 0x122   :  { %769 = vmatprep.subr.bf16.mxu0 %v8858_v18 }
 0x123   :  { %6496 = vmatpush3.bf16.msra.mxu1 %v8875_v23 }
 0x124   :  { %6497 = vmatprep.subr.bf16.mxu1 %v11340_v0 }
 0x125   :  { %770 = vmatpush1.bf16.msra.mxu0 %v8861_v19 }
 0x126   :  { %771 = vmatprep.subr.bf16.mxu0 %v8868_v21 }
 0x127   :  { %6498 = vmatpush3.bf16.msra.mxu1 %v8887_v27 }
 0x128   :  { %6499 = vmatprep.subr.bf16.mxu1 %v11340_v0 }
 0x129   :  { %772 = vmatpush1.bf16.msra.mxu0 %v8871_v22 }
 0x12a   :  { %838 = vmatprep.subr.bf16.mxu0 %v8878_v24 }
 0x12b   :  { %6500 = vmatpush3.bf16.msra.mxu1 %v8898_v30 }
 0x12c   :  { %790 = vmatmul.mubr.bf16.vlgmr.msra.gmra.mrb[4].mxu0 %v754_v52  ;;  %6505 = vmatprep.subr.bf16.mxu1 %v11340_v0 }
 0x12d   :  { %839 = vmatpush1.bf16.msra.mxu0 %v8884_v26  ;;  %870 = vmatprep.mubr.bf16.mxu0 %v11338_v1 }
 0x12e   :  { %840 = vmatprep.subr.bf16.mxu0 %v8890_v28  ;;  %6502 = vmatmul.mubr.bf16.vlgmr.msra.gmra.mrb[8].mxu1 %v754_v52 }
 0x12f   :  { %6506 = vmatpush3.bf16.msra.mxu1 %v8906_v33  ;;  %6521 = vmatprep.mubr.msk.bf16.mxu1 %vm8534_vm0, %v11340_v0 }
 0x130   :  { %6507 = vmatprep.subr.bf16.mxu1 %v11340_v0 }
 0x131   :  { %841 = vmatpush1.bf16.msra.mxu0 %v8894_v29 }
 0x132   :  { %842 = vmatprep.subr.bf16.mxu0 %v8901_v31 }
 0x133   :  { %6508 = vmatpush3.bf16.msra.mxu1 %v8917_v36 }
 0x134   :  { %6509 = vmatprep.subr.bf16.mxu1 %v11340_v0 }
 0x135   :  { %843 = vmatpush1.bf16.msra.mxu0 %v8904_v32 }
 0x136   :  { %844 = vmatprep.subr.bf16.mxu0 %v8909_v34 }
 0x137   :  { %6510 = vmatpush3.bf16.msra.mxu1 %v8928_v39 }
 0x138   :  { %6511 = vmatprep.subr.bf16.mxu1 %v11340_v0 }
 0x139   :  { %845 = vmatpush1.bf16.msra.mxu0 %v8915_v35 }
 0x13a   :  { %846 = vmatprep.subr.bf16.mxu0 %v8919_v37 }
 0x13b   :  { %6512 = vmatpush3.bf16.msra.mxu1 %v8940_v42 }
 0x13c   :  { %6513 = vmatprep.subr.bf16.mxu1 %v11340_v0 }
 0x13d   :  { %847 = vmatpush1.bf16.msra.mxu0 %v8926_v38 }
 0x13e   :  { %848 = vmatprep.subr.bf16.mxu0 %v8932_v40 }
 0x13f   :  { %6514 = vmatpush3.bf16.msra.mxu1 %v8950_v45 }
 0x140   :  { %6515 = vmatprep.subr.bf16.mxu1 %v11340_v0 }
 0x141   :  { %849 = vmatpush1.bf16.msra.mxu0 %v8938_v41 }
 0x142   :  { %850 = vmatprep.subr.bf16.mxu0 %v8942_v43 }
 0x143   :  { %6516 = vmatpush3.bf16.msra.mxu1 %v8960_v48 }
 0x144   :  { %6517 = vmatprep.subr.bf16.mxu1 %v11340_v0 }
 0x145   :  { %851 = vmatpush1.bf16.msra.mxu0 %v8948_v44 }
 0x146   :  { %852 = vmatprep.subr.bf16.mxu0 %v8952_v46 }
 0x147   :  { %6518 = vmatpush3.bf16.msra.mxu1 %v8966_v49 }
 0x148   :  { %6519 = vmatprep.subr.bf16.mxu1 %v11340_v0 }
 0x149   :  { %853 = vmatpush1.bf16.msra.mxu0 %v8958_v47 }
 0x14a   :  { %947 = vmatprep.subr.bf16.mxu0 %v8810_v2  ;;  %v635_v2 = vrot.slane %v277_v60, %v9052_v59 }
 0x14b   :  { %6520 = vmatpush3.bf16.msra.mxu1 %v8972_v50 }
 0x14c   :  { %6525 = vmatprep.subr.bf16.mxu1 %v11340_v0  ;;  %v9066_v52 = vadd.f32 %v635_v2, %v410_v63 }
 0x1c1   :  { %v497_v53 = vpop.f32.mrb[0].mxu1 }
 0x1c2   :  { %v6463_v54 = vpop.f32.mrb[1].mxu1 }
 0x1c3   :  { %v500_v55 = vpop.f32.mrb[2].mxu1 }
 0x1c4   :  { %v6464_v56 = vpop.f32.mrb[3].mxu1  ;;  %v9068_v55 = vadd.f32 %v639_v51, %v414_v25  ;;  %v9072_v25 = vsub.s32 2, %v408_v58 }
 0x1c6   :  { %11542 = vst [vmem:[#allocation36_spill] sm:$0xff] %v9072_v25  ;;  %v9075_v51 = vrot.slane %v277_v60, %v9072_v25 }
 0x1df   :  { %v681_v54 = vpop.f32.mrb[0].mxu0 }
 0x1e0   :  { %v7566_v56 = vadd.f32 %v9066_v52, %v681_v54  ;;  %v683_v57 = vpop.f32.mrb[1].mxu0 }
 0x1e1   :  { %v685_v1 = vpop.f32.mrb[2].mxu0  ;;  %v7568_v47 = vadd.f32 %v9068_v55, %v683_v57  ;;  %v722_v59 = vpop.f32.mrb[4].mxu1 }
 0x1e2   :  { %v5816_v0 = vmul.f32 -1.442695, %v7566_v56  ;;  %v686_v50 = vpop.f32.mrb[3].mxu0  ;;  %v6483_v49 = vpop.f32.mrb[5].mxu1 }
 0x1e3   :  { %v5817_v46 = vmul.f32 -1.442695, %v7568_v47  ;;  %v725_v44 = vpop.f32.mrb[6].mxu1  ;;  %v9078_v50 = vrot.slane %v276_v61, %v9072_v25 }
 0x1e4   :  { %7866 = vpow2.f32 %v5816_v0  ;;  %v6484_v43 = vpop.f32.mrb[7].mxu1  ;;  %v723_v0 = vadd.f32 %v722_v59, %v9075_v51 }
 0x1e5   :  { %7868 = vpow2.f32 %v5817_v46  ;;  %v498_v44 = vadd.f32 %v497_v53, %v9078_v50  ;;  %v11544_v53 = vmov 0.0  }
 0x1ee   :  { %v7867_v63 = vpop.eup %7866 }
 0x1ef   :  { %v732_v2 = vadd.f32 1.0, %v7867_v63  ;;  %v7869_v1 = vpop.eup %7868 }
 0x1f0   :  { %v739_v54 = vadd.f32 1.0, %v7869_v1 }
 0x1f1   :  { %7870 = vrcp.f32 %v732_v2 }
 0x1f2   :  { %7872 = vrcp.f32 %v739_v54  ;;  %v11545_v54 = vmov 0  }
 0x1fb   :  { %v7871_v47 = vpop.eup %7870 }
 0x1fc   :  { %v742_v43 = vmul.f32 %v7871_v47, %v723_v0  ;;  %v7873_v49 = vpop.eup %7872 }
 0x1fd   :  { %v745_v60 = vsub.f32 1.0, %v7873_v49  ;;  %v747_v25 = vmul.f32 0.0, %v7873_v49 }
 0x1fe   :  { %v743_v46 = vadd.f32 %v742_v43, %v498_v44 }
 0x200   :  { %7874 = vtanh.f32 %v743_v46 }
 0x201   :  { %v9082_v58 = vpop.f32.mrb[8].mxu1 }
 0x202   :  { %v6503_v56 = vpop.f32.mrb[9].mxu1 }
 0x203   :  { %v835_v57 = vpop.f32.mrb[10].mxu1 }
 0x204   :  { %v6504_v2 = vpop.f32.mrb[11].mxu1 }
 0x20a   :  { %v7875_v63 = vpop.eup %7874 }
 0x20b   :  { %v746_v61 = vmul.f32 %v7875_v63, %v745_v60  ;;  %v833_v60 = vadd.f32 %v9082_v58, %v9078_v50  ;;  %v9176_v58 = vld [vmem:[#allocation6 + $0x8] ss:$12 sps:$4 sm:$0xff]  }
 0x20d   :  { %v9084_v1 = vadd.f32 %v747_v25, %v746_v61 }
 0x20f   :  { %11543 = vst [vmem:[#allocation37_spill] sm:$0xff] %v9084_v1  ;;  %v749_v59 = vpack.c.bf16 %v9084_v1, %v9084_v1 }
 0x211   :  { %871 = vmatmul.mubr.bf16.vlgmr.msra.gmra.mrb[4].mxu0 %v749_v59  ;;  %6522 = vmatmul.mubr.bf16.vlgmr.msra.gmra.mrb[12].mxu1 %v749_v59 }
 0x212   :  { %948 = vmatpush1.bf16.msra.mxu0 %v8812_v3  ;;  %6526 = vmatpush3.bf16.msra.mxu1 %v8829_v9  ;;  %v9123_v3 = vld [vmem:[#allocation3] ss:$0 sps:$4 sm:$0x22]   ;;  %v11550_v9 = vld [vmem:[#allocation31_spill] sm:$0xff] }
 0x213   :  { %949 = vmatprep.subr.bf16.mxu0 %v8815_v4  ;;  %6527 = vmatprep.subr.bf16.mxu1 %v11544_v53  ;;  %v945_v4 = vrot.slane %v9123_v3, 1 }
 0x214   :  { %979 = vmatprep.mubr.bf16.mxu0 %v11545_v54  ;;  %6541 = vmatprep.mubr.msk.bf16.mxu1 %vm8534_vm0, %v11544_v53 }
 0x216   :  { %950 = vmatpush1.bf16.msra.mxu0 %v8818_v5  ;;  %6528 = vmatpush3.bf16.msra.mxu1 %v8839_v12  ;;  %v11546_v5 = vld [vmem:[#allocation28_spill] sm:$0xff] }
 0x217   :  { %951 = vmatprep.subr.bf16.mxu0 %v8821_v6  ;;  %6529 = vmatprep.subr.bf16.mxu1 %v11544_v53  ;;  %v11547_v6 = vld [vmem:[#allocation29_spill] sm:$0xff] }
 0x21a   :  { %952 = vmatpush1.bf16.msra.mxu0 %v8824_v7  ;;  %6530 = vmatpush3.bf16.msra.mxu1 %v8845_v14  ;;  %v11548_v7 = vld [vmem:[#allocation32_spill] sm:$0xff] }
 0x21b   :  { %953 = vmatprep.subr.bf16.mxu0 %v8827_v8  ;;  %6531 = vmatprep.subr.bf16.mxu1 %v11544_v53  ;;  %v11549_v8 = vld [vmem:[#allocation30_spill] sm:$0xff] }
 0x21e   :  { %954 = vmatpush1.bf16.msra.mxu0 %v8832_v10  ;;  %6532 = vmatpush3.bf16.msra.mxu1 %v8855_v17  ;;  %v11551_v10 = vld [vmem:[#allocation33_spill] sm:$0xff] }
 0x21f   :  { %955 = vmatprep.subr.bf16.mxu0 %v8836_v11  ;;  %6533 = vmatprep.subr.bf16.mxu1 %v11544_v53  ;;  %v9159_v11 = vld [vmem:[#allocation6 + $0x4] ss:$12 sps:$4 sm:$0xff]  }
 0x222   :  { %956 = vmatpush1.bf16.msra.mxu0 %v8841_v13  ;;  %6534 = vmatpush3.bf16.msra.mxu1 %v8865_v20 }
 0x223   :  { %957 = vmatprep.subr.bf16.mxu0 %v8848_v15  ;;  %6535 = vmatprep.subr.bf16.mxu1 %v11544_v53 }
 0x226   :  { %958 = vmatpush1.bf16.msra.mxu0 %v8852_v16  ;;  %6536 = vmatpush3.bf16.msra.mxu1 %v8875_v23 }
 0x227   :  { %959 = vmatprep.subr.bf16.mxu0 %v8858_v18  ;;  %6537 = vmatprep.subr.bf16.mxu1 %v11544_v53 }
 0x22a   :  { %960 = vmatpush1.bf16.msra.mxu0 %v8861_v19  ;;  %6538 = vmatpush3.bf16.msra.mxu1 %v8887_v27 }
 0x22b   :  { %961 = vmatprep.subr.bf16.mxu0 %v8868_v21  ;;  %6539 = vmatprep.subr.bf16.mxu1 %v11544_v53 }
 0x22e   :  { %962 = vmatpush1.bf16.msra.mxu0 %v8871_v22  ;;  %6540 = vmatpush3.bf16.msra.mxu1 %v8898_v30 }
 0x22f   :  { %1028 = vmatprep.subr.bf16.mxu0 %v8878_v24  ;;  %6545 = vmatprep.subr.bf16.mxu1 %v11544_v53 }
 0x231   :  { %980 = vmatmul.mubr.bf16.vlgmr.msra.gmra.mrb[8].mxu0 %v945_v4  ;;  %6542 = vmatmul.mubr.bf16.vlgmr.msra.gmra.mrb[16].mxu1 %v945_v4 }
 0x232   :  { %1029 = vmatpush1.bf16.msra.mxu0 %v8884_v26  ;;  %6546 = vmatpush3.bf16.msra.mxu1 %v8906_v33 }
 0x233   :  { %1030 = vmatprep.subr.bf16.mxu0 %v8890_v28  ;;  %6547 = vmatprep.subr.bf16.mxu1 %v11544_v53 }
 0x234   :  { %1060 = vmatprep.mubr.bf16.mxu0 %v11545_v54  ;;  %6561 = vmatprep.mubr.msk.bf16.mxu1 %vm8534_vm0, %v11544_v53 }
 0x236   :  { %1031 = vmatpush1.bf16.msra.mxu0 %v8894_v29  ;;  %6548 = vmatpush3.bf16.msra.mxu1 %v8917_v36 }
 0x237   :  { %1032 = vmatprep.subr.bf16.mxu0 %v8901_v31  ;;  %6549 = vmatprep.subr.bf16.mxu1 %v11544_v53 }
 0x23a   :  { %1033 = vmatpush1.bf16.msra.mxu0 %v8904_v32  ;;  %6550 = vmatpush3.bf16.msra.mxu1 %v8928_v39 }
 0x23b   :  { %1034 = vmatprep.subr.bf16.mxu0 %v8909_v34  ;;  %6551 = vmatprep.subr.bf16.mxu1 %v11544_v53 }
 0x23e   :  { %1035 = vmatpush1.bf16.msra.mxu0 %v8915_v35  ;;  %6552 = vmatpush3.bf16.msra.mxu1 %v8940_v42 }
 0x23f   :  { %1036 = vmatprep.subr.bf16.mxu0 %v8919_v37  ;;  %6553 = vmatprep.subr.bf16.mxu1 %v11544_v53 }
 0x242   :  { %1037 = vmatpush1.bf16.msra.mxu0 %v8926_v38  ;;  %6554 = vmatpush3.bf16.msra.mxu1 %v8950_v45 }
 0x243   :  { %1038 = vmatprep.subr.bf16.mxu0 %v8932_v40  ;;  %6555 = vmatprep.subr.bf16.mxu1 %v11544_v53 }
 0x246   :  { %1039 = vmatpush1.bf16.msra.mxu0 %v8938_v41  ;;  %6556 = vmatpush3.bf16.msra.mxu1 %v8960_v48 }
 0x247   :  { %1040 = vmatprep.subr.bf16.mxu0 %v11546_v5  ;;  %6557 = vmatprep.subr.bf16.mxu1 %v11544_v53 }
 0x24a   :  { %1041 = vmatpush1.bf16.msra.mxu0 %v11547_v6  ;;  %6558 = vmatpush3.bf16.msra.mxu1 %v11548_v7 }
 0x24b   :  { %1042 = vmatprep.subr.bf16.mxu0 %v11549_v8  ;;  %6559 = vmatprep.subr.bf16.mxu1 %v11544_v53 }
 0x24e   :  { %1043 = vmatpush1.bf16.msra.mxu0 %v11550_v9  ;;  %6560 = vmatpush3.bf16.msra.mxu1 %v11551_v10 }
 0x24f   :  { %1136 = vmatprep.subr.bf16.mxu0 %v9159_v11  ;;  %6565 = vmatprep.subr.bf16.mxu1 %v11544_v53 }
 0x2e4   :  { %v872_v12 = vpop.f32.mrb[4].mxu0  ;;  %v913_v13 = vpop.f32.mrb[12].mxu1 }
 0x2e5   :  { %v7570_v14 = vadd.f32 %v9066_v52, %v872_v12  ;;  %v874_v15 = vpop.f32.mrb[5].mxu0  ;;  %v6523_v16 = vpop.f32.mrb[13].mxu1  ;;  %v914_v49 = vadd.f32 %v913_v13, %v9075_v51  ;;  %v9173_v13 = vld [vmem:[#allocation6] ss:$12 sps:$4 sm:$0xff]  }
 0x2e6   :  { %v876_v17 = vpop.f32.mrb[6].mxu0  ;;  %v916_v18 = vpop.f32.mrb[14].mxu1  ;;  %v7572_v25 = vadd.f32 %v9068_v55, %v874_v15  ;;  %v9179_v16 = vld [vmem:[#allocation6 + $0x1c] ss:$12 sps:$4 sm:$0xff]  }
 0x2e7   :  { %v5819_v19 = vmul.f32 -1.442695, %v7570_v14  ;;  %v877_v21 = vpop.f32.mrb[7].mxu0  ;;  %v6524_v22 = vpop.f32.mrb[15].mxu1  ;;  %v9186_v17 = vld [vmem:[#allocation6 + $0x18] ss:$12 sps:$4 sm:$0xff]  }
 0x2e8   :  { %v5820_v0 = vmul.f32 -1.442695, %v7572_v25  ;;  %v9189_v18 = vld [vmem:[#allocation6 + $0x20] ss:$12 sps:$4 sm:$0xff]   ;;  %v9196_v21 = vld [vmem:[#allocation6 + $0x30] ss:$12 sps:$4 sm:$0xff]  }
 0x2e9   :  { %7876 = vpow2.f32 %v5819_v19  ;;  %v9192_v19 = vld [vmem:[#allocation6 + $0x34] ss:$12 sps:$4 sm:$0xff]   ;;  %v9199_v22 = vld [vmem:[#allocation6 + $0x38] ss:$12 sps:$4 sm:$0xff]  }
 0x2ea   :  { %7878 = vpow2.f32 %v5820_v0  ;;  %v9202_v25 = vld [vmem:[#allocation6 + $0x4c] ss:$12 sps:$4 sm:$0xff]   ;;  %v9206_v0 = vld [vmem:[#allocation6 + $0x48] ss:$12 sps:$4 sm:$0xff]  }
 0x2f3   :  { %v7877_v47 = vpop.eup %7876 }
 0x2f4   :  { %v923_v44 = vadd.f32 1.0, %v7877_v47  ;;  %v7879_v43 = vpop.eup %7878  ;;  %v9209_v47 = vld [vmem:[#allocation6 + $0x50] ss:$12 sps:$4 sm:$0xff]  }
 0x2f5   :  { %v930_v46 = vadd.f32 1.0, %v7879_v43  ;;  %v9216_v43 = vld [vmem:[#allocation6 + $0x60] ss:$12 sps:$4 sm:$0xff]  }
 0x2f6   :  { %7880 = vrcp.f32 %v923_v44  ;;  %v9212_v44 = vld [vmem:[#allocation6 + $0x64] ss:$12 sps:$4 sm:$0xff]  }
 0x2f7   :  { %7882 = vrcp.f32 %v930_v46  ;;  %v9220_v46 = vld [vmem:[#allocation6 + $0x7c] ss:$12 sps:$4 sm:$0xff]  }
 0x300   :  { %v7881_v56 = vpop.eup %7880 }
 0x301   :  { %v933_v57 = vmul.f32 %v7881_v56, %v914_v49  ;;  %v7883_v2 = vpop.eup %7882  ;;  %v9224_v49 = vld [vmem:[#allocation6 + $0x78] ss:$12 sps:$4 sm:$0xff]   ;;  %v9228_v56 = vld [vmem:[#allocation6 + $0x94] ss:$12 sps:$4 sm:$0xff]  }
 0x302   :  { %v936_v61 = vsub.f32 1.0, %v7883_v2  ;;  %v938_v12 = vmul.f32 %v7883_v2, %v9084_v1 }
 0x303   :  { %v934_v63 = vadd.f32 %v933_v57, %v833_v60  ;;  %v9232_v60 = vld [vmem:[#allocation6 + $0x90] ss:$12 sps:$4 sm:$0xff]   ;;  %v9240_v57 = vld [vmem:[#allocation6 + $0xa8] ss:$12 sps:$4 sm:$0xff]  }
 0x305   :  { %7884 = vtanh.f32 %v934_v63 }
 0x30f   :  { %v7885_v59 = vpop.eup %7884 }
 0x310   :  { %v937_v4 = vmul.f32 %v7885_v59, %v936_v61  ;;  %v1132_v61 = vshrl.u32 %v9123_v3, 16 }
 0x312   :  { %v9169_v14 = vadd.f32 %v938_v12, %v937_v4  ;;  %v1134_v59 = vrot.slane %v1132_v61, 1  ;;  %v9332_v61 = vld [vmem:[#allocation6 + $0xb0] ss:$12 sps:$4 sm:$0xff]  }
 0x314   :  { %11552 = vst [vmem:[#allocation28_spill] sm:$0xff] %v9169_v14  ;;  %v941_v15 = vpack.c.bf16 %v9169_v14, %v9169_v14 }
 0x316   :  { %1061 = vmatmul.mubr.bf16.vlgmr.msra.gmra.mrb[8].mxu0 %v941_v15  ;;  %6562 = vmatmul.mubr.bf16.vlgmr.msra.gmra.mrb[20].mxu1 %v941_v15 }
 0x317   :  { %1137 = vmatpush1.bf16.msra.mxu0 %v9173_v13  ;;  %6566 = vmatpush3.bf16.msra.mxu1 %v9176_v58 }
 0x318   :  { %1138 = vmatprep.subr.bf16.mxu0 %v9179_v16  ;;  %6567 = vmatprep.subr.bf16.mxu1 %v11544_v53 }
 0x319   :  { %1168 = vmatprep.mubr.bf16.mxu0 %v11545_v54  ;;  %6581 = vmatprep.mubr.msk.bf16.mxu1 %vm8534_vm0, %v11544_v53 }
 0x31b   :  { %1139 = vmatpush1.bf16.msra.mxu0 %v9186_v17  ;;  %6568 = vmatpush3.bf16.msra.mxu1 %v9189_v18 }
 0x31c   :  { %1140 = vmatprep.subr.bf16.mxu0 %v9192_v19  ;;  %6569 = vmatprep.subr.bf16.mxu1 %v11544_v53 }
 0x31f   :  { %1141 = vmatpush1.bf16.msra.mxu0 %v9196_v21  ;;  %6570 = vmatpush3.bf16.msra.mxu1 %v9199_v22 }
 0x320   :  { %1142 = vmatprep.subr.bf16.mxu0 %v9202_v25  ;;  %6571 = vmatprep.subr.bf16.mxu1 %v11544_v53 }
 0x323   :  { %1143 = vmatpush1.bf16.msra.mxu0 %v9206_v0  ;;  %6572 = vmatpush3.bf16.msra.mxu1 %v9209_v47 }
 0x324   :  { %1144 = vmatprep.subr.bf16.mxu0 %v9212_v44  ;;  %6573 = vmatprep.subr.bf16.mxu1 %v11544_v53 }
 0x327   :  { %1145 = vmatpush1.bf16.msra.mxu0 %v9216_v43  ;;  %6574 = vmatpush3.bf16.msra.mxu1 %v8865_v20  ;;  %v9236_v20 = vld [vmem:[#allocation6 + $0xac] ss:$12 sps:$4 sm:$0xff]  }
 0x328   :  { %1146 = vmatprep.subr.bf16.mxu0 %v9220_v46  ;;  %6575 = vmatprep.subr.bf16.mxu1 %v11544_v53 }
 0x32b   :  { %1147 = vmatpush1.bf16.msra.mxu0 %v9224_v49  ;;  %6576 = vmatpush3.bf16.msra.mxu1 %v8875_v23  ;;  %v9246_v23 = vpop.f32.mrb[16].mxu1 }
 0x32c   :  { %1148 = vmatprep.subr.bf16.mxu0 %v9228_v56  ;;  %6577 = vmatprep.subr.bf16.mxu1 %v11544_v53  ;;  %v6543_v63 = vpop.f32.mrb[17].mxu1 }
 0x32f   :  { %1149 = vmatpush1.bf16.msra.mxu0 %v9232_v60  ;;  %6578 = vmatpush3.bf16.msra.mxu1 %v8887_v27  ;;  %v1025_v27 = vpop.f32.mrb[18].mxu1 }
 0x330   :  { %1150 = vmatprep.subr.bf16.mxu0 %v9236_v20  ;;  %6579 = vmatprep.subr.bf16.mxu1 %v11544_v53  ;;  %v6544_v2 = vpop.f32.mrb[19].mxu1  ;;  %v9320_v27 = vld [vmem:[#allocation6 + $0x80] ss:$12 sps:$4 sm:$0xff]  }
 0x331   :  { %v9326_v2 = vld [vmem:[#allocation6 + $0x98] ss:$12 sps:$4 sm:$0xff]  }
 0x333   :  { %1151 = vmatpush1.bf16.msra.mxu0 %v9240_v57  ;;  %6580 = vmatpush3.bf16.msra.mxu1 %v8898_v30 }
 0x334   :  { %1217 = vmatprep.subr.bf16.mxu0 %v8878_v24  ;;  %6585 = vmatprep.subr.bf16.mxu1 %v11544_v53 }
 0x336   :  { %1169 = vmatmul.mubr.bf16.vlgmr.msra.gmra.mrb[12].mxu0 %v1134_v59  ;;  %6582 = vmatmul.mubr.bf16.vlgmr.msra.gmra.mrb[24].mxu1 %v1134_v59  ;;  %v9335_v59 = vld [vmem:[#allocation8 + $0x4] ss:$12 sps:$4 sm:$0xff]  }
 0x337   :  { %1218 = vmatpush1.bf16.msra.mxu0 %v8884_v26  ;;  %6586 = vmatpush3.bf16.msra.mxu1 %v8906_v33 }
 0x338   :  { %1219 = vmatprep.subr.bf16.mxu0 %v8890_v28  ;;  %6587 = vmatprep.subr.bf16.mxu1 %v11544_v53 }
 0x339   :  { %1249 = vmatprep.mubr.bf16.mxu0 %v11545_v54  ;;  %6601 = vmatprep.mubr.msk.bf16.mxu1 %vm8534_vm0, %v11544_v53 }
 0x33b   :  { %1220 = vmatpush1.bf16.msra.mxu0 %v8894_v29  ;;  %6588 = vmatpush3.bf16.msra.mxu1 %v8917_v36 }
 0x33c   :  { %1221 = vmatprep.subr.bf16.mxu0 %v8901_v31  ;;  %6589 = vmatprep.subr.bf16.mxu1 %v11544_v53 }
 0x33f   :  { %1222 = vmatpush1.bf16.msra.mxu0 %v8904_v32  ;;  %6590 = vmatpush3.bf16.msra.mxu1 %v8928_v39 }
 0x340   :  { %1223 = vmatprep.subr.bf16.mxu0 %v8909_v34  ;;  %6591 = vmatprep.subr.bf16.mxu1 %v11544_v53 }
 0x343   :  { %1224 = vmatpush1.bf16.msra.mxu0 %v8915_v35  ;;  %6592 = vmatpush3.bf16.msra.mxu1 %v8940_v42 }
 0x344   :  { %1225 = vmatprep.subr.bf16.mxu0 %v8919_v37  ;;  %6593 = vmatprep.subr.bf16.mxu1 %v11544_v53 }
 0x347   :  { %1226 = vmatpush1.bf16.msra.mxu0 %v8926_v38  ;;  %6594 = vmatpush3.bf16.msra.mxu1 %v8950_v45 }
 0x348   :  { %1227 = vmatprep.subr.bf16.mxu0 %v8932_v40  ;;  %6595 = vmatprep.subr.bf16.mxu1 %v11544_v53 }
 0x34b   :  { %1228 = vmatpush1.bf16.msra.mxu0 %v8938_v41  ;;  %6596 = vmatpush3.bf16.msra.mxu1 %v8960_v48  ;;  %v1023_v48 = vadd.f32 %v9246_v23, %v9078_v50  ;;  %v9314_v23 = vld [vmem:[#allocation6 + $0x68] ss:$12 sps:$4 sm:$0xff]  }
 0x34c   :  { %1229 = vmatprep.subr.bf16.mxu0 %v11546_v5  ;;  %6597 = vmatprep.subr.bf16.mxu1 %v11544_v53 }
 0x34f   :  { %1230 = vmatpush1.bf16.msra.mxu0 %v11547_v6  ;;  %6598 = vmatpush3.bf16.msra.mxu1 %v11548_v7 }
 0x350   :  { %1231 = vmatprep.subr.bf16.mxu0 %v11549_v8  ;;  %6599 = vmatprep.subr.bf16.mxu1 %v11544_v53 }
 0x353   :  { %1232 = vmatpush1.bf16.msra.mxu0 %v11550_v9  ;;  %6600 = vmatpush3.bf16.msra.mxu1 %v11551_v10 }
 0x354   :  { %1326 = vmatprep.subr.bf16.mxu0 %v9159_v11  ;;  %6605 = vmatprep.subr.bf16.mxu1 %v11544_v53 }
 0x3e9   :  { %v1062_v24 = vpop.f32.mrb[8].mxu0  ;;  %v1103_v26 = vpop.f32.mrb[20].mxu1 }
 0x3ea   :  { %v7574_v28 = vadd.f32 %v9066_v52, %v1062_v24  ;;  %v1064_v29 = vpop.f32.mrb[9].mxu0  ;;  %v6563_v30 = vpop.f32.mrb[21].mxu1  ;;  %v1104_v42 = vadd.f32 %v1103_v26, %v9075_v51 }
 0x3eb   :  { %v1066_v31 = vpop.f32.mrb[10].mxu0  ;;  %v1106_v32 = vpop.f32.mrb[22].mxu1  ;;  %v7576_v36 = vadd.f32 %v9068_v55, %v1064_v29  ;;  %v9341_v30 = vld [vmem:[#allocation3] ss:$0 sps:$4 sm:$0x44]  }
 0x3ec   :  { %v5822_v33 = vmul.f32 -1.442695, %v7574_v28  ;;  %v1067_v34 = vpop.f32.mrb[11].mxu0  ;;  %v6564_v35 = vpop.f32.mrb[23].mxu1  ;;  %v1324_v31 = vrot.slane %v9341_v30, 2 }
 0x3ed   :  { %v5823_v37 = vmul.f32 -1.442695, %v7576_v36  ;;  %v9344_v32 = vld [vmem:[#allocation8] ss:$12 sps:$4 sm:$0xff]   ;;  %v9350_v34 = vld [vmem:[#allocation8 + $0x1c] ss:$12 sps:$4 sm:$0xff]  }
 0x3ee   :  { %7886 = vpow2.f32 %v5822_v33  ;;  %v9347_v33 = vld [vmem:[#allocation8 + $0x8] ss:$12 sps:$4 sm:$0xff]   ;;  %v9357_v35 = vld [vmem:[#allocation8 + $0x18] ss:$12 sps:$4 sm:$0xff]   ;;  %v9360_v36 = vld [vmem:[#allocation8 + $0x20] ss:$12 sps:$4 sm:$0xff]  }
 0x3ef   :  { %7888 = vpow2.f32 %v5823_v37  ;;  %v9363_v37 = vld [vmem:[#allocation8 + $0x34] ss:$12 sps:$4 sm:$0xff]  }
 0x3f8   :  { %v7887_v38 = vpop.eup %7886 }
 0x3f9   :  { %v1113_v39 = vadd.f32 1.0, %v7887_v38  ;;  %v7889_v40 = vpop.eup %7888  ;;  %v9367_v38 = vld [vmem:[#allocation8 + $0x30] ss:$12 sps:$4 sm:$0xff]  }
 0x3fa   :  { %v1120_v41 = vadd.f32 1.0, %v7889_v40  ;;  %v9373_v40 = vld [vmem:[#allocation8 + $0x4c] ss:$12 sps:$4 sm:$0xff]  }
 0x3fb   :  { %7890 = vrcp.f32 %v1113_v39  ;;  %v9370_v39 = vld [vmem:[#allocation8 + $0x38] ss:$12 sps:$4 sm:$0xff]  }
 0x3fc   :  { %7892 = vrcp.f32 %v1120_v41  ;;  %v9377_v41 = vld [vmem:[#allocation8 + $0x48] ss:$12 sps:$4 sm:$0xff]  }
 0x405   :  { %v7891_v45 = vpop.eup %7890 }
 0x406   :  { %v1123_v3 = vmul.f32 %v7891_v45, %v1104_v42  ;;  %v7893_v6 = vpop.eup %7892  ;;  %v9380_v42 = vld [vmem:[#allocation8 + $0x50] ss:$12 sps:$4 sm:$0xff]  }
 0x407   :  { %v1126_v8 = vsub.f32 1.0, %v7893_v6  ;;  %v1128_v12 = vmul.f32 %v7893_v6, %v9169_v14  ;;  %v9383_v45 = vld [vmem:[#allocation8 + $0x64] ss:$12 sps:$4 sm:$0xff]  }
 0x408   :  { %v1124_v5 = vadd.f32 %v1123_v3, %v1023_v48  ;;  %v9387_v48 = vld [vmem:[#allocation8 + $0x60] ss:$12 sps:$4 sm:$0xff]   ;;  %v9390_v3 = vld [vmem:[#allocation8 + $0x68] ss:$12 sps:$4 sm:$0xff]   ;;  %v9397_v6 = vld [vmem:[#allocation8 + $0x78] ss:$12 sps:$4 sm:$0xff]  }
 0x409   :  { %v9339_v24 = vpop.f32.mrb[24].mxu1  ;;  %11554 = vst [vmem:[#allocation32_spill] sm:$0xff] %v9397_v6 }
 0x40a   :  { %7894 = vtanh.f32 %v1124_v5  ;;  %v6583_v26 = vpop.f32.mrb[25].mxu1  ;;  %v9393_v5 = vld [vmem:[#allocation8 + $0x7c] ss:$12 sps:$4 sm:$0xff]  }
 0x40b   :  { %v1214_v28 = vpop.f32.mrb[26].mxu1  ;;  %11553 = vst [vmem:[#allocation29_spill] sm:$0xff] %v9393_v5 }
 0x40c   :  { %v6584_v29 = vpop.f32.mrb[27].mxu1 }
 0x414   :  { %v7895_v9 = vpop.eup %7894 }
 0x415   :  { %v1127_v4 = vmul.f32 %v7895_v9, %v1126_v8  ;;  %v9400_v8 = vld [vmem:[#allocation8 + $0x80] ss:$12 sps:$4 sm:$0xff]  }
 0x416   :  { %11555 = vst [vmem:[#allocation30_spill] sm:$0xff] %v9400_v8  ;;  %v9403_v9 = vld [vmem:[#allocation8 + $0x94] ss:$12 sps:$4 sm:$0xff]  }
 0x417   :  { %v9290_v15 = vadd.f32 %v1128_v12, %v1127_v4  ;;  %11556 = vst [vmem:[#allocation31_spill] sm:$0xff] %v9403_v9  ;;  %v9407_v4 = vld [vmem:[#allocation8 + $0x90] ss:$12 sps:$4 sm:$0xff]   ;;  %v9411_v12 = vld [vmem:[#allocation8 + $0xac] ss:$12 sps:$4 sm:$0xff]  }
 0x418   :  { %11557 = vst [vmem:[#allocation33_spill] sm:$0xff] %v9407_v4  ;;  %11558 = vst [vmem:[#allocation38_spill] sm:$0xff] %v9411_v12 }
 0x419   :  { %v1130_v63 = vpack.c.bf16 %v9290_v15, %v9290_v15 }
 0x41b   :  { %1250 = vmatmul.mubr.bf16.vlgmr.msra.gmra.mrb[12].mxu0 %v1130_v63  ;;  %6602 = vmatmul.mubr.bf16.vlgmr.msra.gmra.mrb[28].mxu1 %v1130_v63  ;;  %v9415_v63 = vld [vmem:[#allocation8 + $0xa8] ss:$12 sps:$4 sm:$0xff]  }
 0x41c   :  { %1327 = vmatpush1.bf16.msra.mxu0 %v9173_v13  ;;  %6606 = vmatpush3.bf16.msra.mxu1 %v9176_v58  ;;  %11559 = vst [vmem:[#allocation39_spill] sm:$0xff] %v9415_v63 }
 0x41d   :  { %1328 = vmatprep.subr.bf16.mxu0 %v9179_v16  ;;  %6607 = vmatprep.subr.bf16.mxu1 %v11544_v53 }
 0x41e   :  { %1358 = vmatprep.mubr.bf16.mxu0 %v11545_v54  ;;  %6621 = vmatprep.mubr.msk.bf16.mxu1 %vm8534_vm0, %v11544_v53 }
 0x420   :  { %1329 = vmatpush1.bf16.msra.mxu0 %v9186_v17  ;;  %6608 = vmatpush3.bf16.msra.mxu1 %v9189_v18 }
 0x421   :  { %1330 = vmatprep.subr.bf16.mxu0 %v9192_v19  ;;  %6609 = vmatprep.subr.bf16.mxu1 %v11544_v53 }
 0x424   :  { %1331 = vmatpush1.bf16.msra.mxu0 %v9196_v21  ;;  %6610 = vmatpush3.bf16.msra.mxu1 %v9199_v22 }
 0x425   :  { %1332 = vmatprep.subr.bf16.mxu0 %v9202_v25  ;;  %6611 = vmatprep.subr.bf16.mxu1 %v11544_v53 }
 0x428   :  { %1333 = vmatpush1.bf16.msra.mxu0 %v9206_v0  ;;  %6612 = vmatpush3.bf16.msra.mxu1 %v9209_v47 }
 0x429   :  { %1334 = vmatprep.subr.bf16.mxu0 %v9212_v44  ;;  %6613 = vmatprep.subr.bf16.mxu1 %v11544_v53 }
 0x42c   :  { %1335 = vmatpush1.bf16.msra.mxu0 %v9216_v43  ;;  %6614 = vmatpush3.bf16.msra.mxu1 %v9314_v23 }
 0x42d   :  { %1336 = vmatprep.subr.bf16.mxu0 %v9220_v46  ;;  %6615 = vmatprep.subr.bf16.mxu1 %v11544_v53 }
 0x430   :  { %1337 = vmatpush1.bf16.msra.mxu0 %v9224_v49  ;;  %6616 = vmatpush3.bf16.msra.mxu1 %v9320_v27 }
 0x431   :  { %1338 = vmatprep.subr.bf16.mxu0 %v9228_v56  ;;  %6617 = vmatprep.subr.bf16.mxu1 %v11544_v53 }
 0x434   :  { %1339 = vmatpush1.bf16.msra.mxu0 %v9232_v60  ;;  %6618 = vmatpush3.bf16.msra.mxu1 %v9326_v2 }
 0x435   :  { %1340 = vmatprep.subr.bf16.mxu0 %v9236_v20  ;;  %6619 = vmatprep.subr.bf16.mxu1 %v11544_v53 }
 0x438   :  { %1341 = vmatpush1.bf16.msra.mxu0 %v9240_v57  ;;  %6620 = vmatpush3.bf16.msra.mxu1 %v9332_v61 }
 0x439   :  { %1407 = vmatprep.subr.bf16.mxu0 %v9335_v59  ;;  %6625 = vmatprep.subr.bf16.mxu1 %v11544_v53 }
 0x43b   :  { %1359 = vmatmul.mubr.bf16.vlgmr.msra.gmra.mrb[16].mxu0 %v1324_v31  ;;  %6622 = vmatmul.mubr.bf16.vlgmr.msra.gmra.mrb[32].mxu1 %v1324_v31 }
 0x43c   :  { %1408 = vmatpush1.bf16.msra.mxu0 %v9344_v32  ;;  %6626 = vmatpush3.bf16.msra.mxu1 %v9347_v33 }
 0x43d   :  { %1409 = vmatprep.subr.bf16.mxu0 %v9350_v34  ;;  %6627 = vmatprep.subr.bf16.mxu1 %v11544_v53 }
 0x43e   :  { %1439 = vmatprep.mubr.bf16.mxu0 %v11545_v54  ;;  %6641 = vmatprep.mubr.msk.bf16.mxu1 %vm8534_vm0, %v11544_v53 }
 0x440   :  { %1410 = vmatpush1.bf16.msra.mxu0 %v9357_v35  ;;  %6628 = vmatpush3.bf16.msra.mxu1 %v9360_v36 }
 0x441   :  { %1411 = vmatprep.subr.bf16.mxu0 %v9363_v37  ;;  %6629 = vmatprep.subr.bf16.mxu1 %v11544_v53 }
 0x444   :  { %1412 = vmatpush1.bf16.msra.mxu0 %v9367_v38  ;;  %6630 = vmatpush3.bf16.msra.mxu1 %v9370_v39 }
 0x445   :  { %1413 = vmatprep.subr.bf16.mxu0 %v9373_v40  ;;  %6631 = vmatprep.subr.bf16.mxu1 %v11544_v53 }
 0x448   :  { %1414 = vmatpush1.bf16.msra.mxu0 %v9377_v41  ;;  %6632 = vmatpush3.bf16.msra.mxu1 %v9380_v42 }
 0x449   :  { %1415 = vmatprep.subr.bf16.mxu0 %v9383_v45  ;;  %6633 = vmatprep.subr.bf16.mxu1 %v11544_v53 }
 0x44c   :  { %1416 = vmatpush1.bf16.msra.mxu0 %v9387_v48  ;;  %6634 = vmatpush3.bf16.msra.mxu1 %v9390_v3 }
 0x44d   :  { %1417 = vmatprep.subr.bf16.mxu0 %v9393_v5  ;;  %6635 = vmatprep.subr.bf16.mxu1 %v11544_v53 }
 0x450   :  { %1418 = vmatpush1.bf16.msra.mxu0 %v9397_v6  ;;  %6636 = vmatpush3.bf16.msra.mxu1 %v9400_v8 }
 0x451   :  { %1419 = vmatprep.subr.bf16.mxu0 %v9403_v9  ;;  %6637 = vmatprep.subr.bf16.mxu1 %v11544_v53 }
 0x454   :  { %1420 = vmatpush1.bf16.msra.mxu0 %v9407_v4  ;;  %6638 = vmatpush3.bf16.msra.mxu1 %v11548_v7 }
 0x455   :  { %1421 = vmatprep.subr.bf16.mxu0 %v9411_v12  ;;  %6639 = vmatprep.subr.bf16.mxu1 %v11544_v53 }
 0x458   :  { %1422 = vmatpush1.bf16.msra.mxu0 %v9415_v63  ;;  %6640 = vmatpush3.bf16.msra.mxu1 %v11551_v10 }
 0x459   :  { %1515 = vmatprep.subr.bf16.mxu0 %v9159_v11  ;;  %6645 = vmatprep.subr.bf16.mxu1 %v11544_v53 }
 0x4ee   :  { %v1251_v26 = vpop.f32.mrb[12].mxu0  ;;  %v1292_v28 = vpop.f32.mrb[28].mxu1 }
 0x4ef   :  { %v7578_v7 = vadd.f32 %v9066_v52, %v1251_v26  ;;  %v1253_v29 = vpop.f32.mrb[13].mxu0  ;;  %v6603_v31 = vpop.f32.mrb[29].mxu1  ;;  %v1293_v5 = vadd.f32 %v1292_v28, %v9075_v51  ;;  %v7762_v28 = vld [vmem:[#allocation9] sm:$0xff]  }
 0x4f0   :  { %v1255_v62 = vpop.f32.mrb[14].mxu0  ;;  %v1295_v1 = vpop.f32.mrb[30].mxu1  ;;  %v7580_v9 = vadd.f32 %v9068_v55, %v1253_v29 }
 0x4f1   :  { %v5824_v14 = vmul.f32 -1.442695, %v7578_v7  ;;  %v1256_v12 = vpop.f32.mrb[15].mxu0  ;;  %v6604_v4 = vpop.f32.mrb[31].mxu1  ;;  %v1212_v62 = vadd.f32 %v9339_v24, %v9078_v50 }
 0x4f2   :  { %v5825_v63 = vmul.f32 -1.442695, %v7580_v9 }
 0x4f3   :  { %7896 = vpow2.f32 %v5824_v14 }
 0x4f4   :  { %7898 = vpow2.f32 %v5825_v63 }
 0x4fd   :  { %v7897_v10 = vpop.eup %7896 }
 0x4fe   :  { %v1302_v11 = vadd.f32 1.0, %v7897_v10  ;;  %v7899_v8 = vpop.eup %7898  ;;  %v7763_v10 = vld [vmem:[#allocation9 + $0x8] sm:$0xff]  }
 0x4ff   :  { %v1309_v6 = vadd.f32 1.0, %v7899_v8 }
 0x500   :  { %7900 = vrcp.f32 %v1302_v11  ;;  %v7764_v11 = vld [vmem:[#allocation9 + $0x10] sm:$0xff]  }
 0x501   :  { %7902 = vrcp.f32 %v1309_v6 }
 0x50a   :  { %v7901_v26 = vpop.eup %7900 }
 0x50b   :  { %v1312_v1 = vmul.f32 %v7901_v26, %v1293_v5  ;;  %v7903_v4 = vpop.eup %7902  ;;  %v7765_v26 = vld [vmem:[#allocation9 + $0x18] sm:$0xff]  }
 0x50c   :  { %v1315_v7 = vsub.f32 1.0, %v7903_v4  ;;  %v1317_v63 = vmul.f32 %v7903_v4, %v9290_v15 }
 0x50d   :  { %v1313_v12 = vadd.f32 %v1312_v1, %v1212_v62 }
 0x50f   :  { %7904 = vtanh.f32 %v1313_v12 }
 0x519   :  { %v7905_v14 = vpop.eup %7904 }
 0x51a   :  { %v1316_v9 = vmul.f32 %v7905_v14, %v1315_v7  ;;  %v7766_v7 = vld [vmem:[#allocation9 + $0x20] sm:$0xff]   ;;  %v7767_v14 = vld [vmem:[#allocation9 + $0x28] sm:$0xff]  }
 0x51c   :  { %v9427_v29 = vadd.f32 %v1317_v63, %v1316_v9  ;;  %v7768_v9 = vld [vmem:[#allocation9 + $0x30] sm:$0xff]   ;;  %v7769_v63 = vld [vmem:[#allocation9 + $0x38] sm:$0xff]  }
 0x51e   :  { %v1320_v8 = vpack.c.bf16 %v9427_v29, %v9427_v29 }
 0x520   :  { %1440 = vmatmul.mubr.bf16.vlgmr.msra.gmra.mrb[16].mxu0 %v1320_v8  ;;  %6642 = vmatmul.mubr.bf16.vlgmr.msra.gmra.mrb[36].mxu1 %v1320_v8  ;;  %v1728_v8 = vld [vmem:[%s11314_s5] sm:$0x1] }
 0x521   :  { %1516 = vmatpush1.bf16.msra.mxu0 %v9173_v13  ;;  %6646 = vmatpush3.bf16.msra.mxu1 %v9176_v58  ;;  %v9466_v13 = vpop.f32.mrb[32].mxu1 }
 0x522   :  { %1517 = vmatprep.subr.bf16.mxu0 %v9179_v16  ;;  %6647 = vmatprep.subr.bf16.mxu1 %v11544_v53  ;;  %v6623_v58 = vpop.f32.mrb[33].mxu1 }
 0x523   :  { %1547 = vmatprep.mubr.bf16.mxu0 %v11545_v54  ;;  %6661 = vmatprep.mubr.msk.bf16.mxu1 %vm8534_vm0, %v11544_v53  ;;  %v1404_v16 = vpop.f32.mrb[34].mxu1  ;;  %v7771_v58 = vld [vmem:[#allocation12] sm:$0xff]  }
 0x524   :  { %v9536_v16 = vld [vmem:[#allocation11 + $0x8] sm:$0xff]  }
 0x525   :  { %1518 = vmatpush1.bf16.msra.mxu0 %v9186_v17  ;;  %6648 = vmatpush3.bf16.msra.mxu1 %v9189_v18  ;;  %v6624_v17 = vpop.f32.mrb[35].mxu1  ;;  %v1511_v18 = vshrl.u32 %v9341_v30, 16 }
 0x526   :  { %1519 = vmatprep.subr.bf16.mxu0 %v9192_v19  ;;  %6649 = vmatprep.subr.bf16.mxu1 %v11544_v53  ;;  %v7773_v17 = vld [vmem:[#allocation12 + $0x8] sm:$0xff]  }
 0x527   :  { %v1513_v19 = vrot.slane %v1511_v18, 2  ;;  %v9541_v18 = vld [vmem:[#allocation11 + $0x10] sm:$0xff]  }
 0x529   :  { %1520 = vmatpush1.bf16.msra.mxu0 %v9196_v21  ;;  %6650 = vmatpush3.bf16.msra.mxu1 %v9199_v22  ;;  %v11560_v21 = vld [vmem:[#allocation29_spill] sm:$0xff]  ;;  %v11561_v22 = vld [vmem:[#allocation32_spill] sm:$0xff] }
 0x52a   :  { %1521 = vmatprep.subr.bf16.mxu0 %v9202_v25  ;;  %6651 = vmatprep.subr.bf16.mxu1 %v11544_v53  ;;  %v11562_v25 = vld [vmem:[#allocation30_spill] sm:$0xff]  ;;  %11568 = vst [vmem:[#allocation32_spill] sm:$0xff] %v9536_v16 }
 0x52b   :  { %11569 = vst [vmem:[#allocation30_spill] sm:$0xff] %v9541_v18 }
 0x52d   :  { %1522 = vmatpush1.bf16.msra.mxu0 %v9206_v0  ;;  %6652 = vmatpush3.bf16.msra.mxu1 %v9209_v47  ;;  %v11563_v0 = vld [vmem:[#allocation31_spill] sm:$0xff]  ;;  %v11564_v47 = vld [vmem:[#allocation33_spill] sm:$0xff] }
 0x52e   :  { %1523 = vmatprep.subr.bf16.mxu0 %v9212_v44  ;;  %6653 = vmatprep.subr.bf16.mxu1 %v11544_v53  ;;  %v8116_v44 = vld [vmem:[#allocation8 + $0x98] ss:$12 sps:$4 sm:$0xff]  }
 0x531   :  { %1524 = vmatpush1.bf16.msra.mxu0 %v9216_v43  ;;  %6654 = vmatpush3.bf16.msra.mxu1 %v9314_v23  ;;  %v11565_v43 = vld [vmem:[#allocation38_spill] sm:$0xff] }
 0x532   :  { %1525 = vmatprep.subr.bf16.mxu0 %v9220_v46  ;;  %6655 = vmatprep.subr.bf16.mxu1 %v11544_v53  ;;  %v11566_v46 = vld [vmem:[#allocation39_spill] sm:$0xff] }
 0x535   :  { %1526 = vmatpush1.bf16.msra.mxu0 %v9224_v49  ;;  %6656 = vmatpush3.bf16.msra.mxu1 %v9320_v27  ;;  %v8117_v49 = vld [vmem:[#allocation8 + $0xb0] ss:$12 sps:$4 sm:$0xff]  }
 0x536   :  { %1527 = vmatprep.subr.bf16.mxu0 %v9228_v56  ;;  %6657 = vmatprep.subr.bf16.mxu1 %v11544_v53 }
 0x539   :  { %1528 = vmatpush1.bf16.msra.mxu0 %v9232_v60  ;;  %6658 = vmatpush3.bf16.msra.mxu1 %v9326_v2 }
 0x53a   :  { %1529 = vmatprep.subr.bf16.mxu0 %v9236_v20  ;;  %6659 = vmatprep.subr.bf16.mxu1 %v11544_v53 }
 0x53d   :  { %1530 = vmatpush1.bf16.msra.mxu0 %v9240_v57  ;;  %6660 = vmatpush3.bf16.msra.mxu1 %v9332_v61 }
 0x53e   :  { %1596 = vmatprep.subr.bf16.mxu0 %v9335_v59  ;;  %6665 = vmatprep.subr.bf16.mxu1 %v11544_v53 }
 0x540   :  { %1548 = vmatmul.mubr.bf16.vlgmr.msra.gmra.mrb[20].mxu0 %v1513_v19  ;;  %6662 = vmatmul.mubr.bf16.vlgmr.msra.gmra.mrb[40].mxu1 %v1513_v19  ;;  %v7775_v19 = vld [vmem:[#allocation12 + $0x10] sm:$0xff]  }
 0x541   :  { %1597 = vmatpush1.bf16.msra.mxu0 %v9344_v32  ;;  %6666 = vmatpush3.bf16.msra.mxu1 %v9347_v33 }
 0x542   :  { %1598 = vmatprep.subr.bf16.mxu0 %v9350_v34  ;;  %6667 = vmatprep.subr.bf16.mxu1 %v11544_v53 }
 0x543   :  { %1628 = vmatprep.mubr.bf16.mxu0 %v11545_v54  ;;  %6681 = vmatprep.mubr.msk.bf16.mxu1 %vm8534_vm0, %v11544_v53 }
 0x545   :  { %1599 = vmatpush1.bf16.msra.mxu0 %v9357_v35  ;;  %6668 = vmatpush3.bf16.msra.mxu1 %v9360_v36 }
 0x546   :  { %1600 = vmatprep.subr.bf16.mxu0 %v9363_v37  ;;  %6669 = vmatprep.subr.bf16.mxu1 %v11544_v53 }
 0x549   :  { %1601 = vmatpush1.bf16.msra.mxu0 %v9367_v38  ;;  %6670 = vmatpush3.bf16.msra.mxu1 %v9370_v39  ;;  %v1402_v39 = vadd.f32 %v9466_v13, %v9078_v50  ;;  %v9529_v13 = vld [vmem:[#allocation11] sm:$0xff]  }
 0x54a   :  { %1602 = vmatprep.subr.bf16.mxu0 %v9373_v40  ;;  %6671 = vmatprep.subr.bf16.mxu1 %v11544_v53  ;;  %11567 = vst [vmem:[#allocation29_spill] sm:$0xff] %v9529_v13 }
 0x54d   :  { %1603 = vmatpush1.bf16.msra.mxu0 %v9377_v41  ;;  %6672 = vmatpush3.bf16.msra.mxu1 %v9380_v42 }
 0x54e   :  { %1604 = vmatprep.subr.bf16.mxu0 %v9383_v45  ;;  %6673 = vmatprep.subr.bf16.mxu1 %v11544_v53 }
 0x551   :  { %1605 = vmatpush1.bf16.msra.mxu0 %v9387_v48  ;;  %6674 = vmatpush3.bf16.msra.mxu1 %v9390_v3 }
 0x552   :  { %1606 = vmatprep.subr.bf16.mxu0 %v11560_v21  ;;  %6675 = vmatprep.subr.bf16.mxu1 %v11544_v53  ;;  %v9546_v21 = vld [vmem:[#allocation11 + $0x18] sm:$0xff]  }
 0x553   :  { %11570 = vst [vmem:[#allocation31_spill] sm:$0xff] %v9546_v21 }
 0x555   :  { %1607 = vmatpush1.bf16.msra.mxu0 %v11561_v22  ;;  %6676 = vmatpush3.bf16.msra.mxu1 %v11562_v25  ;;  %v7777_v22 = vld [vmem:[#allocation12 + $0x18] sm:$0xff]   ;;  %v9551_v25 = vld [vmem:[#allocation11 + $0x20] sm:$0xff]  }
 0x556   :  { %1608 = vmatprep.subr.bf16.mxu0 %v11563_v0  ;;  %6677 = vmatprep.subr.bf16.mxu1 %v11544_v53  ;;  %11571 = vst [vmem:[#allocation33_spill] sm:$0xff] %v9551_v25  ;;  %v7779_v0 = vld [vmem:[#allocation12 + $0x20] sm:$0xff]  }
 0x559   :  { %1609 = vmatpush1.bf16.msra.mxu0 %v11564_v47  ;;  %6678 = vmatpush3.bf16.msra.mxu1 %v8116_v44  ;;  %v9554_v47 = vld [vmem:[#allocation11 + $0x28] sm:$0xff]  }
 0x55a   :  { %1610 = vmatprep.subr.bf16.mxu0 %v11565_v43  ;;  %6679 = vmatprep.subr.bf16.mxu1 %v11544_v53  ;;  %11572 = vst [vmem:[#allocation38_spill] sm:$0xff] %v9554_v47  ;;  %v7781_v44 = vld [vmem:[#allocation12 + $0x28] sm:$0xff]   ;;  %v9559_v43 = vld [vmem:[#allocation11 + $0x30] sm:$0xff]  }
 0x55b   :  { %11573 = vst [vmem:[#allocation39_spill] sm:$0xff] %v9559_v43 }
 0x55d   :  { %1611 = vmatpush1.bf16.msra.mxu0 %v11566_v46  ;;  %6680 = vmatpush3.bf16.msra.mxu1 %v8117_v49  ;;  %v7783_v46 = vld [vmem:[#allocation12 + $0x30] sm:$0xff]   ;;  %v9564_v49 = vld [vmem:[#allocation11 + $0x38] sm:$0xff]  }
 0x55e   :  { %6685 = vmatprep.subr.bf16.mxu0 %v11544_v53  ;;  %6705 = vmatprep.subr.bf16.mxu1 %v11544_v53  ;;  %11574 = vst [vmem:[#allocation40_spill] sm:$0xff] %v9564_v49 }
 0x5f3   :  { %v1441_v56 = vpop.f32.mrb[16].mxu0  ;;  %v1482_v60 = vpop.f32.mrb[36].mxu1 }
 0x5f4   :  { %v7582_v20 = vadd.f32 %v9066_v52, %v1441_v56  ;;  %v1443_v57 = vpop.f32.mrb[17].mxu0  ;;  %v6643_v23 = vpop.f32.mrb[37].mxu1  ;;  %v1483_v37 = vadd.f32 %v1482_v60, %v9075_v51  ;;  %v7785_v56 = vld [vmem:[#allocation12 + $0x38] sm:$0xff]  }
 0x5f5   :  { %v1445_v27 = vpop.f32.mrb[18].mxu0  ;;  %v1485_v2 = vpop.f32.mrb[38].mxu1  ;;  %v7584_v30 = vadd.f32 %v9068_v55, %v1443_v57 }
 0x5f6   :  { %v5827_v61 = vmul.f32 -1.442695, %v7582_v20  ;;  %v1446_v59 = vpop.f32.mrb[19].mxu0  ;;  %v6644_v24 = vpop.f32.mrb[39].mxu1 }
 0x5f7   :  { %v5828_v32 = vmul.f32 -1.442695, %v7584_v30 }
 0x5f8   :  { %7906 = vpow2.f32 %v5827_v61 }
 0x5f9   :  { %7908 = vpow2.f32 %v5828_v32 }
 0x602   :  { %v7907_v33 = vpop.eup %7906 }
 0x603   :  { %v1492_v34 = vadd.f32 1.0, %v7907_v33  ;;  %v7909_v35 = vpop.eup %7908 }
 0x604   :  { %v1499_v36 = vadd.f32 1.0, %v7909_v35 }
 0x605   :  { %7910 = vrcp.f32 %v1492_v34 }
 0x606   :  { %7912 = vrcp.f32 %v1499_v36 }
 0x60f   :  { %v7911_v38 = vpop.eup %7910 }
 0x610   :  { %v1502_v40 = vmul.f32 %v7911_v38, %v1483_v37  ;;  %v7913_v42 = vpop.eup %7912 }
 0x611   :  { %v1505_v45 = vsub.f32 1.0, %v7913_v42  ;;  %v1507_v5 = vmul.f32 %v7913_v42, %v9427_v29 }
 0x612   :  { %v1503_v41 = vadd.f32 %v1502_v40, %v1402_v39 }
 0x613   :  { %v9520_v62 = vpop.f32.mrb[40].mxu1 }
 0x614   :  { %7914 = vtanh.f32 %v1503_v41  ;;  %v6663_v1 = vpop.f32.mrb[41].mxu1  ;;  %v1591_v39 = vadd.f32 %v9520_v62, %v9078_v50 }
 0x615   :  { %v1593_v12 = vpop.f32.mrb[42].mxu1 }
 0x616   :  { %v6664_v4 = vpop.f32.mrb[43].mxu1 }
 0x61e   :  { %v7915_v48 = vpop.eup %7914 }
 0x61f   :  { %v1506_v3 = vmul.f32 %v7915_v48, %v1505_v45 }
 0x621   :  { %v9508_v6 = vadd.f32 %v1507_v5, %v1506_v3  ;;  %v1702_v5 = vrot.slane %v9290_v15, 6 }
 0x623   :  { %v1509_v31 = vpack.c.bf16 %v9508_v6, %v9508_v6  ;;  %v1708_v50 = vrot.slane %v9508_v6, 4 }
 0x625   :  { %1629 = vmatmul.mubr.bf16.vlgmr.msra.gmra.mrb[20].mxu0 %v1509_v31  ;;  %6682 = vmatmul.mubr.bf16.vlgmr.msra.gmra.mrb[44].mxu1 %v1509_v31 }
 0x626   :  { %6686 = vmatpush3.bf16.msra.mxu0 %v7762_v28  ;;  %6701 = vmatprep.mubr.msk.bf16.mxu0 %vm8534_vm0, %v11544_v53  ;;  %v1705_v28 = vrot.slane %v9427_v29, 5 }
 0x627   :  { %6687 = vmatprep.subr.bf16.mxu0 %v11544_v53  ;;  %6721 = vmatprep.mubr.msk.bf16.mxu1 %vm8534_vm0, %v11544_v53 }
 0x628   :  { %6706 = vmatpush3.bf16.msra.mxu1 %v7771_v58 }
 0x629   :  { %6707 = vmatprep.subr.bf16.mxu1 %v11544_v53 }
 0x62a   :  { %6688 = vmatpush3.bf16.msra.mxu0 %v7763_v10  ;;  %v11576_v10 = vld [vmem:[#allocation37_spill] sm:$0xff] }
 0x62b   :  { %6689 = vmatprep.subr.bf16.mxu0 %v11544_v53 }
 0x62c   :  { %6708 = vmatpush3.bf16.msra.mxu1 %v7773_v17 }
 0x62d   :  { %6709 = vmatprep.subr.bf16.mxu1 %v11544_v53 }
 0x62e   :  { %6690 = vmatpush3.bf16.msra.mxu0 %v7764_v11 }
 0x62f   :  { %6691 = vmatprep.subr.bf16.mxu0 %v11544_v53 }
 0x630   :  { %6710 = vmatpush3.bf16.msra.mxu1 %v7775_v19 }
 0x631   :  { %6711 = vmatprep.subr.bf16.mxu1 %v11544_v53 }
 0x632   :  { %6692 = vmatpush3.bf16.msra.mxu0 %v7765_v26 }
 0x633   :  { %6693 = vmatprep.subr.bf16.mxu0 %v11544_v53 }
 0x634   :  { %6712 = vmatpush3.bf16.msra.mxu1 %v7777_v22 }
 0x635   :  { %6713 = vmatprep.subr.bf16.mxu1 %v11544_v53 }
 0x636   :  { %6694 = vmatpush3.bf16.msra.mxu0 %v7766_v7 }
 0x637   :  { %6695 = vmatprep.subr.bf16.mxu0 %v11544_v53 }
 0x638   :  { %6714 = vmatpush3.bf16.msra.mxu1 %v7779_v0 }
 0x639   :  { %6715 = vmatprep.subr.bf16.mxu1 %v11544_v53 }
 0x63a   :  { %6696 = vmatpush3.bf16.msra.mxu0 %v7767_v14 }
 0x63b   :  { %6697 = vmatprep.subr.bf16.mxu0 %v11544_v53 }
 0x63c   :  { %6716 = vmatpush3.bf16.msra.mxu1 %v7781_v44 }
 0x63d   :  { %6717 = vmatprep.subr.bf16.mxu1 %v11544_v53 }
 0x63e   :  { %6698 = vmatpush3.bf16.msra.mxu0 %v7768_v9 }
 0x63f   :  { %6699 = vmatprep.subr.bf16.mxu0 %v11544_v53 }
 0x640   :  { %6718 = vmatpush3.bf16.msra.mxu1 %v7783_v46 }
 0x641   :  { %6719 = vmatprep.subr.bf16.mxu1 %v11544_v53 }
 0x642   :  { %6700 = vmatpush3.bf16.msra.mxu0 %v7769_v63 }
 0x643   :  { %6725 = vmatprep.subr.bf16.mxu0 %v11544_v53 }
 0x644   :  { %6720 = vmatpush3.bf16.msra.mxu1 %v7785_v56 }
 0x645   :  { %6702 = vmatmul.mubr.bf16.vlgmr.msra.gmra.mrb[24].mxu0 %v1728_v8  ;;  %6745 = vmatprep.subr.mxu1 %v11544_v53 }
 0x646   :  { %6741 = vmatprep.mubr.msk.bf16.mxu0 %vm8534_vm0, %v11544_v53  ;;  %6726 = vmatpush3.bf16.msra.mxu0 %v9529_v13 }
 0x647   :  { %6727 = vmatprep.subr.bf16.mxu0 %v11544_v53  ;;  %6722 = vmatmul.mubr.bf16.vlgmr.msra.gmra.mrb[48].mxu1 %v1728_v8  ;;  %v1745_v8 = vld [vmem:[%s11317_s8] sm:$0x1] }
 0x648   :  { %6747 = vmatprep.mubr.msk.f32.mxu1 %vm8534_vm0, %v11544_v53 }
 0x64a   :  { %6728 = vmatpush3.bf16.msra.mxu0 %v9536_v16 }
 0x64b   :  { %6729 = vmatprep.subr.bf16.mxu0 %v11544_v53 }
 0x64e   :  { %6730 = vmatpush3.bf16.msra.mxu0 %v9541_v18 }
 0x64f   :  { %6731 = vmatprep.subr.bf16.mxu0 %v11544_v53 }
 0x652   :  { %6732 = vmatpush3.bf16.msra.mxu0 %v9546_v21 }
 0x653   :  { %6733 = vmatprep.subr.bf16.mxu0 %v11544_v53 }
 0x656   :  { %6734 = vmatpush3.bf16.msra.mxu0 %v9551_v25 }
 0x657   :  { %6735 = vmatprep.subr.bf16.mxu0 %v11544_v53 }
 0x65a   :  { %6736 = vmatpush3.bf16.msra.mxu0 %v9554_v47 }
 0x65b   :  { %6737 = vmatprep.subr.bf16.mxu0 %v11544_v53 }
 0x65e   :  { %6738 = vmatpush3.bf16.msra.mxu0 %v9559_v43 }
 0x65f   :  { %6739 = vmatprep.subr.bf16.mxu0 %v11544_v53 }
 0x662   :  { %6740 = vmatpush3.bf16.msra.mxu0 %v9564_v49 }
 0x6f8   :  { %v1630_v60 = vpop.f32.mrb[20].mxu0  ;;  %v1671_v20 = vpop.f32.mrb[44].mxu1 }
 0x6f9   :  { %v7586_v57 = vadd.f32 %v9066_v52, %v1630_v60  ;;  %v1632_v23 = vpop.f32.mrb[21].mxu0  ;;  %v6683_v27 = vpop.f32.mrb[45].mxu1  ;;  %v1672_v38 = vadd.f32 %v1671_v20, %v9075_v51 }
 0x6fa   :  { %v1634_v2 = vpop.f32.mrb[22].mxu0  ;;  %v1674_v61 = vpop.f32.mrb[46].mxu1  ;;  %v7588_v32 = vadd.f32 %v9068_v55, %v1632_v23  ;;  %v11575_v55 = vld [vmem:[#allocation28_spill] sm:$0xff] }
 0x6fb   :  { %v5829_v59 = vmul.f32 -1.442695, %v7586_v57  ;;  %v1635_v24 = vpop.f32.mrb[23].mxu0  ;;  %v6684_v30 = vpop.f32.mrb[47].mxu1  ;;  %v1699_v45 = vrot.slane %v11575_v55, 7 }
 0x6fc   :  { %v5830_v33 = vmul.f32 -1.442695, %v7588_v32  ;;  %v9613_v32 = vld [vmem:[#allocation14] sm:$0xff]  }
 0x6fd   :  { %7916 = vpow2.f32 %v5829_v59  ;;  %v1714_v11 = vsel %vm1713_vm1, %v11576_v10, %v1699_v45  ;;  %v9655_v55 = vld [vmem:[#allocation15 + $0x18] ss:$12 sps:$4 sm:$0xff]   ;;  %v9658_v45 = vld [vmem:[#allocation15 + $0x34] ss:$12 sps:$4 sm:$0xff]  }
 0x6fe   :  { %7918 = vpow2.f32 %v5830_v33  ;;  %v1716_v62 = vsel %vm1715_vm2, %v1714_v11, %v1702_v5  ;;  %v9667_v5 = vld [vmem:[#allocation15 + $0x48] ss:$12 sps:$4 sm:$0xff]   ;;  %v9685_v11 = vld [vmem:[#allocation15 + $0x90] ss:$12 sps:$4 sm:$0xff]  }
 0x6ff   :  { %v1718_v1 = vsel %vm1717_vm3, %v1716_v62, %v1705_v28  ;;  %v9670_v28 = vld [vmem:[#allocation15 + $0x64] ss:$12 sps:$4 sm:$0xff]   ;;  %v9682_v10 = vld [vmem:[#allocation15 + $0x94] ss:$12 sps:$4 sm:$0xff]  }
 0x707   :  { %v7917_v34 = vpop.eup %7916 }
 0x708   :  { %v1681_v35 = vadd.f32 1.0, %v7917_v34  ;;  %v7919_v36 = vpop.eup %7918  ;;  %v9616_v34 = vld [vmem:[#allocation14 + $0x8] sm:$0xff]  }
 0x709   :  { %v1688_v37 = vadd.f32 1.0, %v7919_v36  ;;  %v9626_v36 = vld [vmem:[#allocation14 + $0x18] sm:$0xff]  }
 0x70a   :  { %7920 = vrcp.f32 %v1681_v35  ;;  %v9622_v35 = vld [vmem:[#allocation14 + $0x10] sm:$0xff]  }
 0x70b   :  { %7922 = vrcp.f32 %v1688_v37  ;;  %v9630_v37 = vld [vmem:[#allocation14 + $0x20] sm:$0xff]  }
 0x714   :  { %v7921_v52 = vpop.eup %7920 }
 0x715   :  { %v1691_v40 = vmul.f32 %v7921_v52, %v1672_v38  ;;  %v7923_v42 = vpop.eup %7922  ;;  %v9634_v38 = vld [vmem:[#allocation14 + $0x28] sm:$0xff]   ;;  %v9638_v52 = vld [vmem:[#allocation14 + $0x30] sm:$0xff]  }
 0x716   :  { %v1694_v48 = vsub.f32 1.0, %v7923_v42  ;;  %v1696_v31 = vmul.f32 %v7923_v42, %v9508_v6  ;;  %v1720_v6 = vsel %vm1719_vm4, %v1718_v1, %v1708_v50  ;;  %v9651_v42 = vld [vmem:[#allocation15 + $0x1c] ss:$12 sps:$4 sm:$0xff]   ;;  %v9679_v50 = vld [vmem:[#allocation15 + $0x78] ss:$12 sps:$4 sm:$0xff]  }
 0x717   :  { %v1692_v41 = vadd.f32 %v1691_v40, %v1591_v39  ;;  %v9643_v39 = vld [vmem:[#allocation14 + $0x38] sm:$0xff]   ;;  %v9647_v40 = vld [vmem:[#allocation15 + $0x4] ss:$12 sps:$4 sm:$0xff]  }
 0x718   :  { %v1828_v7 = vpop.f32.mrb[24].mxu0  ;;  %11577 = vst [vmem:[#allocation28_spill] sm:$0xff] %v9647_v40  ;;  %2460 = vmatprep.subr.bf16.mxu0 %v9647_v40 }
 0x719   :  { %7924 = vtanh.f32 %v1692_v41  ;;  %v6703_v14 = vpop.f32.mrb[25].mxu0  ;;  %v9606_v58 = vadd.f32 %v1828_v7, %v1745_v8  ;;  %v9649_v41 = vld [vmem:[#allocation15] ss:$12 sps:$4 sm:$0xff]   ;;  %v9698_v7 = vld [vmem:[#allocation15 + $0x38] ss:$12 sps:$4 sm:$0xff]  }
 0x71a   :  { %v1831_v9 = vpop.f32.mrb[26].mxu0  ;;  %v9611_v27 = vpop.f32.mrb[48].mxu1  ;;  %v9702_v14 = vld [vmem:[#allocation15 + $0x50] ss:$12 sps:$4 sm:$0xff]   ;;  %v9714_v8 = vld [vmem:[#allocation15 + $0x98] ss:$12 sps:$4 sm:$0xff]  }
 0x71b   :  { %v6704_v63 = vpop.f32.mrb[27].mxu0  ;;  %v6723_v2 = vpop.f32.mrb[49].mxu1  ;;  %v9706_v9 = vld [vmem:[#allocation15 + $0x68] ss:$12 sps:$4 sm:$0xff]  }
 0x71c   :  { %v1936_v61 = vpop.f32.mrb[50].mxu1  ;;  %v9710_v63 = vld [vmem:[#allocation15 + $0x80] ss:$12 sps:$4 sm:$0xff]  }
 0x71d   :  { %v6724_v59 = vpop.f32.mrb[51].mxu1  ;;  %v9739_v61 = vld [vmem:[#allocation17] ss:$12 sps:$4 sm:$0xff]  }
 0x71e   :  { %v9741_v59 = vld [vmem:[#allocation17 + $0x8] ss:$12 sps:$4 sm:$0xff]  }
 0x723   :  { %v7925_v3 = vpop.eup %7924 }
 0x724   :  { %v1695_v51 = vmul.f32 %v7925_v3, %v1694_v48  ;;  %v9661_v48 = vld [vmem:[#allocation15 + $0x30] ss:$12 sps:$4 sm:$0xff]   ;;  %v9664_v3 = vld [vmem:[#allocation15 + $0x4c] ss:$12 sps:$4 sm:$0xff]  }
 0x726   :  { %v9584_v26 = vadd.f32 %v1696_v31, %v1695_v51  ;;  %v9673_v51 = vld [vmem:[#allocation15 + $0x60] ss:$12 sps:$4 sm:$0xff]   ;;  %v9676_v31 = vld [vmem:[#allocation15 + $0x7c] ss:$12 sps:$4 sm:$0xff]  }
 0x728   :  { %v1711_v15 = vrot.slane %v9584_v26, 3  ;;  %v9590_v29 = vpack.c.bf16 %v9584_v26, %v9584_v26 }
 0x72a   :  { %6742 = vmatmul.mubr.bf16.vlgmr.msra.gmra.mrb[28].mxu0 %v9590_v29  ;;  %v1722_v12 = vsel %vm1721_vm5, %v1720_v6, %v1711_v15  ;;  %v9689_v15 = vld [vmem:[#allocation15 + $0x8] ss:$12 sps:$4 sm:$0xff]  }
 0x72b   :  { %v9597_v4 = vsel %vm1723_vm6, %v1722_v12, 0.0  ;;  %2492 = vmatprep.mubr.bf16.mxu0 %v11545_v54  ;;  %2461 = vmatpush1.bf16.msra.mxu0 %v9649_v41  ;;  %v9692_v12 = vld [vmem:[#allocation15 + $0x20] ss:$12 sps:$4 sm:$0xff]  }
 0x72c   :  { %6746 = vmatpush3.msk.msra.mxu1 %vm1725_vm7, %v9597_v4  ;;  %2462 = vmatprep.subr.bf16.mxu0 %v9651_v42 }
 0x72d   :  { %6750 = vmatprep.subr.bf16.mxu1 %v11544_v53 }
 0x72f   :  { %2463 = vmatpush1.bf16.msra.mxu0 %v9655_v55 }
 0x730   :  { %2464 = vmatprep.subr.bf16.mxu0 %v9658_v45 }
 0x733   :  { %2465 = vmatpush1.bf16.msra.mxu0 %v9661_v48 }
 0x734   :  { %2466 = vmatprep.subr.bf16.mxu0 %v9664_v3 }
 0x737   :  { %2467 = vmatpush1.bf16.msra.mxu0 %v9667_v5 }
 0x738   :  { %2468 = vmatprep.subr.bf16.mxu0 %v9670_v28 }
 0x73b   :  { %2469 = vmatpush1.bf16.msra.mxu0 %v9673_v51 }
 0x73c   :  { %2470 = vmatprep.subr.bf16.mxu0 %v9676_v31 }
 0x73f   :  { %2471 = vmatpush1.bf16.msra.mxu0 %v9679_v50 }
 0x740   :  { %2472 = vmatprep.subr.bf16.mxu0 %v9682_v10 }
 0x743   :  { %2473 = vmatpush1.bf16.msra.mxu0 %v9685_v11 }
 0x7fd   :  { %v2038_v17 = vpop.f32.mrb[28].mxu0 }
 0x7fe   :  { %v2044_v19 = vadd.f32 %v2038_v17, %v9606_v58  ;;  %v6743_v22 = vpop.f32.mrb[29].mxu0  ;;  %v9719_v17 = vld [vmem:[#allocation15 + $0xac] ss:$12 sps:$4 sm:$0xff]  }
 0x7ff   :  { %v2041_v0 = vpop.f32.mrb[30].mxu0  ;;  %v9723_v22 = vld [vmem:[#allocation15 + $0xb0] ss:$12 sps:$4 sm:$0xff]   ;;  %2474 = vmatprep.subr.bf16.mxu0 %v9719_v17 }
 0x800   :  { %v6744_v44 = vpop.f32.mrb[31].mxu0  ;;  %v2045_v46 = vsel %vm1713_vm1, %v2044_v19, -inf  ;;  %v9728_v0 = vld [vmem:[#allocation17 + $0x4] ss:$12 sps:$4 sm:$0xff]  }
 0x801   :  { %2046 = vmax.xlane.f32.xlu0 %v2045_v46  ;;  %v1850_v44 = vld [vmem:[%s11320_s11] sm:$0x1] }
 0x802   :  { %v9736_v46 = vadd.f32 %v9611_v27, %v1850_v44  ;;  %v9747_v27 = vld [vmem:[#allocation17 + $0x18] ss:$12 sps:$4 sm:$0xff]  }
 0x803   :  { %v9766_v44 = vld [vmem:[#allocation17 + $0x4c] ss:$12 sps:$4 sm:$0xff]  }
 0x804   :  { %11582 = vst [vmem:[#allocation44_spill] sm:$0xff] %v9766_v44 }
 0x88e   :  { %v2047_v56 = vpop.xlane.xlu0 %2046 }
 0x88f   :  { %v2048_v60 = vsub.f32 %v2044_v19, %v2047_v56  ;;  %v9721_v19 = vld [vmem:[#allocation15 + $0xa8] ss:$12 sps:$4 sm:$0xff]  }
 0x890   :  { %2475 = vmatpush1.bf16.msra.mxu0 %v9721_v19 }
 0x891   :  { %v2049_v20 = vmul.f32 1.442695, %v2048_v60  ;;  %2685 = vmatprep.subr.bf16.mxu0 %v9728_v0 }
 0x893   :  { %7926 = vpow2.f32 %v2049_v20 }
 0x89d   :  { %v7927_v57 = vpop.eup %7926 }
 0x89e   :  { %v2051_v23 = vsel %vm1713_vm1, %v7927_v57, 0.0 }
 0x89f   :  { %2052 = vadd.xlane.f32.xlu0 %v2051_v23 }
 0x92c   :  { %v2053_v24 = vpop.xlane.xlu0 %2052 }
 0x92d   :  { %7928 = vrcp.f32 %v2053_v24 }
 0x937   :  { %v7929_v30 = vpop.eup %7928 }
 0x938   :  { %v2055_v33 = vmul.f32 %v7929_v30, %v7927_v57  ;;  %v9743_v30 = vld [vmem:[#allocation17 + $0x1c] ss:$12 sps:$4 sm:$0xff]  }
 0x93a   :  { %6748 = vmatmul.mubr.f32.vlgmr.msra.gmra.mrb[52].mxu1 %v2055_v33  ;;  %v9749_v33 = vld [vmem:[#allocation17 + $0x20] ss:$12 sps:$4 sm:$0xff]  }
 0x93b   :  { %6751 = vmatpush3.bf16.msra.mxu1 %v9613_v32  ;;  %6766 = vmatprep.mubr.msk.bf16.mxu1 %vm8534_vm0, %v11544_v53  ;;  %11578 = vst [vmem:[#allocation37_spill] sm:$0xff] %v9749_v33 }
 0x93c   :  { %6752 = vmatprep.subr.bf16.mxu1 %v11544_v53 }
 0x93f   :  { %6753 = vmatpush3.bf16.msra.mxu1 %v9616_v34 }
 0x940   :  { %6754 = vmatprep.subr.bf16.mxu1 %v11544_v53 }
 0x943   :  { %6755 = vmatpush3.bf16.msra.mxu1 %v9622_v35 }
 0x944   :  { %6756 = vmatprep.subr.bf16.mxu1 %v11544_v53 }
 0x947   :  { %6757 = vmatpush3.bf16.msra.mxu1 %v9626_v36 }
 0x948   :  { %6758 = vmatprep.subr.bf16.mxu1 %v11544_v53 }
 0x94b   :  { %6759 = vmatpush3.bf16.msra.mxu1 %v9630_v37 }
 0x94c   :  { %6760 = vmatprep.subr.bf16.mxu1 %v11544_v53 }
 0x94f   :  { %6761 = vmatpush3.bf16.msra.mxu1 %v9634_v38 }
 0x950   :  { %6762 = vmatprep.subr.bf16.mxu1 %v11544_v53 }
 0x953   :  { %6763 = vmatpush3.bf16.msra.mxu1 %v9638_v52 }
 0x954   :  { %6764 = vmatprep.subr.bf16.mxu1 %v11544_v53 }
 0x957   :  { %6765 = vmatpush3.bf16.msra.mxu1 %v9643_v39 }
 0x958   :  { %6770 = vmatprep.subr.bf16.mxu1 %v11544_v53 }
 0xa0d   :  { %v2138_v62 = vpop.f32.mrb[52].mxu1 }
 0xa0e   :  { %v2142_v1 = vpack.c.bf16 %v2138_v62, %v2138_v62  ;;  %v6749_v6 = vpop.f32.mrb[53].mxu1  ;;  %v9753_v62 = vld [vmem:[#allocation17 + $0x34] ss:$12 sps:$4 sm:$0xff]  }
 0xa0f   :  { %11579 = vst [vmem:[#allocation41_spill] sm:$0xff] %v9753_v62  ;;  %v9762_v6 = vld [vmem:[#allocation17 + $0x38] ss:$12 sps:$4 sm:$0xff]  }
 0xa10   :  { %6767 = vmatmul.mubr.bf16.vlgmr.msra.gmra.mrb[56].mxu1 %v2142_v1  ;;  %v9760_v1 = vld [vmem:[#allocation17 + $0x30] ss:$12 sps:$4 sm:$0xff]   ;;  %11581 = vst [vmem:[#allocation43_spill] sm:$0xff] %v9762_v6 }
 0xa11   :  { %6771 = vmatpush3.bf16.msra.mxu1 %v9689_v15  ;;  %6786 = vmatprep.mubr.msk.bf16.mxu1 %vm8534_vm0, %v11544_v53  ;;  %11580 = vst [vmem:[#allocation42_spill] sm:$0xff] %v9760_v1 }
 0xa12   :  { %6772 = vmatprep.subr.bf16.mxu1 %v11544_v53 }
 0xa15   :  { %6773 = vmatpush3.bf16.msra.mxu1 %v9692_v12 }
 0xa16   :  { %6774 = vmatprep.subr.bf16.mxu1 %v11544_v53 }
 0xa19   :  { %6775 = vmatpush3.bf16.msra.mxu1 %v9698_v7 }
 0xa1a   :  { %6776 = vmatprep.subr.bf16.mxu1 %v11544_v53 }
 0xa1d   :  { %6777 = vmatpush3.bf16.msra.mxu1 %v9702_v14 }
 0xa1e   :  { %6778 = vmatprep.subr.bf16.mxu1 %v11544_v53 }
 0xa21   :  { %6779 = vmatpush3.bf16.msra.mxu1 %v9706_v9 }
 0xa22   :  { %6780 = vmatprep.subr.bf16.mxu1 %v11544_v53 }
 0xa25   :  { %6781 = vmatpush3.bf16.msra.mxu1 %v9710_v63 }
 0xa26   :  { %6782 = vmatprep.subr.bf16.mxu1 %v11544_v53 }
 0xa29   :  { %6783 = vmatpush3.bf16.msra.mxu1 %v9714_v8 }
 0xa2a   :  { %6784 = vmatprep.subr.bf16.mxu1 %v11544_v53 }
 0xa2d   :  { %6785 = vmatpush3.bf16.msra.mxu1 %v9723_v22 }
 0xa2e   :  { %6790 = vmatprep.subr.bf16.mxu1 %v11544_v53 }
 0xae3   :  { %v2241_v56 = vpop.f32.mrb[56].mxu1 }
 0xae4   :  { %v2247_v60 = vadd.f32 %v2241_v56, %v9736_v46  ;;  %v6768_v20 = vpop.f32.mrb[57].mxu1  ;;  %v9770_v56 = vld [vmem:[#allocation17 + $0x48] ss:$12 sps:$4 sm:$0xff]  }
 0xae5   :  { %v2244_v57 = vpop.f32.mrb[58].mxu1  ;;  %11583 = vst [vmem:[#allocation45_spill] sm:$0xff] %v9770_v56  ;;  %v9776_v20 = vld [vmem:[#allocation17 + $0x64] ss:$12 sps:$4 sm:$0xff]  }
 0xae6   :  { %v2248_v23 = vmax.f32 %v2247_v60, 0.0  ;;  %v6769_v2 = vpop.f32.mrb[59].mxu1  ;;  %v9772_v60 = vld [vmem:[#allocation17 + $0x50] ss:$12 sps:$4 sm:$0xff]   ;;  %11585 = vst [vmem:[#allocation47_spill] sm:$0xff] %v9776_v20 }
 0xae7   :  { %11584 = vst [vmem:[#allocation46_spill] sm:$0xff] %v9772_v60  ;;  %v9780_v57 = vld [vmem:[#allocation17 + $0x60] ss:$12 sps:$4 sm:$0xff]   ;;  %v9786_v2 = vld [vmem:[#allocation17 + $0x7c] ss:$12 sps:$4 sm:$0xff]  }
 0xae8   :  { %v2315_v24 = vpack.c.bf16 %v2248_v23, %v2248_v23  ;;  %11586 = vst [vmem:[#allocation48_spill] sm:$0xff] %v9780_v57  ;;  %v9782_v23 = vld [vmem:[#allocation17 + $0x68] ss:$12 sps:$4 sm:$0xff]   ;;  %11588 = vst [vmem:[#allocation50_spill] sm:$0xff] %v9786_v2 }
 0xae9   :  { %11587 = vst [vmem:[#allocation49_spill] sm:$0xff] %v9782_v23 }
 0xaea   :  { %2493 = vmatmul.mubr.bf16.vlgmr.msra.gmra.mrb[32].mxu0 %v2315_v24  ;;  %6787 = vmatmul.mubr.bf16.vlgmr.msra.gmra.mrb[60].mxu1 %v2315_v24  ;;  %v9790_v24 = vld [vmem:[#allocation17 + $0x78] ss:$12 sps:$4 sm:$0xff]  }
 0xaeb   :  { %2686 = vmatpush1.bf16.msra.mxu0 %v9739_v61  ;;  %6791 = vmatpush3.bf16.msra.mxu1 %v9741_v59  ;;  %11589 = vst [vmem:[#allocation51_spill] sm:$0xff] %v9790_v24 }
 0xaec   :  { %2687 = vmatprep.subr.bf16.mxu0 %v9743_v30  ;;  %6792 = vmatprep.subr.bf16.mxu1 %v11544_v53 }
 0xaed   :  { %2717 = vmatprep.mubr.bf16.mxu0 %v11545_v54  ;;  %6806 = vmatprep.mubr.msk.bf16.mxu1 %vm8534_vm0, %v11544_v53 }
 0xaef   :  { %2688 = vmatpush1.bf16.msra.mxu0 %v9747_v27  ;;  %6793 = vmatpush3.bf16.msra.mxu1 %v9749_v33 }
 0xaf0   :  { %2689 = vmatprep.subr.bf16.mxu0 %v9753_v62  ;;  %6794 = vmatprep.subr.bf16.mxu1 %v11544_v53 }
 0xaf3   :  { %2690 = vmatpush1.bf16.msra.mxu0 %v9760_v1  ;;  %6795 = vmatpush3.bf16.msra.mxu1 %v9762_v6 }
 0xaf4   :  { %2691 = vmatprep.subr.bf16.mxu0 %v9766_v44  ;;  %6796 = vmatprep.subr.bf16.mxu1 %v11544_v53  ;;  %v9792_v44 = vld [vmem:[#allocation17 + $0x80] ss:$12 sps:$4 sm:$0xff]  }
 0xaf5   :  { %11590 = vst [vmem:[#allocation52_spill] sm:$0xff] %v9792_v44 }
 0xaf7   :  { %2692 = vmatpush1.bf16.msra.mxu0 %v9770_v56  ;;  %6797 = vmatpush3.bf16.msra.mxu1 %v9772_v60  ;;  %v9796_v60 = vld [vmem:[#allocation17 + $0x94] ss:$12 sps:$4 sm:$0xff]   ;;  %v9802_v56 = vld [vmem:[#allocation17 + $0x98] ss:$12 sps:$4 sm:$0xff]  }
 0xaf8   :  { %2693 = vmatprep.subr.bf16.mxu0 %v9776_v20  ;;  %6798 = vmatprep.subr.bf16.mxu1 %v11544_v53  ;;  %11591 = vst [vmem:[#allocation53_spill] sm:$0xff] %v9796_v60  ;;  %v9800_v20 = vld [vmem:[#allocation17 + $0x90] ss:$12 sps:$4 sm:$0xff]   ;;  %11593 = vst [vmem:[#allocation55_spill] sm:$0xff] %v9802_v56 }
 0xaf9   :  { %11592 = vst [vmem:[#allocation54_spill] sm:$0xff] %v9800_v20 }
 0xafb   :  { %2694 = vmatpush1.bf16.msra.mxu0 %v9780_v57  ;;  %6799 = vmatpush3.bf16.msra.mxu1 %v9782_v23  ;;  %v9806_v23 = vld [vmem:[#allocation17 + $0xac] ss:$12 sps:$4 sm:$0xff]   ;;  %v9812_v57 = vld [vmem:[#allocation17 + $0xb0] ss:$12 sps:$4 sm:$0xff]  }
 0xafc   :  { %2695 = vmatprep.subr.bf16.mxu0 %v9786_v2  ;;  %6800 = vmatprep.subr.bf16.mxu1 %v11544_v53  ;;  %11594 = vst [vmem:[#allocation56_spill] sm:$0xff] %v9806_v23  ;;  %v9810_v2 = vld [vmem:[#allocation17 + $0xa8] ss:$12 sps:$4 sm:$0xff]   ;;  %11596 = vst [vmem:[#allocation58_spill] sm:$0xff] %v9812_v57 }
 0xafd   :  { %11595 = vst [vmem:[#allocation57_spill] sm:$0xff] %v9810_v2 }
 0xaff   :  { %2696 = vmatpush1.bf16.msra.mxu0 %v9790_v24  ;;  %6801 = vmatpush3.bf16.msra.mxu1 %v9792_v44 }
 0xb00   :  { %2697 = vmatprep.subr.bf16.mxu0 %v9796_v60  ;;  %6802 = vmatprep.subr.bf16.mxu1 %v11544_v53 }
 0xb03   :  { %2698 = vmatpush1.bf16.msra.mxu0 %v9800_v20  ;;  %6803 = vmatpush3.bf16.msra.mxu1 %v9802_v56 }
 0xb04   :  { %2699 = vmatprep.subr.bf16.mxu0 %v9806_v23  ;;  %6804 = vmatprep.subr.bf16.mxu1 %v11544_v53 }
 0xb07   :  { %2700 = vmatpush1.bf16.msra.mxu0 %v9810_v2  ;;  %6805 = vmatpush3.bf16.msra.mxu1 %v9812_v57  ;;  %v11606_v57 = vld [vmem:[#allocation35_spill] sm:$0xff] }
 0xb08   :  { %6810 = vmatprep.subr.bf16.mxu0 %v11544_v53  ;;  %6830 = vmatprep.subr.bf16.mxu1 %v11544_v53 }
 0xb0a   :  { %2718 = vmatmul.mubr.bf16.vlgmr.msra.gmra.mrb[32].mxu0 %v9590_v29  ;;  %6807 = vmatmul.mubr.bf16.vlgmr.msra.gmra.mrb[64].mxu1 %v9590_v29  ;;  %v9842_v29 = vld [vmem:[#allocation18] sm:$0xff]  }
 0xb0b   :  { %6831 = vmatpush3.bf16.msra.mxu1 %v9529_v13  ;;  %6826 = vmatprep.mubr.msk.bf16.mxu0 %vm8534_vm0, %v11544_v53  ;;  %11597 = vst [vmem:[#allocation59_spill] sm:$0xff] %v9842_v29 }
 0xb0c   :  { %6832 = vmatprep.subr.bf16.mxu1 %v11544_v53  ;;  %6846 = vmatprep.mubr.msk.bf16.mxu1 %vm8534_vm0, %v11544_v53 }
 0xb0d   :  { %6811 = vmatpush3.bf16.msra.mxu0 %v9842_v29 }
 0xb0e   :  { %6812 = vmatprep.subr.bf16.mxu0 %v11544_v53 }
 0xb0f   :  { %6833 = vmatpush3.bf16.msra.mxu1 %v9536_v16 }
 0xb10   :  { %6834 = vmatprep.subr.bf16.mxu1 %v11544_v53 }
 0xb13   :  { %6835 = vmatpush3.bf16.msra.mxu1 %v9541_v18  ;;  %v9869_v18 = vld [vmem:[#allocation18 + $0x38] sm:$0xff]  }
 0xb14   :  { %6836 = vmatprep.subr.bf16.mxu1 %v11544_v53  ;;  %11604 = vst [vmem:[#allocation66_spill] sm:$0xff] %v9869_v18 }
 0xb17   :  { %6837 = vmatpush3.bf16.msra.mxu1 %v9546_v21  ;;  %v9865_v21 = vld [vmem:[#allocation18 + $0x30] sm:$0xff]  }
 0xb18   :  { %6838 = vmatprep.subr.bf16.mxu1 %v11544_v53  ;;  %11603 = vst [vmem:[#allocation65_spill] sm:$0xff] %v9865_v21 }
 0xb1b   :  { %6839 = vmatpush3.bf16.msra.mxu1 %v9551_v25  ;;  %v9846_v25 = vld [vmem:[#allocation18 + $0x8] sm:$0xff]  }
 0xb1c   :  { %6840 = vmatprep.subr.bf16.mxu1 %v11544_v53  ;;  %11598 = vst [vmem:[#allocation60_spill] sm:$0xff] %v9846_v25  ;;  %6813 = vmatpush3.bf16.msra.mxu0 %v9846_v25  ;;  %v11605_v25 = vld [vmem:[#allocation34_spill] sm:$0xff] }
 0xb1d   :  { %6814 = vmatprep.subr.bf16.mxu0 %v11544_v53 }
 0xb1f   :  { %6841 = vmatpush3.bf16.msra.mxu1 %v9554_v47  ;;  %v9850_v47 = vld [vmem:[#allocation18 + $0x10] sm:$0xff]  }
 0xb20   :  { %6842 = vmatprep.subr.bf16.mxu1 %v11544_v53  ;;  %11599 = vst [vmem:[#allocation61_spill] sm:$0xff] %v9850_v47  ;;  %6815 = vmatpush3.bf16.msra.mxu0 %v9850_v47 }
 0xb21   :  { %6816 = vmatprep.subr.bf16.mxu0 %v11544_v53 }
 0xb23   :  { %6843 = vmatpush3.bf16.msra.mxu1 %v9559_v43  ;;  %v9861_v43 = vld [vmem:[#allocation18 + $0x28] sm:$0xff]  }
 0xb24   :  { %6844 = vmatprep.subr.bf16.mxu1 %v11544_v53  ;;  %11602 = vst [vmem:[#allocation64_spill] sm:$0xff] %v9861_v43 }
 0xb27   :  { %6845 = vmatpush3.bf16.msra.mxu1 %v9564_v49  ;;  %v9854_v49 = vld [vmem:[#allocation18 + $0x18] sm:$0xff]  }
 0xb28   :  { %3071 = vmatprep.subr.bf16.mxu1 %v9647_v40  ;;  %11600 = vst [vmem:[#allocation62_spill] sm:$0xff] %v9854_v49  ;;  %6817 = vmatpush3.bf16.msra.mxu0 %v9854_v49  ;;  %v9858_v40 = vld [vmem:[#allocation18 + $0x20] sm:$0xff]  }
 0xb29   :  { %6818 = vmatprep.subr.bf16.mxu0 %v11544_v53  ;;  %11601 = vst [vmem:[#allocation63_spill] sm:$0xff] %v9858_v40 }
 0xb2c   :  { %6819 = vmatpush3.bf16.msra.mxu0 %v9858_v40 }
 0xb2d   :  { %6820 = vmatprep.subr.bf16.mxu0 %v11544_v53 }
 0xb30   :  { %6821 = vmatpush3.bf16.msra.mxu0 %v9861_v43  ;;  %v2314_v43 = vld [vmem:[%s11324_s15] sm:$0x7] }
 0xb31   :  { %6822 = vmatprep.subr.bf16.mxu0 %v11544_v53  ;;  %v2673_v29 = vrot.slane %v2314_v43, %v11605_v25  ;;  %v2677_v2 = vrot.slane %v2314_v43, %v11606_v57 }
 0xb34   :  { %6823 = vmatpush3.bf16.msra.mxu0 %v9865_v21  ;;  %v2313_v21 = vld [vmem:[%s11323_s14] sm:$0x7] }
 0xb35   :  { %6824 = vmatprep.subr.bf16.mxu0 %v11544_v53  ;;  %v2448_v13 = vrot.slane %v2313_v21, %v11605_v25 }
 0xb37   :  { %v9884_v23 = vadd.f32 %v2673_v29, %v2448_v13 }
 0xb38   :  { %6825 = vmatpush3.bf16.msra.mxu0 %v9869_v18  ;;  %v2452_v18 = vrot.slane %v2313_v21, %v11606_v57 }
 0xb39   :  { %6850 = vmatprep.subr.mxu0 %v11544_v53 }
 0xbbd   :  { %v2535_v40 = vpop.f32.mrb[60].mxu1 }
 0xbbe   :  { %v6788_v49 = vpop.f32.mrb[61].mxu1 }
 0xbbf   :  { %v2538_v47 = vpop.f32.mrb[62].mxu1  ;;  %v9886_v49 = vadd.f32 %v2677_v2, %v2452_v18  ;;  %v11607_v18 = vld [vmem:[#allocation36_spill] sm:$0xff] }
 0xbc0   :  { %v6789_v16 = vpop.f32.mrb[63].mxu1  ;;  %v9891_v2 = vrot.slane %v2314_v43, %v11607_v18 }
 0xbdd   :  { %v2719_v47 = vpop.f32.mrb[32].mxu0  ;;  %v2760_v16 = vpop.f32.mrb[64].mxu1 }
 0xbde   :  { %v7590_v56 = vadd.f32 %v9884_v23, %v2719_v47  ;;  %v2721_v20 = vpop.f32.mrb[33].mxu0  ;;  %v6808_v60 = vpop.f32.mrb[65].mxu1  ;;  %v9894_v47 = vrot.slane %v2313_v21, %v11607_v18 }
 0xbdf   :  { %v2723_v44 = vpop.f32.mrb[34].mxu0  ;;  %v2763_v24 = vpop.f32.mrb[66].mxu1  ;;  %v7592_v25 = vadd.f32 %v9886_v49, %v2721_v20 }
 0xbe0   :  { %v5911_v6 = vmul.f32 -1.442695, %v7590_v56  ;;  %v2724_v1 = vpop.f32.mrb[35].mxu0  ;;  %v6809_v62 = vpop.f32.mrb[67].mxu1  ;;  %v2761_v56 = vadd.f32 %v2760_v16, %v9891_v2 }
 0xbe1   :  { %v5912_v33 = vmul.f32 -1.442695, %v7592_v25  ;;  %v2536_v62 = vadd.f32 %v2535_v40, %v9894_v47 }
 0xbe2   :  { %7930 = vpow2.f32 %v5911_v6 }
 0xbe3   :  { %7932 = vpow2.f32 %v5912_v33 }
 0xbec   :  { %v7931_v13 = vpop.eup %7930 }
 0xbed   :  { %v2770_v57 = vadd.f32 1.0, %v7931_v13  ;;  %v7933_v29 = vpop.eup %7932 }
 0xbee   :  { %v2777_v44 = vadd.f32 1.0, %v7933_v29 }
 0xbef   :  { %7934 = vrcp.f32 %v2770_v57 }
 0xbf0   :  { %7936 = vrcp.f32 %v2777_v44 }
 0xbf9   :  { %v7935_v1 = vpop.eup %7934 }
 0xbfa   :  { %v2780_v60 = vmul.f32 %v7935_v1, %v2761_v56  ;;  %v7937_v33 = vpop.eup %7936 }
 0xbfb   :  { %v2783_v20 = vsub.f32 1.0, %v7937_v33  ;;  %v2785_v43 = vmul.f32 %v7937_v33, %v9584_v26 }
 0xbfc   :  { %v2781_v6 = vadd.f32 %v2780_v60, %v2536_v62 }
 0xbfe   :  { %7938 = vtanh.f32 %v2781_v6 }
 0xc08   :  { %v7939_v24 = vpop.eup %7938 }
 0xc09   :  { %v2784_v25 = vmul.f32 %v7939_v24, %v2783_v20 }
 0xc0b   :  { %v9899_v13 = vadd.f32 %v2785_v43, %v2784_v25 }
 0xc0d   :  { %v9903_v21 = vpack.c.bf16 %v9899_v13, %v9899_v13 }
 0xc0f   :  { %6827 = vmatmul.mubr.bf16.vlgmr.msra.gmra.mrb[36].mxu0 %v9903_v21  ;;  %6847 = vmatmul.mubr.bf16.vlgmr.msra.gmra.mrb[68].mxu1 %v9903_v21 }
 0xc10   :  { %6851 = vmatpush3.msk.msra.mxu0 %vm1725_vm7, %v9597_v4  ;;  %6852 = vmatprep.mubr.msk.f32.mxu0 %vm8534_vm0, %v11544_v53 }
 0xc11   :  { %6855 = vmatprep.subr.bf16.mxu0 %v11544_v53  ;;  %3072 = vmatpush1.bf16.msra.mxu1 %v9649_v41 }
 0xc12   :  { %3073 = vmatprep.subr.bf16.mxu1 %v9651_v42  ;;  %3103 = vmatprep.mubr.bf16.mxu1 %v11545_v54 }
 0xc15   :  { %3074 = vmatpush1.bf16.msra.mxu1 %v9655_v55 }
 0xc16   :  { %3075 = vmatprep.subr.bf16.mxu1 %v9658_v45 }
 0xc19   :  { %3076 = vmatpush1.bf16.msra.mxu1 %v9661_v48 }
 0xc1a   :  { %3077 = vmatprep.subr.bf16.mxu1 %v9664_v3 }
 0xc1d   :  { %3078 = vmatpush1.bf16.msra.mxu1 %v9667_v5 }
 0xc1e   :  { %3079 = vmatprep.subr.bf16.mxu1 %v9670_v28 }
 0xc21   :  { %3080 = vmatpush1.bf16.msra.mxu1 %v9673_v51 }
 0xc22   :  { %3081 = vmatprep.subr.bf16.mxu1 %v9676_v31 }
 0xc25   :  { %3082 = vmatpush1.bf16.msra.mxu1 %v9679_v50 }
 0xc26   :  { %3083 = vmatprep.subr.bf16.mxu1 %v9682_v10 }
 0xc29   :  { %3084 = vmatpush1.bf16.msra.mxu1 %v9685_v11 }
 0xc2a   :  { %3085 = vmatprep.subr.bf16.mxu1 %v9719_v17 }
 0xc2d   :  { %3086 = vmatpush1.bf16.msra.mxu1 %v9721_v19 }
 0xc2e   :  { %3152 = vmatprep.subr.bf16.mxu1 %v9728_v0 }
 0xce2   :  { %v9929_v26 = vpop.f32.mrb[36].mxu0  ;;  %v2939_v40 = vpop.f32.mrb[68].mxu1 }
 0xce3   :  { %11608 = vst [vmem:[#allocation34_spill] sm:$0xff] %v9929_v26  ;;  %v2945_v16 = vadd.f32 %v2939_v40, %v9606_v58  ;;  %v6828_v57 = vpop.f32.mrb[37].mxu0  ;;  %v6848_v29 = vpop.f32.mrb[69].mxu1  ;;  %v11625_v26 = vld [vmem:[#allocation56_spill] sm:$0xff] }
 0xce4   :  { %v2890_v18 = vpop.f32.mrb[38].mxu0  ;;  %v2942_v44 = vpop.f32.mrb[70].mxu1 }
 0xce5   :  { %v6829_v56 = vpop.f32.mrb[39].mxu0  ;;  %v6849_v1 = vpop.f32.mrb[71].mxu1  ;;  %v2946_v62 = vsel %vm1713_vm1, %v2945_v16, -inf }
 0xce6   :  { %2947 = vmax.xlane.f32.xlu1 %v2946_v62 }
 0xd73   :  { %v2948_v60 = vpop.xlane.xlu1 %2947 }
 0xd74   :  { %v2949_v6 = vsub.f32 %v2945_v16, %v2948_v60 }
 0xd76   :  { %v2950_v33 = vmul.f32 1.442695, %v2949_v6 }
 0xd78   :  { %7940 = vpow2.f32 %v2950_v33  ;;  %v11609_v33 = vld [vmem:[#allocation37_spill] sm:$0xff] }
 0xd82   :  { %v7941_v20 = vpop.eup %7940 }
 0xd83   :  { %v2952_v24 = vsel %vm1713_vm1, %v7941_v20, 0.0 }
 0xd84   :  { %2953 = vadd.xlane.f32.xlu1 %v2952_v24  ;;  %v11611_v24 = vld [vmem:[#allocation42_spill] sm:$0xff] }
 0xe11   :  { %v2954_v25 = vpop.xlane.xlu1 %2953 }
 0xe12   :  { %7942 = vrcp.f32 %v2954_v25  ;;  %v11612_v25 = vld [vmem:[#allocation43_spill] sm:$0xff] }
 0xe1c   :  { %v7943_v43 = vpop.eup %7942 }
 0xe1d   :  { %v2956_v40 = vmul.f32 %v7943_v43, %v7941_v20  ;;  %v11610_v20 = vld [vmem:[#allocation41_spill] sm:$0xff]  ;;  %v11613_v43 = vld [vmem:[#allocation44_spill] sm:$0xff] }
 0xe1f   :  { %6853 = vmatmul.mubr.f32.vlgmr.msra.gmra.mrb[40].mxu0 %v2956_v40  ;;  %v11614_v40 = vld [vmem:[#allocation45_spill] sm:$0xff] }
 0xe20   :  { %6856 = vmatpush3.bf16.msra.mxu0 %v9613_v32  ;;  %6871 = vmatprep.mubr.msk.bf16.mxu0 %vm8534_vm0, %v11544_v53 }
 0xe21   :  { %6857 = vmatprep.subr.bf16.mxu0 %v11544_v53 }
 0xe24   :  { %6858 = vmatpush3.bf16.msra.mxu0 %v9616_v34 }
 0xe25   :  { %6859 = vmatprep.subr.bf16.mxu0 %v11544_v53 }
 0xe28   :  { %6860 = vmatpush3.bf16.msra.mxu0 %v9622_v35 }
 0xe29   :  { %6861 = vmatprep.subr.bf16.mxu0 %v11544_v53 }
 0xe2c   :  { %6862 = vmatpush3.bf16.msra.mxu0 %v9626_v36 }
 0xe2d   :  { %6863 = vmatprep.subr.bf16.mxu0 %v11544_v53 }
 0xe30   :  { %6864 = vmatpush3.bf16.msra.mxu0 %v9630_v37 }
 0xe31   :  { %6865 = vmatprep.subr.bf16.mxu0 %v11544_v53 }
 0xe34   :  { %6866 = vmatpush3.bf16.msra.mxu0 %v9634_v38 }
 0xe35   :  { %6867 = vmatprep.subr.bf16.mxu0 %v11544_v53 }
 0xe38   :  { %6868 = vmatpush3.bf16.msra.mxu0 %v9638_v52 }
 0xe39   :  { %6869 = vmatprep.subr.bf16.mxu0 %v11544_v53 }
 0xe3c   :  { %6870 = vmatpush3.bf16.msra.mxu0 %v9643_v39 }
 0xe3d   :  { %6875 = vmatprep.subr.bf16.mxu0 %v11544_v53 }
 0xef2   :  { %v3023_v16 = vpop.f32.mrb[40].mxu0 }
 0xef3   :  { %v3027_v57 = vpack.c.bf16 %v3023_v16, %v3023_v16  ;;  %v6854_v29 = vpop.f32.mrb[41].mxu0  ;;  %v11615_v16 = vld [vmem:[#allocation46_spill] sm:$0xff] }
 0xef4   :  { %v11617_v29 = vld [vmem:[#allocation48_spill] sm:$0xff] }
 0xef5   :  { %6872 = vmatmul.mubr.bf16.vlgmr.msra.gmra.mrb[44].mxu0 %v3027_v57  ;;  %v11616_v57 = vld [vmem:[#allocation47_spill] sm:$0xff] }
 0xef6   :  { %6876 = vmatpush3.bf16.msra.mxu0 %v9689_v15  ;;  %6891 = vmatprep.mubr.msk.bf16.mxu0 %vm8534_vm0, %v11544_v53 }
 0xef7   :  { %6877 = vmatprep.subr.bf16.mxu0 %v11544_v53 }
 0xefa   :  { %6878 = vmatpush3.bf16.msra.mxu0 %v9692_v12 }
 0xefb   :  { %6879 = vmatprep.subr.bf16.mxu0 %v11544_v53 }
 0xefe   :  { %6880 = vmatpush3.bf16.msra.mxu0 %v9698_v7 }
 0xeff   :  { %6881 = vmatprep.subr.bf16.mxu0 %v11544_v53 }
 0xf02   :  { %6882 = vmatpush3.bf16.msra.mxu0 %v9702_v14 }
 0xf03   :  { %6883 = vmatprep.subr.bf16.mxu0 %v11544_v53 }
 0xf06   :  { %6884 = vmatpush3.bf16.msra.mxu0 %v9706_v9 }
 0xf07   :  { %6885 = vmatprep.subr.bf16.mxu0 %v11544_v53 }
 0xf0a   :  { %6886 = vmatpush3.bf16.msra.mxu0 %v9710_v63 }
 0xf0b   :  { %6887 = vmatprep.subr.bf16.mxu0 %v11544_v53 }
 0xf0e   :  { %6888 = vmatpush3.bf16.msra.mxu0 %v9714_v8 }
 0xf0f   :  { %6889 = vmatprep.subr.bf16.mxu0 %v11544_v53 }
 0xf12   :  { %6890 = vmatpush3.bf16.msra.mxu0 %v9723_v22 }
 0xf13   :  { %6895 = vmatprep.subr.bf16.mxu0 %v11544_v53 }
 0xfc8   :  { %v3062_v18 = vpop.f32.mrb[44].mxu0 }
 0xfc9   :  { %v3068_v44 = vadd.f32 %v3062_v18, %v9736_v46  ;;  %v6873_v56 = vpop.f32.mrb[45].mxu0  ;;  %v11618_v18 = vld [vmem:[#allocation49_spill] sm:$0xff] }
 0xfca   :  { %v3065_v1 = vpop.f32.mrb[46].mxu0  ;;  %v11620_v56 = vld [vmem:[#allocation51_spill] sm:$0xff] }
 0xfcb   :  { %v3069_v62 = vmax.f32 %v3068_v44, 0.0  ;;  %v6874_v60 = vpop.f32.mrb[47].mxu0  ;;  %v11619_v44 = vld [vmem:[#allocation50_spill] sm:$0xff]  ;;  %v11621_v1 = vld [vmem:[#allocation52_spill] sm:$0xff] }
 0xfcc   :  { %v11623_v60 = vld [vmem:[#allocation54_spill] sm:$0xff] }
 0xfcd   :  { %v3070_v6 = vpack.c.bf16 %v3069_v62, %v3069_v62  ;;  %v11622_v62 = vld [vmem:[#allocation53_spill] sm:$0xff] }
 0xfcf   :  { %3104 = vmatmul.mubr.bf16.vlgmr.msra.gmra.mrb[72].mxu1 %v3070_v6  ;;  %6892 = vmatmul.mubr.bf16.vlgmr.msra.gmra.mrb[48].mxu0 %v3070_v6  ;;  %v11624_v6 = vld [vmem:[#allocation55_spill] sm:$0xff] }
 0xfd0   :  { %3153 = vmatpush1.bf16.msra.mxu1 %v9739_v61  ;;  %6896 = vmatpush3.bf16.msra.mxu0 %v9741_v59 }
 0xfd1   :  { %3154 = vmatprep.subr.bf16.mxu1 %v9743_v30  ;;  %6897 = vmatprep.subr.bf16.mxu0 %v11544_v53 }
 0xfd2   :  { %3184 = vmatprep.mubr.bf16.mxu1 %v11545_v54  ;;  %6911 = vmatprep.mubr.msk.bf16.mxu0 %vm8534_vm0, %v11544_v53 }
 0xfd4   :  { %3155 = vmatpush1.bf16.msra.mxu1 %v9747_v27  ;;  %6898 = vmatpush3.bf16.msra.mxu0 %v11609_v33 }
 0xfd5   :  { %3156 = vmatprep.subr.bf16.mxu1 %v11610_v20  ;;  %6899 = vmatprep.subr.bf16.mxu0 %v11544_v53 }
 0xfd8   :  { %3157 = vmatpush1.bf16.msra.mxu1 %v11611_v24  ;;  %6900 = vmatpush3.bf16.msra.mxu0 %v11612_v25 }
 0xfd9   :  { %3158 = vmatprep.subr.bf16.mxu1 %v11613_v43  ;;  %6901 = vmatprep.subr.bf16.mxu0 %v11544_v53 }
 0xfdc   :  { %3159 = vmatpush1.bf16.msra.mxu1 %v11614_v40  ;;  %6902 = vmatpush3.bf16.msra.mxu0 %v11615_v16 }
 0xfdd   :  { %3160 = vmatprep.subr.bf16.mxu1 %v11616_v57  ;;  %6903 = vmatprep.subr.bf16.mxu0 %v11544_v53 }
 0xfe0   :  { %3161 = vmatpush1.bf16.msra.mxu1 %v11617_v29  ;;  %6904 = vmatpush3.bf16.msra.mxu0 %v11618_v18  ;;  %v11626_v18 = vld [vmem:[#allocation57_spill] sm:$0xff] }
 0xfe1   :  { %3162 = vmatprep.subr.bf16.mxu1 %v11619_v44  ;;  %6905 = vmatprep.subr.bf16.mxu0 %v11544_v53  ;;  %v11627_v44 = vld [vmem:[#allocation58_spill] sm:$0xff] }
 0xfe4   :  { %3163 = vmatpush1.bf16.msra.mxu1 %v11620_v56  ;;  %6906 = vmatpush3.bf16.msra.mxu0 %v11621_v1 }
 0xfe5   :  { %3164 = vmatprep.subr.bf16.mxu1 %v11622_v62  ;;  %6907 = vmatprep.subr.bf16.mxu0 %v11544_v53  ;;  %v11628_v62 = vld [vmem:[#allocation59_spill] sm:$0xff] }
 0xfe8   :  { %3165 = vmatpush1.bf16.msra.mxu1 %v11623_v60  ;;  %6908 = vmatpush3.bf16.msra.mxu0 %v11624_v6  ;;  %v11629_v60 = vld [vmem:[#allocation29_spill] sm:$0xff] }
 0xfe9   :  { %3166 = vmatprep.subr.bf16.mxu1 %v11625_v26  ;;  %6909 = vmatprep.subr.bf16.mxu0 %v11544_v53  ;;  %v11635_v26 = vld [vmem:[#allocation31_spill] sm:$0xff] }
 0xfec   :  { %3167 = vmatpush1.bf16.msra.mxu1 %v11626_v18  ;;  %6910 = vmatpush3.bf16.msra.mxu0 %v11627_v44  ;;  %v11630_v44 = vld [vmem:[#allocation60_spill] sm:$0xff] }
 0xfed   :  { %6915 = vmatprep.subr.bf16.mxu1 %v11544_v53  ;;  %6935 = vmatprep.subr.bf16.mxu0 %v11544_v53  ;;  %v11631_v18 = vld [vmem:[#allocation32_spill] sm:$0xff] }
 0xfef   :  { %3185 = vmatmul.mubr.bf16.vlgmr.msra.gmra.mrb[72].mxu1 %v9903_v21  ;;  %6912 = vmatmul.mubr.bf16.vlgmr.msra.gmra.mrb[52].mxu0 %v9903_v21  ;;  %v11632_v21 = vld [vmem:[#allocation61_spill] sm:$0xff] }
 0xff0   :  { %6916 = vmatpush3.bf16.msra.mxu1 %v11628_v62  ;;  %6936 = vmatpush3.bf16.msra.mxu0 %v11629_v60  ;;  %v11633_v60 = vld [vmem:[#allocation30_spill] sm:$0xff] }
 0xff1   :  { %6917 = vmatprep.subr.bf16.mxu1 %v11544_v53  ;;  %6937 = vmatprep.subr.bf16.mxu0 %v11544_v53  ;;  %v11634_v62 = vld [vmem:[#allocation62_spill] sm:$0xff] }
 0xff2   :  { %6931 = vmatprep.mubr.msk.bf16.mxu1 %vm8534_vm0, %v11544_v53  ;;  %6951 = vmatprep.mubr.msk.bf16.mxu0 %vm8534_vm0, %v11544_v53 }
 0xff4   :  { %6918 = vmatpush3.bf16.msra.mxu1 %v11630_v44  ;;  %6938 = vmatpush3.bf16.msra.mxu0 %v11631_v18  ;;  %v11636_v18 = vld [vmem:[#allocation63_spill] sm:$0xff]  ;;  %v11637_v44 = vld [vmem:[#allocation33_spill] sm:$0xff] }
 0xff5   :  { %6919 = vmatprep.subr.bf16.mxu1 %v11544_v53  ;;  %6939 = vmatprep.subr.bf16.mxu0 %v11544_v53 }
 0xff8   :  { %6920 = vmatpush3.bf16.msra.mxu1 %v11632_v21  ;;  %6940 = vmatpush3.bf16.msra.mxu0 %v11633_v60  ;;  %v11638_v60 = vld [vmem:[#allocation64_spill] sm:$0xff]  ;;  %v11639_v21 = vld [vmem:[#allocation38_spill] sm:$0xff] }
 0xff9   :  { %6921 = vmatprep.subr.bf16.mxu1 %v11544_v53  ;;  %6941 = vmatprep.subr.bf16.mxu0 %v11544_v53 }
 0xffc   :  { %6922 = vmatpush3.bf16.msra.mxu1 %v11634_v62  ;;  %6942 = vmatpush3.bf16.msra.mxu0 %v11635_v26  ;;  %v11640_v26 = vld [vmem:[#allocation65_spill] sm:$0xff]  ;;  %v11641_v62 = vld [vmem:[#allocation39_spill] sm:$0xff] }
 0xffd   :  { %6923 = vmatprep.subr.bf16.mxu1 %v11544_v53  ;;  %6943 = vmatprep.subr.bf16.mxu0 %v11544_v53 }
0x1000   :  { %6924 = vmatpush3.bf16.msra.mxu1 %v11636_v18  ;;  %6944 = vmatpush3.bf16.msra.mxu0 %v11637_v44  ;;  %v11642_v44 = vld [vmem:[#allocation66_spill] sm:$0xff]  ;;  %v11643_v18 = vld [vmem:[#allocation40_spill] sm:$0xff] }
0x1001   :  { %6925 = vmatprep.subr.bf16.mxu1 %v11544_v53  ;;  %6945 = vmatprep.subr.bf16.mxu0 %v11544_v53 }
0x1004   :  { %6926 = vmatpush3.bf16.msra.mxu1 %v11638_v60  ;;  %6946 = vmatpush3.bf16.msra.mxu0 %v11639_v21  ;;  %v11644_v60 = vld [vmem:[#allocation28_spill] sm:$0xff] }
0x1005   :  { %6927 = vmatprep.subr.bf16.mxu1 %v11544_v53  ;;  %6947 = vmatprep.subr.bf16.mxu0 %v11544_v53 }
0x1008   :  { %6928 = vmatpush3.bf16.msra.mxu1 %v11640_v26  ;;  %6948 = vmatpush3.bf16.msra.mxu0 %v11641_v62 }
0x1009   :  { %6929 = vmatprep.subr.bf16.mxu1 %v11544_v53  ;;  %6949 = vmatprep.subr.bf16.mxu0 %v11544_v53 }
0x100c   :  { %6930 = vmatpush3.bf16.msra.mxu1 %v11642_v44  ;;  %6950 = vmatpush3.bf16.msra.mxu0 %v11643_v18 }
0x100d   :  { %6955 = vmatprep.subr.mxu1 %v11544_v53  ;;  %3473 = vmatprep.subr.bf16.mxu0 %v11644_v60 }
0x10a2   :  { %v3146_v21 = vpop.f32.mrb[48].mxu0 }
0x10a3   :  { %v6893_v6 = vpop.f32.mrb[49].mxu0 }
0x10a4   :  { %v3149_v1 = vpop.f32.mrb[50].mxu0 }
0x10a5   :  { %v6894_v56 = vpop.f32.mrb[51].mxu0 }
0x10c2   :  { %v3186_v29 = vpop.f32.mrb[72].mxu1  ;;  %v3227_v26 = vpop.f32.mrb[52].mxu0 }
0x10c3   :  { %v7594_v62 = vadd.f32 %v9884_v23, %v3186_v29  ;;  %v3188_v57 = vpop.f32.mrb[73].mxu1  ;;  %v6913_v16 = vpop.f32.mrb[53].mxu0  ;;  %v3228_v33 = vadd.f32 %v3227_v26, %v9891_v2  ;;  %v11656_v26 = vld [vmem:[#allocation50_spill] sm:$0xff] }
0x10c4   :  { %v3190_v40 = vpop.f32.mrb[74].mxu1  ;;  %v3230_v43 = vpop.f32.mrb[54].mxu0  ;;  %v7596_v18 = vadd.f32 %v9886_v49, %v3188_v57  ;;  %v3147_v16 = vadd.f32 %v3146_v21, %v9894_v47  ;;  %v11657_v21 = vld [vmem:[#allocation51_spill] sm:$0xff] }
0x10c5   :  { %v5921_v25 = vmul.f32 -1.442695, %v7594_v62  ;;  %v3191_v44 = vpop.f32.mrb[75].mxu1  ;;  %v6914_v24 = vpop.f32.mrb[55].mxu0 }
0x10c6   :  { %v5922_v20 = vmul.f32 -1.442695, %v7596_v18 }
0x10c7   :  { %7944 = vpow2.f32 %v5921_v25 }
0x10c8   :  { %7946 = vpow2.f32 %v5922_v20 }
0x10d1   :  { %v7945_v60 = vpop.eup %7944 }
0x10d2   :  { %v3237_v6 = vadd.f32 1.0, %v7945_v60  ;;  %v7947_v56 = vpop.eup %7946  ;;  %v11658_v60 = vld [vmem:[#allocation52_spill] sm:$0xff] }
0x10d3   :  { %v3244_v1 = vadd.f32 1.0, %v7947_v56  ;;  %v11660_v56 = vld [vmem:[#allocation54_spill] sm:$0xff] }
0x10d4   :  { %7948 = vrcp.f32 %v3237_v6  ;;  %v11659_v6 = vld [vmem:[#allocation53_spill] sm:$0xff] }
0x10d5   :  { %7950 = vrcp.f32 %v3244_v1  ;;  %v11661_v1 = vld [vmem:[#allocation55_spill] sm:$0xff] }
0x10de   :  { %v7949_v29 = vpop.eup %7948 }
0x10df   :  { %v3247_v40 = vmul.f32 %v7949_v29, %v3228_v33  ;;  %v7951_v24 = vpop.eup %7950  ;;  %v11662_v29 = vld [vmem:[#allocation56_spill] sm:$0xff] }
0x10e0   :  { %v3250_v44 = vsub.f32 1.0, %v7951_v24  ;;  %v3252_v20 = vmul.f32 %v7951_v24, %v9899_v13  ;;  %v10159_v24 = vld [vmem:[#allocation11] sm:$0xff]  }
0x10e1   :  { %v3248_v43 = vadd.f32 %v3247_v40, %v3147_v16  ;;  %v11663_v16 = vld [vmem:[#allocation57_spill] sm:$0xff]  ;;  %v11664_v40 = vld [vmem:[#allocation58_spill] sm:$0xff]  ;;  %11666 = vst [vmem:[#allocation36_spill] sm:$0xff] %v10159_v24 }
0x10e3   :  { %7952 = vtanh.f32 %v3248_v43  ;;  %v11665_v43 = vld [vmem:[#allocation59_spill] sm:$0xff] }
0x10ed   :  { %v7953_v57 = vpop.eup %7952 }
0x10ee   :  { %v3251_v25 = vmul.f32 %v7953_v57, %v3250_v44  ;;  %v11667_v44 = vld [vmem:[#allocation60_spill] sm:$0xff] }
0x10ef   :  { %v10169_v57 = vld [vmem:[#allocation11 + $0x8] sm:$0xff]  }
0x10f0   :  { %v10049_v62 = vadd.f32 %v3252_v20, %v3251_v25  ;;  %11668 = vst [vmem:[#allocation29_spill] sm:$0xff] %v10169_v57  ;;  %v11669_v25 = vld [vmem:[#allocation61_spill] sm:$0xff] }
0x10f1   :  { %v10175_v20 = vld [vmem:[#allocation11 + $0x10] sm:$0xff]  }
0x10f2   :  { %v10053_v18 = vpack.c.bf16 %v10049_v62, %v10049_v62  ;;  %11670 = vst [vmem:[#allocation32_spill] sm:$0xff] %v10175_v20 }
0x10f4   :  { %6932 = vmatmul.mubr.bf16.vlgmr.msra.gmra.mrb[76].mxu1 %v10053_v18  ;;  %6952 = vmatmul.mubr.bf16.vlgmr.msra.gmra.mrb[56].mxu0 %v10053_v18 }
0x10f5   :  { %6956 = vmatpush3.msk.msra.mxu1 %vm1725_vm7, %v9597_v4  ;;  %6957 = vmatprep.mubr.msk.f32.mxu1 %vm8534_vm0, %v11544_v53 }
0x10f6   :  { %6960 = vmatprep.subr.bf16.mxu1 %v11544_v53  ;;  %3474 = vmatpush1.bf16.msra.mxu0 %v9649_v41 }
0x10f7   :  { %3475 = vmatprep.subr.bf16.mxu0 %v9651_v42  ;;  %3505 = vmatprep.mubr.bf16.mxu0 %v11545_v54 }
0x10fa   :  { %3476 = vmatpush1.bf16.msra.mxu0 %v9655_v55 }
0x10fb   :  { %3477 = vmatprep.subr.bf16.mxu0 %v9658_v45 }
0x10fe   :  { %3478 = vmatpush1.bf16.msra.mxu0 %v9661_v48 }
0x10ff   :  { %3479 = vmatprep.subr.bf16.mxu0 %v9664_v3 }
0x1102   :  { %3480 = vmatpush1.bf16.msra.mxu0 %v9667_v5 }
0x1103   :  { %3481 = vmatprep.subr.bf16.mxu0 %v9670_v28 }
0x1106   :  { %3482 = vmatpush1.bf16.msra.mxu0 %v9673_v51 }
0x1107   :  { %3483 = vmatprep.subr.bf16.mxu0 %v9676_v31 }
0x110a   :  { %3484 = vmatpush1.bf16.msra.mxu0 %v9679_v50 }
0x110b   :  { %3485 = vmatprep.subr.bf16.mxu0 %v9682_v10 }
0x110e   :  { %3486 = vmatpush1.bf16.msra.mxu0 %v9685_v11 }
0x110f   :  { %3487 = vmatprep.subr.bf16.mxu0 %v9719_v17 }
0x1112   :  { %3488 = vmatpush1.bf16.msra.mxu0 %v9721_v19 }
0x1113   :  { %3554 = vmatprep.subr.bf16.mxu0 %v9728_v0 }
0x11c7   :  { %v10079_v41 = vpop.f32.mrb[76].mxu1  ;;  %v3341_v42 = vpop.f32.mrb[56].mxu0 }
0x11c8   :  { %11645 = vst [vmem:[#allocation35_spill] sm:$0xff] %v10079_v41  ;;  %v3347_v55 = vadd.f32 %v3341_v42, %v9606_v58  ;;  %v6933_v45 = vpop.f32.mrb[77].mxu1  ;;  %v6953_v48 = vpop.f32.mrb[57].mxu0  ;;  %v10181_v42 = vld [vmem:[#allocation11 + $0x18] sm:$0xff]   ;;  %v10392_v41 = vld [vmem:[#allocation17 + $0x64] ss:$12 sps:$4 sm:$0xff]  }
0x11c9   :  { %v3292_v3 = vpop.f32.mrb[78].mxu1  ;;  %v3344_v5 = vpop.f32.mrb[58].mxu0  ;;  %11672 = vst [vmem:[#allocation30_spill] sm:$0xff] %v10181_v42  ;;  %v10187_v45 = vld [vmem:[#allocation11 + $0x20] sm:$0xff]   ;;  %v11675_v48 = vld [vmem:[#allocation64_spill] sm:$0xff] }
0x11ca   :  { %v6934_v28 = vpop.f32.mrb[79].mxu1  ;;  %v6954_v51 = vpop.f32.mrb[59].mxu0  ;;  %v3348_v31 = vsel %vm1713_vm1, %v3347_v55, -inf  ;;  %11674 = vst [vmem:[#allocation31_spill] sm:$0xff] %v10187_v45  ;;  %v10193_v3 = vld [vmem:[#allocation11 + $0x28] sm:$0xff]   ;;  %v11677_v5 = vld [vmem:[#allocation65_spill] sm:$0xff] }
0x11cb   :  { %3349 = vmax.xlane.f32.xlu0 %v3348_v31  ;;  %11676 = vst [vmem:[#allocation33_spill] sm:$0xff] %v10193_v3  ;;  %v10199_v28 = vld [vmem:[#allocation11 + $0x30] sm:$0xff]   ;;  %v11679_v51 = vld [vmem:[#allocation66_spill] sm:$0xff] }
0x11cc   :  { %11678 = vst [vmem:[#allocation38_spill] sm:$0xff] %v10199_v28  ;;  %v10205_v31 = vld [vmem:[#allocation11 + $0x38] sm:$0xff]  }
0x11cd   :  { %11680 = vst [vmem:[#allocation39_spill] sm:$0xff] %v10205_v31 }
0x1258   :  { %v3350_v50 = vpop.xlane.xlu0 %3349 }
0x1259   :  { %v3351_v10 = vsub.f32 %v3347_v55, %v3350_v50  ;;  %v11673_v55 = vld [vmem:[#allocation63_spill] sm:$0xff] }
0x125a   :  { %v10209_v50 = vld [vmem:[#allocation15 + $0x4] ss:$12 sps:$4 sm:$0xff]  }
0x125b   :  { %v3352_v11 = vmul.f32 1.442695, %v3351_v10  ;;  %11681 = vst [vmem:[#allocation40_spill] sm:$0xff] %v10209_v50 }
0x125d   :  { %7954 = vpow2.f32 %v3352_v11 }
0x1267   :  { %v7955_v17 = vpop.eup %7954 }
0x1268   :  { %v3354_v19 = vsel %vm1713_vm1, %v7955_v17, 0.0 }
0x1269   :  { %3355 = vadd.xlane.f32.xlu1 %v3354_v19 }
0x12f6   :  { %v3356_v0 = vpop.xlane.xlu1 %3355 }
0x12f7   :  { %7956 = vrcp.f32 %v3356_v0 }
0x1301   :  { %v7957_v13 = vpop.eup %7956 }
0x1302   :  { %v3358_v33 = vmul.f32 %v7957_v13, %v7955_v17 }
0x1304   :  { %6958 = vmatmul.mubr.f32.vlgmr.msra.gmra.mrb[54].mxu1 %v3358_v33 }
0x1305   :  { %6961 = vmatpush3.bf16.msra.mxu1 %v9613_v32  ;;  %6976 = vmatprep.mubr.msk.bf16.mxu1 %vm8534_vm0, %v11544_v53 }
0x1306   :  { %6962 = vmatprep.subr.bf16.mxu1 %v11544_v53 }
0x1309   :  { %6963 = vmatpush3.bf16.msra.mxu1 %v9616_v34 }
0x130a   :  { %6964 = vmatprep.subr.bf16.mxu1 %v11544_v53 }
0x130d   :  { %6965 = vmatpush3.bf16.msra.mxu1 %v9622_v35 }
0x130e   :  { %6966 = vmatprep.subr.bf16.mxu1 %v11544_v53 }
0x1311   :  { %6967 = vmatpush3.bf16.msra.mxu1 %v9626_v36 }
0x1312   :  { %6968 = vmatprep.subr.bf16.mxu1 %v11544_v53 }
0x1315   :  { %6969 = vmatpush3.bf16.msra.mxu1 %v9630_v37 }
0x1316   :  { %6970 = vmatprep.subr.bf16.mxu1 %v11544_v53 }
0x1319   :  { %6971 = vmatpush3.bf16.msra.mxu1 %v9634_v38 }
0x131a   :  { %6972 = vmatprep.subr.bf16.mxu1 %v11544_v53 }
0x131d   :  { %6973 = vmatpush3.bf16.msra.mxu1 %v9638_v52 }
0x131e   :  { %6974 = vmatprep.subr.bf16.mxu1 %v11544_v53 }
0x1321   :  { %6975 = vmatpush3.bf16.msra.mxu1 %v9643_v39 }
0x1322   :  { %6980 = vmatprep.subr.bf16.mxu1 %v11544_v53 }
0x13d7   :  { %v3425_v32 = vpop.f32.mrb[54].mxu1 }
0x13d8   :  { %v3429_v34 = vpack.c.bf16 %v3425_v32, %v3425_v32  ;;  %v6959_v35 = vpop.f32.mrb[55].mxu1 }
0x13da   :  { %6977 = vmatmul.mubr.bf16.vlgmr.msra.gmra.mrb[80].mxu1 %v3429_v34 }
0x13db   :  { %6981 = vmatpush3.bf16.msra.mxu1 %v9689_v15  ;;  %6996 = vmatprep.mubr.msk.bf16.mxu1 %vm8534_vm0, %v11544_v53 }
0x13dc   :  { %6982 = vmatprep.subr.bf16.mxu1 %v11544_v53 }
0x13df   :  { %6983 = vmatpush3.bf16.msra.mxu1 %v9692_v12 }
0x13e0   :  { %6984 = vmatprep.subr.bf16.mxu1 %v11544_v53 }
0x13e3   :  { %6985 = vmatpush3.bf16.msra.mxu1 %v9698_v7  ;;  %v11646_v7 = vld [vmem:[#allocation37_spill] sm:$0xff] }
0x13e4   :  { %6986 = vmatprep.subr.bf16.mxu1 %v11544_v53 }
0x13e7   :  { %6987 = vmatpush3.bf16.msra.mxu1 %v9702_v14  ;;  %v11647_v14 = vld [vmem:[#allocation41_spill] sm:$0xff] }
0x13e8   :  { %6988 = vmatprep.subr.bf16.mxu1 %v11544_v53 }
0x13eb   :  { %6989 = vmatpush3.bf16.msra.mxu1 %v9706_v9  ;;  %v11648_v9 = vld [vmem:[#allocation42_spill] sm:$0xff] }
0x13ec   :  { %6990 = vmatprep.subr.bf16.mxu1 %v11544_v53 }
0x13ef   :  { %6991 = vmatpush3.bf16.msra.mxu1 %v9710_v63  ;;  %v11649_v63 = vld [vmem:[#allocation43_spill] sm:$0xff] }
0x13f0   :  { %6992 = vmatprep.subr.bf16.mxu1 %v11544_v53 }
0x13f3   :  { %6993 = vmatpush3.bf16.msra.mxu1 %v9714_v8  ;;  %v11650_v8 = vld [vmem:[#allocation44_spill] sm:$0xff] }
0x13f4   :  { %6994 = vmatprep.subr.bf16.mxu1 %v11544_v53 }
0x13f7   :  { %6995 = vmatpush3.bf16.msra.mxu1 %v9723_v22  ;;  %v11651_v22 = vld [vmem:[#allocation45_spill] sm:$0xff] }
0x13f8   :  { %7000 = vmatprep.subr.bf16.mxu1 %v11544_v53 }
0x14ad   :  { %v3464_v36 = vpop.f32.mrb[80].mxu1 }
0x14ae   :  { %v3470_v37 = vadd.f32 %v3464_v36, %v9736_v46  ;;  %v6978_v38 = vpop.f32.mrb[81].mxu1 }
0x14af   :  { %v3467_v52 = vpop.f32.mrb[82].mxu1 }
0x14b0   :  { %v3471_v39 = vmax.f32 %v3470_v37, 0.0  ;;  %v6979_v15 = vpop.f32.mrb[83].mxu1 }
0x14b2   :  { %v3472_v12 = vpack.c.bf16 %v3471_v39, %v3471_v39 }
0x14b4   :  { %3506 = vmatmul.mubr.bf16.vlgmr.msra.gmra.mrb[60].mxu0 %v3472_v12  ;;  %6997 = vmatmul.mubr.bf16.vlgmr.msra.gmra.mrb[84].mxu1 %v3472_v12 }
0x14b5   :  { %3555 = vmatpush1.bf16.msra.mxu0 %v9739_v61  ;;  %7001 = vmatpush3.bf16.msra.mxu1 %v9741_v59  ;;  %v11652_v61 = vld [vmem:[#allocation46_spill] sm:$0xff]  ;;  %v11653_v59 = vld [vmem:[#allocation47_spill] sm:$0xff] }
0x14b6   :  { %3556 = vmatprep.subr.bf16.mxu0 %v9743_v30  ;;  %7002 = vmatprep.subr.bf16.mxu1 %v11544_v53  ;;  %v11654_v30 = vld [vmem:[#allocation48_spill] sm:$0xff]  ;;  %11690 = vst [vmem:[#allocation47_spill] sm:$0xff] %v10392_v41 }
0x14b7   :  { %3586 = vmatprep.mubr.bf16.mxu0 %v11545_v54  ;;  %7016 = vmatprep.mubr.msk.bf16.mxu1 %vm8534_vm0, %v11544_v53 }
0x14b9   :  { %3557 = vmatpush1.bf16.msra.mxu0 %v9747_v27  ;;  %7003 = vmatpush3.bf16.msra.mxu1 %v11646_v7  ;;  %v11655_v27 = vld [vmem:[#allocation49_spill] sm:$0xff] }
0x14ba   :  { %3558 = vmatprep.subr.bf16.mxu0 %v11647_v14  ;;  %7004 = vmatprep.subr.bf16.mxu1 %v11544_v53 }
0x14bd   :  { %3559 = vmatpush1.bf16.msra.mxu0 %v11648_v9  ;;  %7005 = vmatpush3.bf16.msra.mxu1 %v11649_v63 }
0x14be   :  { %3560 = vmatprep.subr.bf16.mxu0 %v11650_v8  ;;  %7006 = vmatprep.subr.bf16.mxu1 %v11544_v53 }
0x14c1   :  { %3561 = vmatpush1.bf16.msra.mxu0 %v11651_v22  ;;  %7007 = vmatpush3.bf16.msra.mxu1 %v11652_v61 }
0x14c2   :  { %3562 = vmatprep.subr.bf16.mxu0 %v11653_v59  ;;  %7008 = vmatprep.subr.bf16.mxu1 %v11544_v53 }
0x14c5   :  { %3563 = vmatpush1.bf16.msra.mxu0 %v11654_v30  ;;  %7009 = vmatpush3.bf16.msra.mxu1 %v11655_v27 }
0x14c6   :  { %3564 = vmatprep.subr.bf16.mxu0 %v11656_v26  ;;  %7010 = vmatprep.subr.bf16.mxu1 %v11544_v53 }
0x14c9   :  { %3565 = vmatpush1.bf16.msra.mxu0 %v11657_v21  ;;  %7011 = vmatpush3.bf16.msra.mxu1 %v11658_v60 }
0x14ca   :  { %3566 = vmatprep.subr.bf16.mxu0 %v11659_v6  ;;  %7012 = vmatprep.subr.bf16.mxu1 %v11544_v53 }
0x14cd   :  { %3567 = vmatpush1.bf16.msra.mxu0 %v11660_v56  ;;  %7013 = vmatpush3.bf16.msra.mxu1 %v11661_v1  ;;  %v10230_v1 = vld [vmem:[#allocation15] ss:$12 sps:$4 sm:$0xff]  }
0x14ce   :  { %3568 = vmatprep.subr.bf16.mxu0 %v11662_v29  ;;  %7014 = vmatprep.subr.bf16.mxu1 %v11544_v53  ;;  %v10237_v29 = vld [vmem:[#allocation15 + $0x18] ss:$12 sps:$4 sm:$0xff]  }
0x14d1   :  { %3569 = vmatpush1.bf16.msra.mxu0 %v11663_v16  ;;  %7015 = vmatpush3.bf16.msra.mxu1 %v11664_v40  ;;  %v10240_v16 = vld [vmem:[#allocation15 + $0x34] ss:$12 sps:$4 sm:$0xff]   ;;  %v10243_v40 = vld [vmem:[#allocation15 + $0x30] ss:$12 sps:$4 sm:$0xff]  }
0x14d2   :  { %7020 = vmatprep.subr.bf16.mxu0 %v11544_v53  ;;  %7040 = vmatprep.subr.bf16.mxu1 %v11544_v53 }
0x14d4   :  { %3587 = vmatmul.mubr.bf16.vlgmr.msra.gmra.mrb[60].mxu0 %v10053_v18  ;;  %7017 = vmatmul.mubr.bf16.vlgmr.msra.gmra.mrb[88].mxu1 %v10053_v18  ;;  %v11671_v18 = vld [vmem:[#allocation62_spill] sm:$0xff] }
0x14d5   :  { %7021 = vmatpush3.bf16.msra.mxu0 %v11665_v43  ;;  %7041 = vmatpush3.bf16.msra.mxu1 %v10159_v24  ;;  %v10246_v43 = vld [vmem:[#allocation15 + $0x4c] ss:$12 sps:$4 sm:$0xff]  }
0x14d6   :  { %7022 = vmatprep.subr.bf16.mxu0 %v11544_v53  ;;  %7042 = vmatprep.subr.bf16.mxu1 %v11544_v53 }
0x14d7   :  { %7036 = vmatprep.mubr.msk.bf16.mxu0 %vm8534_vm0, %v11544_v53  ;;  %7056 = vmatprep.mubr.msk.bf16.mxu1 %vm8534_vm0, %v11544_v53 }
0x14d9   :  { %7023 = vmatpush3.bf16.msra.mxu0 %v11667_v44  ;;  %7043 = vmatpush3.bf16.msra.mxu1 %v10169_v57  ;;  %v10249_v44 = vld [vmem:[#allocation15 + $0x48] ss:$12 sps:$4 sm:$0xff]  }
0x14da   :  { %7024 = vmatprep.subr.bf16.mxu0 %v11544_v53  ;;  %7044 = vmatprep.subr.bf16.mxu1 %v11544_v53 }
0x14dd   :  { %7025 = vmatpush3.bf16.msra.mxu0 %v11669_v25  ;;  %7045 = vmatpush3.bf16.msra.mxu1 %v10175_v20  ;;  %v10252_v25 = vld [vmem:[#allocation15 + $0x64] ss:$12 sps:$4 sm:$0xff]  }
0x14de   :  { %7026 = vmatprep.subr.bf16.mxu0 %v11544_v53  ;;  %7046 = vmatprep.subr.bf16.mxu1 %v11544_v53 }
0x14e1   :  { %7027 = vmatpush3.bf16.msra.mxu0 %v11671_v18  ;;  %7047 = vmatpush3.bf16.msra.mxu1 %v10181_v42  ;;  %v10255_v18 = vld [vmem:[#allocation15 + $0x60] ss:$12 sps:$4 sm:$0xff]  }
0x14e2   :  { %7028 = vmatprep.subr.bf16.mxu0 %v11544_v53  ;;  %7048 = vmatprep.subr.bf16.mxu1 %v11544_v53 }
0x14e5   :  { %7029 = vmatpush3.bf16.msra.mxu0 %v11673_v55  ;;  %7049 = vmatpush3.bf16.msra.mxu1 %v10187_v45  ;;  %v10258_v55 = vld [vmem:[#allocation15 + $0x7c] ss:$12 sps:$4 sm:$0xff]  }
0x14e6   :  { %7030 = vmatprep.subr.bf16.mxu0 %v11544_v53  ;;  %7050 = vmatprep.subr.bf16.mxu1 %v11544_v53 }
0x14e9   :  { %7031 = vmatpush3.bf16.msra.mxu0 %v11675_v48  ;;  %7051 = vmatpush3.bf16.msra.mxu1 %v10193_v3  ;;  %v10261_v48 = vld [vmem:[#allocation15 + $0x78] ss:$12 sps:$4 sm:$0xff]  }
0x14ea   :  { %7032 = vmatprep.subr.bf16.mxu0 %v11544_v53  ;;  %7052 = vmatprep.subr.bf16.mxu1 %v11544_v53 }
0x14ed   :  { %7033 = vmatpush3.bf16.msra.mxu0 %v11677_v5  ;;  %7053 = vmatpush3.bf16.msra.mxu1 %v10199_v28  ;;  %v10264_v5 = vld [vmem:[#allocation15 + $0x94] ss:$12 sps:$4 sm:$0xff]  }
0x14ee   :  { %7034 = vmatprep.subr.bf16.mxu0 %v11544_v53  ;;  %7054 = vmatprep.subr.bf16.mxu1 %v11544_v53 }
0x14f1   :  { %7035 = vmatpush3.bf16.msra.mxu0 %v11679_v51  ;;  %7055 = vmatpush3.bf16.msra.mxu1 %v10205_v31  ;;  %v10267_v51 = vld [vmem:[#allocation15 + $0x90] ss:$12 sps:$4 sm:$0xff]  }
0x14f2   :  { %7060 = vmatprep.subr.mxu0 %v11544_v53  ;;  %3875 = vmatprep.subr.bf16.mxu1 %v10209_v50 }
0x1587   :  { %v3548_v10 = vpop.f32.mrb[84].mxu1 }
0x1588   :  { %v6998_v11 = vpop.f32.mrb[85].mxu1  ;;  %v3549_v22 = vadd.f32 %v3548_v10, %v9894_v47  ;;  %v10270_v10 = vld [vmem:[#allocation15 + $0xac] ss:$12 sps:$4 sm:$0xff]  }
0x1589   :  { %v3551_v17 = vpop.f32.mrb[86].mxu1  ;;  %v10273_v11 = vld [vmem:[#allocation15 + $0xa8] ss:$12 sps:$4 sm:$0xff]  }
0x158a   :  { %v6999_v19 = vpop.f32.mrb[87].mxu1  ;;  %v10276_v17 = vld [vmem:[#allocation17 + $0x4] ss:$12 sps:$4 sm:$0xff]  }
0x15a7   :  { %v3588_v0 = vpop.f32.mrb[60].mxu0  ;;  %v3629_v13 = vpop.f32.mrb[88].mxu1 }
0x15a8   :  { %v7598_v33 = vadd.f32 %v9884_v23, %v3588_v0  ;;  %v3590_v32 = vpop.f32.mrb[61].mxu0  ;;  %v7018_v34 = vpop.f32.mrb[89].mxu1  ;;  %v3630_v63 = vadd.f32 %v3629_v13, %v9891_v2 }
0x15a9   :  { %v3592_v35 = vpop.f32.mrb[62].mxu0  ;;  %v3632_v36 = vpop.f32.mrb[90].mxu1  ;;  %v7600_v39 = vadd.f32 %v9886_v49, %v3590_v32 }
0x15aa   :  { %v5923_v37 = vmul.f32 -1.442695, %v7598_v33  ;;  %v3593_v38 = vpop.f32.mrb[63].mxu0  ;;  %v7019_v52 = vpop.f32.mrb[91].mxu1 }
0x15ab   :  { %v5924_v15 = vmul.f32 -1.442695, %v7600_v39 }
0x15ac   :  { %7958 = vpow2.f32 %v5923_v37 }
0x15ad   :  { %7960 = vpow2.f32 %v5924_v15 }
0x15b6   :  { %v7959_v12 = vpop.eup %7958 }
0x15b7   :  { %v3639_v7 = vadd.f32 1.0, %v7959_v12  ;;  %v7961_v14 = vpop.eup %7960 }
0x15b8   :  { %v3646_v9 = vadd.f32 1.0, %v7961_v14 }
0x15b9   :  { %7962 = vrcp.f32 %v3639_v7 }
0x15ba   :  { %7964 = vrcp.f32 %v3646_v9 }
0x15c3   :  { %v7963_v8 = vpop.eup %7962 }
0x15c4   :  { %v3649_v61 = vmul.f32 %v7963_v8, %v3630_v63  ;;  %v7965_v30 = vpop.eup %7964  ;;  %v10284_v8 = vld [vmem:[#allocation14] sm:$0xff]  }
0x15c5   :  { %v3652_v27 = vsub.f32 1.0, %v7965_v30  ;;  %v3654_v60 = vmul.f32 %v7965_v30, %v10049_v62  ;;  %v10233_v62 = vld [vmem:[#allocation15 + $0x1c] ss:$12 sps:$4 sm:$0xff]   ;;  %v10302_v30 = vld [vmem:[#allocation14 + $0x20] sm:$0xff]  }
0x15c6   :  { %v3650_v59 = vadd.f32 %v3649_v61, %v3549_v22  ;;  %v10290_v22 = vld [vmem:[#allocation14 + $0x8] sm:$0xff]   ;;  %v10294_v61 = vld [vmem:[#allocation14 + $0x10] sm:$0xff]  }
0x15c8   :  { %7966 = vtanh.f32 %v3650_v59  ;;  %v10298_v59 = vld [vmem:[#allocation14 + $0x18] sm:$0xff]  }
0x15d2   :  { %v7967_v26 = vpop.eup %7966 }
0x15d3   :  { %v3653_v21 = vmul.f32 %v7967_v26, %v3652_v27  ;;  %v10306_v27 = vld [vmem:[#allocation14 + $0x28] sm:$0xff]   ;;  %v10310_v26 = vld [vmem:[#allocation14 + $0x30] sm:$0xff]  }
0x15d5   :  { %v10217_v6 = vadd.f32 %v3654_v60, %v3653_v21  ;;  %v10314_v21 = vld [vmem:[#allocation14 + $0x38] sm:$0xff]  }
0x15d7   :  { %v10221_v56 = vpack.c.bf16 %v10217_v6, %v10217_v6 }
0x15d9   :  { %7037 = vmatmul.mubr.bf16.vlgmr.msra.gmra.mrb[64].mxu0 %v10221_v56  ;;  %7057 = vmatmul.mubr.bf16.vlgmr.msra.gmra.mrb[92].mxu1 %v10221_v56 }
0x15da   :  { %7061 = vmatpush3.msk.msra.mxu0 %vm1725_vm7, %v9597_v4  ;;  %7062 = vmatprep.mubr.msk.f32.mxu0 %vm8534_vm0, %v11544_v53 }
0x15db   :  { %7065 = vmatprep.subr.bf16.mxu0 %v11544_v53  ;;  %3876 = vmatpush1.bf16.msra.mxu1 %v10230_v1 }
0x15dc   :  { %3877 = vmatprep.subr.bf16.mxu1 %v10233_v62  ;;  %3907 = vmatprep.mubr.bf16.mxu1 %v11545_v54 }
0x15df   :  { %3878 = vmatpush1.bf16.msra.mxu1 %v10237_v29 }
0x15e0   :  { %3879 = vmatprep.subr.bf16.mxu1 %v10240_v16 }
0x15e3   :  { %3880 = vmatpush1.bf16.msra.mxu1 %v10243_v40 }
0x15e4   :  { %3881 = vmatprep.subr.bf16.mxu1 %v10246_v43 }
0x15e7   :  { %3882 = vmatpush1.bf16.msra.mxu1 %v10249_v44 }
0x15e8   :  { %3883 = vmatprep.subr.bf16.mxu1 %v10252_v25 }
0x15eb   :  { %3884 = vmatpush1.bf16.msra.mxu1 %v10255_v18 }
0x15ec   :  { %3885 = vmatprep.subr.bf16.mxu1 %v10258_v55 }
0x15ef   :  { %3886 = vmatpush1.bf16.msra.mxu1 %v10261_v48 }
0x15f0   :  { %3887 = vmatprep.subr.bf16.mxu1 %v10264_v5 }
0x15f3   :  { %3888 = vmatpush1.bf16.msra.mxu1 %v10267_v51 }
0x15f4   :  { %3889 = vmatprep.subr.bf16.mxu1 %v10270_v10 }
0x15f7   :  { %3890 = vmatpush1.bf16.msra.mxu1 %v10273_v11 }
0x15f8   :  { %3956 = vmatprep.subr.bf16.mxu1 %v10276_v17 }
0x16ac   :  { %v10279_v19 = vpop.f32.mrb[64].mxu0  ;;  %v3743_v0 = vpop.f32.mrb[92].mxu1 }
0x16ad   :  { %11682 = vst [vmem:[#allocation28_spill] sm:$0xff] %v10279_v19  ;;  %v3749_v13 = vadd.f32 %v3743_v0, %v9606_v58  ;;  %v7038_v33 = vpop.f32.mrb[65].mxu0  ;;  %v7058_v32 = vpop.f32.mrb[93].mxu1  ;;  %v10389_v19 = vld [vmem:[#allocation17 + $0x50] ss:$12 sps:$4 sm:$0xff]  }
0x16ae   :  { %v3694_v34 = vpop.f32.mrb[66].mxu0  ;;  %v3746_v35 = vpop.f32.mrb[94].mxu1  ;;  %v10318_v33 = vld [vmem:[#allocation15 + $0x8] ss:$12 sps:$4 sm:$0xff]   ;;  %v10324_v32 = vld [vmem:[#allocation15 + $0x20] ss:$12 sps:$4 sm:$0xff]  }
0x16af   :  { %v7039_v36 = vpop.f32.mrb[67].mxu0  ;;  %v7059_v37 = vpop.f32.mrb[95].mxu1  ;;  %v3750_v38 = vsel %vm1713_vm1, %v3749_v13, -inf  ;;  %v10328_v34 = vld [vmem:[#allocation15 + $0x38] ss:$12 sps:$4 sm:$0xff]   ;;  %11689 = vst [vmem:[#allocation46_spill] sm:$0xff] %v10389_v19 }
0x16b0   :  { %3751 = vmax.xlane.f32.xlu0 %v3750_v38  ;;  %v10332_v35 = vld [vmem:[#allocation15 + $0x50] ss:$12 sps:$4 sm:$0xff]   ;;  %v10336_v36 = vld [vmem:[#allocation15 + $0x68] ss:$12 sps:$4 sm:$0xff]   ;;  %v10340_v37 = vld [vmem:[#allocation15 + $0x80] ss:$12 sps:$4 sm:$0xff]  }
0x16b1   :  { %v10344_v38 = vld [vmem:[#allocation15 + $0x98] ss:$12 sps:$4 sm:$0xff]  }
0x173d   :  { %v3752_v52 = vpop.xlane.xlu0 %3751 }
0x173e   :  { %v3753_v39 = vsub.f32 %v3749_v13, %v3752_v52  ;;  %v10348_v52 = vld [vmem:[#allocation15 + $0xb0] ss:$12 sps:$4 sm:$0xff]  }
0x1740   :  { %v3754_v15 = vmul.f32 1.442695, %v3753_v39 }
0x1742   :  { %7968 = vpow2.f32 %v3754_v15 }
0x174c   :  { %v7969_v12 = vpop.eup %7968 }
0x174d   :  { %v3756_v7 = vsel %vm1713_vm1, %v7969_v12, 0.0 }
0x174e   :  { %3757 = vadd.xlane.f32.xlu1 %v3756_v7 }
0x17db   :  { %v3758_v14 = vpop.xlane.xlu1 %3757 }
0x17dc   :  { %7970 = vrcp.f32 %v3758_v14 }
0x17e6   :  { %v7971_v9 = vpop.eup %7970 }
0x17e7   :  { %v3760_v63 = vmul.f32 %v7971_v9, %v7969_v12 }
0x17e9   :  { %7063 = vmatmul.mubr.f32.vlgmr.msra.gmra.mrb[42].mxu0 %v3760_v63 }
0x17ea   :  { %7066 = vmatpush3.bf16.msra.mxu0 %v10284_v8  ;;  %7081 = vmatprep.mubr.msk.bf16.mxu0 %vm8534_vm0, %v11544_v53 }
0x17eb   :  { %7067 = vmatprep.subr.bf16.mxu0 %v11544_v53 }
0x17ee   :  { %7068 = vmatpush3.bf16.msra.mxu0 %v10290_v22 }
0x17ef   :  { %7069 = vmatprep.subr.bf16.mxu0 %v11544_v53 }
0x17f2   :  { %7070 = vmatpush3.bf16.msra.mxu0 %v10294_v61 }
0x17f3   :  { %7071 = vmatprep.subr.bf16.mxu0 %v11544_v53 }
0x17f6   :  { %7072 = vmatpush3.bf16.msra.mxu0 %v10298_v59 }
0x17f7   :  { %7073 = vmatprep.subr.bf16.mxu0 %v11544_v53 }
0x17fa   :  { %7074 = vmatpush3.bf16.msra.mxu0 %v10302_v30 }
0x17fb   :  { %7075 = vmatprep.subr.bf16.mxu0 %v11544_v53 }
0x17fe   :  { %7076 = vmatpush3.bf16.msra.mxu0 %v10306_v27 }
0x17ff   :  { %7077 = vmatprep.subr.bf16.mxu0 %v11544_v53 }
0x1802   :  { %7078 = vmatpush3.bf16.msra.mxu0 %v10310_v26 }
0x1803   :  { %7079 = vmatprep.subr.bf16.mxu0 %v11544_v53 }
0x1806   :  { %7080 = vmatpush3.bf16.msra.mxu0 %v10314_v21 }
0x1807   :  { %7085 = vmatprep.subr.bf16.mxu0 %v11544_v53 }
0x18bc   :  { %v3827_v60 = vpop.f32.mrb[42].mxu0 }
0x18bd   :  { %v3831_v0 = vpack.c.bf16 %v3827_v60, %v3827_v60  ;;  %v7064_v13 = vpop.f32.mrb[43].mxu0  ;;  %v10353_v60 = vld [vmem:[#allocation17] ss:$12 sps:$4 sm:$0xff]  }
0x18be   :  { %v10359_v13 = vld [vmem:[#allocation17 + $0x1c] ss:$12 sps:$4 sm:$0xff]  }
0x18bf   :  { %7082 = vmatmul.mubr.bf16.vlgmr.msra.gmra.mrb[68].mxu0 %v3831_v0  ;;  %v10356_v0 = vld [vmem:[#allocation17 + $0x8] ss:$12 sps:$4 sm:$0xff]  }
0x18c0   :  { %7086 = vmatpush3.bf16.msra.mxu0 %v10318_v33  ;;  %7101 = vmatprep.mubr.msk.bf16.mxu0 %vm8534_vm0, %v11544_v53 }
0x18c1   :  { %7087 = vmatprep.subr.bf16.mxu0 %v11544_v53 }
0x18c4   :  { %7088 = vmatpush3.bf16.msra.mxu0 %v10324_v32 }
0x18c5   :  { %7089 = vmatprep.subr.bf16.mxu0 %v11544_v53 }
0x18c8   :  { %7090 = vmatpush3.bf16.msra.mxu0 %v10328_v34 }
0x18c9   :  { %7091 = vmatprep.subr.bf16.mxu0 %v11544_v53 }
0x18cc   :  { %7092 = vmatpush3.bf16.msra.mxu0 %v10332_v35 }
0x18cd   :  { %7093 = vmatprep.subr.bf16.mxu0 %v11544_v53 }
0x18d0   :  { %7094 = vmatpush3.bf16.msra.mxu0 %v10336_v36 }
0x18d1   :  { %7095 = vmatprep.subr.bf16.mxu0 %v11544_v53 }
0x18d4   :  { %7096 = vmatpush3.bf16.msra.mxu0 %v10340_v37 }
0x18d5   :  { %7097 = vmatprep.subr.bf16.mxu0 %v11544_v53 }
0x18d8   :  { %7098 = vmatpush3.bf16.msra.mxu0 %v10344_v38 }
0x18d9   :  { %7099 = vmatprep.subr.bf16.mxu0 %v11544_v53 }
0x18dc   :  { %7100 = vmatpush3.bf16.msra.mxu0 %v10348_v52 }
0x18dd   :  { %7105 = vmatprep.subr.bf16.mxu0 %v11544_v53 }
0x1992   :  { %v3866_v39 = vpop.f32.mrb[68].mxu0 }
0x1993   :  { %v3872_v15 = vadd.f32 %v3866_v39, %v9736_v46  ;;  %v7083_v12 = vpop.f32.mrb[69].mxu0  ;;  %v10366_v39 = vld [vmem:[#allocation17 + $0x18] ss:$12 sps:$4 sm:$0xff]  }
0x1994   :  { %v3869_v7 = vpop.f32.mrb[70].mxu0  ;;  %v10372_v12 = vld [vmem:[#allocation17 + $0x34] ss:$12 sps:$4 sm:$0xff]  }
0x1995   :  { %v3873_v14 = vmax.f32 %v3872_v15, 0.0  ;;  %v7084_v9 = vpop.f32.mrb[71].mxu0  ;;  %v10369_v15 = vld [vmem:[#allocation17 + $0x20] ss:$12 sps:$4 sm:$0xff]   ;;  %11684 = vst [vmem:[#allocation41_spill] sm:$0xff] %v10372_v12 }
0x1996   :  { %11683 = vst [vmem:[#allocation37_spill] sm:$0xff] %v10369_v15  ;;  %v10376_v7 = vld [vmem:[#allocation17 + $0x30] ss:$12 sps:$4 sm:$0xff]   ;;  %v10382_v9 = vld [vmem:[#allocation17 + $0x4c] ss:$12 sps:$4 sm:$0xff]  }
0x1997   :  { %v3874_v63 = vpack.c.bf16 %v3873_v14, %v3873_v14  ;;  %11685 = vst [vmem:[#allocation42_spill] sm:$0xff] %v10376_v7  ;;  %v10379_v14 = vld [vmem:[#allocation17 + $0x38] ss:$12 sps:$4 sm:$0xff]   ;;  %11687 = vst [vmem:[#allocation44_spill] sm:$0xff] %v10382_v9 }
0x1998   :  { %11686 = vst [vmem:[#allocation43_spill] sm:$0xff] %v10379_v14 }
0x1999   :  { %3908 = vmatmul.mubr.bf16.vlgmr.msra.gmra.mrb[96].mxu1 %v3874_v63  ;;  %7102 = vmatmul.mubr.bf16.vlgmr.msra.gmra.mrb[72].mxu0 %v3874_v63  ;;  %v10386_v63 = vld [vmem:[#allocation17 + $0x48] ss:$12 sps:$4 sm:$0xff]  }
0x199a   :  { %3957 = vmatpush1.bf16.msra.mxu1 %v10353_v60  ;;  %7106 = vmatpush3.bf16.msra.mxu0 %v10356_v0  ;;  %11688 = vst [vmem:[#allocation45_spill] sm:$0xff] %v10386_v63 }
0x199b   :  { %3958 = vmatprep.subr.bf16.mxu1 %v10359_v13  ;;  %7107 = vmatprep.subr.bf16.mxu0 %v11544_v53 }
0x199c   :  { %3988 = vmatprep.mubr.bf16.mxu1 %v11545_v54  ;;  %7121 = vmatprep.mubr.msk.bf16.mxu0 %vm8534_vm0, %v11544_v53 }
0x199e   :  { %3959 = vmatpush1.bf16.msra.mxu1 %v10366_v39  ;;  %7108 = vmatpush3.bf16.msra.mxu0 %v10369_v15 }
0x199f   :  { %3960 = vmatprep.subr.bf16.mxu1 %v10372_v12  ;;  %7109 = vmatprep.subr.bf16.mxu0 %v11544_v53 }
0x19a2   :  { %3961 = vmatpush1.bf16.msra.mxu1 %v10376_v7  ;;  %7110 = vmatpush3.bf16.msra.mxu0 %v10379_v14  ;;  %v10396_v14 = vld [vmem:[#allocation17 + $0x60] ss:$12 sps:$4 sm:$0xff]   ;;  %v10402_v7 = vld [vmem:[#allocation17 + $0x7c] ss:$12 sps:$4 sm:$0xff]  }
0x19a3   :  { %3962 = vmatprep.subr.bf16.mxu1 %v10382_v9  ;;  %7111 = vmatprep.subr.bf16.mxu0 %v11544_v53  ;;  %11691 = vst [vmem:[#allocation48_spill] sm:$0xff] %v10396_v14  ;;  %v10399_v9 = vld [vmem:[#allocation17 + $0x68] ss:$12 sps:$4 sm:$0xff]   ;;  %11693 = vst [vmem:[#allocation50_spill] sm:$0xff] %v10402_v7 }
0x19a4   :  { %11692 = vst [vmem:[#allocation49_spill] sm:$0xff] %v10399_v9 }
0x19a6   :  { %3963 = vmatpush1.bf16.msra.mxu1 %v10386_v63  ;;  %7112 = vmatpush3.bf16.msra.mxu0 %v10389_v19  ;;  %v10406_v19 = vld [vmem:[#allocation17 + $0x78] ss:$12 sps:$4 sm:$0xff]   ;;  %v10412_v63 = vld [vmem:[#allocation17 + $0x94] ss:$12 sps:$4 sm:$0xff]  }
0x19a7   :  { %3964 = vmatprep.subr.bf16.mxu1 %v10392_v41  ;;  %7113 = vmatprep.subr.bf16.mxu0 %v11544_v53  ;;  %11694 = vst [vmem:[#allocation51_spill] sm:$0xff] %v10406_v19  ;;  %v10409_v41 = vld [vmem:[#allocation17 + $0x80] ss:$12 sps:$4 sm:$0xff]   ;;  %11696 = vst [vmem:[#allocation53_spill] sm:$0xff] %v10412_v63 }
0x19a8   :  { %11695 = vst [vmem:[#allocation52_spill] sm:$0xff] %v10409_v41 }
0x19aa   :  { %3965 = vmatpush1.bf16.msra.mxu1 %v10396_v14  ;;  %7114 = vmatpush3.bf16.msra.mxu0 %v10399_v9  ;;  %v10416_v9 = vld [vmem:[#allocation17 + $0x90] ss:$12 sps:$4 sm:$0xff]   ;;  %v10422_v14 = vld [vmem:[#allocation17 + $0xac] ss:$12 sps:$4 sm:$0xff]  }
0x19ab   :  { %3966 = vmatprep.subr.bf16.mxu1 %v10402_v7  ;;  %7115 = vmatprep.subr.bf16.mxu0 %v11544_v53  ;;  %11697 = vst [vmem:[#allocation54_spill] sm:$0xff] %v10416_v9  ;;  %v10419_v7 = vld [vmem:[#allocation17 + $0x98] ss:$12 sps:$4 sm:$0xff]   ;;  %11699 = vst [vmem:[#allocation56_spill] sm:$0xff] %v10422_v14 }
0x19ac   :  { %11698 = vst [vmem:[#allocation55_spill] sm:$0xff] %v10419_v7 }
0x19ae   :  { %3967 = vmatpush1.bf16.msra.mxu1 %v10406_v19  ;;  %7116 = vmatpush3.bf16.msra.mxu0 %v10409_v41  ;;  %v10426_v41 = vld [vmem:[#allocation17 + $0xa8] ss:$12 sps:$4 sm:$0xff]  }
0x19af   :  { %3968 = vmatprep.subr.bf16.mxu1 %v10412_v63  ;;  %7117 = vmatprep.subr.bf16.mxu0 %v11544_v53  ;;  %11700 = vst [vmem:[#allocation57_spill] sm:$0xff] %v10426_v41  ;;  %v10429_v63 = vld [vmem:[#allocation17 + $0xb0] ss:$12 sps:$4 sm:$0xff]  }
0x19b0   :  { %11701 = vst [vmem:[#allocation58_spill] sm:$0xff] %v10429_v63 }
0x19b2   :  { %3969 = vmatpush1.bf16.msra.mxu1 %v10416_v9  ;;  %7118 = vmatpush3.bf16.msra.mxu0 %v10419_v7  ;;  %v10436_v7 = vld [vmem:[#allocation18] sm:$0xff]  }
0x19b3   :  { %3970 = vmatprep.subr.bf16.mxu1 %v10422_v14  ;;  %7119 = vmatprep.subr.bf16.mxu0 %v11544_v53  ;;  %11702 = vst [vmem:[#allocation59_spill] sm:$0xff] %v10436_v7 }
0x19b6   :  { %3971 = vmatpush1.bf16.msra.mxu1 %v10426_v41  ;;  %7120 = vmatpush3.bf16.msra.mxu0 %v10429_v63  ;;  %v10446_v63 = vld [vmem:[#allocation18 + $0x8] sm:$0xff]  }
0x19b7   :  { %7125 = vmatprep.subr.bf16.mxu1 %v11544_v53  ;;  %7145 = vmatprep.subr.bf16.mxu0 %v11544_v53  ;;  %11703 = vst [vmem:[#allocation60_spill] sm:$0xff] %v10446_v63 }
0x19b9   :  { %3989 = vmatmul.mubr.bf16.vlgmr.msra.gmra.mrb[96].mxu1 %v10221_v56  ;;  %7122 = vmatmul.mubr.bf16.vlgmr.msra.gmra.mrb[76].mxu0 %v10221_v56  ;;  %v10452_v56 = vld [vmem:[#allocation18 + $0x10] sm:$0xff]  }
0x19ba   :  { %7126 = vmatpush3.bf16.msra.mxu1 %v10436_v7  ;;  %7146 = vmatpush3.bf16.msra.mxu0 %v10159_v24  ;;  %11704 = vst [vmem:[#allocation61_spill] sm:$0xff] %v10452_v56  ;;  %v10458_v24 = vld [vmem:[#allocation18 + $0x18] sm:$0xff]  }
0x19bb   :  { %7127 = vmatprep.subr.bf16.mxu1 %v11544_v53  ;;  %7147 = vmatprep.subr.bf16.mxu0 %v11544_v53  ;;  %11705 = vst [vmem:[#allocation62_spill] sm:$0xff] %v10458_v24 }
0x19bc   :  { %7141 = vmatprep.mubr.msk.bf16.mxu1 %vm8534_vm0, %v11544_v53  ;;  %7161 = vmatprep.mubr.msk.bf16.mxu0 %vm8534_vm0, %v11544_v53 }
0x19be   :  { %7128 = vmatpush3.bf16.msra.mxu1 %v10446_v63  ;;  %7148 = vmatpush3.bf16.msra.mxu0 %v10169_v57  ;;  %v10464_v57 = vld [vmem:[#allocation18 + $0x20] sm:$0xff]  }
0x19bf   :  { %7129 = vmatprep.subr.bf16.mxu1 %v11544_v53  ;;  %7149 = vmatprep.subr.bf16.mxu0 %v11544_v53  ;;  %11706 = vst [vmem:[#allocation63_spill] sm:$0xff] %v10464_v57 }
0x19c2   :  { %7130 = vmatpush3.bf16.msra.mxu1 %v10452_v56  ;;  %7150 = vmatpush3.bf16.msra.mxu0 %v10175_v20  ;;  %v10470_v20 = vld [vmem:[#allocation18 + $0x28] sm:$0xff]  }
0x19c3   :  { %7131 = vmatprep.subr.bf16.mxu1 %v11544_v53  ;;  %7151 = vmatprep.subr.bf16.mxu0 %v11544_v53  ;;  %11707 = vst [vmem:[#allocation64_spill] sm:$0xff] %v10470_v20 }
0x19c6   :  { %7132 = vmatpush3.bf16.msra.mxu1 %v10458_v24  ;;  %7152 = vmatpush3.bf16.msra.mxu0 %v10181_v42  ;;  %v10476_v42 = vld [vmem:[#allocation18 + $0x30] sm:$0xff]  }
0x19c7   :  { %7133 = vmatprep.subr.bf16.mxu1 %v11544_v53  ;;  %7153 = vmatprep.subr.bf16.mxu0 %v11544_v53  ;;  %11708 = vst [vmem:[#allocation65_spill] sm:$0xff] %v10476_v42 }
0x19ca   :  { %7134 = vmatpush3.bf16.msra.mxu1 %v10464_v57  ;;  %7154 = vmatpush3.bf16.msra.mxu0 %v10187_v45  ;;  %v10482_v45 = vld [vmem:[#allocation18 + $0x38] sm:$0xff]  }
0x19cb   :  { %7135 = vmatprep.subr.bf16.mxu1 %v11544_v53  ;;  %7155 = vmatprep.subr.bf16.mxu0 %v11544_v53  ;;  %11709 = vst [vmem:[#allocation66_spill] sm:$0xff] %v10482_v45 }
0x19ce   :  { %7136 = vmatpush3.bf16.msra.mxu1 %v10470_v20  ;;  %7156 = vmatpush3.bf16.msra.mxu0 %v10193_v3 }
0x19cf   :  { %7137 = vmatprep.subr.bf16.mxu1 %v11544_v53  ;;  %7157 = vmatprep.subr.bf16.mxu0 %v11544_v53 }
0x19d2   :  { %7138 = vmatpush3.bf16.msra.mxu1 %v10476_v42  ;;  %7158 = vmatpush3.bf16.msra.mxu0 %v10199_v28 }
0x19d3   :  { %7139 = vmatprep.subr.bf16.mxu1 %v11544_v53  ;;  %7159 = vmatprep.subr.bf16.mxu0 %v11544_v53 }
0x19d6   :  { %7140 = vmatpush3.bf16.msra.mxu1 %v10482_v45  ;;  %7160 = vmatpush3.bf16.msra.mxu0 %v10205_v31 }
0x19d7   :  { %7165 = vmatprep.subr.mxu1 %v11544_v53  ;;  %4277 = vmatprep.subr.bf16.mxu0 %v10209_v50 }
0x1a6c   :  { %v3950_v3 = vpop.f32.mrb[72].mxu0 }
0x1a6d   :  { %v7103_v20 = vpop.f32.mrb[73].mxu0 }
0x1a6e   :  { %v3953_v57 = vpop.f32.mrb[74].mxu0 }
0x1a6f   :  { %v7104_v42 = vpop.f32.mrb[75].mxu0 }
0x1a8c   :  { %v3990_v24 = vpop.f32.mrb[96].mxu1  ;;  %v4031_v28 = vpop.f32.mrb[76].mxu0 }
0x1a8d   :  { %v7602_v56 = vadd.f32 %v9884_v23, %v3990_v24  ;;  %v3992_v63 = vpop.f32.mrb[97].mxu1  ;;  %v7123_v7 = vpop.f32.mrb[77].mxu0  ;;  %v4032_v15 = vadd.f32 %v4031_v28, %v9891_v2 }
0x1a8e   :  { %v3994_v41 = vpop.f32.mrb[98].mxu1  ;;  %v4034_v14 = vpop.f32.mrb[78].mxu0  ;;  %v7604_v31 = vadd.f32 %v9886_v49, %v3992_v63  ;;  %v3951_v7 = vadd.f32 %v3950_v3, %v9894_v47 }
0x1a8f   :  { %v5925_v9 = vmul.f32 -1.442695, %v7602_v56  ;;  %v3995_v45 = vpop.f32.mrb[99].mxu1  ;;  %v7124_v19 = vpop.f32.mrb[79].mxu0 }
0x1a90   :  { %v5926_v12 = vmul.f32 -1.442695, %v7604_v31 }
0x1a91   :  { %7972 = vpow2.f32 %v5925_v9 }
0x1a92   :  { %7974 = vpow2.f32 %v5926_v12 }
0x1a9b   :  { %v7973_v50 = vpop.eup %7972 }
0x1a9c   :  { %v4041_v20 = vadd.f32 1.0, %v7973_v50  ;;  %v7975_v57 = vpop.eup %7974 }
0x1a9d   :  { %v4048_v42 = vadd.f32 1.0, %v7975_v57 }
0x1a9e   :  { %7976 = vrcp.f32 %v4041_v20 }
0x1a9f   :  { %7978 = vrcp.f32 %v4048_v42 }
0x1aa8   :  { %v7977_v24 = vpop.eup %7976 }
0x1aa9   :  { %v4051_v41 = vmul.f32 %v7977_v24, %v4032_v15  ;;  %v7979_v45 = vpop.eup %7978 }
0x1aaa   :  { %v4054_v19 = vsub.f32 1.0, %v7979_v45  ;;  %v4056_v31 = vmul.f32 %v7979_v45, %v10217_v6 }
0x1aab   :  { %v4052_v14 = vadd.f32 %v4051_v41, %v3951_v7 }
0x1aad   :  { %7980 = vtanh.f32 %v4052_v14 }
0x1ab7   :  { %v7981_v63 = vpop.eup %7980 }
0x1ab8   :  { %v4055_v9 = vmul.f32 %v7981_v63, %v4054_v19 }
0x1aba   :  { %v10493_v12 = vadd.f32 %v4056_v31, %v4055_v9 }
0x1abc   :  { %v10497_v50 = vpack.c.bf16 %v10493_v12, %v10493_v12 }
0x1abe   :  { %7142 = vmatmul.mubr.bf16.vlgmr.msra.gmra.mrb[100].mxu1 %v10497_v50  ;;  %7162 = vmatmul.mubr.bf16.vlgmr.msra.gmra.mrb[80].mxu0 %v10497_v50 }
0x1abf   :  { %7166 = vmatpush3.msk.msra.mxu1 %vm1725_vm7, %v9597_v4  ;;  %7167 = vmatprep.mubr.msk.f32.mxu1 %vm8534_vm0, %v11544_v53 }
0x1ac0   :  { %7170 = vmatprep.subr.bf16.mxu1 %v11544_v53  ;;  %4278 = vmatpush1.bf16.msra.mxu0 %v10230_v1 }
0x1ac1   :  { %4279 = vmatprep.subr.bf16.mxu0 %v10233_v62  ;;  %4309 = vmatprep.mubr.bf16.mxu0 %v11545_v54 }
0x1ac4   :  { %4280 = vmatpush1.bf16.msra.mxu0 %v10237_v29 }
0x1ac5   :  { %4281 = vmatprep.subr.bf16.mxu0 %v10240_v16 }
0x1ac8   :  { %4282 = vmatpush1.bf16.msra.mxu0 %v10243_v40 }
0x1ac9   :  { %4283 = vmatprep.subr.bf16.mxu0 %v10246_v43 }
0x1acc   :  { %4284 = vmatpush1.bf16.msra.mxu0 %v10249_v44 }
0x1acd   :  { %4285 = vmatprep.subr.bf16.mxu0 %v10252_v25 }
0x1ad0   :  { %4286 = vmatpush1.bf16.msra.mxu0 %v10255_v18 }
0x1ad1   :  { %4287 = vmatprep.subr.bf16.mxu0 %v10258_v55 }
0x1ad4   :  { %4288 = vmatpush1.bf16.msra.mxu0 %v10261_v48 }
0x1ad5   :  { %4289 = vmatprep.subr.bf16.mxu0 %v10264_v5 }
0x1ad8   :  { %4290 = vmatpush1.bf16.msra.mxu0 %v10267_v51 }
0x1ad9   :  { %4291 = vmatprep.subr.bf16.mxu0 %v10270_v10 }
0x1adc   :  { %4292 = vmatpush1.bf16.msra.mxu0 %v10273_v11 }
0x1add   :  { %4358 = vmatprep.subr.bf16.mxu0 %v10276_v17 }
0x1b91   :  { %v10523_v3 = vpop.f32.mrb[100].mxu1  ;;  %v4145_v28 = vpop.f32.mrb[80].mxu0 }
0x1b92   :  { %11710 = vst [vmem:[#allocation67_spill] sm:$0xff] %v10523_v3  ;;  %v4151_v6 = vadd.f32 %v4145_v28, %v9606_v58  ;;  %v7143_v15 = vpop.f32.mrb[101].mxu1  ;;  %v7163_v56 = vpop.f32.mrb[81].mxu0  ;;  %v11727_v3 = vld [vmem:[#allocation56_spill] sm:$0xff] }
0x1b93   :  { %v4096_v20 = vpop.f32.mrb[102].mxu1  ;;  %v4148_v57 = vpop.f32.mrb[82].mxu0 }
0x1b94   :  { %v7144_v42 = vpop.f32.mrb[103].mxu1  ;;  %v7164_v24 = vpop.f32.mrb[83].mxu0  ;;  %v4152_v7 = vsel %vm1713_vm1, %v4151_v6, -inf }
0x1b95   :  { %4153 = vmax.xlane.f32.xlu0 %v4152_v7 }
0x1c22   :  { %v4154_v41 = vpop.xlane.xlu0 %4153 }
0x1c23   :  { %v4155_v14 = vsub.f32 %v4151_v6, %v4154_v41 }
0x1c25   :  { %v4156_v45 = vmul.f32 1.442695, %v4155_v14 }
0x1c27   :  { %7982 = vpow2.f32 %v4156_v45  ;;  %v11711_v45 = vld [vmem:[#allocation37_spill] sm:$0xff] }
0x1c31   :  { %v7983_v19 = vpop.eup %7982 }
0x1c32   :  { %v4158_v63 = vsel %vm1713_vm1, %v7983_v19, 0.0 }
0x1c33   :  { %4159 = vadd.xlane.f32.xlu1 %v4158_v63  ;;  %v11713_v63 = vld [vmem:[#allocation42_spill] sm:$0xff] }
0x1cc0   :  { %v4160_v9 = vpop.xlane.xlu1 %4159 }
0x1cc1   :  { %7984 = vrcp.f32 %v4160_v9  ;;  %v11714_v9 = vld [vmem:[#allocation43_spill] sm:$0xff] }
0x1ccb   :  { %v7985_v31 = vpop.eup %7984 }
0x1ccc   :  { %v4162_v28 = vmul.f32 %v7985_v31, %v7983_v19  ;;  %v11712_v19 = vld [vmem:[#allocation41_spill] sm:$0xff]  ;;  %v11715_v31 = vld [vmem:[#allocation44_spill] sm:$0xff] }
0x1cce   :  { %7168 = vmatmul.mubr.f32.vlgmr.msra.gmra.mrb[104].mxu1 %v4162_v28  ;;  %v11716_v28 = vld [vmem:[#allocation45_spill] sm:$0xff] }
0x1ccf   :  { %7171 = vmatpush3.bf16.msra.mxu1 %v10284_v8  ;;  %7186 = vmatprep.mubr.msk.bf16.mxu1 %vm8534_vm0, %v11544_v53 }
0x1cd0   :  { %7172 = vmatprep.subr.bf16.mxu1 %v11544_v53 }
0x1cd3   :  { %7173 = vmatpush3.bf16.msra.mxu1 %v10290_v22 }
0x1cd4   :  { %7174 = vmatprep.subr.bf16.mxu1 %v11544_v53 }
0x1cd7   :  { %7175 = vmatpush3.bf16.msra.mxu1 %v10294_v61 }
0x1cd8   :  { %7176 = vmatprep.subr.bf16.mxu1 %v11544_v53 }
0x1cdb   :  { %7177 = vmatpush3.bf16.msra.mxu1 %v10298_v59 }
0x1cdc   :  { %7178 = vmatprep.subr.bf16.mxu1 %v11544_v53 }
0x1cdf   :  { %7179 = vmatpush3.bf16.msra.mxu1 %v10302_v30 }
0x1ce0   :  { %7180 = vmatprep.subr.bf16.mxu1 %v11544_v53 }
0x1ce3   :  { %7181 = vmatpush3.bf16.msra.mxu1 %v10306_v27 }
0x1ce4   :  { %7182 = vmatprep.subr.bf16.mxu1 %v11544_v53 }
0x1ce7   :  { %7183 = vmatpush3.bf16.msra.mxu1 %v10310_v26 }
0x1ce8   :  { %7184 = vmatprep.subr.bf16.mxu1 %v11544_v53 }
0x1ceb   :  { %7185 = vmatpush3.bf16.msra.mxu1 %v10314_v21 }
0x1cec   :  { %7190 = vmatprep.subr.bf16.mxu1 %v11544_v53 }
0x1da1   :  { %v4229_v6 = vpop.f32.mrb[104].mxu1 }
0x1da2   :  { %v4233_v15 = vpack.c.bf16 %v4229_v6, %v4229_v6  ;;  %v7169_v56 = vpop.f32.mrb[105].mxu1  ;;  %v11717_v6 = vld [vmem:[#allocation46_spill] sm:$0xff] }
0x1da3   :  { %v11719_v56 = vld [vmem:[#allocation48_spill] sm:$0xff] }
0x1da4   :  { %7187 = vmatmul.mubr.bf16.vlgmr.msra.gmra.mrb[108].mxu1 %v4233_v15  ;;  %v11718_v15 = vld [vmem:[#allocation47_spill] sm:$0xff] }
0x1da5   :  { %7191 = vmatpush3.bf16.msra.mxu1 %v10318_v33  ;;  %7206 = vmatprep.mubr.msk.bf16.mxu1 %vm8534_vm0, %v11544_v53 }
0x1da6   :  { %7192 = vmatprep.subr.bf16.mxu1 %v11544_v53 }
0x1da9   :  { %7193 = vmatpush3.bf16.msra.mxu1 %v10324_v32 }
0x1daa   :  { %7194 = vmatprep.subr.bf16.mxu1 %v11544_v53 }
0x1dad   :  { %7195 = vmatpush3.bf16.msra.mxu1 %v10328_v34 }
0x1dae   :  { %7196 = vmatprep.subr.bf16.mxu1 %v11544_v53 }
0x1db1   :  { %7197 = vmatpush3.bf16.msra.mxu1 %v10332_v35 }
0x1db2   :  { %7198 = vmatprep.subr.bf16.mxu1 %v11544_v53 }
0x1db5   :  { %7199 = vmatpush3.bf16.msra.mxu1 %v10336_v36 }
0x1db6   :  { %7200 = vmatprep.subr.bf16.mxu1 %v11544_v53 }
0x1db9   :  { %7201 = vmatpush3.bf16.msra.mxu1 %v10340_v37 }
0x1dba   :  { %7202 = vmatprep.subr.bf16.mxu1 %v11544_v53 }
0x1dbd   :  { %7203 = vmatpush3.bf16.msra.mxu1 %v10344_v38 }
0x1dbe   :  { %7204 = vmatprep.subr.bf16.mxu1 %v11544_v53 }
0x1dc1   :  { %7205 = vmatpush3.bf16.msra.mxu1 %v10348_v52 }
0x1dc2   :  { %7210 = vmatprep.subr.bf16.mxu1 %v11544_v53 }
0x1e77   :  { %v4268_v20 = vpop.f32.mrb[108].mxu1 }
0x1e78   :  { %v4274_v57 = vadd.f32 %v4268_v20, %v9736_v46  ;;  %v7188_v42 = vpop.f32.mrb[109].mxu1  ;;  %v11720_v20 = vld [vmem:[#allocation49_spill] sm:$0xff] }
0x1e79   :  { %v4271_v24 = vpop.f32.mrb[110].mxu1  ;;  %v11722_v42 = vld [vmem:[#allocation51_spill] sm:$0xff] }
0x1e7a   :  { %v4275_v7 = vmax.f32 %v4274_v57, 0.0  ;;  %v7189_v41 = vpop.f32.mrb[111].mxu1  ;;  %v11721_v57 = vld [vmem:[#allocation50_spill] sm:$0xff]  ;;  %v11723_v24 = vld [vmem:[#allocation52_spill] sm:$0xff] }
0x1e7b   :  { %v11725_v41 = vld [vmem:[#allocation54_spill] sm:$0xff] }
0x1e7c   :  { %v4276_v14 = vpack.c.bf16 %v4275_v7, %v4275_v7  ;;  %v11724_v7 = vld [vmem:[#allocation53_spill] sm:$0xff] }
0x1e7e   :  { %4310 = vmatmul.mubr.bf16.vlgmr.msra.gmra.mrb[84].mxu0 %v4276_v14  ;;  %7207 = vmatmul.mubr.bf16.vlgmr.msra.gmra.mrb[112].mxu1 %v4276_v14  ;;  %v11726_v14 = vld [vmem:[#allocation55_spill] sm:$0xff] }
0x1e7f   :  { %4359 = vmatpush1.bf16.msra.mxu0 %v10353_v60  ;;  %7211 = vmatpush3.bf16.msra.mxu1 %v10356_v0 }
0x1e80   :  { %4360 = vmatprep.subr.bf16.mxu0 %v10359_v13  ;;  %7212 = vmatprep.subr.bf16.mxu1 %v11544_v53 }
0x1e81   :  { %4390 = vmatprep.mubr.bf16.mxu0 %v11545_v54  ;;  %7226 = vmatprep.mubr.msk.bf16.mxu1 %vm8534_vm0, %v11544_v53 }
0x1e83   :  { %4361 = vmatpush1.bf16.msra.mxu0 %v10366_v39  ;;  %7213 = vmatpush3.bf16.msra.mxu1 %v11711_v45 }
0x1e84   :  { %4362 = vmatprep.subr.bf16.mxu0 %v11712_v19  ;;  %7214 = vmatprep.subr.bf16.mxu1 %v11544_v53 }
0x1e87   :  { %4363 = vmatpush1.bf16.msra.mxu0 %v11713_v63  ;;  %7215 = vmatpush3.bf16.msra.mxu1 %v11714_v9 }
0x1e88   :  { %4364 = vmatprep.subr.bf16.mxu0 %v11715_v31  ;;  %7216 = vmatprep.subr.bf16.mxu1 %v11544_v53 }
0x1e8b   :  { %4365 = vmatpush1.bf16.msra.mxu0 %v11716_v28  ;;  %7217 = vmatpush3.bf16.msra.mxu1 %v11717_v6 }
0x1e8c   :  { %4366 = vmatprep.subr.bf16.mxu0 %v11718_v15  ;;  %7218 = vmatprep.subr.bf16.mxu1 %v11544_v53 }
0x1e8f   :  { %4367 = vmatpush1.bf16.msra.mxu0 %v11719_v56  ;;  %7219 = vmatpush3.bf16.msra.mxu1 %v11720_v20  ;;  %v11728_v20 = vld [vmem:[#allocation57_spill] sm:$0xff] }
0x1e90   :  { %4368 = vmatprep.subr.bf16.mxu0 %v11721_v57  ;;  %7220 = vmatprep.subr.bf16.mxu1 %v11544_v53  ;;  %v11729_v57 = vld [vmem:[#allocation58_spill] sm:$0xff] }
0x1e93   :  { %4369 = vmatpush1.bf16.msra.mxu0 %v11722_v42  ;;  %7221 = vmatpush3.bf16.msra.mxu1 %v11723_v24 }
0x1e94   :  { %4370 = vmatprep.subr.bf16.mxu0 %v11724_v7  ;;  %7222 = vmatprep.subr.bf16.mxu1 %v11544_v53  ;;  %v11730_v7 = vld [vmem:[#allocation59_spill] sm:$0xff] }
0x1e97   :  { %4371 = vmatpush1.bf16.msra.mxu0 %v11725_v41  ;;  %7223 = vmatpush3.bf16.msra.mxu1 %v11726_v14  ;;  %v11731_v41 = vld [vmem:[#allocation36_spill] sm:$0xff] }
0x1e98   :  { %4372 = vmatprep.subr.bf16.mxu0 %v11727_v3  ;;  %7224 = vmatprep.subr.bf16.mxu1 %v11544_v53  ;;  %v11737_v3 = vld [vmem:[#allocation30_spill] sm:$0xff] }
0x1e9b   :  { %4373 = vmatpush1.bf16.msra.mxu0 %v11728_v20  ;;  %7225 = vmatpush3.bf16.msra.mxu1 %v11729_v57  ;;  %v11732_v57 = vld [vmem:[#allocation60_spill] sm:$0xff]  ;;  %v11733_v20 = vld [vmem:[#allocation29_spill] sm:$0xff] }
0x1e9c   :  { %7230 = vmatprep.subr.bf16.mxu0 %v11544_v53  ;;  %7250 = vmatprep.subr.bf16.mxu1 %v11544_v53 }
0x1e9e   :  { %4391 = vmatmul.mubr.bf16.vlgmr.msra.gmra.mrb[84].mxu0 %v10497_v50  ;;  %7227 = vmatmul.mubr.bf16.vlgmr.msra.gmra.mrb[116].mxu1 %v10497_v50  ;;  %v11734_v50 = vld [vmem:[#allocation61_spill] sm:$0xff] }
0x1e9f   :  { %7231 = vmatpush3.bf16.msra.mxu0 %v11730_v7  ;;  %7251 = vmatpush3.bf16.msra.mxu1 %v11731_v41  ;;  %v11735_v41 = vld [vmem:[#allocation32_spill] sm:$0xff]  ;;  %v11736_v7 = vld [vmem:[#allocation62_spill] sm:$0xff] }
0x1ea0   :  { %7232 = vmatprep.subr.bf16.mxu0 %v11544_v53  ;;  %7252 = vmatprep.subr.bf16.mxu1 %v11544_v53 }
0x1ea1   :  { %7246 = vmatprep.mubr.msk.bf16.mxu0 %vm8534_vm0, %v11544_v53  ;;  %7266 = vmatprep.mubr.msk.bf16.mxu1 %vm8534_vm0, %v11544_v53 }
0x1ea3   :  { %7233 = vmatpush3.bf16.msra.mxu0 %v11732_v57  ;;  %7253 = vmatpush3.bf16.msra.mxu1 %v11733_v20  ;;  %v11738_v20 = vld [vmem:[#allocation63_spill] sm:$0xff] }
0x1ea4   :  { %7234 = vmatprep.subr.bf16.mxu0 %v11544_v53  ;;  %7254 = vmatprep.subr.bf16.mxu1 %v11544_v53  ;;  %v11739_v57 = vld [vmem:[#allocation31_spill] sm:$0xff] }
0x1ea7   :  { %7235 = vmatpush3.bf16.msra.mxu0 %v11734_v50  ;;  %7255 = vmatpush3.bf16.msra.mxu1 %v11735_v41  ;;  %v11740_v41 = vld [vmem:[#allocation64_spill] sm:$0xff]  ;;  %v11741_v50 = vld [vmem:[#allocation33_spill] sm:$0xff] }
0x1ea8   :  { %7236 = vmatprep.subr.bf16.mxu0 %v11544_v53  ;;  %7256 = vmatprep.subr.bf16.mxu1 %v11544_v53 }
0x1eab   :  { %7237 = vmatpush3.bf16.msra.mxu0 %v11736_v7  ;;  %7257 = vmatpush3.bf16.msra.mxu1 %v11737_v3  ;;  %v11742_v3 = vld [vmem:[#allocation65_spill] sm:$0xff]  ;;  %v11743_v7 = vld [vmem:[#allocation38_spill] sm:$0xff] }
0x1eac   :  { %7238 = vmatprep.subr.bf16.mxu0 %v11544_v53  ;;  %7258 = vmatprep.subr.bf16.mxu1 %v11544_v53 }
0x1eaf   :  { %7239 = vmatpush3.bf16.msra.mxu0 %v11738_v20  ;;  %7259 = vmatpush3.bf16.msra.mxu1 %v11739_v57  ;;  %v11744_v57 = vld [vmem:[#allocation66_spill] sm:$0xff]  ;;  %v11745_v20 = vld [vmem:[#allocation39_spill] sm:$0xff] }
0x1eb0   :  { %7240 = vmatprep.subr.bf16.mxu0 %v11544_v53  ;;  %7260 = vmatprep.subr.bf16.mxu1 %v11544_v53 }
0x1eb3   :  { %7241 = vmatpush3.bf16.msra.mxu0 %v11740_v41  ;;  %7261 = vmatpush3.bf16.msra.mxu1 %v11741_v50  ;;  %v11746_v41 = vld [vmem:[#allocation40_spill] sm:$0xff] }
0x1eb4   :  { %7242 = vmatprep.subr.bf16.mxu0 %v11544_v53  ;;  %7262 = vmatprep.subr.bf16.mxu1 %v11544_v53 }
0x1eb7   :  { %7243 = vmatpush3.bf16.msra.mxu0 %v11742_v3  ;;  %7263 = vmatpush3.bf16.msra.mxu1 %v11743_v7 }
0x1eb8   :  { %7244 = vmatprep.subr.bf16.mxu0 %v11544_v53  ;;  %7264 = vmatprep.subr.bf16.mxu1 %v11544_v53 }
0x1ebb   :  { %7245 = vmatpush3.bf16.msra.mxu0 %v11744_v57  ;;  %7265 = vmatpush3.bf16.msra.mxu1 %v11745_v20 }
0x1ebc   :  { %7270 = vmatprep.subr.mxu0 %v11544_v53  ;;  %4679 = vmatprep.subr.bf16.mxu1 %v11746_v41 }
0x1f51   :  { %v4352_v50 = vpop.f32.mrb[112].mxu1 }
0x1f52   :  { %v7208_v14 = vpop.f32.mrb[113].mxu1 }
0x1f53   :  { %v4355_v24 = vpop.f32.mrb[114].mxu1 }
0x1f54   :  { %v7209_v42 = vpop.f32.mrb[115].mxu1 }
0x1f71   :  { %v4392_v56 = vpop.f32.mrb[84].mxu0  ;;  %v4433_v3 = vpop.f32.mrb[116].mxu1 }
0x1f72   :  { %v7606_v7 = vadd.f32 %v9884_v23, %v4392_v56  ;;  %v4394_v15 = vpop.f32.mrb[85].mxu0  ;;  %v7228_v6 = vpop.f32.mrb[117].mxu1  ;;  %v4434_v45 = vadd.f32 %v4433_v3, %v9891_v2  ;;  %v11757_v3 = vld [vmem:[#allocation50_spill] sm:$0xff] }
0x1f73   :  { %v4396_v28 = vpop.f32.mrb[86].mxu0  ;;  %v4436_v31 = vpop.f32.mrb[118].mxu1  ;;  %v7608_v20 = vadd.f32 %v9886_v49, %v4394_v15  ;;  %v4353_v6 = vadd.f32 %v4352_v50, %v9894_v47  ;;  %v11758_v50 = vld [vmem:[#allocation51_spill] sm:$0xff] }
0x1f74   :  { %v5927_v9 = vmul.f32 -1.442695, %v7606_v7  ;;  %v4397_v57 = vpop.f32.mrb[87].mxu0  ;;  %v7229_v63 = vpop.f32.mrb[119].mxu1 }
0x1f75   :  { %v5928_v19 = vmul.f32 -1.442695, %v7608_v20 }
0x1f76   :  { %7986 = vpow2.f32 %v5927_v9 }
0x1f77   :  { %7988 = vpow2.f32 %v5928_v19 }
0x1f80   :  { %v7987_v41 = vpop.eup %7986 }
0x1f81   :  { %v4443_v14 = vadd.f32 1.0, %v7987_v41  ;;  %v7989_v42 = vpop.eup %7988  ;;  %v11759_v41 = vld [vmem:[#allocation52_spill] sm:$0xff] }
0x1f82   :  { %v4450_v24 = vadd.f32 1.0, %v7989_v42  ;;  %v11761_v42 = vld [vmem:[#allocation54_spill] sm:$0xff] }
0x1f83   :  { %7990 = vrcp.f32 %v4443_v14  ;;  %v11760_v14 = vld [vmem:[#allocation53_spill] sm:$0xff] }
0x1f84   :  { %7992 = vrcp.f32 %v4450_v24  ;;  %v11762_v24 = vld [vmem:[#allocation55_spill] sm:$0xff] }
0x1f8d   :  { %v7991_v56 = vpop.eup %7990 }
0x1f8e   :  { %v4453_v28 = vmul.f32 %v7991_v56, %v4434_v45  ;;  %v7993_v63 = vpop.eup %7992  ;;  %v11763_v56 = vld [vmem:[#allocation56_spill] sm:$0xff] }
0x1f8f   :  { %v4456_v57 = vsub.f32 1.0, %v7993_v63  ;;  %v4458_v19 = vmul.f32 %v7993_v63, %v10493_v12  ;;  %v10753_v63 = vld [vmem:[#allocation11] sm:$0xff]  }
0x1f90   :  { %v4454_v31 = vadd.f32 %v4453_v28, %v4353_v6  ;;  %v11764_v6 = vld [vmem:[#allocation57_spill] sm:$0xff]  ;;  %v11765_v28 = vld [vmem:[#allocation58_spill] sm:$0xff] }
0x1f92   :  { %7994 = vtanh.f32 %v4454_v31  ;;  %v11766_v31 = vld [vmem:[#allocation59_spill] sm:$0xff] }
0x1f9c   :  { %v7995_v15 = vpop.eup %7994 }
0x1f9d   :  { %v4457_v9 = vmul.f32 %v7995_v15, %v4456_v57  ;;  %v11767_v57 = vld [vmem:[#allocation60_spill] sm:$0xff] }
0x1f9e   :  { %v10763_v15 = vld [vmem:[#allocation11 + $0x8] sm:$0xff]  }
0x1f9f   :  { %v10643_v7 = vadd.f32 %v4458_v19, %v4457_v9  ;;  %v11768_v9 = vld [vmem:[#allocation61_spill] sm:$0xff] }
0x1fa0   :  { %v10769_v19 = vld [vmem:[#allocation11 + $0x10] sm:$0xff]  }
0x1fa1   :  { %v10647_v20 = vpack.c.bf16 %v10643_v7, %v10643_v7 }
0x1fa3   :  { %7247 = vmatmul.mubr.bf16.vlgmr.msra.gmra.mrb[88].mxu0 %v10647_v20  ;;  %7267 = vmatmul.mubr.bf16.vlgmr.msra.gmra.mrb[120].mxu1 %v10647_v20 }
0x1fa4   :  { %7271 = vmatpush3.msk.msra.mxu0 %vm1725_vm7, %v9597_v4  ;;  %7272 = vmatprep.mubr.msk.f32.mxu0 %vm8534_vm0, %v11544_v53 }
0x1fa5   :  { %7275 = vmatprep.subr.bf16.mxu0 %v11544_v53  ;;  %4680 = vmatpush1.bf16.msra.mxu1 %v10230_v1 }
0x1fa6   :  { %4681 = vmatprep.subr.bf16.mxu1 %v10233_v62  ;;  %4711 = vmatprep.mubr.bf16.mxu1 %v11545_v54 }
0x1fa9   :  { %4682 = vmatpush1.bf16.msra.mxu1 %v10237_v29 }
0x1faa   :  { %4683 = vmatprep.subr.bf16.mxu1 %v10240_v16 }
0x1fad   :  { %4684 = vmatpush1.bf16.msra.mxu1 %v10243_v40 }
0x1fae   :  { %4685 = vmatprep.subr.bf16.mxu1 %v10246_v43 }
0x1fb1   :  { %4686 = vmatpush1.bf16.msra.mxu1 %v10249_v44 }
0x1fb2   :  { %4687 = vmatprep.subr.bf16.mxu1 %v10252_v25 }
0x1fb5   :  { %4688 = vmatpush1.bf16.msra.mxu1 %v10255_v18 }
0x1fb6   :  { %4689 = vmatprep.subr.bf16.mxu1 %v10258_v55 }
0x1fb9   :  { %4690 = vmatpush1.bf16.msra.mxu1 %v10261_v48 }
0x1fba   :  { %4691 = vmatprep.subr.bf16.mxu1 %v10264_v5 }
0x1fbd   :  { %4692 = vmatpush1.bf16.msra.mxu1 %v10267_v51 }
0x1fbe   :  { %4693 = vmatprep.subr.bf16.mxu1 %v10270_v10 }
0x1fc1   :  { %4694 = vmatpush1.bf16.msra.mxu1 %v10273_v11 }
0x1fc2   :  { %4760 = vmatprep.subr.bf16.mxu1 %v10276_v17 }
0x2076   :  { %v10673_v1 = vpop.f32.mrb[88].mxu0  ;;  %v4547_v62 = vpop.f32.mrb[120].mxu1 }
0x2077   :  { %v4553_v29 = vadd.f32 %v4547_v62, %v9606_v58  ;;  %v7248_v16 = vpop.f32.mrb[89].mxu0  ;;  %v7268_v40 = vpop.f32.mrb[121].mxu1  ;;  %v10775_v62 = vld [vmem:[#allocation11 + $0x18] sm:$0xff]  }
0x2078   :  { %v4498_v43 = vpop.f32.mrb[90].mxu0  ;;  %v4550_v44 = vpop.f32.mrb[122].mxu1  ;;  %v10781_v16 = vld [vmem:[#allocation11 + $0x20] sm:$0xff]   ;;  %v11771_v40 = vld [vmem:[#allocation64_spill] sm:$0xff] }
0x2079   :  { %v7249_v25 = vpop.f32.mrb[91].mxu0  ;;  %v7269_v18 = vpop.f32.mrb[123].mxu1  ;;  %v4554_v55 = vsel %vm1713_vm1, %v4553_v29, -inf  ;;  %v10787_v43 = vld [vmem:[#allocation11 + $0x28] sm:$0xff]   ;;  %v11772_v44 = vld [vmem:[#allocation65_spill] sm:$0xff] }
0x207a   :  { %4555 = vmax.xlane.f32.xlu0 %v4554_v55  ;;  %v10793_v25 = vld [vmem:[#allocation11 + $0x30] sm:$0xff]   ;;  %v11773_v18 = vld [vmem:[#allocation66_spill] sm:$0xff] }
0x207b   :  { %v10799_v55 = vld [vmem:[#allocation11 + $0x38] sm:$0xff]  }
0x2107   :  { %v4556_v48 = vpop.xlane.xlu0 %4555 }
0x2108   :  { %v4557_v5 = vsub.f32 %v4553_v29, %v4556_v48  ;;  %v11770_v29 = vld [vmem:[#allocation63_spill] sm:$0xff] }
0x2109   :  { %v10803_v48 = vld [vmem:[#allocation15 + $0x4] ss:$12 sps:$4 sm:$0xff]  }
0x210a   :  { %v4558_v51 = vmul.f32 1.442695, %v4557_v5 }
0x210c   :  { %7996 = vpow2.f32 %v4558_v51 }
0x2116   :  { %v7997_v10 = vpop.eup %7996 }
0x2117   :  { %v4560_v11 = vsel %vm1713_vm1, %v7997_v10, 0.0 }
0x2118   :  { %4561 = vadd.xlane.f32.xlu1 %v4560_v11 }
0x21a5   :  { %v4562_v17 = vpop.xlane.xlu1 %4561 }
0x21a6   :  { %7998 = vrcp.f32 %v4562_v17 }
0x21b0   :  { %v7999_v12 = vpop.eup %7998 }
0x21b1   :  { %v4564_v45 = vmul.f32 %v7999_v12, %v7997_v10 }
0x21b3   :  { %7273 = vmatmul.mubr.f32.vlgmr.msra.gmra.mrb[92].mxu0 %v4564_v45 }
0x21b4   :  { %7276 = vmatpush3.bf16.msra.mxu0 %v10284_v8  ;;  %7291 = vmatprep.mubr.msk.bf16.mxu0 %vm8534_vm0, %v11544_v53 }
0x21b5   :  { %7277 = vmatprep.subr.bf16.mxu0 %v11544_v53 }
0x21b8   :  { %7278 = vmatpush3.bf16.msra.mxu0 %v10290_v22 }
0x21b9   :  { %7279 = vmatprep.subr.bf16.mxu0 %v11544_v53 }
0x21bc   :  { %7280 = vmatpush3.bf16.msra.mxu0 %v10294_v61 }
0x21bd   :  { %7281 = vmatprep.subr.bf16.mxu0 %v11544_v53 }
0x21c0   :  { %7282 = vmatpush3.bf16.msra.mxu0 %v10298_v59 }
0x21c1   :  { %7283 = vmatprep.subr.bf16.mxu0 %v11544_v53 }
0x21c4   :  { %7284 = vmatpush3.bf16.msra.mxu0 %v10302_v30 }
0x21c5   :  { %7285 = vmatprep.subr.bf16.mxu0 %v11544_v53 }
0x21c8   :  { %7286 = vmatpush3.bf16.msra.mxu0 %v10306_v27 }
0x21c9   :  { %7287 = vmatprep.subr.bf16.mxu0 %v11544_v53 }
0x21cc   :  { %7288 = vmatpush3.bf16.msra.mxu0 %v10310_v26 }
0x21cd   :  { %7289 = vmatprep.subr.bf16.mxu0 %v11544_v53 }
0x21d0   :  { %7290 = vmatpush3.bf16.msra.mxu0 %v10314_v21 }
0x21d1   :  { %7295 = vmatprep.subr.bf16.mxu0 %v11544_v53 }
0x2286   :  { %v4631_v8 = vpop.f32.mrb[92].mxu0 }
0x2287   :  { %v4635_v22 = vpack.c.bf16 %v4631_v8, %v4631_v8  ;;  %v7274_v61 = vpop.f32.mrb[93].mxu0 }
0x2289   :  { %7292 = vmatmul.mubr.bf16.vlgmr.msra.gmra.mrb[96].mxu0 %v4635_v22 }
0x228a   :  { %7296 = vmatpush3.bf16.msra.mxu0 %v10318_v33  ;;  %7311 = vmatprep.mubr.msk.bf16.mxu0 %vm8534_vm0, %v11544_v53 }
0x228b   :  { %7297 = vmatprep.subr.bf16.mxu0 %v11544_v53 }
0x228e   :  { %7298 = vmatpush3.bf16.msra.mxu0 %v10324_v32 }
0x228f   :  { %7299 = vmatprep.subr.bf16.mxu0 %v11544_v53 }
0x2292   :  { %7300 = vmatpush3.bf16.msra.mxu0 %v10328_v34  ;;  %v11747_v34 = vld [vmem:[#allocation37_spill] sm:$0xff] }
0x2293   :  { %7301 = vmatprep.subr.bf16.mxu0 %v11544_v53 }
0x2296   :  { %7302 = vmatpush3.bf16.msra.mxu0 %v10332_v35  ;;  %v11748_v35 = vld [vmem:[#allocation41_spill] sm:$0xff] }
0x2297   :  { %7303 = vmatprep.subr.bf16.mxu0 %v11544_v53 }
0x229a   :  { %7304 = vmatpush3.bf16.msra.mxu0 %v10336_v36  ;;  %v11749_v36 = vld [vmem:[#allocation42_spill] sm:$0xff] }
0x229b   :  { %7305 = vmatprep.subr.bf16.mxu0 %v11544_v53 }
0x229e   :  { %7306 = vmatpush3.bf16.msra.mxu0 %v10340_v37  ;;  %v11750_v37 = vld [vmem:[#allocation43_spill] sm:$0xff] }
0x229f   :  { %7307 = vmatprep.subr.bf16.mxu0 %v11544_v53 }
0x22a2   :  { %7308 = vmatpush3.bf16.msra.mxu0 %v10344_v38  ;;  %v11751_v38 = vld [vmem:[#allocation44_spill] sm:$0xff] }
0x22a3   :  { %7309 = vmatprep.subr.bf16.mxu0 %v11544_v53 }
0x22a6   :  { %7310 = vmatpush3.bf16.msra.mxu0 %v10348_v52  ;;  %v11752_v52 = vld [vmem:[#allocation45_spill] sm:$0xff] }
0x22a7   :  { %7315 = vmatprep.subr.bf16.mxu0 %v11544_v53 }
0x235c   :  { %v4670_v59 = vpop.f32.mrb[96].mxu0 }
0x235d   :  { %v4676_v30 = vadd.f32 %v4670_v59, %v9736_v46  ;;  %v7293_v27 = vpop.f32.mrb[97].mxu0 }
0x235e   :  { %v4673_v26 = vpop.f32.mrb[98].mxu0 }
0x235f   :  { %v4677_v21 = vmax.f32 %v4676_v30, 0.0  ;;  %v7294_v33 = vpop.f32.mrb[99].mxu0 }
0x2361   :  { %v4678_v32 = vpack.c.bf16 %v4677_v21, %v4677_v21 }
0x2363   :  { %4712 = vmatmul.mubr.bf16.vlgmr.msra.gmra.mrb[124].mxu1 %v4678_v32  ;;  %7312 = vmatmul.mubr.bf16.vlgmr.msra.gmra.mrb[100].mxu0 %v4678_v32 }
0x2364   :  { %4761 = vmatpush1.bf16.msra.mxu1 %v10353_v60  ;;  %7316 = vmatpush3.bf16.msra.mxu0 %v10356_v0  ;;  %v11753_v60 = vld [vmem:[#allocation46_spill] sm:$0xff]  ;;  %v11754_v0 = vld [vmem:[#allocation47_spill] sm:$0xff] }
0x2365   :  { %4762 = vmatprep.subr.bf16.mxu1 %v10359_v13  ;;  %7317 = vmatprep.subr.bf16.mxu0 %v11544_v53  ;;  %v11755_v13 = vld [vmem:[#allocation48_spill] sm:$0xff] }
0x2366   :  { %4792 = vmatprep.mubr.bf16.mxu1 %v11545_v54  ;;  %7331 = vmatprep.mubr.msk.bf16.mxu0 %vm8534_vm0, %v11544_v53 }
0x2368   :  { %4763 = vmatpush1.bf16.msra.mxu1 %v10366_v39  ;;  %7318 = vmatpush3.bf16.msra.mxu0 %v11747_v34  ;;  %v11756_v39 = vld [vmem:[#allocation49_spill] sm:$0xff] }
0x2369   :  { %4764 = vmatprep.subr.bf16.mxu1 %v11748_v35  ;;  %7319 = vmatprep.subr.bf16.mxu0 %v11544_v53 }
0x236c   :  { %4765 = vmatpush1.bf16.msra.mxu1 %v11749_v36  ;;  %7320 = vmatpush3.bf16.msra.mxu0 %v11750_v37 }
0x236d   :  { %4766 = vmatprep.subr.bf16.mxu1 %v11751_v38  ;;  %7321 = vmatprep.subr.bf16.mxu0 %v11544_v53 }
0x2370   :  { %4767 = vmatpush1.bf16.msra.mxu1 %v11752_v52  ;;  %7322 = vmatpush3.bf16.msra.mxu0 %v11753_v60 }
0x2371   :  { %4768 = vmatprep.subr.bf16.mxu1 %v11754_v0  ;;  %7323 = vmatprep.subr.bf16.mxu0 %v11544_v53 }
0x2374   :  { %4769 = vmatpush1.bf16.msra.mxu1 %v11755_v13  ;;  %7324 = vmatpush3.bf16.msra.mxu0 %v11756_v39 }
0x2375   :  { %4770 = vmatprep.subr.bf16.mxu1 %v11757_v3  ;;  %7325 = vmatprep.subr.bf16.mxu0 %v11544_v53 }
0x2378   :  { %4771 = vmatpush1.bf16.msra.mxu1 %v11758_v50  ;;  %7326 = vmatpush3.bf16.msra.mxu0 %v11759_v41 }
0x2379   :  { %4772 = vmatprep.subr.bf16.mxu1 %v11760_v14  ;;  %7327 = vmatprep.subr.bf16.mxu0 %v11544_v53 }
0x237c   :  { %4773 = vmatpush1.bf16.msra.mxu1 %v11761_v42  ;;  %7328 = vmatpush3.bf16.msra.mxu0 %v11762_v24  ;;  %v10824_v24 = vld [vmem:[#allocation15] ss:$12 sps:$4 sm:$0xff]  }
0x237d   :  { %4774 = vmatprep.subr.bf16.mxu1 %v11763_v56  ;;  %7329 = vmatprep.subr.bf16.mxu0 %v11544_v53  ;;  %v10831_v56 = vld [vmem:[#allocation15 + $0x18] ss:$12 sps:$4 sm:$0xff]  }
0x2380   :  { %4775 = vmatpush1.bf16.msra.mxu1 %v11764_v6  ;;  %7330 = vmatpush3.bf16.msra.mxu0 %v11765_v28  ;;  %v10834_v6 = vld [vmem:[#allocation15 + $0x34] ss:$12 sps:$4 sm:$0xff]   ;;  %v10837_v28 = vld [vmem:[#allocation15 + $0x30] ss:$12 sps:$4 sm:$0xff]  }
0x2381   :  { %7335 = vmatprep.subr.bf16.mxu1 %v11544_v53  ;;  %7355 = vmatprep.subr.bf16.mxu0 %v11544_v53 }
0x2383   :  { %4793 = vmatmul.mubr.bf16.vlgmr.msra.gmra.mrb[124].mxu1 %v10647_v20  ;;  %7332 = vmatmul.mubr.bf16.vlgmr.msra.gmra.mrb[104].mxu0 %v10647_v20  ;;  %v11769_v20 = vld [vmem:[#allocation62_spill] sm:$0xff] }
0x2384   :  { %7336 = vmatpush3.bf16.msra.mxu1 %v11766_v31  ;;  %7356 = vmatpush3.bf16.msra.mxu0 %v10753_v63  ;;  %v10840_v31 = vld [vmem:[#allocation15 + $0x4c] ss:$12 sps:$4 sm:$0xff]  }
0x2385   :  { %7337 = vmatprep.subr.bf16.mxu1 %v11544_v53  ;;  %7357 = vmatprep.subr.bf16.mxu0 %v11544_v53 }
0x2386   :  { %7351 = vmatprep.mubr.msk.bf16.mxu1 %vm8534_vm0, %v11544_v53  ;;  %7371 = vmatprep.mubr.msk.bf16.mxu0 %vm8534_vm0, %v11544_v53 }
0x2388   :  { %7338 = vmatpush3.bf16.msra.mxu1 %v11767_v57  ;;  %7358 = vmatpush3.bf16.msra.mxu0 %v10763_v15  ;;  %v10843_v57 = vld [vmem:[#allocation15 + $0x48] ss:$12 sps:$4 sm:$0xff]  }
0x2389   :  { %7339 = vmatprep.subr.bf16.mxu1 %v11544_v53  ;;  %7359 = vmatprep.subr.bf16.mxu0 %v11544_v53 }
0x238c   :  { %7340 = vmatpush3.bf16.msra.mxu1 %v11768_v9  ;;  %7360 = vmatpush3.bf16.msra.mxu0 %v10769_v19  ;;  %v10846_v9 = vld [vmem:[#allocation15 + $0x64] ss:$12 sps:$4 sm:$0xff]  }
0x238d   :  { %7341 = vmatprep.subr.bf16.mxu1 %v11544_v53  ;;  %7361 = vmatprep.subr.bf16.mxu0 %v11544_v53 }
0x2390   :  { %7342 = vmatpush3.bf16.msra.mxu1 %v11769_v20  ;;  %7362 = vmatpush3.bf16.msra.mxu0 %v10775_v62  ;;  %v10849_v20 = vld [vmem:[#allocation15 + $0x60] ss:$12 sps:$4 sm:$0xff]  }
0x2391   :  { %7343 = vmatprep.subr.bf16.mxu1 %v11544_v53  ;;  %7363 = vmatprep.subr.bf16.mxu0 %v11544_v53 }
0x2394   :  { %7344 = vmatpush3.bf16.msra.mxu1 %v11770_v29  ;;  %7364 = vmatpush3.bf16.msra.mxu0 %v10781_v16  ;;  %v10852_v29 = vld [vmem:[#allocation15 + $0x7c] ss:$12 sps:$4 sm:$0xff]  }
0x2395   :  { %7345 = vmatprep.subr.bf16.mxu1 %v11544_v53  ;;  %7365 = vmatprep.subr.bf16.mxu0 %v11544_v53 }
0x2398   :  { %7346 = vmatpush3.bf16.msra.mxu1 %v11771_v40  ;;  %7366 = vmatpush3.bf16.msra.mxu0 %v10787_v43  ;;  %v10855_v40 = vld [vmem:[#allocation15 + $0x78] ss:$12 sps:$4 sm:$0xff]  }
0x2399   :  { %7347 = vmatprep.subr.bf16.mxu1 %v11544_v53  ;;  %7367 = vmatprep.subr.bf16.mxu0 %v11544_v53 }
0x239c   :  { %7348 = vmatpush3.bf16.msra.mxu1 %v11772_v44  ;;  %7368 = vmatpush3.bf16.msra.mxu0 %v10793_v25  ;;  %v10858_v44 = vld [vmem:[#allocation15 + $0x94] ss:$12 sps:$4 sm:$0xff]  }
0x239d   :  { %7349 = vmatprep.subr.bf16.mxu1 %v11544_v53  ;;  %7369 = vmatprep.subr.bf16.mxu0 %v11544_v53 }
0x23a0   :  { %7350 = vmatpush3.bf16.msra.mxu1 %v11773_v18  ;;  %7370 = vmatpush3.bf16.msra.mxu0 %v10799_v55  ;;  %v10861_v18 = vld [vmem:[#allocation15 + $0x90] ss:$12 sps:$4 sm:$0xff]  }
0x23a1   :  { %7375 = vmatprep.subr.mxu1 %v11544_v53  ;;  %5081 = vmatprep.subr.bf16.mxu0 %v10803_v48 }
0x2436   :  { %v4754_v5 = vpop.f32.mrb[100].mxu0 }
0x2437   :  { %v7313_v51 = vpop.f32.mrb[101].mxu0  ;;  %v4755_v52 = vadd.f32 %v4754_v5, %v9894_v47  ;;  %v10864_v5 = vld [vmem:[#allocation15 + $0xac] ss:$12 sps:$4 sm:$0xff]  }
0x2438   :  { %v4757_v10 = vpop.f32.mrb[102].mxu0  ;;  %v10867_v51 = vld [vmem:[#allocation15 + $0xa8] ss:$12 sps:$4 sm:$0xff]  }
0x2439   :  { %v7314_v11 = vpop.f32.mrb[103].mxu0  ;;  %v10870_v10 = vld [vmem:[#allocation17 + $0x4] ss:$12 sps:$4 sm:$0xff]  }
0x2456   :  { %v4794_v17 = vpop.f32.mrb[124].mxu1  ;;  %v4835_v12 = vpop.f32.mrb[104].mxu0 }
0x2457   :  { %v7610_v45 = vadd.f32 %v9884_v23, %v4794_v17  ;;  %v4796_v8 = vpop.f32.mrb[125].mxu1  ;;  %v7333_v22 = vpop.f32.mrb[105].mxu0  ;;  %v4836_v37 = vadd.f32 %v4835_v12, %v9891_v2 }
0x2458   :  { %v4798_v61 = vpop.f32.mrb[126].mxu1  ;;  %v4838_v59 = vpop.f32.mrb[106].mxu0  ;;  %v7612_v21 = vadd.f32 %v9886_v49, %v4796_v8 }
0x2459   :  { %v5929_v30 = vmul.f32 -1.442695, %v7610_v45  ;;  %v4799_v27 = vpop.f32.mrb[127].mxu1  ;;  %v7334_v26 = vpop.f32.mrb[107].mxu0 }
0x245a   :  { %v5930_v33 = vmul.f32 -1.442695, %v7612_v21 }
0x245b   :  { %8000 = vpow2.f32 %v5929_v30 }
0x245c   :  { %8002 = vpow2.f32 %v5930_v33 }
0x2465   :  { %v8001_v32 = vpop.eup %8000 }
0x2466   :  { %v4845_v34 = vadd.f32 1.0, %v8001_v32  ;;  %v8003_v35 = vpop.eup %8002 }
0x2467   :  { %v4852_v36 = vadd.f32 1.0, %v8003_v35 }
0x2468   :  { %8004 = vrcp.f32 %v4845_v34 }
0x2469   :  { %8006 = vrcp.f32 %v4852_v36 }
0x2472   :  { %v8005_v38 = vpop.eup %8004 }
0x2473   :  { %v4855_v60 = vmul.f32 %v8005_v38, %v4836_v37  ;;  %v8007_v13 = vpop.eup %8006  ;;  %v10878_v38 = vld [vmem:[#allocation14] sm:$0xff]  }
0x2474   :  { %v4858_v39 = vsub.f32 1.0, %v8007_v13  ;;  %v4860_v41 = vmul.f32 %v8007_v13, %v10643_v7  ;;  %v10827_v7 = vld [vmem:[#allocation15 + $0x1c] ss:$12 sps:$4 sm:$0xff]   ;;  %v10896_v13 = vld [vmem:[#allocation14 + $0x20] sm:$0xff]  }
0x2475   :  { %v4856_v0 = vadd.f32 %v4855_v60, %v4755_v52  ;;  %v10884_v52 = vld [vmem:[#allocation14 + $0x8] sm:$0xff]   ;;  %v10888_v60 = vld [vmem:[#allocation14 + $0x10] sm:$0xff]  }
0x2477   :  { %8008 = vtanh.f32 %v4856_v0  ;;  %v10892_v0 = vld [vmem:[#allocation14 + $0x18] sm:$0xff]  }
0x2481   :  { %v8009_v3 = vpop.eup %8008 }
0x2482   :  { %v4859_v50 = vmul.f32 %v8009_v3, %v4858_v39  ;;  %v10900_v39 = vld [vmem:[#allocation14 + $0x28] sm:$0xff]   ;;  %v10904_v3 = vld [vmem:[#allocation14 + $0x30] sm:$0xff]  }
0x2484   :  { %v10811_v14 = vadd.f32 %v4860_v41, %v4859_v50  ;;  %v10908_v50 = vld [vmem:[#allocation14 + $0x38] sm:$0xff]  }
0x2486   :  { %v10815_v42 = vpack.c.bf16 %v10811_v14, %v10811_v14 }
0x2488   :  { %7352 = vmatmul.mubr.bf16.vlgmr.msra.gmra.mrb[128].mxu1 %v10815_v42  ;;  %7372 = vmatmul.mubr.bf16.vlgmr.msra.gmra.mrb[108].mxu0 %v10815_v42 }
0x2489   :  { %7376 = vmatpush3.msk.msra.mxu1 %vm1725_vm7, %v9597_v4  ;;  %7377 = vmatprep.mubr.msk.f32.mxu1 %vm8534_vm0, %v11544_v53 }
0x248a   :  { %7380 = vmatprep.subr.bf16.mxu1 %v11544_v53  ;;  %5082 = vmatpush1.bf16.msra.mxu0 %v10824_v24 }
0x248b   :  { %5083 = vmatprep.subr.bf16.mxu0 %v10827_v7  ;;  %5113 = vmatprep.mubr.bf16.mxu0 %v11545_v54 }
0x248e   :  { %5084 = vmatpush1.bf16.msra.mxu0 %v10831_v56 }
0x248f   :  { %5085 = vmatprep.subr.bf16.mxu0 %v10834_v6 }
0x2492   :  { %5086 = vmatpush1.bf16.msra.mxu0 %v10837_v28 }
0x2493   :  { %5087 = vmatprep.subr.bf16.mxu0 %v10840_v31 }
0x2496   :  { %5088 = vmatpush1.bf16.msra.mxu0 %v10843_v57 }
0x2497   :  { %5089 = vmatprep.subr.bf16.mxu0 %v10846_v9 }
0x249a   :  { %5090 = vmatpush1.bf16.msra.mxu0 %v10849_v20 }
0x249b   :  { %5091 = vmatprep.subr.bf16.mxu0 %v10852_v29 }
0x249e   :  { %5092 = vmatpush1.bf16.msra.mxu0 %v10855_v40 }
0x249f   :  { %5093 = vmatprep.subr.bf16.mxu0 %v10858_v44 }
0x24a2   :  { %5094 = vmatpush1.bf16.msra.mxu0 %v10861_v18 }
0x24a3   :  { %5095 = vmatprep.subr.bf16.mxu0 %v10864_v5 }
0x24a6   :  { %5096 = vmatpush1.bf16.msra.mxu0 %v10867_v51 }
0x24a7   :  { %5162 = vmatprep.subr.bf16.mxu0 %v10870_v10 }
0x255b   :  { %v10873_v11 = vpop.f32.mrb[128].mxu1  ;;  %v4949_v17 = vpop.f32.mrb[108].mxu0 }
0x255c   :  { %v4955_v12 = vadd.f32 %v4949_v17, %v9606_v58  ;;  %v7353_v45 = vpop.f32.mrb[129].mxu1  ;;  %v7373_v8 = vpop.f32.mrb[109].mxu0 }
0x255d   :  { %v4900_v22 = vpop.f32.mrb[130].mxu1  ;;  %v4952_v61 = vpop.f32.mrb[110].mxu0  ;;  %v10912_v45 = vld [vmem:[#allocation15 + $0x8] ss:$12 sps:$4 sm:$0xff]   ;;  %v10918_v8 = vld [vmem:[#allocation15 + $0x20] ss:$12 sps:$4 sm:$0xff]  }
0x255e   :  { %v7354_v59 = vpop.f32.mrb[131].mxu1  ;;  %v7374_v30 = vpop.f32.mrb[111].mxu0  ;;  %v4956_v27 = vsel %vm1713_vm1, %v4955_v12, -inf  ;;  %v10922_v22 = vld [vmem:[#allocation15 + $0x38] ss:$12 sps:$4 sm:$0xff]  }
0x255f   :  { %4957 = vmax.xlane.f32.xlu0 %v4956_v27  ;;  %v10926_v61 = vld [vmem:[#allocation15 + $0x50] ss:$12 sps:$4 sm:$0xff]   ;;  %v10930_v59 = vld [vmem:[#allocation15 + $0x68] ss:$12 sps:$4 sm:$0xff]   ;;  %v10934_v30 = vld [vmem:[#allocation15 + $0x80] ss:$12 sps:$4 sm:$0xff]  }
0x2560   :  { %v10938_v27 = vld [vmem:[#allocation15 + $0x98] ss:$12 sps:$4 sm:$0xff]  }
0x25ec   :  { %v4958_v26 = vpop.xlane.xlu0 %4957 }
0x25ed   :  { %v4959_v21 = vsub.f32 %v4955_v12, %v4958_v26  ;;  %v10942_v26 = vld [vmem:[#allocation15 + $0xb0] ss:$12 sps:$4 sm:$0xff]  }
0x25ef   :  { %v4960_v33 = vmul.f32 1.442695, %v4959_v21 }
0x25f1   :  { %8010 = vpow2.f32 %v4960_v33 }
0x25fb   :  { %v8011_v32 = vpop.eup %8010 }
0x25fc   :  { %v4962_v34 = vsel %vm1713_vm1, %v8011_v32, 0.0 }
0x25fd   :  { %4963 = vadd.xlane.f32.xlu1 %v4962_v34 }
0x268a   :  { %v4964_v35 = vpop.xlane.xlu1 %4963 }
0x268b   :  { %8012 = vrcp.f32 %v4964_v35 }
0x2695   :  { %v8013_v36 = vpop.eup %8012 }
0x2696   :  { %v4966_v37 = vmul.f32 %v8013_v36, %v8011_v32 }
0x2698   :  { %7378 = vmatmul.mubr.f32.vlgmr.msra.gmra.mrb[106].mxu1 %v4966_v37 }
0x2699   :  { %7381 = vmatpush3.bf16.msra.mxu1 %v10878_v38  ;;  %7396 = vmatprep.mubr.msk.bf16.mxu1 %vm8534_vm0, %v11544_v53 }
0x269a   :  { %7382 = vmatprep.subr.bf16.mxu1 %v11544_v53 }
0x269d   :  { %7383 = vmatpush3.bf16.msra.mxu1 %v10884_v52 }
0x269e   :  { %7384 = vmatprep.subr.bf16.mxu1 %v11544_v53 }
0x26a1   :  { %7385 = vmatpush3.bf16.msra.mxu1 %v10888_v60 }
0x26a2   :  { %7386 = vmatprep.subr.bf16.mxu1 %v11544_v53 }
0x26a5   :  { %7387 = vmatpush3.bf16.msra.mxu1 %v10892_v0 }
0x26a6   :  { %7388 = vmatprep.subr.bf16.mxu1 %v11544_v53 }
0x26a9   :  { %7389 = vmatpush3.bf16.msra.mxu1 %v10896_v13 }
0x26aa   :  { %7390 = vmatprep.subr.bf16.mxu1 %v11544_v53 }
0x26ad   :  { %7391 = vmatpush3.bf16.msra.mxu1 %v10900_v39 }
0x26ae   :  { %7392 = vmatprep.subr.bf16.mxu1 %v11544_v53 }
0x26b1   :  { %7393 = vmatpush3.bf16.msra.mxu1 %v10904_v3 }
0x26b2   :  { %7394 = vmatprep.subr.bf16.mxu1 %v11544_v53 }
0x26b5   :  { %7395 = vmatpush3.bf16.msra.mxu1 %v10908_v50 }
0x26b6   :  { %7400 = vmatprep.subr.bf16.mxu1 %v11544_v53 }
0x276b   :  { %v5033_v41 = vpop.f32.mrb[106].mxu1 }
0x276c   :  { %v5037_v17 = vpack.c.bf16 %v5033_v41, %v5033_v41  ;;  %v7379_v12 = vpop.f32.mrb[107].mxu1  ;;  %v10947_v41 = vld [vmem:[#allocation17] ss:$12 sps:$4 sm:$0xff]  }
0x276d   :  { %v10953_v12 = vld [vmem:[#allocation17 + $0x1c] ss:$12 sps:$4 sm:$0xff]  }
0x276e   :  { %7397 = vmatmul.mubr.bf16.vlgmr.msra.gmra.mrb[132].mxu1 %v5037_v17  ;;  %v10950_v17 = vld [vmem:[#allocation17 + $0x8] ss:$12 sps:$4 sm:$0xff]   ;;  %11774 = vst [vmem:[#allocation36_spill] sm:$0xff] %v10953_v12 }
0x276f   :  { %7401 = vmatpush3.bf16.msra.mxu1 %v10912_v45  ;;  %7416 = vmatprep.mubr.msk.bf16.mxu1 %vm8534_vm0, %v11544_v53 }
0x2770   :  { %7402 = vmatprep.subr.bf16.mxu1 %v11544_v53 }
0x2773   :  { %7403 = vmatpush3.bf16.msra.mxu1 %v10918_v8 }
0x2774   :  { %7404 = vmatprep.subr.bf16.mxu1 %v11544_v53 }
0x2777   :  { %7405 = vmatpush3.bf16.msra.mxu1 %v10922_v22 }
0x2778   :  { %7406 = vmatprep.subr.bf16.mxu1 %v11544_v53 }
0x277b   :  { %7407 = vmatpush3.bf16.msra.mxu1 %v10926_v61 }
0x277c   :  { %7408 = vmatprep.subr.bf16.mxu1 %v11544_v53 }
0x277f   :  { %7409 = vmatpush3.bf16.msra.mxu1 %v10930_v59 }
0x2780   :  { %7410 = vmatprep.subr.bf16.mxu1 %v11544_v53 }
0x2783   :  { %7411 = vmatpush3.bf16.msra.mxu1 %v10934_v30 }
0x2784   :  { %7412 = vmatprep.subr.bf16.mxu1 %v11544_v53 }
0x2787   :  { %7413 = vmatpush3.bf16.msra.mxu1 %v10938_v27 }
0x2788   :  { %7414 = vmatprep.subr.bf16.mxu1 %v11544_v53 }
0x278b   :  { %7415 = vmatpush3.bf16.msra.mxu1 %v10942_v26 }
0x278c   :  { %7420 = vmatprep.subr.bf16.mxu1 %v11544_v53 }
0x2841   :  { %v5072_v21 = vpop.f32.mrb[132].mxu1 }
0x2842   :  { %v5078_v33 = vadd.f32 %v5072_v21, %v9736_v46  ;;  %v7398_v32 = vpop.f32.mrb[133].mxu1  ;;  %v10960_v21 = vld [vmem:[#allocation17 + $0x18] ss:$12 sps:$4 sm:$0xff]  }
0x2843   :  { %v5075_v34 = vpop.f32.mrb[134].mxu1  ;;  %11775 = vst [vmem:[#allocation29_spill] sm:$0xff] %v10960_v21  ;;  %v10966_v32 = vld [vmem:[#allocation17 + $0x34] ss:$12 sps:$4 sm:$0xff]  }
0x2844   :  { %v5079_v35 = vmax.f32 %v5078_v33, 0.0  ;;  %v7399_v36 = vpop.f32.mrb[135].mxu1  ;;  %v10963_v33 = vld [vmem:[#allocation17 + $0x20] ss:$12 sps:$4 sm:$0xff]   ;;  %11777 = vst [vmem:[#allocation30_spill] sm:$0xff] %v10966_v32 }
0x2845   :  { %11776 = vst [vmem:[#allocation32_spill] sm:$0xff] %v10963_v33  ;;  %v10970_v34 = vld [vmem:[#allocation17 + $0x30] ss:$12 sps:$4 sm:$0xff]   ;;  %v10976_v36 = vld [vmem:[#allocation17 + $0x4c] ss:$12 sps:$4 sm:$0xff]  }
0x2846   :  { %v5080_v37 = vpack.c.bf16 %v5079_v35, %v5079_v35  ;;  %11778 = vst [vmem:[#allocation31_spill] sm:$0xff] %v10970_v34  ;;  %v10973_v35 = vld [vmem:[#allocation17 + $0x38] ss:$12 sps:$4 sm:$0xff]   ;;  %11780 = vst [vmem:[#allocation38_spill] sm:$0xff] %v10976_v36 }
0x2847   :  { %11779 = vst [vmem:[#allocation33_spill] sm:$0xff] %v10973_v35 }
0x2848   :  { %5114 = vmatmul.mubr.bf16.vlgmr.msra.gmra.mrb[112].mxu0 %v5080_v37  ;;  %7417 = vmatmul.mubr.bf16.vlgmr.msra.gmra.mrb[136].mxu1 %v5080_v37  ;;  %v10980_v37 = vld [vmem:[#allocation17 + $0x48] ss:$12 sps:$4 sm:$0xff]  }
0x2849   :  { %5163 = vmatpush1.bf16.msra.mxu0 %v10947_v41  ;;  %7421 = vmatpush3.bf16.msra.mxu1 %v10950_v17  ;;  %11781 = vst [vmem:[#allocation39_spill] sm:$0xff] %v10980_v37 }
0x284a   :  { %5164 = vmatprep.subr.bf16.mxu0 %v10953_v12  ;;  %7422 = vmatprep.subr.bf16.mxu1 %v11544_v53 }
0x284b   :  { %5194 = vmatprep.mubr.bf16.mxu0 %v11545_v54  ;;  %7436 = vmatprep.mubr.msk.bf16.mxu1 %vm8534_vm0, %v11544_v53 }
0x284d   :  { %5165 = vmatpush1.bf16.msra.mxu0 %v10960_v21  ;;  %7423 = vmatpush3.bf16.msra.mxu1 %v10963_v33  ;;  %v10986_v33 = vld [vmem:[#allocation17 + $0x64] ss:$12 sps:$4 sm:$0xff]  }
0x284e   :  { %5166 = vmatprep.subr.bf16.mxu0 %v10966_v32  ;;  %7424 = vmatprep.subr.bf16.mxu1 %v11544_v53  ;;  %v10983_v32 = vld [vmem:[#allocation17 + $0x50] ss:$12 sps:$4 sm:$0xff]   ;;  %11783 = vst [vmem:[#allocation37_spill] sm:$0xff] %v10986_v33 }
0x284f   :  { %11782 = vst [vmem:[#allocation40_spill] sm:$0xff] %v10983_v32 }
0x2851   :  { %5167 = vmatpush1.bf16.msra.mxu0 %v10970_v34  ;;  %7425 = vmatpush3.bf16.msra.mxu1 %v10973_v35  ;;  %v10990_v35 = vld [vmem:[#allocation17 + $0x60] ss:$12 sps:$4 sm:$0xff]   ;;  %v10996_v34 = vld [vmem:[#allocation17 + $0x7c] ss:$12 sps:$4 sm:$0xff]  }
0x2852   :  { %5168 = vmatprep.subr.bf16.mxu0 %v10976_v36  ;;  %7426 = vmatprep.subr.bf16.mxu1 %v11544_v53  ;;  %11784 = vst [vmem:[#allocation41_spill] sm:$0xff] %v10990_v35  ;;  %v10993_v36 = vld [vmem:[#allocation17 + $0x68] ss:$12 sps:$4 sm:$0xff]   ;;  %11786 = vst [vmem:[#allocation43_spill] sm:$0xff] %v10996_v34 }
0x2853   :  { %11785 = vst [vmem:[#allocation42_spill] sm:$0xff] %v10993_v36 }
0x2855   :  { %5169 = vmatpush1.bf16.msra.mxu0 %v10980_v37  ;;  %7427 = vmatpush3.bf16.msra.mxu1 %v10983_v32  ;;  %v11000_v32 = vld [vmem:[#allocation17 + $0x78] ss:$12 sps:$4 sm:$0xff]   ;;  %v11006_v37 = vld [vmem:[#allocation17 + $0x94] ss:$12 sps:$4 sm:$0xff]  }
0x2856   :  { %5170 = vmatprep.subr.bf16.mxu0 %v10986_v33  ;;  %7428 = vmatprep.subr.bf16.mxu1 %v11544_v53  ;;  %11787 = vst [vmem:[#allocation44_spill] sm:$0xff] %v11000_v32  ;;  %v11003_v33 = vld [vmem:[#allocation17 + $0x80] ss:$12 sps:$4 sm:$0xff]   ;;  %11789 = vst [vmem:[#allocation46_spill] sm:$0xff] %v11006_v37 }
0x2857   :  { %11788 = vst [vmem:[#allocation45_spill] sm:$0xff] %v11003_v33 }
0x2859   :  { %5171 = vmatpush1.bf16.msra.mxu0 %v10990_v35  ;;  %7429 = vmatpush3.bf16.msra.mxu1 %v10993_v36  ;;  %v11010_v36 = vld [vmem:[#allocation17 + $0x90] ss:$12 sps:$4 sm:$0xff]   ;;  %v11016_v35 = vld [vmem:[#allocation17 + $0xac] ss:$12 sps:$4 sm:$0xff]  }
0x285a   :  { %5172 = vmatprep.subr.bf16.mxu0 %v10996_v34  ;;  %7430 = vmatprep.subr.bf16.mxu1 %v11544_v53  ;;  %11790 = vst [vmem:[#allocation47_spill] sm:$0xff] %v11010_v36  ;;  %v11013_v34 = vld [vmem:[#allocation17 + $0x98] ss:$12 sps:$4 sm:$0xff]   ;;  %11792 = vst [vmem:[#allocation49_spill] sm:$0xff] %v11016_v35 }
0x285b   :  { %11791 = vst [vmem:[#allocation48_spill] sm:$0xff] %v11013_v34 }
0x285d   :  { %5173 = vmatpush1.bf16.msra.mxu0 %v11000_v32  ;;  %7431 = vmatpush3.bf16.msra.mxu1 %v11003_v33  ;;  %v11020_v33 = vld [vmem:[#allocation17 + $0xa8] ss:$12 sps:$4 sm:$0xff]  }
0x285e   :  { %5174 = vmatprep.subr.bf16.mxu0 %v11006_v37  ;;  %7432 = vmatprep.subr.bf16.mxu1 %v11544_v53  ;;  %11793 = vst [vmem:[#allocation50_spill] sm:$0xff] %v11020_v33  ;;  %v11023_v37 = vld [vmem:[#allocation17 + $0xb0] ss:$12 sps:$4 sm:$0xff]  }
0x285f   :  { %11794 = vst [vmem:[#allocation51_spill] sm:$0xff] %v11023_v37 }
0x2861   :  { %5175 = vmatpush1.bf16.msra.mxu0 %v11010_v36  ;;  %7433 = vmatpush3.bf16.msra.mxu1 %v11013_v34  ;;  %v11030_v34 = vld [vmem:[#allocation18] sm:$0xff]  }
0x2862   :  { %5176 = vmatprep.subr.bf16.mxu0 %v11016_v35  ;;  %7434 = vmatprep.subr.bf16.mxu1 %v11544_v53  ;;  %11795 = vst [vmem:[#allocation52_spill] sm:$0xff] %v11030_v34 }
0x2865   :  { %5177 = vmatpush1.bf16.msra.mxu0 %v11020_v33  ;;  %7435 = vmatpush3.bf16.msra.mxu1 %v11023_v37  ;;  %v11040_v37 = vld [vmem:[#allocation18 + $0x8] sm:$0xff]  }
0x2866   :  { %7440 = vmatprep.subr.bf16.mxu0 %v11544_v53  ;;  %7460 = vmatprep.subr.bf16.mxu1 %v11544_v53  ;;  %11796 = vst [vmem:[#allocation53_spill] sm:$0xff] %v11040_v37 }
0x2868   :  { %5195 = vmatmul.mubr.bf16.vlgmr.msra.gmra.mrb[112].mxu0 %v10815_v42  ;;  %7437 = vmatmul.mubr.bf16.vlgmr.msra.gmra.mrb[140].mxu1 %v10815_v42  ;;  %v11052_v42 = vld [vmem:[#allocation18 + $0x18] sm:$0xff]  }
0x2869   :  { %7441 = vmatpush3.bf16.msra.mxu0 %v11030_v34  ;;  %7461 = vmatpush3.bf16.msra.mxu1 %v10753_v63  ;;  %v11046_v63 = vld [vmem:[#allocation18 + $0x10] sm:$0xff]   ;;  %11798 = vst [vmem:[#allocation55_spill] sm:$0xff] %v11052_v42 }
0x286a   :  { %7442 = vmatprep.subr.bf16.mxu0 %v11544_v53  ;;  %7462 = vmatprep.subr.bf16.mxu1 %v11544_v53  ;;  %11797 = vst [vmem:[#allocation54_spill] sm:$0xff] %v11046_v63 }
0x286b   :  { %7456 = vmatprep.mubr.msk.bf16.mxu0 %vm8534_vm0, %v11544_v53  ;;  %7476 = vmatprep.mubr.msk.bf16.mxu1 %vm8534_vm0, %v11544_v53 }
0x286d   :  { %7443 = vmatpush3.bf16.msra.mxu0 %v11040_v37  ;;  %7463 = vmatpush3.bf16.msra.mxu1 %v10763_v15  ;;  %v11058_v15 = vld [vmem:[#allocation18 + $0x20] sm:$0xff]  }
0x286e   :  { %7444 = vmatprep.subr.bf16.mxu0 %v11544_v53  ;;  %7464 = vmatprep.subr.bf16.mxu1 %v11544_v53  ;;  %11799 = vst [vmem:[#allocation56_spill] sm:$0xff] %v11058_v15 }
0x2871   :  { %7445 = vmatpush3.bf16.msra.mxu0 %v11046_v63  ;;  %7465 = vmatpush3.bf16.msra.mxu1 %v10769_v19  ;;  %v11064_v19 = vld [vmem:[#allocation18 + $0x28] sm:$0xff]  }
0x2872   :  { %7446 = vmatprep.subr.bf16.mxu0 %v11544_v53  ;;  %7466 = vmatprep.subr.bf16.mxu1 %v11544_v53  ;;  %11800 = vst [vmem:[#allocation57_spill] sm:$0xff] %v11064_v19 }
0x2875   :  { %7447 = vmatpush3.bf16.msra.mxu0 %v11052_v42  ;;  %7467 = vmatpush3.bf16.msra.mxu1 %v10775_v62  ;;  %v11070_v62 = vld [vmem:[#allocation18 + $0x30] sm:$0xff]  }
0x2876   :  { %7448 = vmatprep.subr.bf16.mxu0 %v11544_v53  ;;  %7468 = vmatprep.subr.bf16.mxu1 %v11544_v53  ;;  %11801 = vst [vmem:[#allocation58_spill] sm:$0xff] %v11070_v62 }
0x2879   :  { %7449 = vmatpush3.bf16.msra.mxu0 %v11058_v15  ;;  %7469 = vmatpush3.bf16.msra.mxu1 %v10781_v16  ;;  %v11076_v16 = vld [vmem:[#allocation18 + $0x38] sm:$0xff]  }
0x287a   :  { %7450 = vmatprep.subr.bf16.mxu0 %v11544_v53  ;;  %7470 = vmatprep.subr.bf16.mxu1 %v11544_v53  ;;  %11802 = vst [vmem:[#allocation59_spill] sm:$0xff] %v11076_v16 }
0x287d   :  { %7451 = vmatpush3.bf16.msra.mxu0 %v11064_v19  ;;  %7471 = vmatpush3.bf16.msra.mxu1 %v10787_v43 }
0x287e   :  { %7452 = vmatprep.subr.bf16.mxu0 %v11544_v53  ;;  %7472 = vmatprep.subr.bf16.mxu1 %v11544_v53 }
0x2881   :  { %7453 = vmatpush3.bf16.msra.mxu0 %v11070_v62  ;;  %7473 = vmatpush3.bf16.msra.mxu1 %v10793_v25 }
0x2882   :  { %7454 = vmatprep.subr.bf16.mxu0 %v11544_v53  ;;  %7474 = vmatprep.subr.bf16.mxu1 %v11544_v53 }
0x2885   :  { %7455 = vmatpush3.bf16.msra.mxu0 %v11076_v16  ;;  %7475 = vmatpush3.bf16.msra.mxu1 %v10799_v55 }
0x2886   :  { %7480 = vmatprep.subr.mxu0 %v11544_v53  ;;  %5483 = vmatprep.subr.bf16.mxu1 %v10803_v48 }
0x291b   :  { %v5156_v43 = vpop.f32.mrb[136].mxu1 }
0x291c   :  { %v7418_v19 = vpop.f32.mrb[137].mxu1 }
0x291d   :  { %v5159_v15 = vpop.f32.mrb[138].mxu1 }
0x291e   :  { %v7419_v62 = vpop.f32.mrb[139].mxu1 }
0x293b   :  { %v5196_v42 = vpop.f32.mrb[112].mxu0  ;;  %v5237_v25 = vpop.f32.mrb[140].mxu1 }
0x293c   :  { %v7614_v63 = vadd.f32 %v9884_v23, %v5196_v42  ;;  %v5198_v37 = vpop.f32.mrb[113].mxu0  ;;  %v7438_v34 = vpop.f32.mrb[141].mxu1  ;;  %v5238_v12 = vadd.f32 %v5237_v25, %v9891_v2 }
0x293d   :  { %v5200_v33 = vpop.f32.mrb[114].mxu0  ;;  %v5240_v35 = vpop.f32.mrb[142].mxu1  ;;  %v7616_v55 = vadd.f32 %v9886_v49, %v5198_v37  ;;  %v5157_v34 = vadd.f32 %v5156_v43, %v9894_v47 }
0x293e   :  { %v5931_v36 = vmul.f32 -1.442695, %v7614_v63  ;;  %v5201_v16 = vpop.f32.mrb[115].mxu0  ;;  %v7439_v32 = vpop.f32.mrb[143].mxu1 }
0x293f   :  { %v5932_v21 = vmul.f32 -1.442695, %v7616_v55 }
0x2940   :  { %8014 = vpow2.f32 %v5931_v36 }
0x2941   :  { %8016 = vpow2.f32 %v5932_v21 }
0x294a   :  { %v8015_v48 = vpop.eup %8014 }
0x294b   :  { %v5247_v19 = vadd.f32 1.0, %v8015_v48  ;;  %v8017_v15 = vpop.eup %8016 }
0x294c   :  { %v5254_v62 = vadd.f32 1.0, %v8017_v15 }
0x294d   :  { %8018 = vrcp.f32 %v5247_v19 }
0x294e   :  { %8020 = vrcp.f32 %v5254_v62 }
0x2957   :  { %v8019_v42 = vpop.eup %8018 }
0x2958   :  { %v5257_v33 = vmul.f32 %v8019_v42, %v5238_v12  ;;  %v8021_v32 = vpop.eup %8020 }
0x2959   :  { %v5260_v63 = vsub.f32 1.0, %v8021_v32  ;;  %v5262_v21 = vmul.f32 %v8021_v32, %v10811_v14 }
0x295a   :  { %v5258_v35 = vadd.f32 %v5257_v33, %v5157_v34 }
0x295c   :  { %8022 = vtanh.f32 %v5258_v35 }
0x2966   :  { %v8023_v37 = vpop.eup %8022 }
0x2967   :  { %v5261_v36 = vmul.f32 %v8023_v37, %v5260_v63 }
0x2969   :  { %v11087_v16 = vadd.f32 %v5262_v21, %v5261_v36  ;;  %v11805_v36 = vld [vmem:[#allocation28_spill] sm:$0xff] }
0x296b   :  { %v11091_v55 = vpack.c.bf16 %v11087_v16, %v11087_v16 }
0x296d   :  { %7457 = vmatmul.mubr.bf16.vlgmr.msra.gmra.mrb[116].mxu0 %v11091_v55  ;;  %7477 = vmatmul.mubr.bf16.vlgmr.msra.gmra.mrb[144].mxu1 %v11091_v55 }
0x296e   :  { %7481 = vmatpush3.msk.msra.mxu0 %vm1725_vm7, %v9597_v4  ;;  %7482 = vmatprep.mubr.msk.f32.mxu0 %vm8534_vm0, %v11544_v53 }
0x296f   :  { %7485 = vmatprep.subr.bf16.mxu0 %v11544_v53  ;;  %5484 = vmatpush1.bf16.msra.mxu1 %v10824_v24 }
0x2970   :  { %5485 = vmatprep.subr.bf16.mxu1 %v10827_v7  ;;  %5515 = vmatprep.mubr.bf16.mxu1 %v11545_v54 }
0x2973   :  { %5486 = vmatpush1.bf16.msra.mxu1 %v10831_v56 }
0x2974   :  { %5487 = vmatprep.subr.bf16.mxu1 %v10834_v6  ;;  %v11121_v6 = vld [vmem:[%s11326_s17] sm:$0x1]  ;;  %s8535_s17 = smov [#allocation20]  }
0x2975   :  { %v11146_v21 = vadd.f32 %v11805_v36, %v11121_v6  ;;  %v11827_v36 = vld [vmem:[#allocation51_spill] sm:$0xff]  ;;  %s5754_s27 = sshll.u32 %s8535_s17, 4  ;;  %s5755_s27 = int_to_ptr.vmem [resolvable:$true] %s5754_s27 }
0x2976   :  { %s8482_s10 = scalar_lea.vmem %s5755_s27, 128  ;;  %p8487_p11 = scmp.lt.s32.totalorder %s5755_s27, %s5755_s27 }
0x2977   :  { %5488 = vmatpush1.bf16.msra.mxu1 %v10837_v28  ;;  %p8483_p10 = scmp.ne.s32.totalorder %s5755_s27, %s8482_s10  ;;  %p8488_p12 = scmp.lt.s32.totalorder %s8482_s10, %s8482_s10 }
0x2978   :  { %5489 = vmatprep.subr.bf16.mxu1 %v10840_v31 }
0x2979   :  { %p8489_p13 = por %p8488_p12, %p8487_p11 }
0x297b   :  { %5490 = vmatpush1.bf16.msra.mxu1 %v10843_v57  ;;  %v11803_v57 = vld [vmem:[#allocation35_spill] sm:$0xff]  ;;  %p8490_p0 = pnand %p8489_p13, %p8483_p10 }
0x297c   :  { %5491 = vmatprep.subr.bf16.mxu1 %v10846_v9  ;;  %v3290_v9 = vadd.f32 %v11803_v57, %v11121_v6  ;;  %v3697_v57 = vsel %vm1713_vm1, %v11146_v21, -inf }
0x297f   :  { %5492 = vmatpush1.bf16.msra.mxu1 %v10849_v20 }
0x2980   :  { %5493 = vmatprep.subr.bf16.mxu1 %v10852_v29 }
0x2983   :  { %5494 = vmatpush1.bf16.msra.mxu1 %v10855_v40 }
0x2984   :  { %5495 = vmatprep.subr.bf16.mxu1 %v10858_v44  ;;  %v11804_v44 = vld [vmem:[#allocation34_spill] sm:$0xff] }
0x2987   :  { %5496 = vmatpush1.bf16.msra.mxu1 %v10861_v18  ;;  %v3295_v18 = vsel %vm1713_vm1, %v3290_v9, -inf }
0x2988   :  { %5497 = vmatprep.subr.bf16.mxu1 %v10864_v5  ;;  %v4496_v5 = vadd.f32 %v10673_v1, %v11121_v6 }
0x298a   :  { %v4501_v12 = vsel %vm1713_vm1, %v4496_v5, -inf }
0x298b   :  { %5498 = vmatpush1.bf16.msra.mxu1 %v10867_v51 }
0x298c   :  { %5564 = vmatprep.subr.bf16.mxu1 %v10870_v10 }
0x2a40   :  { %v5299_v4 = vpop.f32.mrb[116].mxu0  ;;  %v5351_v14 = vpop.f32.mrb[144].mxu1 }
0x2a41   :  { %v5357_v24 = vadd.f32 %v5351_v14, %v9606_v58  ;;  %v7458_v7 = vpop.f32.mrb[117].mxu0  ;;  %v7478_v56 = vpop.f32.mrb[145].mxu1  ;;  %v2888_v58 = vadd.f32 %v11804_v44, %v11121_v6  ;;  %v5300_v10 = vadd.f32 %v5299_v4, %v11121_v6 }
0x2a42   :  { %v5302_v28 = vpop.f32.mrb[118].mxu0  ;;  %v5354_v31 = vpop.f32.mrb[146].mxu1 }
0x2a43   :  { %v7459_v20 = vpop.f32.mrb[119].mxu0  ;;  %v7479_v29 = vpop.f32.mrb[147].mxu1  ;;  %v5358_v40 = vsel %vm1713_vm1, %v5357_v24, -inf  ;;  %v2893_v51 = vsel %vm1713_vm1, %v2888_v58, -inf  ;;  %v5305_v43 = vsel %vm1713_vm1, %v5300_v10, -inf  ;;  %v11806_v28 = vld [vmem:[#allocation67_spill] sm:$0xff] }
0x2a44   :  { %5359 = vmax.xlane.f32.xlu0 %v5358_v40  ;;  %v11154_v31 = vadd.f32 %v11806_v28, %v11121_v6  ;;  %v11161_v29 = vadd.f32 %v10873_v11, %v11121_v6  ;;  %v11833_v28 = vld [vmem:[#allocation57_spill] sm:$0xff] }
0x2a46   :  { %v4099_v40 = vsel %vm1713_vm1, %v11154_v31, -inf }
0x2a48   :  { %3296 = vmax.xlane.f32.xlu0 %v3295_v18  ;;  %v4903_v18 = vsel %vm1713_vm1, %v11161_v29, -inf }
0x2a4c   :  { %2894 = vmax.xlane.f32.xlu0 %v2893_v51 }
0x2a50   :  { %4502 = vmax.xlane.f32.xlu0 %v4501_v12 }
0x2a54   :  { %5306 = vmax.xlane.f32.xlu0 %v5305_v43 }
0x2ad1   :  { %v5360_v25 = vpop.xlane.xlu0 %5359 }
0x2ad2   :  { %v5361_v48 = vsub.f32 %v5357_v24, %v5360_v25  ;;  %v11817_v25 = vld [vmem:[#allocation41_spill] sm:$0xff] }
0x2ad4   :  { %v5362_v19 = vmul.f32 1.442695, %v5361_v48  ;;  %v11818_v48 = vld [vmem:[#allocation42_spill] sm:$0xff] }
0x2ad5   :  { %v3297_v15 = vpop.xlane.xlu0 %3296 }
0x2ad6   :  { %8024 = vpow2.f32 %v5362_v19  ;;  %v11135_v62 = vsub.f32 %v3290_v9, %v3297_v15  ;;  %v11819_v19 = vld [vmem:[#allocation43_spill] sm:$0xff]  ;;  %v11820_v15 = vld [vmem:[#allocation44_spill] sm:$0xff] }
0x2ad8   :  { %v3299_v1 = vmul.f32 1.442695, %v11135_v62 }
0x2ad9   :  { %v2895_v42 = vpop.xlane.xlu0 %2894 }
0x2ada   :  { %8026 = vpow2.f32 %v3299_v1  ;;  %v11138_v34 = vsub.f32 %v2888_v58, %v2895_v42  ;;  %v11821_v1 = vld [vmem:[#allocation45_spill] sm:$0xff]  ;;  %v11822_v42 = vld [vmem:[#allocation46_spill] sm:$0xff] }
0x2adc   :  { %v2897_v33 = vmul.f32 1.442695, %v11138_v34 }
0x2add   :  { %v4503_v35 = vpop.xlane.xlu0 %4502 }
0x2ade   :  { %8028 = vpow2.f32 %v2897_v33  ;;  %v11141_v32 = vsub.f32 %v4496_v5, %v4503_v35  ;;  %v11823_v33 = vld [vmem:[#allocation47_spill] sm:$0xff]  ;;  %v11824_v35 = vld [vmem:[#allocation48_spill] sm:$0xff] }
0x2ae0   :  { %v8025_v63 = vpop.eup %8024  ;;  %v4505_v37 = vmul.f32 1.442695, %v11141_v32 }
0x2ae1   :  { %v5307_v4 = vpop.xlane.xlu0 %5306  ;;  %v5364_v14 = vsel %vm1713_vm1, %v8025_v63, 0.0 }
0x2ae2   :  { %8030 = vpow2.f32 %v4505_v37  ;;  %v11149_v24 = vsub.f32 %v5300_v10, %v5307_v4  ;;  %5365 = vadd.xlane.f32.xlu1 %v5364_v14  ;;  %v11826_v37 = vld [vmem:[#allocation50_spill] sm:$0xff]  ;;  %v11828_v4 = vld [vmem:[#allocation52_spill] sm:$0xff]  ;;  %v11829_v14 = vld [vmem:[#allocation53_spill] sm:$0xff] }
0x2ae4   :  { %v8027_v7 = vpop.eup %8026  ;;  %v5309_v56 = vmul.f32 1.442695, %v11149_v24 }
0x2ae5   :  { %v3301_v9 = vsel %vm1713_vm1, %v8027_v7, 0.0  ;;  %v11830_v7 = vld [vmem:[#allocation54_spill] sm:$0xff] }
0x2ae6   :  { %8032 = vpow2.f32 %v5309_v56  ;;  %3698 = vmax.xlane.f32.xlu1 %v3697_v57  ;;  %3302 = vadd.xlane.f32.xlu0 %v3301_v9  ;;  %v11831_v56 = vld [vmem:[#allocation55_spill] sm:$0xff]  ;;  %v11834_v57 = vld [vmem:[#allocation58_spill] sm:$0xff] }
0x2ae7   :  { %v11835_v9 = vld [vmem:[#allocation59_spill] sm:$0xff] }
0x2ae8   :  { %v8029_v20 = vpop.eup %8028 }
0x2ae9   :  { %v2899_v44 = vsel %vm1713_vm1, %v8029_v20, 0.0 }
0x2aea   :  { %4100 = vmax.xlane.f32.xlu1 %v4099_v40  ;;  %2900 = vadd.xlane.f32.xlu0 %v2899_v44 }
0x2aec   :  { %v8031_v58 = vpop.eup %8030 }
0x2aed   :  { %v4507_v5 = vsel %vm1713_vm1, %v8031_v58, 0.0 }
0x2aee   :  { %4904 = vmax.xlane.f32.xlu1 %v4903_v18  ;;  %4508 = vadd.xlane.f32.xlu0 %v4507_v5 }
0x2af0   :  { %v8033_v51 = vpop.eup %8032 }
0x2af1   :  { %v5311_v10 = vsel %vm1713_vm1, %v8033_v51, 0.0 }
0x2af2   :  { %5312 = vadd.xlane.f32.xlu0 %v5311_v10 }
0x2b6f   :  { %v5366_v11 = vpop.xlane.xlu1 %5365 }
0x2b70   :  { %8034 = vrcp.f32 %v5366_v11 }
0x2b7a   :  { %v8035_v12 = vpop.eup %8034 }
0x2b7b   :  { %v5368_v43 = vmul.f32 %v8035_v12, %v8025_v63  ;;  %v11825_v63 = vld [vmem:[#allocation49_spill] sm:$0xff] }
0x2b7d   :  { %7483 = vmatmul.mubr.f32.vlgmr.msra.gmra.mrb[94].mxu0 %v5368_v43 }
0x2b7e   :  { %7486 = vmatpush3.bf16.msra.mxu0 %v10878_v38  ;;  %7501 = vmatprep.mubr.msk.bf16.mxu0 %vm8534_vm0, %v11544_v53 }
0x2b7f   :  { %7487 = vmatprep.subr.bf16.mxu0 %v11544_v53 }
0x2b82   :  { %7488 = vmatpush3.bf16.msra.mxu0 %v10884_v52 }
0x2b83   :  { %7489 = vmatprep.subr.bf16.mxu0 %v11544_v53 }
0x2b86   :  { %7490 = vmatpush3.bf16.msra.mxu0 %v10888_v60 }
0x2b87   :  { %7491 = vmatprep.subr.bf16.mxu0 %v11544_v53 }
0x2b8a   :  { %7492 = vmatpush3.bf16.msra.mxu0 %v10892_v0 }
0x2b8b   :  { %7493 = vmatprep.subr.bf16.mxu0 %v11544_v53 }
0x2b8e   :  { %7494 = vmatpush3.bf16.msra.mxu0 %v10896_v13 }
0x2b8f   :  { %7495 = vmatprep.subr.bf16.mxu0 %v11544_v53 }
0x2b92   :  { %7496 = vmatpush3.bf16.msra.mxu0 %v10900_v39 }
0x2b93   :  { %7497 = vmatprep.subr.bf16.mxu0 %v11544_v53 }
0x2b96   :  { %7498 = vmatpush3.bf16.msra.mxu0 %v10904_v3 }
0x2b97   :  { %7499 = vmatprep.subr.bf16.mxu0 %v11544_v53 }
0x2b9a   :  { %7500 = vmatpush3.bf16.msra.mxu0 %v10908_v50 }
0x2b9b   :  { %7505 = vmatprep.subr.bf16.mxu0 %v11544_v53 }
0x2c50   :  { %v5435_v38 = vpop.f32.mrb[94].mxu0 }
0x2c51   :  { %v5439_v52 = vpack.c.bf16 %v5435_v38, %v5435_v38  ;;  %v7484_v60 = vpop.f32.mrb[95].mxu0 }
0x2c53   :  { %7502 = vmatmul.mubr.bf16.vlgmr.msra.gmra.mrb[120].mxu0 %v5439_v52 }
0x2c54   :  { %7506 = vmatpush3.bf16.msra.mxu0 %v10912_v45  ;;  %7521 = vmatprep.mubr.msk.bf16.mxu0 %vm8534_vm0, %v11544_v53 }
0x2c55   :  { %7507 = vmatprep.subr.bf16.mxu0 %v11544_v53 }
0x2c58   :  { %7508 = vmatpush3.bf16.msra.mxu0 %v10918_v8 }
0x2c59   :  { %7509 = vmatprep.subr.bf16.mxu0 %v11544_v53 }
0x2c5c   :  { %7510 = vmatpush3.bf16.msra.mxu0 %v10922_v22  ;;  %v11807_v22 = vld [vmem:[#allocation36_spill] sm:$0xff] }
0x2c5d   :  { %7511 = vmatprep.subr.bf16.mxu0 %v11544_v53 }
0x2c60   :  { %7512 = vmatpush3.bf16.msra.mxu0 %v10926_v61  ;;  %v11809_v61 = vld [vmem:[#allocation32_spill] sm:$0xff] }
0x2c61   :  { %7513 = vmatprep.subr.bf16.mxu0 %v11544_v53 }
0x2c64   :  { %7514 = vmatpush3.bf16.msra.mxu0 %v10930_v59  ;;  %v11810_v59 = vld [vmem:[#allocation30_spill] sm:$0xff] }
0x2c65   :  { %7515 = vmatprep.subr.bf16.mxu0 %v11544_v53 }
0x2c68   :  { %7516 = vmatpush3.bf16.msra.mxu0 %v10934_v30  ;;  %v11811_v30 = vld [vmem:[#allocation31_spill] sm:$0xff] }
0x2c69   :  { %7517 = vmatprep.subr.bf16.mxu0 %v11544_v53 }
0x2c6c   :  { %7518 = vmatpush3.bf16.msra.mxu0 %v10938_v27  ;;  %v11812_v27 = vld [vmem:[#allocation33_spill] sm:$0xff] }
0x2c6d   :  { %7519 = vmatprep.subr.bf16.mxu0 %v11544_v53 }
0x2c70   :  { %7520 = vmatpush3.bf16.msra.mxu0 %v10942_v26  ;;  %v11813_v26 = vld [vmem:[#allocation38_spill] sm:$0xff] }
0x2c71   :  { %7525 = vmatprep.subr.bf16.mxu0 %v11544_v53 }
0x2d26   :  { %v5474_v0 = vpop.f32.mrb[120].mxu0 }
0x2d27   :  { %v5480_v13 = vadd.f32 %v5474_v0, %v9736_v46  ;;  %v7503_v39 = vpop.f32.mrb[121].mxu0  ;;  %v11808_v46 = vld [vmem:[#allocation29_spill] sm:$0xff] }
0x2d28   :  { %v5477_v3 = vpop.f32.mrb[122].mxu0 }
0x2d29   :  { %v5481_v50 = vmax.f32 %v5480_v13, 0.0  ;;  %v7504_v45 = vpop.f32.mrb[123].mxu0 }
0x2d2b   :  { %v5482_v8 = vpack.c.bf16 %v5481_v50, %v5481_v50 }
0x2d2d   :  { %5516 = vmatmul.mubr.bf16.vlgmr.msra.gmra.mrb[148].mxu1 %v5482_v8  ;;  %7522 = vmatmul.mubr.bf16.vlgmr.msra.gmra.mrb[124].mxu0 %v5482_v8 }
0x2d2e   :  { %5565 = vmatpush1.bf16.msra.mxu1 %v10947_v41  ;;  %7526 = vmatpush3.bf16.msra.mxu0 %v10950_v17  ;;  %v11815_v41 = vld [vmem:[#allocation40_spill] sm:$0xff]  ;;  %v11816_v17 = vld [vmem:[#allocation37_spill] sm:$0xff] }
0x2d2f   :  { %5566 = vmatprep.subr.bf16.mxu1 %v11807_v22  ;;  %7527 = vmatprep.subr.bf16.mxu0 %v11544_v53 }
0x2d30   :  { %5596 = vmatprep.mubr.bf16.mxu1 %v11545_v54  ;;  %7541 = vmatprep.mubr.msk.bf16.mxu0 %vm8534_vm0, %v11544_v53  ;;  %v11814_v54 = vld [vmem:[#allocation39_spill] sm:$0xff] }
0x2d32   :  { %5567 = vmatpush1.bf16.msra.mxu1 %v11808_v46  ;;  %7528 = vmatpush3.bf16.msra.mxu0 %v11809_v61 }
0x2d33   :  { %5568 = vmatprep.subr.bf16.mxu1 %v11810_v59  ;;  %7529 = vmatprep.subr.bf16.mxu0 %v11544_v53 }
0x2d36   :  { %5569 = vmatpush1.bf16.msra.mxu1 %v11811_v30  ;;  %7530 = vmatpush3.bf16.msra.mxu0 %v11812_v27 }
0x2d37   :  { %5570 = vmatprep.subr.bf16.mxu1 %v11813_v26  ;;  %7531 = vmatprep.subr.bf16.mxu0 %v11544_v53 }
0x2d3a   :  { %5571 = vmatpush1.bf16.msra.mxu1 %v11814_v54  ;;  %7532 = vmatpush3.bf16.msra.mxu0 %v11815_v41  ;;  %v3699_v41 = vpop.xlane.xlu1 %3698 }
0x2d3b   :  { %5572 = vmatprep.subr.bf16.mxu1 %v11816_v17  ;;  %7533 = vmatprep.subr.bf16.mxu0 %v11544_v53 }
0x2d3e   :  { %5573 = vmatpush1.bf16.msra.mxu1 %v11817_v25  ;;  %7534 = vmatpush3.bf16.msra.mxu0 %v11818_v48  ;;  %v4101_v17 = vpop.xlane.xlu1 %4100 }
0x2d3f   :  { %5574 = vmatprep.subr.bf16.mxu1 %v11819_v19  ;;  %7535 = vmatprep.subr.bf16.mxu0 %v11544_v53  ;;  %v11270_v25 = vsub.f32 %v11154_v31, %v4101_v17 }
0x2d41   :  { %v4103_v19 = vmul.f32 1.442695, %v11270_v25 }
0x2d42   :  { %5575 = vmatpush1.bf16.msra.mxu1 %v11820_v15  ;;  %7536 = vmatpush3.bf16.msra.mxu0 %v11821_v1  ;;  %v4905_v48 = vpop.xlane.xlu1 %4904 }
0x2d43   :  { %5576 = vmatprep.subr.bf16.mxu1 %v11822_v42  ;;  %7537 = vmatprep.subr.bf16.mxu0 %v11544_v53  ;;  %v11274_v15 = vsub.f32 %v11161_v29, %v4905_v48 }
0x2d46   :  { %5577 = vmatpush1.bf16.msra.mxu1 %v11823_v33  ;;  %7538 = vmatpush3.bf16.msra.mxu0 %v11824_v35 }
0x2d47   :  { %5578 = vmatprep.subr.bf16.mxu1 %v11825_v63  ;;  %7539 = vmatprep.subr.bf16.mxu0 %v11544_v53 }
0x2d4a   :  { %5579 = vmatpush1.bf16.msra.mxu1 %v11826_v37  ;;  %7540 = vmatpush3.bf16.msra.mxu0 %v11827_v36 }
0x2d4b   :  { %7545 = vmatprep.subr.bf16.mxu1 %v11544_v53 }
0x2d4d   :  { %5597 = vmatmul.mubr.bf16.vlgmr.msra.gmra.mrb[148].mxu1 %v11091_v55  ;;  %7542 = vmatmul.mubr.bf16.vlgmr.msra.gmra.mrb[128].mxu0 %v11091_v55  ;;  %v11832_v55 = vld [vmem:[#allocation56_spill] sm:$0xff] }
0x2d4e   :  { %7546 = vmatpush3.bf16.msra.mxu1 %v11828_v4  ;;  %7561 = vmatprep.mubr.msk.bf16.mxu1 %vm8534_vm0, %v11544_v53 }
0x2d4f   :  { %7547 = vmatprep.subr.bf16.mxu1 %v11544_v53 }
0x2d52   :  { %7548 = vmatpush3.bf16.msra.mxu1 %v11829_v14 }
0x2d53   :  { %7549 = vmatprep.subr.bf16.mxu1 %v11544_v53 }
0x2d56   :  { %7550 = vmatpush3.bf16.msra.mxu1 %v11830_v7 }
0x2d57   :  { %7551 = vmatprep.subr.bf16.mxu1 %v11544_v53 }
0x2d5a   :  { %7552 = vmatpush3.bf16.msra.mxu1 %v11831_v56 }
0x2d5b   :  { %7553 = vmatprep.subr.bf16.mxu1 %v11544_v53 }
0x2d5e   :  { %7554 = vmatpush3.bf16.msra.mxu1 %v11832_v55 }
0x2d5f   :  { %7555 = vmatprep.subr.bf16.mxu1 %v11544_v53 }
0x2d62   :  { %7556 = vmatpush3.bf16.msra.mxu1 %v11833_v28 }
0x2d63   :  { %7557 = vmatprep.subr.bf16.mxu1 %v11544_v53 }
0x2d66   :  { %7558 = vmatpush3.bf16.msra.mxu1 %v11834_v57  ;;  %v3303_v57 = vpop.xlane.xlu0 %3302 }
0x2d67   :  { %7559 = vmatprep.subr.bf16.mxu1 %v11544_v53 }
0x2d6a   :  { %7560 = vmatpush3.bf16.msra.mxu1 %v11835_v9 }
0x2e00   :  { %v5558_v20 = vpop.f32.mrb[124].mxu0 }
0x2e01   :  { %v7523_v40 = vpop.f32.mrb[125].mxu0  ;;  %v5559_v8 = vadd.f32 %v5558_v20, %v9894_v47  ;;  %v2901_v20 = vpop.xlane.xlu0 %2900 }
0x2e02   :  { %v5561_v44 = vpop.f32.mrb[126].mxu0 }
0x2e03   :  { %v7524_v58 = vpop.f32.mrb[127].mxu0 }
0x2e05   :  { %v4509_v44 = vpop.xlane.xlu0 %4508 }
0x2e20   :  { %v5598_v18 = vpop.f32.mrb[148].mxu1  ;;  %v5639_v5 = vpop.f32.mrb[128].mxu0 }
0x2e21   :  { %v7618_v51 = vadd.f32 %v9884_v23, %v5598_v18  ;;  %v5600_v10 = vpop.f32.mrb[149].mxu1  ;;  %v7543_v11 = vpop.f32.mrb[129].mxu0  ;;  %v5640_v45 = vadd.f32 %v5639_v5, %v9891_v2  ;;  %v11266_v2 = vsub.f32 %v11146_v21, %v3699_v41 }
0x2e22   :  { %v5602_v12 = vpop.f32.mrb[150].mxu1  ;;  %v5642_v43 = vpop.f32.mrb[130].mxu0  ;;  %v7620_v0 = vadd.f32 %v9886_v49, %v5600_v10 }
0x2e23   :  { %v5933_v38 = vmul.f32 -1.442695, %v7618_v51  ;;  %v5603_v52 = vpop.f32.mrb[151].mxu1  ;;  %v7544_v60 = vpop.f32.mrb[131].mxu0  ;;  %v3701_v47 = vmul.f32 1.442695, %v11266_v2 }
0x2e24   :  { %v5934_v53 = vmul.f32 -1.442695, %v7620_v0  ;;  %v5313_v18 = vpop.xlane.xlu0 %5312 }
0x2e25   :  { %8036 = vpow2.f32 %v5933_v38 }
0x2e26   :  { %8038 = vpow2.f32 %v5934_v53 }
0x2e2f   :  { %v8037_v13 = vpop.eup %8036 }
0x2e30   :  { %v5649_v39 = vadd.f32 1.0, %v8037_v13  ;;  %v8039_v3 = vpop.eup %8038 }
0x2e31   :  { %v5656_v50 = vadd.f32 1.0, %v8039_v3 }
0x2e32   :  { %8040 = vrcp.f32 %v5649_v39 }
0x2e33   :  { %8042 = vrcp.f32 %v5656_v50 }
0x2e3c   :  { %v8041_v23 = vpop.eup %8040 }
0x2e3d   :  { %v5659_v22 = vmul.f32 %v8041_v23, %v5640_v45  ;;  %v8043_v61 = vpop.eup %8042 }
0x2e3e   :  { %v5662_v59 = vsub.f32 1.0, %v8043_v61  ;;  %v5664_v27 = vmul.f32 %v8043_v61, %v11087_v16  ;;  %v4907_v16 = vmul.f32 1.442695, %v11274_v15 }
0x2e3f   :  { %v5660_v46 = vadd.f32 %v5659_v22, %v5559_v8 }
0x2e41   :  { %8044 = vtanh.f32 %v5660_v46 }
0x2e42   :  { %8046 = vpow2.f32 %v3701_v47 }
0x2e43   :  { %8048 = vpow2.f32 %v4103_v19 }
0x2e44   :  { %8050 = vpow2.f32 %v4907_v16 }
0x2e4b   :  { %v8045_v49 = vpop.eup %8044 }
0x2e4c   :  { %v5663_v30 = vmul.f32 %v8045_v49, %v5662_v59  ;;  %v8047_v63 = vpop.eup %8046 }
0x2e4d   :  { %v3703_v37 = vsel %vm1713_vm1, %v8047_v63, 0.0  ;;  %v8049_v36 = vpop.eup %8048 }
0x2e4e   :  { %v5665_v26 = vadd.f32 %v5664_v27, %v5663_v30  ;;  %v4105_v29 = vsel %vm1713_vm1, %v8049_v36, 0.0  ;;  %v8051_v4 = vpop.eup %8050 }
0x2e4f   :  { %v4909_v14 = vsel %vm1713_vm1, %v8051_v4, 0.0 }
0x2e50   :  { %v5666_v54 = vpack.c.bf16 %v5665_v26, %v5665_v26 }
0x2e52   :  { %7562 = vmatmul.mubr.bf16.vlgmr.msra.gmra.mrb[152].mxu1 %v5666_v54 }
0x2f25   :  { %v5701_v1 = vpop.f32.mrb[152].mxu1 }
0x2f26   :  { %v5702_v42 = vadd.f32 %v5701_v1, %v11121_v6  ;;  %v7563_v21 = vpop.f32.mrb[153].mxu1 }
0x2f27   :  { %v5704_v33 = vpop.f32.mrb[154].mxu1 }
0x2f28   :  { %v7564_v35 = vpop.f32.mrb[155].mxu1  ;;  %v5707_v31 = vsel %vm1713_vm1, %v5702_v42, -inf }
0x2f29   :  { %5708 = vmax.xlane.f32.xlu1 %v5707_v31 }
0x2f2d   :  { %3704 = vadd.xlane.f32.xlu1 %v3703_v37 }
0x2f31   :  { %4106 = vadd.xlane.f32.xlu1 %v4105_v29 }
0x2f35   :  { %4910 = vadd.xlane.f32.xlu1 %v4909_v14 }
0x2fb6   :  { %v5709_v6 = vpop.xlane.xlu1 %5708 }
0x2fb7   :  { %v5710_v7 = vsub.f32 %v5702_v42, %v5709_v6 }
0x2fb9   :  { %v5711_v56 = vmul.f32 1.442695, %v5710_v7 }
0x2fba   :  { %v3705_v9 = vpop.xlane.xlu1 %3704 }
0x2fbb   :  { %8052 = vpow2.f32 %v5711_v56 }
0x2fbc   :  { %8054 = vlog2.f32 %v3303_v57 }
0x2fbd   :  { %8056 = vlog2.f32 %v3705_v9 }
0x2fbe   :  { %v4107_v40 = vpop.xlane.xlu1 %4106 }
0x2fbf   :  { %8058 = vlog2.f32 %v4107_v40 }
0x2fc0   :  { %8060 = vlog2.f32 %v2901_v20 }
0x2fc2   :  { %v4911_v58 = vpop.xlane.xlu1 %4910 }
0x2fc3   :  { %8062 = vlog2.f32 %v4911_v58 }
0x2fc4   :  { %8064 = vlog2.f32 %v4509_v44 }
0x2fc5   :  { %v8053_v55 = vpop.eup %8052  ;;  %8066 = vlog2.f32 %v5313_v18 }
0x2fc6   :  { %v5713_v28 = vsel %vm1713_vm1, %v8053_v55, 0.0  ;;  %v8055_v5 = vpop.eup %8054 }
0x2fc7   :  { %5714 = vadd.xlane.f32.xlu1 %v5713_v28  ;;  %v8057_v51 = vpop.eup %8056  ;;  %v3305_v43 = vmul.f32 0.6931472, %v8055_v5 }
0x2fc8   :  { %v3707_v12 = vmul.f32 0.6931472, %v8057_v51 }
0x2fc9   :  { %v8059_v10 = vpop.eup %8058  ;;  %v3306_v39 = vsub.f32 %v11135_v62, %v3305_v43 }
0x2fca   :  { %v8061_v11 = vpop.eup %8060  ;;  %v4109_v38 = vmul.f32 0.6931472, %v8059_v10  ;;  %v3708_v13 = vsub.f32 %v11266_v2, %v3707_v12 }
0x2fcb   :  { %v2903_v0 = vmul.f32 0.6931472, %v8061_v11  ;;  %v5720_v46 = vrot.slane %v3306_v39, 7 }
0x2fcc   :  { %v4110_v3 = vsub.f32 %v11270_v25, %v4109_v38  ;;  %v5723_v22 = vrot.slane %v3708_v13, 6 }
0x2fcd   :  { %v8063_v52 = vpop.eup %8062  ;;  %v2904_v8 = vsub.f32 %v11138_v34, %v2903_v0 }
0x2fce   :  { %v8065_v60 = vpop.eup %8064  ;;  %v4913_v50 = vmul.f32 0.6931472, %v8063_v52  ;;  %v5726_v61 = vrot.slane %v4110_v3, 5 }
0x2fcf   :  { %v4511_v45 = vmul.f32 0.6931472, %v8065_v60  ;;  %v8067_v23 = vpop.eup %8066  ;;  %v5740_v27 = vsel %vm1713_vm1, %v2904_v8, %v5720_v46 }
0x2fd0   :  { %v4914_v59 = vsub.f32 %v11274_v15, %v4913_v50  ;;  %v5315_v30 = vmul.f32 0.6931472, %v8067_v23  ;;  %v5741_v26 = vsel %vm1715_vm2, %v5740_v27, %v5723_v22 }
0x2fd1   :  { %v4512_v49 = vsub.f32 %v11141_v32, %v4511_v45  ;;  %v5742_v62 = vsel %vm1717_vm3, %v5741_v26, %v5726_v61 }
0x2fd2   :  { %v5732_v54 = vrot.slane %v4914_v59, 3  ;;  %v5316_v2 = vsub.f32 %v11149_v24, %v5315_v30 }
0x2fd3   :  { %v5729_v17 = vrot.slane %v4512_v49, 4 }
0x2fd4   :  { %v5735_v32 = vrot.slane %v5316_v2, 2 }
0x2fd5   :  { %v5743_v47 = vsel %vm1719_vm4, %v5742_v62, %v5729_v17 }
0x2fd6   :  { %v5744_v48 = vsel %vm1721_vm5, %v5743_v47, %v5732_v54 }
0x2fd7   :  { %v5745_v15 = vsel %vm1723_vm6, %v5744_v48, %v5735_v32 }
0x3054   :  { %v5715_v53 = vpop.xlane.xlu1 %5714 }
0x3055   :  { %8068 = vlog2.f32 %v5715_v53 }
0x305f   :  { %v8069_v41 = vpop.eup %8068 }
0x3060   :  { %v5717_v34 = vmul.f32 0.6931472, %v8069_v41 }
0x3062   :  { %v5718_v25 = vsub.f32 %v5710_v7, %v5717_v34 }
0x3064   :  { %v5738_v19 = vrot.slane %v5718_v25, 1 }
0x3066   :  { %v5746_v16 = vsel %vm1725_vm7, %v5745_v15, %v5738_v19 }
0x3067   :  { %5747 = vst [vmem:[#allocation20] sm:$0xff] %v5746_v16 }
0x3068   :  { %8493 = shalt.err (!%p8490_p0)
}
0x3069   :  { %s11836_s28 = sld [smem:[#allocation71_spill]] }
0x306f   :  { %s8494_s7 = scalar_lea.hbm %s11836_s28, 128 }
0x3070   :  { %p8495_p1 = scmp.ne.s32.totalorder %s11836_s28, %s8494_s7  ;;  %p8498_p2 = scmp.lt.u32.totalorder %s8494_s7, %s11836_s28 }
0x3072   :  { %p8500_p3 = pnand %p8498_p2, %p8495_p1 }
0x3074   :  { %8503 = shalt.err (!%p8500_p3)
}
0x3075   :  { %5757 = dma.vmem_to_hbm [thread:$0]  %s5755_s27, 128, %s11836_s28, [#allocation5]  }
0x3076   :  { %8516 = dma.done.wait [#allocation5], 128  }
0x3077   :  { %8517 = vsyncadd [#allocation5], 4294967168 }
0x3078   :  { %5761 = vsyncpa [#allocation4], 1 }
0x3079   :  { %5762 = vsyncpa [#allocation7], 1 }
0x307a   :  { %5763 = vsyncpa [#allocation10], 1 }
0x307b   :  { %5764 = vsyncpa [#allocation13], 1 }
0x307c   :  { %5765 = vsyncpa [#allocation16], 1 }
0x307d   :  { %5766 = vsyncpa [#allocation19], 1 }
0x307e   :  { %5767 = vsyncpa [#allocation5], 1 }

</bundles_post_ra>
